<compile_context>
chip_gen: v7x
topology: tpu7x:2x2x1
jax: 0.10.0
libtpu: 0.0.40
codegen_flags: <defaults>
</compile_context>

<pallas_src>
import functools

import jax
import jax.numpy as jnp
import numpy as np
from jax.experimental import pallas as pl
from jax.experimental.pallas import tpu as pltpu

_F32 = jnp.float32
_BF16 = jnp.bfloat16


def _round_up(x, m):
  return (x + m - 1) // m * m


def _default_tile_n(n):
  """Point-tile size: 1024 everywhere (working set is only a few MiB)."""
  if n >= 1024:
    return 1024
  return max(128, _round_up(n, 128))


def _layer1(x, w1, b1):
  # K=3 contraction: three VPU broadcast-FMAs instead of an MXU dot (avoids a
  # lane-3 MXU operand layout; VALU slots have plenty of slack here).
  t = x[:, 0:1] * w1[0:1, :] + x[:, 1:2] * w1[1:2, :] + x[:, 2:3] * w1[2:3, :]
  return jnp.maximum(t + b1, 0.0)


def _bdot(a_f32, w_ref):
  # bf16 MXU operands, f32 accumulation.
  return jnp.dot(a_f32.astype(_BF16), w_ref[...], preferred_element_type=_F32)


# ----------------------------- pass A kernel -------------------------------
def _pass_a_kernel(x_ref, w1, b1, w2, b2, w3, b3, g_ref,
                   *, tile_n, tiles_per_split, n_actual, mask_tail):
  s = pl.program_id(1)   # reduction-split index (parallel across TCs)
  n = pl.program_id(2)   # tile index within the split (arbitrary / reduced)

  @pl.when(n == 0)
  def _():
    g_ref[...] = jnp.zeros_like(g_ref)   # post-ReLU max is always >= 0

  x = x_ref[...]                                       # (tile_n, 3) f32
  t = _layer1(x, w1[...], b1[...])                     # (tile_n, 64)
  h = jnp.maximum(_bdot(t, w2) + b2[...], 0.0)         # (tile_n, 128)
  h = jnp.maximum(_bdot(h, w3) + b3[...], 0.0)         # (tile_n, 1024)

  if not mask_tail:
    g_ref[...] = jnp.maximum(g_ref[...], jnp.max(h, axis=0, keepdims=True))
  else:
    start = (s * tiles_per_split + n) * tile_n
    no_pad = start + tile_n <= n_actual

    @pl.when(no_pad)
    def _():   # hot path: no masking work at all
      g_ref[...] = jnp.maximum(g_ref[...], jnp.max(h, axis=0, keepdims=True))

    @pl.when(jnp.logical_not(no_pad))
    def _():   # only the tile(s) containing padded rows pay for the mask
      row = start + jax.lax.broadcasted_iota(jnp.int32, (tile_n, 1), 0)
      hm = jnp.where(row < n_actual, h, 0.0)   # (tile_n,1) mask, lane-broadcast
      g_ref[...] = jnp.maximum(g_ref[...], jnp.max(hm, axis=0, keepdims=True))


# ----------------------------- pass B kernel -------------------------------
def _pass_b_kernel(x_ref, gp_ref, w1, b1, w4g, b4, w4t, w5, b5, w6, b6,
                   w7t, b7, o_ref):
  x = x_ref[...]                                       # (tile_n, 3) f32
  t = _layer1(x, w1[...], b1[...])                     # (tile_n, 64)
  # Fold the global-feature bias in-kernel: max over splits, then g @ W4g + b4
  # (tiny: ~0.5M MAC per tile vs ~200M for the rest of the tile).
  g = jnp.max(gp_ref[...], axis=0)                     # (1, 1024)
  gb = _bdot(g, w4g) + b4[...]                         # (1, 512)
  # concat(t, g) @ W4 == t @ W4t + g @ W4g
  h = jnp.maximum(_bdot(t, w4t) + gb, 0.0)             # (tile_n, 512)
  h = jnp.maximum(_bdot(h, w5) + b5[...], 0.0)         # (tile_n, 256)
  h = jnp.maximum(_bdot(h, w6) + b6[...], 0.0)         # (tile_n, 128)
  # Lane-dense epilogue: transpose the 128-feature tile (clean XLU transpose,
  # hidden under the MXU-bound matmuls) so the final matmul emits
  # channels-first (k, tile_n) logits and the store is unmasked full vregs.
  ht = jnp.transpose(h).astype(_BF16)                  # (128, tile_n)
  logits = jnp.dot(w7t[...], ht, preferred_element_type=_F32) + b7[...]
  m = jnp.max(logits, axis=0, keepdims=True)           # (1, tile_n)
  lse = jnp.log(jnp.sum(jnp.exp(logits - m), axis=0, keepdims=True)) + m
  o_ref[...] = (logits - lse).astype(o_ref.dtype)      # (k, tile_n)


# ------------------------------- wrapper ------------------------------------
def _weight_spec(arr, grid_rank):
  nd = arr.ndim
  zeros = (0,) * nd
  if grid_rank == 2:
    return pl.BlockSpec(arr.shape, lambda b, n, _z=zeros: _z)
  return pl.BlockSpec(arr.shape, lambda b, s, n, _z=zeros: _z)


def _cost_estimate(flops, transcendentals, in_arrays, out_bytes):
  bytes_accessed = out_bytes + sum(int(a.size) * a.dtype.itemsize
                                   for a in in_arrays)
  return pl.CostEstimate(flops=int(flops),
                         transcendentals=int(transcendentals),
                         bytes_accessed=int(bytes_accessed))


def pointnet_seg_forward(x, params, tile_n=None):
  """x: (B, N, 3) float32 -> log-softmax scores (B, N, k)."""
  B, N, _ = x.shape
  k = params["w7t"].shape[0]
  if tile_n is None:
    tile_n = _default_tile_n(N)
  # Lane-dense channels-first output block needs tile_n to be a lane multiple.
  tile_n = max(128, _round_up(tile_n, 128))

  n_tiles_min = -(-N // tile_n)
  num_splits = 2 if n_tiles_min >= 2 else 1      # feed both v7x TensorCores
  n_pad = _round_up(N, num_splits * tile_n)
  n_tiles = n_pad // tile_n
  tiles_per_split = n_tiles // num_splits
  mask_tail = (n_pad != N)

  if n_pad != N:
    x = jnp.pad(x, ((0, 0), (0, n_pad - N), (0, 0)))

  # Default tile (<=1024) stays well under every chip's default scoped VMEM;
  # only raise the budget if a caller asks for a bigger tile (v5e default is
  # 16 MiB and a 2048-row pass-A intermediate alone is 8 MiB).
  vmem_limit = (48 << 20) if tile_n > 1024 else None

  # ---------- pass A: per-(batch, split) partial max feature ---------------
  wa = [params[name] for name in ("w1", "b1", "w2", "b2", "w3", "b3")]
  kernel_a = functools.partial(_pass_a_kernel, tile_n=tile_n,
                               tiles_per_split=tiles_per_split,
                               n_actual=N, mask_tail=mask_tail)
  g_partial = pl.pallas_call(
      kernel_a,
      out_shape=jax.ShapeDtypeStruct((B, num_splits, 1, 1024), _F32),
      grid_spec=pltpu.PrefetchScalarGridSpec(
          num_scalar_prefetch=0,
          grid=(B, num_splits, tiles_per_split),
          in_specs=[pl.BlockSpec(
                        (None, tile_n, 3),
                        lambda b, s, n, _t=tiles_per_split: (b, s * _t + n, 0))]
                   + [_weight_spec(w, 3) for w in wa],
          out_specs=pl.BlockSpec((None, None, 1, 1024),
                                 lambda b, s, n: (b, s, 0, 0)),
      ),
      compiler_params=pltpu.CompilerParams(
          dimension_semantics=("parallel", "parallel", "arbitrary"),
          vmem_limit_bytes=vmem_limit),
      cost_estimate=_cost_estimate(
          flops=2 * B * n_pad * (3 * 64 + 64 * 128 + 128 * 1024),
          transcendentals=0,
          in_arrays=[x] + wa,
          out_bytes=B * num_splits * 1024 * 4),
  )(x, *wa)

  # ---------- pass B: per-point segmentation head (channels-first out) -----
  wb = [params[name] for name in
        ("w1", "b1", "w4g", "b4", "w4t", "w5", "b5", "w6", "b6", "w7t", "b7")]
  out_cf = pl.pallas_call(
      _pass_b_kernel,
      out_shape=jax.ShapeDtypeStruct((B, k, n_pad), _F32),
      grid_spec=pltpu.PrefetchScalarGridSpec(
          num_scalar_prefetch=0,
          grid=(B, n_tiles),
          in_specs=[pl.BlockSpec((None, tile_n, 3), lambda b, n: (b, n, 0)),
                    pl.BlockSpec((None, num_splits, 1, 1024),
                                 lambda b, n: (b, 0, 0, 0))]
                   + [_weight_spec(w, 2) for w in wb],
          out_specs=pl.BlockSpec((None, k, tile_n), lambda b, n: (b, 0, n)),
      ),
      compiler_params=pltpu.CompilerParams(
          dimension_semantics=("parallel", "parallel"),
          vmem_limit_bytes=vmem_limit),
      cost_estimate=_cost_estimate(
          flops=2 * B * (n_pad * (3 * 64 + 64 * 512 + 512 * 256
                                  + 256 * 128 + 128 * k)
                         + n_tiles * 1024 * 512),
          transcendentals=B * n_pad * (k + 1),
          in_arrays=[x, g_partial] + wb,
          out_bytes=B * n_pad * k * 4),
  )(x, g_partial, *wb)

  # Back to the module's (B, n_pts, k) convention; padded columns sliced off.
  return jnp.transpose(out_cf[:, :, :N], (0, 2, 1))


# --------------------------- parameter helpers ------------------------------
def _fold_bn(w, b, gamma, beta, mean, var, eps=1e-5):
  """Fold eval-mode BatchNorm1d into a preceding 1x1 conv (w: (Cin,Cout))."""
  scale = gamma / jnp.sqrt(var + eps)
  w_eff = w * scale[None, :]
  b_eff = scale * (b - mean) + beta
  return w_eff.astype(_F32), b_eff[None, :].astype(_F32)


def make_params(key, k=2):
  """Deterministic synthetic parameters (shapes from PointNetSeg.__init__)."""
  dims = [(3, 64), (64, 128), (128, 1024), (1088, 512), (512, 256), (256, 128)]
  keys = jax.random.split(key, 32)
  ki = iter(range(32))
  folded = []
  for (cin, cout) in dims:
    w = 0.05 * jax.random.normal(keys[next(ki)], (cin, cout), _F32)
    b = 0.05 * jax.random.normal(keys[next(ki)], (cout,), _F32)
    gamma = 1.0 + 0.1 * jax.random.normal(keys[next(ki)], (cout,), _F32)
    beta = 0.1 * jax.random.normal(keys[next(ki)], (cout,), _F32)
    mean = 0.01 * jnp.arange(cout, dtype=_F32)
    var = jnp.ones((cout,), _F32) + 0.001 * jnp.arange(cout, dtype=_F32)
    folded.append(_fold_bn(w, b, gamma, beta, mean, var))

  params = {}
  # Layer 1 stays f32 (computed on the VPU); all biases stay f32.
  params["w1"], params["b1"] = folded[0]
  params["w2"] = folded[1][0].astype(_BF16); params["b2"] = folded[1][1]
  params["w3"] = folded[2][0].astype(_BF16); params["b3"] = folded[2][1]
  w4, b4 = folded[3]
  # torch.cat((t, x), 1): rows 0:64 -> t, rows 64:1088 -> broadcast global feat
  params["w4t"] = w4[:64, :].astype(_BF16)
  params["w4g"] = w4[64:, :].astype(_BF16)
  params["b4"] = b4
  params["w5"] = folded[4][0].astype(_BF16); params["b5"] = folded[4][1]
  params["w6"] = folded[5][0].astype(_BF16); params["b6"] = folded[5][1]
  kw = jax.random.split(key, 2)[1]
  w7 = 0.05 * jax.random.normal(kw, (128, k), _F32)
  params["w7t"] = jnp.transpose(w7).astype(_BF16)              # (k, 128)
  params["b7"] = (0.01 * jnp.arange(k, dtype=_F32))[:, None]   # (k, 1)
  return params


def pointnet_seg_reference(x, params):
  """Pure-JAX reference mirroring the same bf16-operand / f32-accum math."""
  relu = jax.nn.relu

  def bdot(a, w):
    return jnp.dot(a.astype(_BF16), w, preferred_element_type=_F32)

  t = relu(x @ params["w1"] + params["b1"])
  h = relu(bdot(t, params["w2"]) + params["b2"])
  h = relu(bdot(h, params["w3"]) + params["b3"])
  g = jnp.max(h, axis=1, keepdims=True)                       # (B, 1, 1024)
  gbias = jnp.einsum("boh,hc->boc", g.astype(_BF16), params["w4g"],
                     preferred_element_type=_F32) + params["b4"]
  h = relu(bdot(t, params["w4t"]) + gbias)
  h = relu(bdot(h, params["w5"]) + params["b5"])
  h = relu(bdot(h, params["w6"]) + params["b6"])
  logits = jnp.einsum("bnd,kd->bnk", h.astype(_BF16), params["w7t"],
                      preferred_element_type=_F32) + params["b7"][:, 0]
  return jax.nn.log_softmax(logits, axis=2)


if __name__ == "__main__":
  # Small shapes: N=300 with tile_n=128 exercises the split reduction axis
  # (2 parallel splits x 2 tiles each), multi-tile max accumulation, the
  # padded-tail mask (n_pad = 512) and the channels-first lane-dense output.
  B, N, k = 2, 300, 2
  key = jax.random.PRNGKey(0)
  kx, kp = jax.random.split(key)
  x = jax.random.normal(kx, (B, N, 3), _F32)     # (batch, n_pts, 3)
  params = make_params(kp, k=k)

  fwd = jax.jit(functools.partial(pointnet_seg_forward, tile_n=128))
  out = jax.block_until_ready(fwd(x, params))

  ref = pointnet_seg_reference(x, params)
  np.testing.assert_allclose(np.asarray(out), np.asarray(ref),
                             rtol=2e-2, atol=2e-2)
  assert out.shape == (B, N, k)
  print("KERNEL_OK")
</pallas_src>

<mosaic_0001>
module attributes {stable_mosaic.version = 11 : i64} {
  func.func @_pass_b_kernel(%arg0: i32, %arg1: i32, %arg2: memref<1x128x3xf32, #tpu.memory_space<vmem>>, %arg3: memref<1x2x1x1024xf32, #tpu.memory_space<vmem>>, %arg4: memref<3x64xf32, #tpu.memory_space<vmem>>, %arg5: memref<1x64xf32, #tpu.memory_space<vmem>>, %arg6: memref<1024x512xbf16, #tpu.memory_space<vmem>>, %arg7: memref<1x512xf32, #tpu.memory_space<vmem>>, %arg8: memref<64x512xbf16, #tpu.memory_space<vmem>>, %arg9: memref<512x256xbf16, #tpu.memory_space<vmem>>, %arg10: memref<1x256xf32, #tpu.memory_space<vmem>>, %arg11: memref<256x128xbf16, #tpu.memory_space<vmem>>, %arg12: memref<1x128xf32, #tpu.memory_space<vmem>>, %arg13: memref<2x128xbf16, #tpu.memory_space<vmem>>, %arg14: memref<2x1xf32, #tpu.memory_space<vmem>>, %arg15: memref<1x2x128xf32, #tpu.memory_space<vmem>>) attributes {dimension_semantics = [#tpu.dimension_semantics<parallel>, #tpu.dimension_semantics<parallel>], iteration_bounds = array<i64: 2, 4>, scalar_prefetch = 0 : i64, scratch_operands = 0 : i64, tpu.core_type = #tpu.core_type<tc>, window_params = [{transform_indices = @transform_0, window_bounds = array<i64: 1, 128, 3>}, {transform_indices = @transform_1, window_bounds = array<i64: 1, 2, 1, 1024>}, {pipeline_mode = #tpu.pipeline_mode<synchronous>, transform_indices = @transform_2, window_bounds = array<i64: 3, 64>}, {pipeline_mode = #tpu.pipeline_mode<synchronous>, transform_indices = @transform_3, window_bounds = array<i64: 1, 64>}, {pipeline_mode = #tpu.pipeline_mode<synchronous>, transform_indices = @transform_4, window_bounds = array<i64: 1024, 512>}, {pipeline_mode = #tpu.pipeline_mode<synchronous>, transform_indices = @transform_5, window_bounds = array<i64: 1, 512>}, {pipeline_mode = #tpu.pipeline_mode<synchronous>, transform_indices = @transform_6, window_bounds = array<i64: 64, 512>}, {pipeline_mode = #tpu.pipeline_mode<synchronous>, transform_indices = @transform_7, window_bounds = array<i64: 512, 256>}, {pipeline_mode = #tpu.pipeline_mode<synchronous>, transform_indices = @transform_8, window_bounds = array<i64: 1, 256>}, {pipeline_mode = #tpu.pipeline_mode<synchronous>, transform_indices = @transform_9, window_bounds = array<i64: 256, 128>}, {pipeline_mode = #tpu.pipeline_mode<synchronous>, transform_indices = @transform_10, window_bounds = array<i64: 1, 128>}, {pipeline_mode = #tpu.pipeline_mode<synchronous>, transform_indices = @transform_11, window_bounds = array<i64: 2, 128>}, {pipeline_mode = #tpu.pipeline_mode<synchronous>, transform_indices = @transform_12, window_bounds = array<i64: 2, 1>}, {transform_indices = @transform_13, window_bounds = array<i64: 1, 2, 128>}]} {
    %c0 = arith.constant 0 : index
    %c0_0 = arith.constant 0 : index
    %c0_1 = arith.constant 0 : index
    %0 = vector.load %arg2[%c0, %c0_0, %c0_1] : memref<1x128x3xf32, #tpu.memory_space<vmem>>, vector<1x128x3xf32>
    %1 = vector.shape_cast %0 : vector<1x128x3xf32> to vector<128x3xf32>
    %c0_2 = arith.constant 0 : index
    %c0_3 = arith.constant 0 : index
    %2 = vector.load %arg4[%c0_2, %c0_3] : memref<3x64xf32, #tpu.memory_space<vmem>>, vector<3x64xf32>
    %c0_4 = arith.constant 0 : index
    %c0_5 = arith.constant 0 : index
    %3 = vector.load %arg5[%c0_4, %c0_5] : memref<1x64xf32, #tpu.memory_space<vmem>>, vector<1x64xf32>
    %4 = vector.extract_strided_slice %1 {offsets = [0, 0], sizes = [128, 1], strides = [1, 1]} : vector<128x3xf32> to vector<128x1xf32>
    %5 = vector.extract_strided_slice %2 {offsets = [0, 0], sizes = [1, 64], strides = [1, 1]} : vector<3x64xf32> to vector<1x64xf32>
    %6 = vector.broadcast %4 : vector<128x1xf32> to vector<128x64xf32>
    %7 = vector.broadcast %5 : vector<1x64xf32> to vector<128x64xf32>
    %8 = arith.mulf %6, %7 : vector<128x64xf32>
    %9 = vector.extract_strided_slice %1 {offsets = [0, 1], sizes = [128, 1], strides = [1, 1]} : vector<128x3xf32> to vector<128x1xf32>
    %10 = vector.extract_strided_slice %2 {offsets = [1, 0], sizes = [1, 64], strides = [1, 1]} : vector<3x64xf32> to vector<1x64xf32>
    %11 = vector.broadcast %9 : vector<128x1xf32> to vector<128x64xf32>
    %12 = vector.broadcast %10 : vector<1x64xf32> to vector<128x64xf32>
    %13 = arith.mulf %11, %12 : vector<128x64xf32>
    %14 = arith.addf %8, %13 : vector<128x64xf32>
    %15 = vector.extract_strided_slice %1 {offsets = [0, 2], sizes = [128, 1], strides = [1, 1]} : vector<128x3xf32> to vector<128x1xf32>
    %16 = vector.extract_strided_slice %2 {offsets = [2, 0], sizes = [1, 64], strides = [1, 1]} : vector<3x64xf32> to vector<1x64xf32>
    %17 = vector.broadcast %15 : vector<128x1xf32> to vector<128x64xf32>
    %18 = vector.broadcast %16 : vector<1x64xf32> to vector<128x64xf32>
    %19 = arith.mulf %17, %18 : vector<128x64xf32>
    %20 = arith.addf %14, %19 : vector<128x64xf32>
    %21 = vector.broadcast %3 : vector<1x64xf32> to vector<128x64xf32>
    %22 = arith.addf %20, %21 : vector<128x64xf32>
    %cst = arith.constant 0.000000e+00 : f32
    %23 = vector.broadcast %cst : f32 to vector<128x64xf32>
    %24 = arith.maximumf %22, %23 : vector<128x64xf32>
    %c0_6 = arith.constant 0 : index
    %c0_7 = arith.constant 0 : index
    %c0_8 = arith.constant 0 : index
    %c0_9 = arith.constant 0 : index
    %25 = vector.load %arg3[%c0_6, %c0_7, %c0_8, %c0_9] : memref<1x2x1x1024xf32, #tpu.memory_space<vmem>>, vector<1x2x1x1024xf32>
    %26 = vector.shape_cast %25 : vector<1x2x1x1024xf32> to vector<2x1x1024xf32>
    %cst_10 = arith.constant dense<0xFF800000> : vector<1x1024xf32>
    %27 = vector.multi_reduction <maximumf>, %26, %cst_10 [0] : vector<2x1x1024xf32> to vector<1x1024xf32>
    %28 = arith.truncf %27 : vector<1x1024xf32> to vector<1x1024xbf16>
    %c0_11 = arith.constant 0 : index
    %c0_12 = arith.constant 0 : index
    %29 = vector.load %arg6[%c0_11, %c0_12] : memref<1024x512xbf16, #tpu.memory_space<vmem>>, vector<1024x512xbf16>
    %cst_13 = arith.constant dense<0.000000e+00> : vector<1x512xf32>
    %30 = tpu.matmul %28, %29, %cst_13 {dimension_numbers = #tpu.dot_dimension_numbers<[1], [0], [0], [1], [0, 0, 1, 1], [], []>} : vector<1x1024xbf16>, vector<1024x512xbf16>, vector<1x512xf32> -> vector<1x512xf32>
    %c0_14 = arith.constant 0 : index
    %c0_15 = arith.constant 0 : index
    %31 = vector.load %arg7[%c0_14, %c0_15] : memref<1x512xf32, #tpu.memory_space<vmem>>, vector<1x512xf32>
    %32 = arith.addf %30, %31 : vector<1x512xf32>
    %33 = arith.truncf %24 : vector<128x64xf32> to vector<128x64xbf16>
    %c0_16 = arith.constant 0 : index
    %c0_17 = arith.constant 0 : index
    %34 = vector.load %arg8[%c0_16, %c0_17] : memref<64x512xbf16, #tpu.memory_space<vmem>>, vector<64x512xbf16>
    %cst_18 = arith.constant dense<0.000000e+00> : vector<128x512xf32>
    %35 = tpu.matmul %33, %34, %cst_18 {dimension_numbers = #tpu.dot_dimension_numbers<[1], [0], [0], [1], [0, 0, 1, 1], [], []>} : vector<128x64xbf16>, vector<64x512xbf16>, vector<128x512xf32> -> vector<128x512xf32>
    %36 = vector.broadcast %32 : vector<1x512xf32> to vector<128x512xf32>
    %37 = arith.addf %35, %36 : vector<128x512xf32>
    %cst_19 = arith.constant 0.000000e+00 : f32
    %38 = vector.broadcast %cst_19 : f32 to vector<128x512xf32>
    %39 = arith.maximumf %37, %38 : vector<128x512xf32>
    %40 = arith.truncf %39 : vector<128x512xf32> to vector<128x512xbf16>
    %c0_20 = arith.constant 0 : index
    %c0_21 = arith.constant 0 : index
    %41 = vector.load %arg9[%c0_20, %c0_21] : memref<512x256xbf16, #tpu.memory_space<vmem>>, vector<512x256xbf16>
    %cst_22 = arith.constant dense<0.000000e+00> : vector<128x256xf32>
    %42 = tpu.matmul %40, %41, %cst_22 {dimension_numbers = #tpu.dot_dimension_numbers<[1], [0], [0], [1], [0, 0, 1, 1], [], []>} : vector<128x512xbf16>, vector<512x256xbf16>, vector<128x256xf32> -> vector<128x256xf32>
    %c0_23 = arith.constant 0 : index
    %c0_24 = arith.constant 0 : index
    %43 = vector.load %arg10[%c0_23, %c0_24] : memref<1x256xf32, #tpu.memory_space<vmem>>, vector<1x256xf32>
    %44 = vector.broadcast %43 : vector<1x256xf32> to vector<128x256xf32>
    %45 = arith.addf %42, %44 : vector<128x256xf32>
    %cst_25 = arith.constant 0.000000e+00 : f32
    %46 = vector.broadcast %cst_25 : f32 to vector<128x256xf32>
    %47 = arith.maximumf %45, %46 : vector<128x256xf32>
    %48 = arith.truncf %47 : vector<128x256xf32> to vector<128x256xbf16>
    %c0_26 = arith.constant 0 : index
    %c0_27 = arith.constant 0 : index
    %49 = vector.load %arg11[%c0_26, %c0_27] : memref<256x128xbf16, #tpu.memory_space<vmem>>, vector<256x128xbf16>
    %cst_28 = arith.constant dense<0.000000e+00> : vector<128x128xf32>
    %50 = tpu.matmul %48, %49, %cst_28 {dimension_numbers = #tpu.dot_dimension_numbers<[1], [0], [0], [1], [0, 0, 1, 1], [], []>} : vector<128x256xbf16>, vector<256x128xbf16>, vector<128x128xf32> -> vector<128x128xf32>
    %c0_29 = arith.constant 0 : index
    %c0_30 = arith.constant 0 : index
    %51 = vector.load %arg12[%c0_29, %c0_30] : memref<1x128xf32, #tpu.memory_space<vmem>>, vector<1x128xf32>
    %52 = vector.broadcast %51 : vector<1x128xf32> to vector<128x128xf32>
    %53 = arith.addf %50, %52 : vector<128x128xf32>
    %cst_31 = arith.constant 0.000000e+00 : f32
    %54 = vector.broadcast %cst_31 : f32 to vector<128x128xf32>
    %55 = arith.maximumf %53, %54 : vector<128x128xf32>
    %56 = tpu.transpose %55, [1, 0] : vector<128x128xf32> -> vector<128x128xf32>
    %57 = arith.truncf %56 : vector<128x128xf32> to vector<128x128xbf16>
    %c0_32 = arith.constant 0 : index
    %c0_33 = arith.constant 0 : index
    %58 = vector.load %arg13[%c0_32, %c0_33] : memref<2x128xbf16, #tpu.memory_space<vmem>>, vector<2x128xbf16>
    %cst_34 = arith.constant dense<0.000000e+00> : vector<2x128xf32>
    %59 = tpu.matmul %58, %57, %cst_34 {dimension_numbers = #tpu.dot_dimension_numbers<[1], [0], [0], [1], [0, 0, 1, 1], [], []>} : vector<2x128xbf16>, vector<128x128xbf16>, vector<2x128xf32> -> vector<2x128xf32>
    %c0_35 = arith.constant 0 : index
    %c0_36 = arith.constant 0 : index
    %60 = vector.load %arg14[%c0_35, %c0_36] : memref<2x1xf32, #tpu.memory_space<vmem>>, vector<2x1xf32>
    %61 = vector.broadcast %60 : vector<2x1xf32> to vector<2x128xf32>
    %62 = arith.addf %59, %61 : vector<2x128xf32>
    %cst_37 = arith.constant dense<0xFF800000> : vector<128xf32>
    %63 = vector.multi_reduction <maximumf>, %62, %cst_37 [0] : vector<2x128xf32> to vector<128xf32>
    %64 = vector.shape_cast %63 : vector<128xf32> to vector<1x128xf32>
    %65 = vector.broadcast %64 : vector<1x128xf32> to vector<2x128xf32>
    %66 = arith.subf %62, %65 : vector<2x128xf32>
    %67 = math.exp %66 : vector<2x128xf32>
    %cst_38 = arith.constant dense<0.000000e+00> : vector<128xf32>
    %68 = vector.multi_reduction <add>, %67, %cst_38 [0] : vector<2x128xf32> to vector<128xf32>
    %69 = vector.shape_cast %68 : vector<128xf32> to vector<1x128xf32>
    %70 = math.log %69 : vector<1x128xf32>
    %71 = arith.addf %70, %64 : vector<1x128xf32>
    %72 = vector.broadcast %71 : vector<1x128xf32> to vector<2x128xf32>
    %73 = arith.subf %62, %72 : vector<2x128xf32>
    %c0_39 = arith.constant 0 : index
    %c0_40 = arith.constant 0 : index
    %c0_41 = arith.constant 0 : index
    %74 = vector.load %arg15[%c0_39, %c0_40, %c0_41] : memref<1x2x128xf32, #tpu.memory_space<vmem>>, vector<1x2x128xf32>
    %75 = vector.shape_cast %74 : vector<1x2x128xf32> to vector<2x128xf32>
    %76 = vector.shape_cast %73 : vector<2x128xf32> to vector<1x2x128xf32>
    tpu.vector_store %arg15[%c0_39, %c0_40, %c0_41], %76 {strides = array<i32>} : memref<1x2x128xf32, #tpu.memory_space<vmem>>, vector<1x2x128xf32>,
    return
  }
  func.func @transform_0(%arg0: i32, %arg1: i32) -> (i32, i32, i32) {
    %c0_i32 = arith.constant 0 : i32
    %c0_i32_0 = arith.constant 0 : i32
    return %arg0, %arg1, %c0_i32 : i32, i32, i32
  }
  func.func @transform_1(%arg0: i32, %arg1: i32) -> (i32, i32, i32, i32) {
    %c0_i32 = arith.constant 0 : i32
    %c0_i32_0 = arith.constant 0 : i32
    %c0_i32_1 = arith.constant 0 : i32
    %c0_i32_2 = arith.constant 0 : i32
    return %arg0, %c0_i32, %c0_i32_0, %c0_i32_1 : i32, i32, i32, i32
  }
  func.func @transform_2(%arg0: i32, %arg1: i32) -> (i32, i32) {
    %c0_i32 = arith.constant 0 : i32
    %c0_i32_0 = arith.constant 0 : i32
    %c0_i32_1 = arith.constant 0 : i32
    return %c0_i32, %c0_i32_0 : i32, i32
  }
  func.func @transform_3(%arg0: i32, %arg1: i32) -> (i32, i32) {
    %c0_i32 = arith.constant 0 : i32
    %c0_i32_0 = arith.constant 0 : i32
    %c0_i32_1 = arith.constant 0 : i32
    return %c0_i32, %c0_i32_0 : i32, i32
  }
  func.func @transform_4(%arg0: i32, %arg1: i32) -> (i32, i32) {
    %c0_i32 = arith.constant 0 : i32
    %c0_i32_0 = arith.constant 0 : i32
    %c0_i32_1 = arith.constant 0 : i32
    return %c0_i32, %c0_i32_0 : i32, i32
  }
  func.func @transform_5(%arg0: i32, %arg1: i32) -> (i32, i32) {
    %c0_i32 = arith.constant 0 : i32
    %c0_i32_0 = arith.constant 0 : i32
    %c0_i32_1 = arith.constant 0 : i32
    return %c0_i32, %c0_i32_0 : i32, i32
  }
  func.func @transform_6(%arg0: i32, %arg1: i32) -> (i32, i32) {
    %c0_i32 = arith.constant 0 : i32
    %c0_i32_0 = arith.constant 0 : i32
    %c0_i32_1 = arith.constant 0 : i32
    return %c0_i32, %c0_i32_0 : i32, i32
  }
  func.func @transform_7(%arg0: i32, %arg1: i32) -> (i32, i32) {
    %c0_i32 = arith.constant 0 : i32
    %c0_i32_0 = arith.constant 0 : i32
    %c0_i32_1 = arith.constant 0 : i32
    return %c0_i32, %c0_i32_0 : i32, i32
  }
  func.func @transform_8(%arg0: i32, %arg1: i32) -> (i32, i32) {
    %c0_i32 = arith.constant 0 : i32
    %c0_i32_0 = arith.constant 0 : i32
    %c0_i32_1 = arith.constant 0 : i32
    return %c0_i32, %c0_i32_0 : i32, i32
  }
  func.func @transform_9(%arg0: i32, %arg1: i32) -> (i32, i32) {
    %c0_i32 = arith.constant 0 : i32
    %c0_i32_0 = arith.constant 0 : i32
    %c0_i32_1 = arith.constant 0 : i32
    return %c0_i32, %c0_i32_0 : i32, i32
  }
  func.func @transform_10(%arg0: i32, %arg1: i32) -> (i32, i32) {
    %c0_i32 = arith.constant 0 : i32
    %c0_i32_0 = arith.constant 0 : i32
    %c0_i32_1 = arith.constant 0 : i32
    return %c0_i32, %c0_i32_0 : i32, i32
  }
  func.func @transform_11(%arg0: i32, %arg1: i32) -> (i32, i32) {
    %c0_i32 = arith.constant 0 : i32
    %c0_i32_0 = arith.constant 0 : i32
    %c0_i32_1 = arith.constant 0 : i32
    return %c0_i32, %c0_i32_0 : i32, i32
  }
  func.func @transform_12(%arg0: i32, %arg1: i32) -> (i32, i32) {
    %c0_i32 = arith.constant 0 : i32
    %c0_i32_0 = arith.constant 0 : i32
    %c0_i32_1 = arith.constant 0 : i32
    return %c0_i32, %c0_i32_0 : i32, i32
  }
  func.func @transform_13(%arg0: i32, %arg1: i32) -> (i32, i32, i32) {
    %c0_i32 = arith.constant 0 : i32
    %c0_i32_0 = arith.constant 0 : i32
    return %arg0, %c0_i32, %arg1 : i32, i32, i32
  }
}

module attributes {stable_mosaic.version = 11 : i64} {
  func.func @_pass_a_kernel(%arg0: i32, %arg1: i32, %arg2: i32, %arg3: memref<1x128x3xf32, #tpu.memory_space<vmem>>, %arg4: memref<3x64xf32, #tpu.memory_space<vmem>>, %arg5: memref<1x64xf32, #tpu.memory_space<vmem>>, %arg6: memref<64x128xbf16, #tpu.memory_space<vmem>>, %arg7: memref<1x128xf32, #tpu.memory_space<vmem>>, %arg8: memref<128x1024xbf16, #tpu.memory_space<vmem>>, %arg9: memref<1x1024xf32, #tpu.memory_space<vmem>>, %arg10: memref<1x1x1x1024xf32, #tpu.memory_space<vmem>>) attributes {dimension_semantics = [#tpu.dimension_semantics<parallel>, #tpu.dimension_semantics<parallel>, #tpu.dimension_semantics<arbitrary>], iteration_bounds = array<i64: 2, 2, 2>, scalar_prefetch = 0 : i64, scratch_operands = 0 : i64, tpu.core_type = #tpu.core_type<tc>, window_params = [{transform_indices = @transform_0, window_bounds = array<i64: 1, 128, 3>}, {pipeline_mode = #tpu.pipeline_mode<synchronous>, transform_indices = @transform_1, window_bounds = array<i64: 3, 64>}, {pipeline_mode = #tpu.pipeline_mode<synchronous>, transform_indices = @transform_2, window_bounds = array<i64: 1, 64>}, {pipeline_mode = #tpu.pipeline_mode<synchronous>, transform_indices = @transform_3, window_bounds = array<i64: 64, 128>}, {pipeline_mode = #tpu.pipeline_mode<synchronous>, transform_indices = @transform_4, window_bounds = array<i64: 1, 128>}, {pipeline_mode = #tpu.pipeline_mode<synchronous>, transform_indices = @transform_5, window_bounds = array<i64: 128, 1024>}, {pipeline_mode = #tpu.pipeline_mode<synchronous>, transform_indices = @transform_6, window_bounds = array<i64: 1, 1024>}, {transform_indices = @transform_7, window_bounds = array<i64: 1, 1, 1, 1024>}]} {
    %c0_i32 = arith.constant 0 : i32
    %0 = arith.cmpi eq, %arg2, %c0_i32 : i32
    %1 = arith.extui %0 : i1 to i32
    %c0_i32_0 = arith.constant 0 : i32
    %2 = arith.cmpi ne, %1, %c0_i32_0 : i32
    scf.if %2 {
      %cst_22 = arith.constant 0.000000e+00 : f32
      %54 = vector.broadcast %cst_22 : f32 to vector<1x1024xf32>
      %c0_23 = arith.constant 0 : index
      %c0_24 = arith.constant 0 : index
      %c0_25 = arith.constant 0 : index
      %c0_26 = arith.constant 0 : index
      %55 = vector.load %arg10[%c0_23, %c0_24, %c0_25, %c0_26] : memref<1x1x1x1024xf32, #tpu.memory_space<vmem>>, vector<1x1x1x1024xf32>
      %56 = vector.shape_cast %55 : vector<1x1x1x1024xf32> to vector<1x1024xf32>
      %57 = vector.shape_cast %54 : vector<1x1024xf32> to vector<1x1x1x1024xf32>
      tpu.vector_store %arg10[%c0_23, %c0_24, %c0_25, %c0_26], %57 {strides = array<i32>} : memref<1x1x1x1024xf32, #tpu.memory_space<vmem>>, vector<1x1x1x1024xf32>,
    } else {
    }
    %c0 = arith.constant 0 : index
    %c0_1 = arith.constant 0 : index
    %c0_2 = arith.constant 0 : index
    %3 = vector.load %arg3[%c0, %c0_1, %c0_2] : memref<1x128x3xf32, #tpu.memory_space<vmem>>, vector<1x128x3xf32>
    %4 = vector.shape_cast %3 : vector<1x128x3xf32> to vector<128x3xf32>
    %c0_3 = arith.constant 0 : index
    %c0_4 = arith.constant 0 : index
    %5 = vector.load %arg4[%c0_3, %c0_4] : memref<3x64xf32, #tpu.memory_space<vmem>>, vector<3x64xf32>
    %c0_5 = arith.constant 0 : index
    %c0_6 = arith.constant 0 : index
    %6 = vector.load %arg5[%c0_5, %c0_6] : memref<1x64xf32, #tpu.memory_space<vmem>>, vector<1x64xf32>
    %7 = vector.extract_strided_slice %4 {offsets = [0, 0], sizes = [128, 1], strides = [1, 1]} : vector<128x3xf32> to vector<128x1xf32>
    %8 = vector.extract_strided_slice %5 {offsets = [0, 0], sizes = [1, 64], strides = [1, 1]} : vector<3x64xf32> to vector<1x64xf32>
    %9 = vector.broadcast %7 : vector<128x1xf32> to vector<128x64xf32>
    %10 = vector.broadcast %8 : vector<1x64xf32> to vector<128x64xf32>
    %11 = arith.mulf %9, %10 : vector<128x64xf32>
    %12 = vector.extract_strided_slice %4 {offsets = [0, 1], sizes = [128, 1], strides = [1, 1]} : vector<128x3xf32> to vector<128x1xf32>
    %13 = vector.extract_strided_slice %5 {offsets = [1, 0], sizes = [1, 64], strides = [1, 1]} : vector<3x64xf32> to vector<1x64xf32>
    %14 = vector.broadcast %12 : vector<128x1xf32> to vector<128x64xf32>
    %15 = vector.broadcast %13 : vector<1x64xf32> to vector<128x64xf32>
    %16 = arith.mulf %14, %15 : vector<128x64xf32>
    %17 = arith.addf %11, %16 : vector<128x64xf32>
    %18 = vector.extract_strided_slice %4 {offsets = [0, 2], sizes = [128, 1], strides = [1, 1]} : vector<128x3xf32> to vector<128x1xf32>
    %19 = vector.extract_strided_slice %5 {offsets = [2, 0], sizes = [1, 64], strides = [1, 1]} : vector<3x64xf32> to vector<1x64xf32>
    %20 = vector.broadcast %18 : vector<128x1xf32> to vector<128x64xf32>
    %21 = vector.broadcast %19 : vector<1x64xf32> to vector<128x64xf32>
    %22 = arith.mulf %20, %21 : vector<128x64xf32>
    %23 = arith.addf %17, %22 : vector<128x64xf32>
    %24 = vector.broadcast %6 : vector<1x64xf32> to vector<128x64xf32>
    %25 = arith.addf %23, %24 : vector<128x64xf32>
    %cst = arith.constant 0.000000e+00 : f32
    %26 = vector.broadcast %cst : f32 to vector<128x64xf32>
    %27 = arith.maximumf %25, %26 : vector<128x64xf32>
    %28 = arith.truncf %27 : vector<128x64xf32> to vector<128x64xbf16>
    %c0_7 = arith.constant 0 : index
    %c0_8 = arith.constant 0 : index
    %29 = vector.load %arg6[%c0_7, %c0_8] : memref<64x128xbf16, #tpu.memory_space<vmem>>, vector<64x128xbf16>
    %cst_9 = arith.constant dense<0.000000e+00> : vector<128x128xf32>
    %30 = tpu.matmul %28, %29, %cst_9 {dimension_numbers = #tpu.dot_dimension_numbers<[1], [0], [0], [1], [0, 0, 1, 1], [], []>} : vector<128x64xbf16>, vector<64x128xbf16>, vector<128x128xf32> -> vector<128x128xf32>
    %c0_10 = arith.constant 0 : index
    %c0_11 = arith.constant 0 : index
    %31 = vector.load %arg7[%c0_10, %c0_11] : memref<1x128xf32, #tpu.memory_space<vmem>>, vector<1x128xf32>
    %32 = vector.broadcast %31 : vector<1x128xf32> to vector<128x128xf32>
    %33 = arith.addf %30, %32 : vector<128x128xf32>
    %cst_12 = arith.constant 0.000000e+00 : f32
    %34 = vector.broadcast %cst_12 : f32 to vector<128x128xf32>
    %35 = arith.maximumf %33, %34 : vector<128x128xf32>
    %36 = arith.truncf %35 : vector<128x128xf32> to vector<128x128xbf16>
    %c0_13 = arith.constant 0 : index
    %c0_14 = arith.constant 0 : index
    %37 = vector.load %arg8[%c0_13, %c0_14] : memref<128x1024xbf16, #tpu.memory_space<vmem>>, vector<128x1024xbf16>
    %cst_15 = arith.constant dense<0.000000e+00> : vector<128x1024xf32>
    %38 = tpu.matmul %36, %37, %cst_15 {dimension_numbers = #tpu.dot_dimension_numbers<[1], [0], [0], [1], [0, 0, 1, 1], [], []>} : vector<128x128xbf16>, vector<128x1024xbf16>, vector<128x1024xf32> -> vector<128x1024xf32>
    %c0_16 = arith.constant 0 : index
    %c0_17 = arith.constant 0 : index
    %39 = vector.load %arg9[%c0_16, %c0_17] : memref<1x1024xf32, #tpu.memory_space<vmem>>, vector<1x1024xf32>
    %40 = vector.broadcast %39 : vector<1x1024xf32> to vector<128x1024xf32>
    %41 = arith.addf %38, %40 : vector<128x1024xf32>
    %cst_18 = arith.constant 0.000000e+00 : f32
    %42 = vector.broadcast %cst_18 : f32 to vector<128x1024xf32>
    %43 = arith.maximumf %41, %42 : vector<128x1024xf32>
    %c2_i32 = arith.constant 2 : i32
    %44 = arith.muli %arg1, %c2_i32 : i32
    %45 = arith.addi %44, %arg2 : i32
    %c128_i32 = arith.constant 128 : i32
    %46 = arith.muli %45, %c128_i32 : i32
    %c128_i32_19 = arith.constant 128 : i32
    %47 = arith.addi %46, %c128_i32_19 : i32
    %c300_i32 = arith.constant 300 : i32
    %48 = arith.cmpi sle, %47, %c300_i32 : i32
    %49 = arith.extui %48 : i1 to i32
    %c0_i32_20 = arith.constant 0 : i32
    %50 = arith.cmpi ne, %49, %c0_i32_20 : i32
    scf.if %50 {
      %c0_22 = arith.constant 0 : index
      %c0_23 = arith.constant 0 : index
      %c0_24 = arith.constant 0 : index
      %c0_25 = arith.constant 0 : index
      %54 = vector.load %arg10[%c0_22, %c0_23, %c0_24, %c0_25] : memref<1x1x1x1024xf32, #tpu.memory_space<vmem>>, vector<1x1x1x1024xf32>
      %55 = vector.shape_cast %54 : vector<1x1x1x1024xf32> to vector<1x1024xf32>
      %cst_26 = arith.constant dense<0xFF800000> : vector<1024xf32>
      %56 = vector.multi_reduction <maximumf>, %43, %cst_26 [0] : vector<128x1024xf32> to vector<1024xf32>
      %57 = vector.shape_cast %56 : vector<1024xf32> to vector<1x1024xf32>
      %58 = arith.maximumf %55, %57 : vector<1x1024xf32>
      %c0_27 = arith.constant 0 : index
      %c0_28 = arith.constant 0 : index
      %c0_29 = arith.constant 0 : index
      %c0_30 = arith.constant 0 : index
      %59 = vector.load %arg10[%c0_27, %c0_28, %c0_29, %c0_30] : memref<1x1x1x1024xf32, #tpu.memory_space<vmem>>, vector<1x1x1x1024xf32>
      %60 = vector.shape_cast %59 : vector<1x1x1x1024xf32> to vector<1x1024xf32>
      %61 = vector.shape_cast %58 : vector<1x1024xf32> to vector<1x1x1x1024xf32>
      tpu.vector_store %arg10[%c0_27, %c0_28, %c0_29, %c0_30], %61 {strides = array<i32>} : memref<1x1x1x1024xf32, #tpu.memory_space<vmem>>, vector<1x1x1x1024xf32>,
    } else {
    }
    %true = arith.constant true
    %51 = arith.xori %48, %true : i1
    %52 = arith.extui %51 : i1 to i32
    %c0_i32_21 = arith.constant 0 : i32
    %53 = arith.cmpi ne, %52, %c0_i32_21 : i32
    scf.if %53 {
      %54 = tpu.iota {dimensions = array<i32: 0>} : vector<128x1xi32>
      %55 = vector.broadcast %46 : i32 to vector<128x1xi32>
      %56 = arith.addi %55, %54 : vector<128x1xi32>
      %c300_i32_22 = arith.constant 300 : i32
      %57 = vector.broadcast %c300_i32_22 : i32 to vector<128x1xi32>
      %58 = arith.cmpi slt, %56, %57 : vector<128x1xi32>
      %cst_23 = arith.constant 0.000000e+00 : f32
      %59 = vector.shape_cast %58 : vector<128x1xi1> to vector<128x1xi1>
      %60 = vector.broadcast %59 : vector<128x1xi1> to vector<128x1024xi1>
      %61 = vector.broadcast %cst_23 : f32 to vector<128x1024xf32>
      %62 = arith.select %60, %43, %61 : vector<128x1024xi1>, vector<128x1024xf32>
      %c0_24 = arith.constant 0 : index
      %c0_25 = arith.constant 0 : index
      %c0_26 = arith.constant 0 : index
      %c0_27 = arith.constant 0 : index
      %63 = vector.load %arg10[%c0_24, %c0_25, %c0_26, %c0_27] : memref<1x1x1x1024xf32, #tpu.memory_space<vmem>>, vector<1x1x1x1024xf32>
      %64 = vector.shape_cast %63 : vector<1x1x1x1024xf32> to vector<1x1024xf32>
      %cst_28 = arith.constant dense<0xFF800000> : vector<1024xf32>
      %65 = vector.multi_reduction <maximumf>, %62, %cst_28 [0] : vector<128x1024xf32> to vector<1024xf32>
      %66 = vector.shape_cast %65 : vector<1024xf32> to vector<1x1024xf32>
      %67 = arith.maximumf %64, %66 : vector<1x1024xf32>
      %c0_29 = arith.constant 0 : index
      %c0_30 = arith.constant 0 : index
      %c0_31 = arith.constant 0 : index
      %c0_32 = arith.constant 0 : index
      %68 = vector.load %arg10[%c0_29, %c0_30, %c0_31, %c0_32] : memref<1x1x1x1024xf32, #tpu.memory_space<vmem>>, vector<1x1x1x1024xf32>
      %69 = vector.shape_cast %68 : vector<1x1x1x1024xf32> to vector<1x1024xf32>
      %70 = vector.shape_cast %67 : vector<1x1024xf32> to vector<1x1x1x1024xf32>
      tpu.vector_store %arg10[%c0_29, %c0_30, %c0_31, %c0_32], %70 {strides = array<i32>} : memref<1x1x1x1024xf32, #tpu.memory_space<vmem>>, vector<1x1x1x1024xf32>,
    } else {
    }
    return
  }
  func.func @transform_0(%arg0: i32, %arg1: i32, %arg2: i32) -> (i32, i32, i32) {
    %c2_i32 = arith.constant 2 : i32
    %0 = arith.muli %arg1, %c2_i32 : i32
    %1 = arith.addi %0, %arg2 : i32
    %c0_i32 = arith.constant 0 : i32
    %c0_i32_0 = arith.constant 0 : i32
    return %arg0, %1, %c0_i32 : i32, i32, i32
  }
  func.func @transform_1(%arg0: i32, %arg1: i32, %arg2: i32) -> (i32, i32) {
    %c0_i32 = arith.constant 0 : i32
    %c0_i32_0 = arith.constant 0 : i32
    %c0_i32_1 = arith.constant 0 : i32
    return %c0_i32, %c0_i32_0 : i32, i32
  }
  func.func @transform_2(%arg0: i32, %arg1: i32, %arg2: i32) -> (i32, i32) {
    %c0_i32 = arith.constant 0 : i32
    %c0_i32_0 = arith.constant 0 : i32
    %c0_i32_1 = arith.constant 0 : i32
    return %c0_i32, %c0_i32_0 : i32, i32
  }
  func.func @transform_3(%arg0: i32, %arg1: i32, %arg2: i32) -> (i32, i32) {
    %c0_i32 = arith.constant 0 : i32
    %c0_i32_0 = arith.constant 0 : i32
    %c0_i32_1 = arith.constant 0 : i32
    return %c0_i32, %c0_i32_0 : i32, i32
  }
  func.func @transform_4(%arg0: i32, %arg1: i32, %arg2: i32) -> (i32, i32) {
    %c0_i32 = arith.constant 0 : i32
    %c0_i32_0 = arith.constant 0 : i32
    %c0_i32_1 = arith.constant 0 : i32
    return %c0_i32, %c0_i32_0 : i32, i32
  }
  func.func @transform_5(%arg0: i32, %arg1: i32, %arg2: i32) -> (i32, i32) {
    %c0_i32 = arith.constant 0 : i32
    %c0_i32_0 = arith.constant 0 : i32
    %c0_i32_1 = arith.constant 0 : i32
    return %c0_i32, %c0_i32_0 : i32, i32
  }
  func.func @transform_6(%arg0: i32, %arg1: i32, %arg2: i32) -> (i32, i32) {
    %c0_i32 = arith.constant 0 : i32
    %c0_i32_0 = arith.constant 0 : i32
    %c0_i32_1 = arith.constant 0 : i32
    return %c0_i32, %c0_i32_0 : i32, i32
  }
  func.func @transform_7(%arg0: i32, %arg1: i32, %arg2: i32) -> (i32, i32, i32, i32) {
    %c0_i32 = arith.constant 0 : i32
    %c0_i32_0 = arith.constant 0 : i32
    %c0_i32_1 = arith.constant 0 : i32
    return %arg0, %arg1, %c0_i32, %c0_i32_0 : i32, i32, i32, i32
  }
}

</mosaic_0001>

<bundles_post_ra>
// kernel: pointnet_seg_forward.2
= control target key start
LH: loop header
LB: loop body
LE: loop exit
PB: predicated region body
PF: predicated region fallthrough
CT: control target
= control target key end

     0   :  { %s4974_s0 = inlined_call_operand.vmem [shape: f32[2,512,3], index: 0, kind: input, shape index: {}]   ;;  %s4975_s1 = inlined_call_operand.vmem [shape: f32[3,64], index: 1, kind: input, shape index: {}]   ;;  %s4976_s2 = inlined_call_operand.vmem [shape: f32[1,64], index: 2, kind: input, shape index: {}]   ;;  %s4977_s3 = inlined_call_operand.vmem [shape: bf16[64,128], index: 3, kind: input, shape index: {}]   ;;  %s4978_s4 = inlined_call_operand.vmem [shape: f32[1,128], index: 4, kind: input, shape index: {}]   ;;  %s4979_s5 = inlined_call_operand.hbm [shape: bf16[128,1024], index: 5, kind: input, shape index: {}]   ;;  %s4980_s6 = inlined_call_operand.vmem [shape: f32[1,1024], index: 6, kind: input, shape index: {}]   ;;  %s4981_s7 = inlined_call_operand.vmem [shape: f32[2,2,1,1024], index: 7, kind: output, shape index: {}]  }
   0x1   :  { %5087 = sst [smem:[#allocation106_spill]] %s4979_s5 }
   0x2   :  { %12 = vsyncpa [#allocation3], 0  ;;  %s3090_s24 = smov 0   ;;  %s3092_s25 = smov 0  }
   0x3   :  { %s3094_s26 = smov 0   ;;  %s3096_s27 = smov 0  }
   0x4   :  { %s3098_s28 = smov 0   ;;  %s3100_s29 = smov 0  }
   0x5   :  { %s3102_s30 = smov 0  }
   0x6 LB: > { %s2697_s8 = sadd.s32 4294967295, %s3039_s30   ;;  %s30_s9 = sadd.s32 1, %s3027_s27  ;;  %s3039_s30 = sphi %s3102_s30, %s18_s30   ;;  %s3035_s29 = sphi %s3100_s29, %s5634_s29   ;;  %s3031_s28 = sphi %s3098_s28, %s5633_s28   ;;  %s3027_s27 = sphi %s3096_s27, %s5632_s27   ;;  %s3023_s26 = sphi %s3094_s26, %s5631_s26   ;;  %s3019_s25 = sphi %s3092_s25, %s5630_s25   ;;  %s3015_s24 = sphi %s3090_s24, %s5629_s24  }
   0x7   : > { %p31_p0 = scmp.ge.s32.totalorder %s30_s9, 2  ;;  %s33_s10 = sadd.s32 1, %s3031_s28 }
   0x8   : > { %s37_s11 = sadd.s32 1, %s3035_s29  ;;  %p2701_p1 = scmp.ge.s32.totalorder %s3039_s30, 1 }
   0x9   : > { %s5636_s9 = smov (%p31_p0, %s30_s9), 0  ;;  %s5638_s10 = smov (!%p31_p0, %s33_s10), %s3031_s28 }
   0xa   : > { %p228_p2 = scmp.lt.s32.totalorder %s3039_s30, 9  ;;  %p35_p3 = scmp.ge.s32.totalorder %s5638_s10, 2 }
   0xb   : > { %p3134_p4 = scmp.eq.s32.totalorder %s2697_s8, 0  ;;  %s3041_s14 = smov [#allocation2]  }
   0xc   : > { %p3138_p5 = pnand %p2701_p1, %p228_p2  ;;  %s5640_s10 = smov (%p35_p3, %s5638_s10), 0 }
   0xd   : > { %s5088_s12 = scalar_select %p3134_p4, 1, 0 }
   0xe   : > { %s5089_s13 = scalar_select %p3138_p5, 1, 0 }
   0xf   : > { %s5642_s11 = smov (!%p35_p3, %s37_s11), %s3035_s29  ;;  %p2853_p6 = pneg %p3138_p5 }
  0x10   : > { %s252_s15 = sshll.u32 %s3041_s14, 4  ;;  %p39_p7 = scmp.ge.s32.totalorder %s5642_s11, 2  ;;  %s253_s15 = int_to_ptr.vmem [resolvable:$true] %s252_s15 }
  0x11   : > { %p3149_p8 = pnand %p3134_p4, %p2853_p6  ;;  %s5091_s5 = sld [smem:[#allocation106_spill]] }
  0x12   : > { %s5644_s11 = smov (%p39_p7, %s5642_s11), 0 }
  0x13   : > { %p2955_p10 = pneg %p3149_p8 }
  0x17   : > { %s2953_s19 = scalar_lea.hbm %s5091_s5, 8192 }
  0x18   : > { %p2954_p9 = scmp.ne.s32.totalorder %s5091_s5, %s2953_s19  ;;  %p2960_p13 = scmp.lt.u32.totalorder %s2953_s19, %s5091_s5 }
  0x1a   : > { %p2956_p11 = pnand %p2955_p10, %p2954_p9 }
  0x1c   : > { %p2957_p12 = pneg %p2956_p11 }
  0x1e   : > { %p2962_p0 = pnand %p2960_p13, %p2957_p12 }
  0x20   : > { %2965 = shalt.err (!%p2962_p0)
}
  0x21   : > { %s2966_s8 = scalar_lea.vmem %s253_s15, 8192  ;;  %p2974_p6 = scmp.lt.s32.totalorder %s253_s15, %s253_s15 }
  0x22   : > { %p2967_p1 = scmp.ne.s32.totalorder %s253_s15, %s2966_s8  ;;  %p2975_p7 = scmp.lt.s32.totalorder %s2966_s8, %s2966_s8 }
  0x24   : > { %p2969_p2 = pnand %p2967_p1, %p2955_p10  ;;  %p2976_p4 = por %p2975_p7, %p2974_p6 }
  0x26   : > { %p2970_p3 = pneg %p2969_p2 }
  0x28   : > { %p2977_p5 = pnand %p2976_p4, %p2970_p3 }
  0x2a   : > { %2980 = shalt.err (!%p2977_p5)
}
  0x2b   : > { %s3042_s14 = smov 512   ;;  %s3043_s17 = smov 32  }
  0x2c   : > { %2856 = dma.hbm_to_vmem [thread:$0]  (!%p3149_p8), %s5091_s5, 8192, %s253_s15, [#allocation3], %s3042_s14, %s3042_s14, %s3043_s17  }
  0x2d   : > { %p5092_p9 = scmp.ne.s32.totalorder %s5089_s13, 0 }
  0x2f   : > { %288 = sbr.rel (%p5092_p9) target bundleno = 1095 (0x447), region = 48 }
  0x36   : > { %p5093_p11 = scmp.ne.s32.totalorder %s5088_s12, 0 }
  0x38   : > { %3010 = dma.done.wait (%p5093_p11), [#allocation3], 8192  }
  0x39   : > { %3012 = vsyncadd (%p5093_p11), [#allocation3], 4294959104  ;;  %s2706_s16 = sshll.u32 %s3019_s25, 1  ;;  %p332_p4 = scmp.lt.s32.totalorder %s3023_s26, 1 }
  0x3a   : > { %s3180_s19 = sadd.s32 %s3015_s24, %s2706_s16  ;;  %p345_p5 = scmp.lt.s32.totalorder %s3019_s25, 1 }
  0x3b   : > { %s2707_s15 = sshll.u32 %s3180_s19, 4  ;;  %s5646_s26 = smov (!%p332_p4, %s3023_s26), 1 }
  0x3c   : > { %p334_p8 = scmp.lt.s32.totalorder %s2707_s15, 63  ;;  %s2708_s13 = sshll.u32 %s5646_s26, 6 }
  0x3d   : > { %s2711_s21 = sshll.u32 %s5646_s26, 4  ;;  %s5650_s25 = smov (!%p345_p5, %s3019_s25), 1 }
  0x3e   : > { %s5648_s15 = smov (!%p334_p8, %s2707_s15), 63  ;;  %s2710_s23 = sshll.u32 %s5650_s25, 3 }
  0x3f   : > { %s337_s12 = sadd.s32 %s2708_s13, %s5648_s15  ;;  %s349_s18 = sadd.s32 %s2711_s21, %s2710_s23 }
  0x40   : > { %s2709_s22 = sshll.u32 %s337_s12, 3  ;;  %s3194_s5 = scalar_lea.vmem %s4981_s7, %s349_s18 }
  0x41   : > { %s3189_s17 = scalar_lea.vmem %s4974_s0, %s2709_s22  ;;  %p2712_p10 = scmp.ne.s32.totalorder %s3015_s24, 0 }
  0x42   : > { %v3044_v0 = vmov (!%p2712_p10), 0.0  }
  0x43   : > { %355 = sbr.rel (%p2712_p10) target bundleno = 74 (0x4a), region = 56  ;;  %356 = vst [vmem:[%s3194_s5] sm:$0xff] (!%p2712_p10), %v3044_v0 }
  0x4a PF: > { %v357_v1 = vld [vmem:[%s3189_s17] sm:$0xff]  ;;  %v3045_v2 = vmov 1   ;;  %v3046_v3 = vmov 0   ;;  %v358_v4 = vld [vmem:[%s3189_s17 + $0x8] sm:$0xff]  ;;  %v359_v5 = vld [vmem:[%s3189_s17 + $0x10] sm:$0xff]  ;;  %v3047_v8 = vmov 2   ;;  %v455_v26 = vlaneseq }
  0x4b   : > { %2925 = vset.pattern.permute.xlu1 %v3045_v2  ;;  %2924 = vset.pattern.permute.xlu0 %v3046_v3  ;;  %v360_v6 = vld [vmem:[%s3189_s17 + $0x18] sm:$0xff]  ;;  %v362_v7 = vld [vmem:[%s3189_s17 + $0x28] sm:$0xff]  ;;  %v363_v9 = vld [vmem:[%s3189_s17 + $0x30] sm:$0xff]  ;;  %vm760_vm0 = vcmask 523264   ;;  %s2792_s25 = sshll.u32 %s3180_s19, 7 }
  0x4c   : > { %476 = vperm.xlu1 %2925, %v357_v1   ;;  %377 = vperm.xlu0 %2924, %v357_v1   ;;  %v2949_v10 = vld [vmem:[%s4977_s3] sm:$0xff]   ;;  %v2950_v11 = vld [vmem:[%s4977_s3 + $0x8] sm:$0xff]   ;;  %v2951_v13 = vld [vmem:[%s4977_s3 + $0x10] sm:$0xff]   ;;  %v3252_v29 = vshrl.u32 %v455_v26, 7  ;;  %s3667_s26 = sadd.s32 128, %s2792_s25 }
  0x4d   : > { %1364 = vmatprep.mubr.bf16.mxu1 %v3046_v3  ;;  %2809 = vmatprep.subr.bf16.mxu0 %v2949_v10  ;;  %v361_v12 = vld [vmem:[%s3189_s17 + $0x20] sm:$0xff]  ;;  %v364_v14 = vld [vmem:[%s3189_s17 + $0x38] sm:$0xff]  ;;  %v366_v16 = vld [vmem:[%s3189_s17 + $0x48] sm:$0xff]  ;;  %p2793_p12 = scmp.gt.s32.totalorder %s3667_s26, 300 }
  0x4e   : > { %2810 = vmatpush3.bf16.msra.mxu0 %v2949_v10  ;;  %v2952_v15 = vld [vmem:[%s4977_s3 + $0x18] sm:$0xff]   ;;  %v367_v17 = vld [vmem:[%s3189_s17 + $0x50] sm:$0xff]  ;;  %v369_v18 = vld [vmem:[%s3189_s17 + $0x60] sm:$0xff]  ;;  %5094 = vst [vmem:[#allocation5_spill] sm:$0xff] %v3252_v29  ;;  %v541_v32 = vsub.s32 1, %v3252_v29  ;;  %v457_v33 = vsub.s32 0, %v3252_v29 }
  0x4f   : > { %2811 = vmatprep.subr.bf16.mxu0 %v2950_v11  ;;  %v370_v19 = vld [vmem:[%s3189_s17 + $0x68] sm:$0xff]  ;;  %v365_v20 = vld [vmem:[%s3189_s17 + $0x40] sm:$0xff]  ;;  %v371_v21 = vld [vmem:[%s3189_s17 + $0x70] sm:$0xff]  ;;  %v641_v36 = vsub.s32 2, %v3252_v29 }
  0x50   : > { %480 = vperm.xlu1 %2925, %v358_v4   ;;  %382 = vperm.xlu0 %2924, %v358_v4   ;;  %v368_v22 = vld [vmem:[%s3189_s17 + $0x58] sm:$0xff]  ;;  %v373_v34 = vld [vmem:[%s4975_s1] sm:$0x7]  ;;  %v3260_v39 = vld [vmem:[#allocation2 + $0x8] sm:$0xff] }
  0x51   : > { %v372_v23 = vld [vmem:[%s3189_s17 + $0x78] sm:$0xff]  ;;  %v906_v37 = vld [vmem:[#allocation2] sm:$0xff]  ;;  %v3262_v42 = vld [vmem:[#allocation2 + $0x28] sm:$0xff]  ;;  %v3266_v46 = vrot.slane %v373_v34, %v541_v32  ;;  %v3270_v47 = vrot.slane %v373_v34, %v457_v33  ;;  %v3278_v53 = vrot.slane %v373_v34, %v641_v36 }
  0x52   : > { %2812 = vmatpush3.bf16.msra.mxu0 %v2950_v11  ;;  %v910_v38 = vld [vmem:[#allocation2 + $0x20] sm:$0xff]  ;;  %v2730_v48 = vcombine.high %v3260_v39, %v3262_v42 }
  0x53   : > { %2813 = vmatprep.subr.bf16.mxu0 %v2951_v13  ;;  %v2728_v41 = vcombine.high %v906_v37, %v910_v38  ;;  %v2727_v43 = vcombine.low %v906_v37, %v910_v38  ;;  %v914_v44 = vld [vmem:[#allocation2 + $0x40] sm:$0xff] }
  0x54   : > { %2926 = vset.pattern.permute.xlu1 %v3046_v3  ;;  %387 = vperm.xlu0 %2924, %v359_v5   ;;  %v918_v45 = vld [vmem:[#allocation2 + $0x60] sm:$0xff] }
  0x55   : > { %392 = vperm.xlu1 %2926, %v360_v6   ;;  %v2736_v49 = vcombine.high %v914_v44, %v918_v45  ;;  %v922_v50 = vld [vmem:[#allocation2 + $0x80] sm:$0xff]  ;;  %1332 = vmatprep.subr.bf16.mxu1 %v2728_v41  ;;  %v2735_v54 = vcombine.low %v914_v44, %v918_v45  ;;  %v915_v45 = vld [vmem:[#allocation2 + $0x48] sm:$0xff] }
  0x56   : > { %2814 = vmatpush3.bf16.msra.mxu0 %v2951_v13  ;;  %v926_v51 = vld [vmem:[#allocation2 + $0xa0] sm:$0xff]  ;;  %1333 = vmatpush1.bf16.msra.mxu1 %v2727_v43 }
  0x57   : > { %2815 = vmatprep.subr.bf16.mxu0 %v2952_v15  ;;  %1334 = vmatprep.subr.bf16.mxu1 %v2736_v49  ;;  %v2744_v57 = vcombine.high %v922_v50, %v926_v51  ;;  %v930_v61 = vld [vmem:[#allocation2 + $0xc0] sm:$0xff] }
  0x58   : > { %2927 = vset.pattern.permute.xlu0 %v3045_v2  ;;  %v934_v62 = vld [vmem:[#allocation2 + $0xe0] sm:$0xff] }
  0x59   : > { %2928 = vset.pattern.permute.xlu1 %v3045_v2  ;;  %484 = vperm.xlu0 %2927, %v359_v5   ;;  %v942_v10 = vld [vmem:[#allocation2 + $0x120] sm:$0xff] }
  0x5a   : > { %488 = vperm.xlu1 %2928, %v360_v6   ;;  %2816 = vmatpush3.bf16.msra.mxu0 %v2952_v15 }
  0x5b   : > { %1445 = vmatprep.subr.bf16.mxu0 %v2730_v48  ;;  %1335 = vmatpush1.bf16.msra.mxu1 %v2735_v54  ;;  %v919_v48 = vld [vmem:[#allocation2 + $0x68] sm:$0xff] }
  0x5c   : > { %1336 = vmatprep.subr.bf16.mxu1 %v2744_v57 }
  0x5d   : > { %496 = vperm.xlu0 %2927, %v362_v7  }
  0x5e   : > { %2929 = vset.pattern.permute.xlu1 %v3047_v8 }
  0x5f   : > { %576 = vperm.xlu1 %2929, %v357_v1   ;;  %v2743_v1 = vcombine.low %v922_v50, %v926_v51 }
  0x61   : > { %500 = vperm.xlu0 %2927, %v363_v9   ;;  %1337 = vmatpush1.bf16.msra.mxu1 %v2743_v1 }
  0x63   : > { %584 = vperm.xlu1 %2929, %v359_v5  }
  0x65   : > { %2933 = vset.pattern.permute.xlu0 %v3047_v8 }
  0x66   : > { %580 = vperm.xlu0 %2933, %v358_v4   ;;  %v2752_v4 = vcombine.high %v930_v61, %v934_v62 }
  0x67   : > { %588 = vperm.xlu1 %2929, %v360_v6  }
  0x68   : > { %1338 = vmatprep.subr.bf16.mxu1 %v2752_v4  ;;  %v935_v4 = vld [vmem:[#allocation2 + $0xe8] sm:$0xff] }
  0x6a   : > { %592 = vperm.xlu0 %2933, %v361_v12  }
  0x6b   : > { %2930 = vset.pattern.permute.xlu1 %v3046_v3 }
  0x6c   : > { %402 = vperm.xlu1 %2930, %v362_v7  }
  0x6e   : > { %604 = vperm.xlu0 %2933, %v364_v14  }
  0x70   : > { %2931 = vset.pattern.permute.xlu1 %v3045_v2 }
  0x71   : > { %492 = vperm.xlu1 %2931, %v361_v12  }
  0x72   : > { %612 = vperm.xlu0 %2933, %v366_v16  }
  0x75   : > { %2932 = vset.pattern.permute.xlu1 %v3046_v3 }
  0x76   : > { %407 = vperm.xlu1 %2932, %v363_v9   ;;  %2941 = vset.pattern.permute.xlu0 %v3046_v3 }
  0x77   : > { %397 = vperm.xlu0 %2941, %v361_v12  }
  0x7a   : > { %412 = vperm.xlu1 %2932, %v364_v14  }
  0x7b   : > { %422 = vperm.xlu0 %2941, %v366_v16  }
  0x7e   : > { %2934 = vset.pattern.permute.xlu1 %v3045_v2 }
  0x7f   : > { %504 = vperm.xlu1 %2934, %v364_v14   ;;  %427 = vperm.xlu0 %2941, %v367_v17   ;;  %v2751_v14 = vcombine.low %v930_v61, %v934_v62  ;;  %v927_v61 = vld [vmem:[#allocation2 + $0xa8] sm:$0xff] }
  0x81   : > { %1339 = vmatpush1.bf16.msra.mxu1 %v2751_v14  ;;  %v947_v14 = vld [vmem:[#allocation2 + $0x148] sm:$0xff] }
  0x83   : > { %2935 = vset.pattern.permute.xlu1 %v3047_v8  ;;  %437 = vperm.xlu0 %2941, %v369_v18  }
  0x84   : > { %596 = vperm.xlu1 %2935, %v362_v7  }
  0x87   : > { %2942 = vset.pattern.permute.xlu0 %v3045_v2 }
  0x88   : > { %600 = vperm.xlu1 %2935, %v363_v9   ;;  %516 = vperm.xlu0 %2942, %v367_v17   ;;  %v938_v9 = vld [vmem:[#allocation2 + $0x100] sm:$0xff] }
  0x8c   : > { %2936 = vset.pattern.permute.xlu1 %v3046_v3  ;;  %528 = vperm.xlu0 %2942, %v370_v19  }
  0x8d   : > { %417 = vperm.xlu1 %2936, %v365_v20  }
  0x90   : > { %532 = vperm.xlu0 %2942, %v371_v21  }
  0x91   : > { %2937 = vset.pattern.permute.xlu1 %v3045_v2 }
  0x92   : > { %508 = vperm.xlu1 %2937, %v365_v20  }
  0x94   : > { %2947 = vset.pattern.permute.xlu0 %v3047_v8 }
  0x95   : > { %624 = vperm.xlu0 %2947, %v369_v18  }
  0x96   : > { %512 = vperm.xlu1 %2937, %v366_v16   ;;  %v3295_v16 = vld [vmem:[%s4976_s2] ss:$0 sm:$0xff] }
  0x99   : > { %636 = vperm.xlu0 %2947, %v372_v23  }
  0x9a   : > { %2938 = vset.pattern.permute.xlu1 %v3046_v3 }
  0x9b   : > { %432 = vperm.xlu1 %2938, %v368_v22  }
  0x9f   : > { %2939 = vset.pattern.permute.xlu1 %v3045_v2 }
  0xa0   : > { %520 = vperm.xlu1 %2939, %v368_v22  }
  0xa4   : > { %2940 = vset.pattern.permute.xlu1 %v3047_v8 }
  0xa5   : > { %608 = vperm.xlu1 %2940, %v365_v20  }
  0xa9   : > { %616 = vperm.xlu1 %2940, %v367_v17  }
  0xad   : > { %620 = vperm.xlu1 %2940, %v368_v22  }
  0xb1   : > { %2943 = vset.pattern.permute.xlu1 %v3046_v3 }
  0xb2   : > { %442 = vperm.xlu1 %2943, %v370_v19  }
  0xb6   : > { %2944 = vset.pattern.permute.xlu1 %v3045_v2 }
  0xb7   : > { %524 = vperm.xlu1 %2944, %v369_v18  }
  0xbb   : > { %2945 = vset.pattern.permute.xlu1 %v3046_v3 }
  0xbc   : > { %447 = vperm.xlu1 %2945, %v371_v21  }
  0xc0   : > { %452 = vperm.xlu1 %2945, %v372_v23  }
  0xc4   : > { %2946 = vset.pattern.permute.xlu1 %v3045_v2 }
  0xc5   : > { %536 = vperm.xlu1 %2946, %v372_v23   ;;  %v946_v23 = vld [vmem:[#allocation2 + $0x140] sm:$0xff] }
  0xc9   : > { %2948 = vset.pattern.permute.xlu1 %v3047_v8 }
  0xca   : > { %628 = vperm.xlu1 %2948, %v370_v19   ;;  %v2760_v19 = vcombine.high %v938_v9, %v942_v10 }
  0xcb   : > { %v477_v24 = vpop.permute.xlu1 %476  ;;  %v378_v25 = vpop.permute.xlu0 %377 }
  0xcc   : > { %v543_v58 = vmul.f32 %v3266_v46, %v477_v24  ;;  %v459_v59 = vmul.f32 %v3270_v47, %v378_v25  ;;  %v950_v24 = vld [vmem:[#allocation2 + $0x160] sm:$0xff]  ;;  %1340 = vmatprep.subr.bf16.mxu1 %v2760_v19 }
  0xcd   : > { %v2768_v37 = vcombine.high %v946_v23, %v950_v24  ;;  %v2767_v49 = vcombine.low %v946_v23, %v950_v24 }
  0xce   : > { %632 = vperm.xlu1 %2948, %v371_v21   ;;  %v559_v5 = vadd.f32 %v543_v58, %v459_v59  ;;  %v2738_v58 = vcombine.high %v915_v45, %v919_v48 }
  0xcf   : > { %v481_v27 = vpop.permute.xlu1 %480  ;;  %v383_v28 = vpop.permute.xlu0 %382 }
  0xd0   : > { %v544_v6 = vmul.f32 %v3266_v46, %v481_v27  ;;  %v460_v7 = vmul.f32 %v3270_v47, %v383_v28 }
  0xd2   : > { %v560_v20 = vadd.f32 %v544_v6, %v460_v7  ;;  %v939_v7 = vld [vmem:[#allocation2 + $0x108] sm:$0xff] }
  0xd3   : > { %v388_v30 = vpop.permute.xlu0 %387 }
  0xd4   : > { %v393_v31 = vpop.permute.xlu1 %392  ;;  %v461_v55 = vmul.f32 %v3270_v47, %v388_v30  ;;  %v2759_v30 = vcombine.low %v938_v9, %v942_v10 }
  0xd5   : > { %v462_v15 = vmul.f32 %v3270_v47, %v393_v31 }
  0xd6   : > { %1341 = vmatpush1.bf16.msra.mxu1 %v2759_v30 }
  0xd7   : > { %1342 = vmatprep.subr.bf16.mxu1 %v2768_v37 }
  0xd8   : > { %v485_v35 = vpop.permute.xlu0 %484 }
  0xd9   : > { %v489_v40 = vpop.permute.xlu1 %488  ;;  %v545_v56 = vmul.f32 %v3266_v46, %v485_v35 }
  0xda   : > { %v546_v11 = vmul.f32 %v3266_v46, %v489_v40  ;;  %1343 = vmatpush1.bf16.msra.mxu1 %v2767_v49 }
  0xdb   : > { %v561_v2 = vadd.f32 %v545_v56, %v461_v55  ;;  %v2729_v56 = vcombine.low %v3260_v39, %v3262_v42 }
  0xdc   : > { %v3274_v52 = vpop.permute.xlu0 %496  ;;  %v562_v25 = vadd.f32 %v546_v11, %v462_v15  ;;  %v951_v15 = vld [vmem:[#allocation2 + $0x168] sm:$0xff] }
  0xdd   : > { %v548_v23 = vmul.f32 %v3266_v46, %v3274_v52  ;;  %v2769_v30 = vcombine.low %v947_v14, %v951_v15 }
  0xde   : > { %v577_v60 = vpop.permute.xlu1 %576 }
  0xdf   : > { %v643_v63 = vmul.f32 %v3278_v53, %v577_v60  ;;  %v923_v60 = vld [vmem:[#allocation2 + $0x88] sm:$0xff] }
  0xe0   : > { %v3285_v0 = vpop.permute.xlu0 %500  ;;  %v2746_v1 = vcombine.high %v923_v60, %v927_v61  ;;  %v2745_v39 = vcombine.low %v923_v60, %v927_v61 }
  0xe1   : > { %v659_v13 = vadd.f32 %v643_v63, %v559_v5  ;;  %v2737_v63 = vcombine.low %v915_v45, %v919_v48 }
  0xe2   : > { %v585_v8 = vpop.permute.xlu1 %584 }
  0xe3   : > { %v645_v12 = vmul.f32 %v3278_v53, %v585_v8  ;;  %v681_v28 = vadd.f32 %v3295_v16, %v659_v13  ;;  %v943_v8 = vld [vmem:[#allocation2 + $0x128] sm:$0xff] }
  0xe5   : > { %v661_v17 = vadd.f32 %v645_v12, %v561_v2  ;;  %v581_v18 = vpop.permute.xlu0 %580  ;;  %v697_v43 = vmax.f32 %v681_v28, 0.0  ;;  %v931_v2 = vld [vmem:[#allocation2 + $0xc8] sm:$0xff]  ;;  %v2762_v12 = vcombine.high %v939_v7, %v943_v8 }
  0xe6   : > { %v644_v21 = vmul.f32 %v3278_v53, %v581_v18  ;;  %v589_v22 = vpop.permute.xlu1 %588  ;;  %v2754_v6 = vcombine.high %v931_v2, %v935_v4  ;;  %v2753_v11 = vcombine.low %v931_v2, %v935_v4 }
  0xe7   : > { %v646_v26 = vmul.f32 %v3278_v53, %v589_v22  ;;  %v683_v31 = vadd.f32 %v3295_v16, %v661_v17  ;;  %v2770_v22 = vcombine.high %v947_v14, %v951_v15 }
  0xe8   : > { %v660_v27 = vadd.f32 %v644_v21, %v560_v20  ;;  %v2761_v20 = vcombine.low %v939_v7, %v943_v8 }
  0xe9   : > { %v662_v34 = vadd.f32 %v646_v26, %v562_v25  ;;  %v593_v35 = vpop.permute.xlu0 %592  ;;  %v699_v50 = vmax.f32 %v683_v31, 0.0 }
  0xea   : > { %v682_v38 = vadd.f32 %v3295_v16, %v660_v27  ;;  %v647_v17 = vmul.f32 %v3278_v53, %v593_v35 }
  0xeb   : > { %v684_v40 = vadd.f32 %v3295_v16, %v662_v34  ;;  %v403_v41 = vpop.permute.xlu1 %402  ;;  %v549_v34 = vmul.f32 %v3266_v46, %v3285_v0 }
  0xec   : > { %v698_v44 = vmax.f32 %v682_v38, 0.0  ;;  %v464_v24 = vmul.f32 %v3270_v47, %v403_v41 }
  0xed   : > { %v700_v51 = vmax.f32 %v684_v40, 0.0  ;;  %v605_v54 = vpop.permute.xlu0 %604 }
  0xee   : > { %v713_v55 = vpack.c.bf16 %v698_v44, %v697_v43  ;;  %v650_v26 = vmul.f32 %v3278_v53, %v605_v54  ;;  %v564_v35 = vadd.f32 %v548_v23, %v464_v24 }
  0xef   : > { %v714_v57 = vpack.c.bf16 %v700_v51, %v699_v50 }
  0xf0   : > { %v493_v59 = vpop.permute.xlu1 %492  ;;  %2817 = vmatprep.mubr.msk.bf16.mxu0 %vm760_vm0, %v713_v55 }
  0xf1   : > { %2818 = vmatmul.mubr.msk.bf16.vlgmr.msra.gmra.mrb[0].mxu0 %vm760_vm0, %v714_v57  ;;  %v3307_v62 = vpop.permute.xlu0 %612  ;;  %v547_v13 = vmul.f32 %v3266_v46, %v493_v59 }
  0xf2   : > { %1446 = vmatpush1.bf16.msra.mxu0 %v2729_v56 }
  0xf3   : > { %1447 = vmatprep.subr.bf16.mxu0 %v2738_v58 }
  0xf5   : > { %v408_v5 = vpop.permute.xlu1 %407 }
  0xf6   : > { %1448 = vmatpush1.bf16.msra.mxu0 %v2737_v63  ;;  %v398_v42 = vpop.permute.xlu0 %397  ;;  %v465_v37 = vmul.f32 %v3270_v47, %v408_v5 }
  0xf7   : > { %1449 = vmatprep.subr.bf16.mxu0 %v2746_v1  ;;  %v463_v10 = vmul.f32 %v3270_v47, %v398_v42  ;;  %v652_v42 = vmul.f32 %v3278_v53, %v3307_v62 }
  0xf8   : > { %v565_v44 = vadd.f32 %v549_v34, %v465_v37 }
  0xf9   : > { %v413_v9 = vpop.permute.xlu1 %412  ;;  %v563_v18 = vadd.f32 %v547_v13, %v463_v10 }
  0xfa   : > { %1450 = vmatpush1.bf16.msra.mxu0 %v2745_v39  ;;  %v466_v25 = vmul.f32 %v3270_v47, %v413_v9  ;;  %v423_v60 = vpop.permute.xlu0 %422 }
  0xfb   : > { %1451 = vmatprep.subr.bf16.mxu0 %v2754_v6  ;;  %v663_v27 = vadd.f32 %v647_v17, %v563_v18  ;;  %v468_v39 = vmul.f32 %v3270_v47, %v423_v60 }
  0xfd   : > { %v685_v38 = vadd.f32 %v3295_v16, %v663_v27 }
  0xfe   : > { %v505_v19 = vpop.permute.xlu1 %504  ;;  %1452 = vmatpush1.bf16.msra.mxu0 %v2753_v11  ;;  %v428_v63 = vpop.permute.xlu0 %427 }
  0xff   : > { %v550_v21 = vmul.f32 %v3266_v46, %v505_v19  ;;  %1453 = vmatprep.subr.bf16.mxu0 %v2762_v12  ;;  %v701_v49 = vmax.f32 %v685_v38, 0.0  ;;  %v469_v12 = vmul.f32 %v3270_v47, %v428_v63  ;;  %v959_v63 = vld [vmem:[#allocation2 + $0x1a8] sm:$0xff] }
 0x101   : > { %v566_v28 = vadd.f32 %v550_v21, %v466_v25 }
 0x102   : > { %1454 = vmatpush1.bf16.msra.mxu0 %v2761_v20  ;;  %v438_v4 = vpop.permute.xlu0 %437 }
 0x103   : > { %v597_v31 = vpop.permute.xlu1 %596  ;;  %1455 = vmatprep.subr.bf16.mxu0 %v2770_v22  ;;  %v666_v40 = vadd.f32 %v650_v26, %v566_v28 }
 0x104   : > { %v648_v52 = vmul.f32 %v3278_v53, %v597_v31 }
 0x105   : > { %v688_v50 = vadd.f32 %v3295_v16, %v666_v40 }
 0x106   : > { %v664_v41 = vadd.f32 %v648_v52, %v564_v35  ;;  %1456 = vmatpush1.bf16.msra.mxu0 %v2769_v30 }
 0x107   : > { %v601_v43 = vpop.permute.xlu1 %600  ;;  %v704_v57 = vmax.f32 %v688_v50, 0.0  ;;  %v517_v8 = vpop.permute.xlu0 %516 }
 0x108   : > { %v686_v45 = vadd.f32 %v3295_v16, %v664_v41  ;;  %v649_v48 = vmul.f32 %v3278_v53, %v601_v43  ;;  %v553_v13 = vmul.f32 %v3266_v46, %v517_v8  ;;  %v962_v8 = vld [vmem:[#allocation2 + $0x1c0] sm:$0xff] }
 0x10a   : > { %v702_v0 = vmax.f32 %v686_v45, 0.0  ;;  %v665_v51 = vadd.f32 %v649_v48, %v565_v44  ;;  %v569_v62 = vadd.f32 %v553_v13, %v469_v12 }
 0x10b   : > { %v529_v44 = vpop.permute.xlu0 %528 }
 0x10c   : > { %v715_v54 = vpack.c.bf16 %v702_v0, %v701_v49  ;;  %v687_v55 = vadd.f32 %v3295_v16, %v665_v51  ;;  %v418_v56 = vpop.permute.xlu1 %417 }
 0x10d   : > { %v467_v10 = vmul.f32 %v3270_v47, %v418_v56  ;;  %v958_v56 = vld [vmem:[#allocation2 + $0x1a0] sm:$0xff] }
 0x10e   : > { %v703_v58 = vmax.f32 %v687_v55, 0.0  ;;  %2821 = vmatprep.mubr.msk.bf16.mxu0 %vm760_vm0, %v715_v54  ;;  %v471_v54 = vmul.f32 %v3270_v47, %v438_v4  ;;  %v954_v55 = vld [vmem:[#allocation2 + $0x180] sm:$0xff] }
 0x10f   : > { %v533_v48 = vpop.permute.xlu0 %532 }
 0x110   : > { %v716_v59 = vpack.c.bf16 %v704_v57, %v703_v58  ;;  %v955_v57 = vld [vmem:[#allocation2 + $0x188] sm:$0xff] }
 0x111   : > { %v509_v61 = vpop.permute.xlu1 %508 }
 0x112   : > { %2822 = vmatmul.mubr.msk.bf16.gmra.mrb[4].mxu0 %vm760_vm0, %v716_v59  ;;  %v551_v9 = vmul.f32 %v3266_v46, %v509_v61  ;;  %v2776_v61 = vcombine.high %v954_v55, %v958_v56 }
 0x114   : > { %v567_v15 = vadd.f32 %v551_v9, %v467_v10  ;;  %v625_v51 = vpop.permute.xlu0 %624  ;;  %1344 = vmatprep.subr.bf16.mxu1 %v2776_v61  ;;  %v966_v9 = vld [vmem:[#allocation2 + $0x1e0] sm:$0xff]  ;;  %v963_v10 = vld [vmem:[#allocation2 + $0x1c8] sm:$0xff] }
 0x115   : > { %v513_v1 = vpop.permute.xlu1 %512  ;;  %v655_v59 = vmul.f32 %v3278_v53, %v625_v51 }
 0x116   : > { %v552_v5 = vmul.f32 %v3266_v46, %v513_v1 }
 0x118   : > { %v568_v6 = vadd.f32 %v552_v5, %v468_v39  ;;  %v2777_v5 = vcombine.low %v955_v57, %v959_v63  ;;  %v2778_v39 = vcombine.high %v955_v57, %v959_v63  ;;  %v916_v63 = vld [vmem:[#allocation2 + $0x50] sm:$0xff] }
 0x11a   : > { %v433_v2 = vpop.permute.xlu1 %432  ;;  %v668_v11 = vadd.f32 %v652_v42, %v568_v6  ;;  %v2775_v42 = vcombine.low %v954_v55, %v958_v56  ;;  %v556_v6 = vmul.f32 %v3266_v46, %v529_v44  ;;  %1457 = vmatprep.subr.bf16.mxu0 %v2778_v39  ;;  %v912_v44 = vld [vmem:[#allocation2 + $0x30] sm:$0xff]  ;;  %v917_v39 = vld [vmem:[#allocation2 + $0x58] sm:$0xff] }
 0x11b   : > { %v470_v25 = vmul.f32 %v3270_v47, %v433_v2  ;;  %v637_v2 = vpop.permute.xlu0 %636  ;;  %1458 = vmatpush1.bf16.msra.mxu0 %v2777_v5  ;;  %v920_v5 = vld [vmem:[#allocation2 + $0x70] sm:$0xff] }
 0x11c   : > { %v690_v18 = vadd.f32 %v3295_v16, %v668_v11  ;;  %1345 = vmatpush1.bf16.msra.mxu1 %v2775_v42  ;;  %v658_v13 = vmul.f32 %v3278_v53, %v637_v2  ;;  %v921_v42 = vld [vmem:[#allocation2 + $0x78] sm:$0xff] }
 0x11e   : > { %v706_v24 = vmax.f32 %v690_v18, 0.0 }
 0x11f   : > { %v521_v7 = vpop.permute.xlu1 %520 }
 0x120   : > { %v554_v21 = vmul.f32 %v3266_v46, %v521_v7 }
 0x122   : > { %v570_v30 = vadd.f32 %v554_v21, %v470_v25  ;;  %v557_v21 = vmul.f32 %v3266_v46, %v533_v48  ;;  %v909_v48 = vld [vmem:[#allocation2 + $0x18] sm:$0xff] }
 0x124   : > { %v609_v14 = vpop.permute.xlu1 %608 }
 0x125   : > { %v651_v17 = vmul.f32 %v3278_v53, %v609_v14  ;;  %v2784_v14 = vcombine.high %v962_v8, %v966_v9 }
 0x127   : > { %v667_v19 = vadd.f32 %v651_v17, %v567_v15  ;;  %v967_v15 = vld [vmem:[#allocation2 + $0x1e8] sm:$0xff]  ;;  %1346 = vmatprep.subr.bf16.mxu1 %v2784_v14  ;;  %v2739_v14 = vcombine.low %v916_v63, %v920_v5 }
 0x128   : > { %v617_v20 = vpop.permute.xlu1 %616  ;;  %v2785_v18 = vcombine.low %v963_v10, %v967_v15 }
 0x129   : > { %v689_v22 = vadd.f32 %v3295_v16, %v667_v19  ;;  %v653_v23 = vmul.f32 %v3278_v53, %v617_v20  ;;  %v2786_v19 = vcombine.high %v963_v10, %v967_v15  ;;  %v3385_v10 = vcombine.high %v917_v39, %v921_v42 }
 0x12a   : > { %v3392_v15 = vcombine.low %v917_v39, %v921_v42 }
 0x12b   : > { %v705_v26 = vmax.f32 %v689_v22, 0.0  ;;  %v669_v27 = vadd.f32 %v653_v23, %v569_v62  ;;  %v2783_v62 = vcombine.low %v962_v8, %v966_v9  ;;  %1459 = vmatprep.subr.bf16.mxu0 %v2786_v19  ;;  %v2740_v8 = vcombine.high %v916_v63, %v920_v5  ;;  %v924_v9 = vld [vmem:[#allocation2 + $0x90] sm:$0xff] }
 0x12c   : > { %v621_v28 = vpop.permute.xlu1 %620  ;;  %1460 = vmatpush1.bf16.msra.mxu0 %v2785_v18  ;;  %v932_v18 = vld [vmem:[#allocation2 + $0xd0] sm:$0xff] }
 0x12d   : > { %v717_v31 = vpack.c.bf16 %v706_v24, %v705_v26  ;;  %v654_v34 = vmul.f32 %v3278_v53, %v621_v28  ;;  %v691_v35 = vadd.f32 %v3295_v16, %v669_v27  ;;  %1347 = vmatpush1.bf16.msra.mxu1 %v2783_v62  ;;  %v936_v62 = vld [vmem:[#allocation2 + $0xf0] sm:$0xff] }
 0x12f   : > { %v670_v37 = vadd.f32 %v654_v34, %v570_v30  ;;  %2825 = vmatprep.mubr.msk.bf16.mxu0 %vm760_vm0, %v717_v31  ;;  %v707_v40 = vmax.f32 %v691_v35, 0.0 }
 0x131   : > { %v692_v52 = vadd.f32 %v3295_v16, %v670_v37  ;;  %v443_v38 = vpop.permute.xlu1 %442 }
 0x132   : > { %v472_v7 = vmul.f32 %v3270_v47, %v443_v38 }
 0x133   : > { %v708_v41 = vmax.f32 %v692_v52, 0.0 }
 0x134   : > { %v572_v20 = vadd.f32 %v556_v6, %v472_v7 }
 0x135   : > { %v718_v43 = vpack.c.bf16 %v708_v41, %v707_v40 }
 0x136   : > { %v525_v45 = vpop.permute.xlu1 %524 }
 0x137   : > { %2826 = vmatmul.mubr.msk.bf16.gmra.mrb[8].mxu0 %vm760_vm0, %v718_v43  ;;  %v555_v0 = vmul.f32 %v3266_v46, %v525_v45  ;;  %v908_v43 = vld [vmem:[#allocation2 + $0x10] sm:$0xff] }
 0x138   : > { %v2732_v45 = vcombine.high %v908_v43, %v912_v44 }
 0x139   : > { %v571_v58 = vadd.f32 %v555_v0, %v471_v54 }
 0x13a   : > { %1558 = vmatprep.subr.bf16.mxu1 %v2732_v45  ;;  %v960_v45 = vld [vmem:[#allocation2 + $0x1b0] sm:$0xff] }
 0x13b   : > { %v448_v49 = vpop.permute.xlu1 %447  ;;  %v671_v11 = vadd.f32 %v655_v59, %v571_v58 }
 0x13c   : > { %v473_v22 = vmul.f32 %v3270_v47, %v448_v49  ;;  %v913_v49 = vld [vmem:[#allocation2 + $0x38] sm:$0xff] }
 0x13d   : > { %v693_v24 = vadd.f32 %v3295_v16, %v671_v11  ;;  %v928_v11 = vld [vmem:[#allocation2 + $0xb0] sm:$0xff] }
 0x13e   : > { %v573_v28 = vadd.f32 %v557_v21, %v473_v22  ;;  %v937_v21 = vld [vmem:[#allocation2 + $0xf8] sm:$0xff]  ;;  %v2747_v22 = vcombine.low %v924_v9, %v928_v11 }
 0x13f   : > { %v453_v50 = vpop.permute.xlu1 %452  ;;  %v709_v34 = vmax.f32 %v693_v24, 0.0  ;;  %v2756_v24 = vcombine.high %v932_v18, %v936_v62 }
 0x140   : > { %v474_v4 = vmul.f32 %v3270_v47, %v453_v50  ;;  %v3367_v50 = vcombine.high %v909_v48, %v913_v49 }
 0x142   : > { %1671 = vmatprep.subr.bf16.mxu0 %v3367_v50 }
 0x144   : > { %v537_v60 = vpop.permute.xlu1 %536 }
 0x145   : > { %v558_v1 = vmul.f32 %v3266_v46, %v537_v60 }
 0x147   : > { %v574_v12 = vadd.f32 %v558_v1, %v474_v4  ;;  %v3383_v4 = vcombine.low %v909_v48, %v913_v49  ;;  %v957_v48 = vld [vmem:[#allocation2 + $0x198] sm:$0xff] }
 0x148   : > { %v961_v49 = vld [vmem:[#allocation2 + $0x1b8] sm:$0xff] }
 0x149   : > { %v629_v17 = vpop.permute.xlu1 %628  ;;  %v674_v25 = vadd.f32 %v658_v13, %v574_v12  ;;  %v925_v12 = vld [vmem:[#allocation2 + $0x98] sm:$0xff] }
 0x14a   : > { %v656_v23 = vmul.f32 %v3278_v53, %v629_v17  ;;  %v929_v13 = vld [vmem:[#allocation2 + $0xb8] sm:$0xff]  ;;  %v2748_v17 = vcombine.high %v924_v9, %v928_v11 }
 0x14b   : > { %v696_v46 = vadd.f32 %v3295_v16, %v674_v25  ;;  %v3395_v19 = vcombine.high %v925_v12, %v929_v13  ;;  %v940_v25 = vld [vmem:[#allocation2 + $0x110] sm:$0xff] }
 0x14c   : > { %v672_v26 = vadd.f32 %v656_v23, %v572_v20  ;;  %v933_v20 = vld [vmem:[#allocation2 + $0xd8] sm:$0xff]  ;;  %v3398_v23 = vcombine.low %v925_v12, %v929_v13 }
 0x14d   : > { %v633_v27 = vpop.permute.xlu1 %632  ;;  %v712_v38 = vmax.f32 %v696_v46, 0.0 }
 0x14e   : > { %v694_v30 = vadd.f32 %v3295_v16, %v672_v26  ;;  %v657_v31 = vmul.f32 %v3278_v53, %v633_v27  ;;  %v2731_v53 = vcombine.low %v908_v43, %v912_v44  ;;  %v3401_v26 = vcombine.high %v933_v20, %v937_v21  ;;  %v944_v27 = vld [vmem:[#allocation2 + $0x130] sm:$0xff] }
 0x14f   : > { %v2764_v46 = vcombine.high %v940_v25, %v944_v27  ;;  %v956_v44 = vld [vmem:[#allocation2 + $0x190] sm:$0xff] }
 0x150   : > { %v710_v47 = vmax.f32 %v694_v30, 0.0  ;;  %v673_v35 = vadd.f32 %v657_v31, %v573_v28  ;;  %v941_v28 = vld [vmem:[#allocation2 + $0x118] sm:$0xff]  ;;  %v2755_v31 = vcombine.low %v932_v18, %v936_v62 }
 0x151   : > { %v945_v30 = vld [vmem:[#allocation2 + $0x138] sm:$0xff] }
 0x152   : > { %v719_v37 = vpack.c.bf16 %v710_v47, %v709_v34  ;;  %v695_v52 = vadd.f32 %v3295_v16, %v673_v35  ;;  %v3373_v16 = vld [vmem:[%s4978_s4] ss:$0 sm:$0xff]  ;;  %v3408_v34 = vcombine.low %v933_v20, %v937_v21  ;;  %v948_v47 = vld [vmem:[#allocation2 + $0x150] sm:$0xff]  ;;  %v3411_v35 = vcombine.high %v941_v28, %v945_v30 }
 0x154   : > { %v711_v40 = vmax.f32 %v695_v52, 0.0  ;;  %2829 = vmatprep.mubr.msk.bf16.mxu0 %vm760_vm0, %v719_v37  ;;  %v952_v37 = vld [vmem:[#allocation2 + $0x170] sm:$0xff]  ;;  %v949_v52 = vld [vmem:[#allocation2 + $0x158] sm:$0xff] }
 0x155   : > { %v2772_v43 = vcombine.high %v948_v47, %v952_v37 }
 0x156   : > { %v720_v41 = vpack.c.bf16 %v712_v38, %v711_v40  ;;  %v953_v38 = vld [vmem:[#allocation2 + $0x178] sm:$0xff]  ;;  %v2763_v40 = vcombine.low %v940_v25, %v944_v27 }
 0x158   : > { %2830 = vmatmul.mubr.msk.bf16.gmra.mrb[12].mxu0 %vm760_vm0, %v720_v41  ;;  %v3414_v41 = vcombine.low %v941_v28, %v945_v30 }
 0x159   : > { %1477 = vmatprep.mubr.bf16.mxu0 %v3046_v3 }
 0x1c4   : > { %v2819_v0 = vpop.f32.mrb[0].mxu0 }
 0x1c5   : > { %v828_v51 = vadd.f32 %v2819_v0, %v3373_v16  ;;  %v819_v54 = vpop.f32.mrb[1].mxu0  ;;  %v2771_v0 = vcombine.low %v948_v47, %v952_v37 }
 0x1c6   : > { %v820_v55 = vadd.f32 %v3373_v16, %v819_v54  ;;  %v2820_v56 = vpop.f32.mrb[2].mxu0  ;;  %v2780_v54 = vcombine.high %v956_v44, %v960_v45 }
 0x1c7   : > { %v831_v57 = vadd.f32 %v2820_v56, %v3373_v16  ;;  %v822_v58 = vpop.f32.mrb[3].mxu0  ;;  %v884_v60 = vmax.f32 %v828_v51, 0.0  ;;  %v3420_v51 = vcombine.low %v949_v52, %v953_v38  ;;  %v3423_v56 = vcombine.high %v957_v48, %v961_v49 }
 0x1c8   : > { %v823_v59 = vadd.f32 %v3373_v16, %v822_v58  ;;  %v882_v1 = vmax.f32 %v820_v55, 0.0  ;;  %v964_v55 = vld [vmem:[#allocation2 + $0x1d0] sm:$0xff]  ;;  %v965_v58 = vld [vmem:[#allocation2 + $0x1d8] sm:$0xff] }
 0x1c9   : > { %v885_v61 = vmax.f32 %v831_v57, 0.0  ;;  %v968_v57 = vld [vmem:[#allocation2 + $0x1f0] sm:$0xff] }
 0x1ca   : > { %v883_v2 = vmax.f32 %v823_v59, 0.0  ;;  %v969_v59 = vld [vmem:[#allocation2 + $0x1f8] sm:$0xff]  ;;  %v2787_v12 = vcombine.low %v964_v55, %v968_v57 }
 0x1cb   : > { %v3379_v6 = vpack.c.bf16 %v885_v61, %v884_v60  ;;  %v2779_v60 = vcombine.low %v956_v44, %v960_v45  ;;  %v3426_v61 = vcombine.low %v957_v48, %v961_v49  ;;  %v3435_v13 = vcombine.low %v965_v58, %v969_v59 }
 0x1cc   : > { %v3381_v7 = vpack.c.bf16 %v883_v2, %v882_v1  ;;  %v2788_v1 = vcombine.high %v964_v55, %v968_v57  ;;  %v3429_v2 = vcombine.high %v965_v58, %v969_v59 }
 0x1ce   : > { %1365 = vmatmul.mubr.bf16.vlgmr.msra.gmra.mrb[0].mxu1 %v3381_v7  ;;  %1478 = vmatmul.mubr.bf16.vlgmr.msra.gmra.mrb[16].mxu0 %v3381_v7 }
 0x1cf   : > { %1374 = vmatprep.mubr.bf16.mxu1 %v3046_v3  ;;  %1487 = vmatprep.mubr.bf16.mxu0 %v3046_v3 }
 0x1d0   : > { %1559 = vmatpush1.bf16.msra.mxu1 %v2731_v53  ;;  %1672 = vmatpush1.bf16.msra.mxu0 %v3383_v4  ;;  %v3417_v53 = vcombine.high %v949_v52, %v953_v38 }
 0x1d1   : > { %1560 = vmatprep.subr.bf16.mxu1 %v2740_v8  ;;  %1673 = vmatprep.subr.bf16.mxu0 %v3385_v10 }
 0x1d4   : > { %1561 = vmatpush1.bf16.msra.mxu1 %v2739_v14  ;;  %1674 = vmatpush1.bf16.msra.mxu0 %v3392_v15 }
 0x1d5   : > { %1562 = vmatprep.subr.bf16.mxu1 %v2748_v17  ;;  %1675 = vmatprep.subr.bf16.mxu0 %v3395_v19 }
 0x1d6   : > { %1375 = vmatmul.mubr.bf16.gmra.mrb[4].mxu1 %v3379_v6  ;;  %1488 = vmatmul.mubr.bf16.gmra.mrb[20].mxu0 %v3379_v6 }
 0x1d7   : > { %1384 = vmatprep.mubr.bf16.mxu1 %v3046_v3  ;;  %1497 = vmatprep.mubr.bf16.mxu0 %v3046_v3 }
 0x1d8   : > { %1563 = vmatpush1.bf16.msra.mxu1 %v2747_v22  ;;  %1676 = vmatpush1.bf16.msra.mxu0 %v3398_v23 }
 0x1d9   : > { %1564 = vmatprep.subr.bf16.mxu1 %v2756_v24  ;;  %1677 = vmatprep.subr.bf16.mxu0 %v3401_v26 }
 0x1dc   : > { %1565 = vmatpush1.bf16.msra.mxu1 %v2755_v31  ;;  %1678 = vmatpush1.bf16.msra.mxu0 %v3408_v34 }
 0x1dd   : > { %1566 = vmatprep.subr.bf16.mxu1 %v2764_v46  ;;  %1679 = vmatprep.subr.bf16.mxu0 %v3411_v35 }
 0x1e0   : > { %1567 = vmatpush1.bf16.msra.mxu1 %v2763_v40  ;;  %1680 = vmatpush1.bf16.msra.mxu0 %v3414_v41 }
 0x1e1   : > { %1568 = vmatprep.subr.bf16.mxu1 %v2772_v43  ;;  %1681 = vmatprep.subr.bf16.mxu0 %v3417_v53 }
 0x1e4   : > { %1569 = vmatpush1.bf16.msra.mxu1 %v2771_v0  ;;  %1682 = vmatpush1.bf16.msra.mxu0 %v3420_v51 }
 0x1e5   : > { %v2823_v63 = vpop.f32.mrb[4].mxu0  ;;  %1570 = vmatprep.subr.bf16.mxu1 %v2780_v54  ;;  %1683 = vmatprep.subr.bf16.mxu0 %v3423_v56 }
 0x1e6   : > { %v844_v5 = vadd.f32 %v2823_v63, %v3373_v16  ;;  %v835_v39 = vpop.f32.mrb[5].mxu0 }
 0x1e7   : > { %v836_v42 = vadd.f32 %v3373_v16, %v835_v39  ;;  %v2824_v8 = vpop.f32.mrb[6].mxu0 }
 0x1e8   : > { %v847_v9 = vadd.f32 %v2824_v8, %v3373_v16  ;;  %v838_v11 = vpop.f32.mrb[7].mxu0  ;;  %1571 = vmatpush1.bf16.msra.mxu1 %v2779_v60  ;;  %1684 = vmatpush1.bf16.msra.mxu0 %v3426_v61  ;;  %v888_v17 = vmax.f32 %v844_v5, 0.0 }
 0x1e9   : > { %v839_v14 = vadd.f32 %v3373_v16, %v838_v11  ;;  %1572 = vmatprep.subr.bf16.mxu1 %v2788_v1  ;;  %1685 = vmatprep.subr.bf16.mxu0 %v3429_v2  ;;  %v886_v62 = vmax.f32 %v836_v42, 0.0 }
 0x1ea   : > { %v889_v18 = vmax.f32 %v847_v9, 0.0 }
 0x1eb   : > { %v887_v20 = vmax.f32 %v839_v14, 0.0 }
 0x1ec   : > { %v3439_v21 = vpack.c.bf16 %v889_v18, %v888_v17  ;;  %1573 = vmatpush1.bf16.msra.mxu1 %v2787_v12  ;;  %1686 = vmatpush1.bf16.msra.mxu0 %v3435_v13 }
 0x1ed   : > { %v3442_v22 = vpack.c.bf16 %v887_v20, %v886_v62  ;;  %2833 = vmatprep.subr.bf16.mxu1 %v3367_v50 }
 0x1ef   : > { %1385 = vmatmul.mubr.bf16.gmra.mrb[8].mxu1 %v3442_v22  ;;  %1498 = vmatmul.mubr.bf16.gmra.mrb[24].mxu0 %v3442_v22 }
 0x1f0   : > { %1394 = vmatprep.mubr.bf16.mxu1 %v3046_v3  ;;  %1507 = vmatprep.mubr.bf16.mxu0 %v3046_v3 }
 0x1f7   : > { %1395 = vmatmul.mubr.bf16.gmra.mrb[12].mxu1 %v3439_v21  ;;  %1508 = vmatmul.mubr.bf16.gmra.mrb[28].mxu0 %v3439_v21 }
 0x1f8   : > { %1404 = vmatprep.mubr.bf16.mxu1 %v3046_v3  ;;  %1517 = vmatprep.mubr.bf16.mxu0 %v3046_v3 }
 0x20a   : > { %v2827_v24 = vpop.f32.mrb[8].mxu0 }
 0x20b   : > { %v860_v25 = vadd.f32 %v2827_v24, %v3373_v16  ;;  %v851_v50 = vpop.f32.mrb[9].mxu0 }
 0x20c   : > { %v852_v27 = vadd.f32 %v3373_v16, %v851_v50  ;;  %v2828_v28 = vpop.f32.mrb[10].mxu0 }
 0x20d   : > { %v863_v30 = vadd.f32 %v2828_v28, %v3373_v16  ;;  %v854_v31 = vpop.f32.mrb[11].mxu0  ;;  %v892_v47 = vmax.f32 %v860_v25, 0.0 }
 0x20e   : > { %v855_v46 = vadd.f32 %v3373_v16, %v854_v31  ;;  %v890_v52 = vmax.f32 %v852_v27, 0.0 }
 0x20f   : > { %v893_v37 = vmax.f32 %v863_v30, 0.0 }
 0x210   : > { %v891_v38 = vmax.f32 %v855_v46, 0.0 }
 0x211   : > { %v3457_v40 = vpack.c.bf16 %v893_v37, %v892_v47 }
 0x212   : > { %v902_v43 = vpack.c.bf16 %v891_v38, %v890_v52 }
 0x214   : > { %1405 = vmatmul.mubr.bf16.gmra.mrb[16].mxu1 %v902_v43  ;;  %1518 = vmatmul.mubr.bf16.gmra.mrb[32].mxu0 %v902_v43 }
 0x215   : > { %1414 = vmatprep.mubr.bf16.mxu1 %v3046_v3  ;;  %1527 = vmatprep.mubr.bf16.mxu0 %v3046_v3 }
 0x21c   : > { %1415 = vmatmul.mubr.bf16.gmra.mrb[20].mxu1 %v3457_v40  ;;  %1528 = vmatmul.mubr.bf16.gmra.mrb[36].mxu0 %v3457_v40 }
 0x21d   : > { %1424 = vmatprep.mubr.bf16.mxu1 %v3046_v3  ;;  %1537 = vmatprep.mubr.bf16.mxu0 %v3046_v3 }
 0x22b   : > { %v2831_v44 = vpop.f32.mrb[12].mxu0 }
 0x22c   : > { %v876_v45 = vadd.f32 %v2831_v44, %v3373_v16  ;;  %v867_v48 = vpop.f32.mrb[13].mxu0 }
 0x22d   : > { %v868_v49 = vadd.f32 %v3373_v16, %v867_v48  ;;  %v2832_v0 = vpop.f32.mrb[14].mxu0 }
 0x22e   : > { %v879_v54 = vadd.f32 %v2832_v0, %v3373_v16  ;;  %v870_v55 = vpop.f32.mrb[15].mxu0  ;;  %v896_v58 = vmax.f32 %v876_v45, 0.0 }
 0x22f   : > { %v871_v57 = vadd.f32 %v3373_v16, %v870_v55  ;;  %v894_v60 = vmax.f32 %v868_v49, 0.0  ;;  %v3515_v16 = vld [vmem:[%s4980_s6] sm:$0xff] }
 0x230   : > { %v897_v59 = vmax.f32 %v879_v54, 0.0 }
 0x231   : > { %v895_v63 = vmax.f32 %v871_v57, 0.0 }
 0x232   : > { %v905_v1 = vpack.c.bf16 %v897_v59, %v896_v58 }
 0x233   : > { %v904_v5 = vpack.c.bf16 %v895_v63, %v894_v60 }
 0x235   : > { %1425 = vmatmul.mubr.bf16.gmra.mrb[24].mxu1 %v904_v5  ;;  %1538 = vmatmul.mubr.bf16.gmra.mrb[40].mxu0 %v904_v5 }
 0x236   : > { %1434 = vmatprep.mubr.bf16.mxu1 %v3046_v3  ;;  %1547 = vmatprep.mubr.bf16.mxu0 %v3046_v3 }
 0x23d   : > { %1435 = vmatmul.mubr.bf16.gmra.mrb[28].mxu1 %v905_v1  ;;  %1548 = vmatmul.mubr.bf16.gmra.mrb[44].mxu0 %v905_v1 }
 0x23e   : > { %1590 = vmatprep.mubr.bf16.mxu1 %v3046_v3  ;;  %1703 = vmatprep.mubr.bf16.mxu0 %v3046_v3 }
 0x245   : > { %1591 = vmatmul.mubr.bf16.vlgmr.msra.gmra.mrb[32].mxu1 %v3381_v7  ;;  %1704 = vmatmul.mubr.bf16.vlgmr.msra.gmra.mrb[48].mxu0 %v3381_v7  ;;  %v3521_v7 = vrot.slane %v3515_v16, %v457_v33 }
 0x246   : > { %2841 = vmatpush1.bf16.msra.mxu1 %v3383_v4  ;;  %1600 = vmatprep.mubr.bf16.mxu1 %v3046_v3  ;;  %v3526_v4 = vrot.slane %v3515_v16, %v641_v36 }
 0x247   : > { %2834 = vmatprep.subr.bf16.mxu1 %v3385_v10  ;;  %1713 = vmatprep.mubr.bf16.mxu0 %v3046_v3 }
 0x24a   : > { %2842 = vmatpush1.bf16.msra.mxu1 %v3392_v15 }
 0x24b   : > { %2835 = vmatprep.subr.bf16.mxu1 %v3395_v19 }
 0x24d   : > { %1601 = vmatmul.mubr.bf16.gmra.mrb[36].mxu1 %v3379_v6  ;;  %1714 = vmatmul.mubr.bf16.gmra.mrb[52].mxu0 %v3379_v6  ;;  %v986_v6 = vsub.s32 3, %v3252_v29 }
 0x24e   : > { %1610 = vmatprep.mubr.bf16.mxu1 %v3046_v3  ;;  %1723 = vmatprep.mubr.bf16.mxu0 %v3046_v3 }
 0x24f   : > { %2843 = vmatpush1.bf16.msra.mxu1 %v3398_v23  ;;  %v3534_v10 = vrot.slane %v3515_v16, %v986_v6 }
 0x250   : > { %2836 = vmatprep.subr.bf16.mxu1 %v3401_v26 }
 0x253   : > { %2844 = vmatpush1.bf16.msra.mxu1 %v3408_v34 }
 0x254   : > { %2837 = vmatprep.subr.bf16.mxu1 %v3411_v35 }
 0x255   : > { %1611 = vmatmul.mubr.bf16.gmra.mrb[40].mxu1 %v3442_v22  ;;  %1724 = vmatmul.mubr.bf16.gmra.mrb[56].mxu0 %v3442_v22 }
 0x256   : > { %1620 = vmatprep.mubr.bf16.mxu1 %v3046_v3  ;;  %1733 = vmatprep.mubr.bf16.mxu0 %v3046_v3 }
 0x257   : > { %2845 = vmatpush1.bf16.msra.mxu1 %v3414_v41 }
 0x258   : > { %2838 = vmatprep.subr.bf16.mxu1 %v3417_v53 }
 0x25b   : > { %2846 = vmatpush1.bf16.msra.mxu1 %v3420_v51 }
 0x25c   : > { %2839 = vmatprep.subr.bf16.mxu1 %v3423_v56 }
 0x25d   : > { %1621 = vmatmul.mubr.bf16.gmra.mrb[44].mxu1 %v3439_v21  ;;  %1734 = vmatmul.mubr.bf16.gmra.mrb[60].mxu0 %v3439_v21 }
 0x25e   : > { %1630 = vmatprep.mubr.bf16.mxu1 %v3046_v3  ;;  %1743 = vmatprep.mubr.bf16.mxu0 %v3046_v3 }
 0x25f   : > { %2847 = vmatpush1.bf16.msra.mxu1 %v3426_v61 }
 0x260   : > { %2840 = vmatprep.subr.bf16.mxu1 %v3429_v2 }
 0x263   : > { %2848 = vmatpush1.bf16.msra.mxu1 %v3435_v13 }
 0x265   : > { %1631 = vmatmul.mubr.bf16.gmra.mrb[48].mxu1 %v902_v43  ;;  %1744 = vmatmul.mubr.bf16.gmra.mrb[64].mxu0 %v902_v43 }
 0x266   : > { %1640 = vmatprep.mubr.bf16.mxu1 %v3046_v3  ;;  %1753 = vmatprep.mubr.bf16.mxu0 %v3046_v3 }
 0x26d   : > { %1641 = vmatmul.mubr.bf16.gmra.mrb[52].mxu1 %v3457_v40  ;;  %1754 = vmatmul.mubr.bf16.gmra.mrb[68].mxu0 %v3457_v40 }
 0x26e   : > { %1650 = vmatprep.mubr.bf16.mxu1 %v3046_v3  ;;  %1763 = vmatprep.mubr.bf16.mxu0 %v3046_v3 }
 0x275   : > { %1651 = vmatmul.mubr.bf16.gmra.mrb[56].mxu1 %v904_v5  ;;  %1764 = vmatmul.mubr.bf16.gmra.mrb[72].mxu0 %v904_v5 }
 0x276   : > { %1660 = vmatprep.mubr.bf16.mxu1 %v3046_v3 }
 0x27d   : > { %1661 = vmatmul.mubr.bf16.gmra.mrb[60].mxu1 %v905_v1 }
 0x27e   : > { %1773 = vmatprep.mubr.bf16.mxu1 %v3046_v3  ;;  %v3531_v3 = vrot.slane %v3515_v16, %v541_v32 }
 0x285   : > { %1774 = vmatmul.mubr.bf16.vlgmr.msra.gmra.mrb[64].mxu1 %v905_v1 }
 0x2a1   : > { %v1366_v15 = vpop.f32.mrb[0].mxu1  ;;  %v1479_v19 = vpop.f32.mrb[16].mxu0 }
 0x2a2   : > { %v3537_v23 = vadd.f32 %v1366_v15, %v3521_v7  ;;  %v3540_v33 = vadd.f32 %v1479_v19, %v3526_v4  ;;  %v1368_v26 = vpop.f32.mrb[1].mxu1  ;;  %v1481_v34 = vpop.f32.mrb[17].mxu0 }
 0x2a3   : > { %v3543_v36 = vadd.f32 %v1368_v26, %v3531_v3  ;;  %v3546_v35 = vadd.f32 %v1481_v34, %v3534_v10  ;;  %v1370_v32 = vpop.f32.mrb[2].mxu1  ;;  %v1483_v41 = vpop.f32.mrb[18].mxu0 }
 0x2a4   : > { %5095 = vst [vmem:[#allocation6_spill] sm:$0xff] %v3537_v23  ;;  %v3551_v56 = vadd.f32 %v1370_v32, %v3521_v7  ;;  %v3554_v61 = vadd.f32 %v1483_v41, %v3526_v4  ;;  %v1372_v2 = vpop.f32.mrb[3].mxu1  ;;  %v1485_v39 = vpop.f32.mrb[19].mxu0 }
 0x2a5   : > { %v3559_v9 = vadd.f32 %v1372_v2, %v3531_v3  ;;  %v3562_v11 = vadd.f32 %v1485_v39, %v3534_v10 }
 0x2a6   : > { %5096 = vst [vmem:[#allocation7_spill] sm:$0xff] %v3551_v56  ;;  %5097 = vst [vmem:[#allocation8_spill] sm:$0xff] %v3554_v61 }
 0x2a7   : > { %5098 = vst [vmem:[#allocation9_spill] sm:$0xff] %v3559_v9  ;;  %5099 = vst [vmem:[#allocation10_spill] sm:$0xff] %v3562_v11 }
 0x2a9   : > { %v1376_v18 = vpop.f32.mrb[4].mxu1  ;;  %v1489_v62 = vpop.f32.mrb[20].mxu0 }
 0x2aa   : > { %v3569_v20 = vadd.f32 %v1376_v18, %v3521_v7  ;;  %v3572_v21 = vadd.f32 %v1489_v62, %v3526_v4  ;;  %v1378_v22 = vpop.f32.mrb[5].mxu1  ;;  %v1491_v24 = vpop.f32.mrb[21].mxu0 }
 0x2ab   : > { %v3575_v25 = vadd.f32 %v1378_v22, %v3531_v3  ;;  %v3578_v50 = vadd.f32 %v1491_v24, %v3534_v10  ;;  %v1380_v27 = vpop.f32.mrb[6].mxu1  ;;  %v1493_v28 = vpop.f32.mrb[22].mxu0 }
 0x2ac   : > { %5100 = vst [vmem:[#allocation11_spill] sm:$0xff] %v3569_v20  ;;  %v3583_v46 = vadd.f32 %v1380_v27, %v3521_v7  ;;  %v3586_v47 = vadd.f32 %v1493_v28, %v3526_v4  ;;  %v1382_v37 = vpop.f32.mrb[7].mxu1  ;;  %v1495_v52 = vpop.f32.mrb[23].mxu0 }
 0x2ad   : > { %v3591_v43 = vadd.f32 %v1382_v37, %v3531_v3  ;;  %v3594_v44 = vadd.f32 %v1495_v52, %v3534_v10 }
 0x2ae   : > { %5101 = vst [vmem:[#allocation12_spill] sm:$0xff] %v3583_v46 }
 0x2c2   : > { %v1386_v54 = vpop.f32.mrb[8].mxu1  ;;  %v1499_v55 = vpop.f32.mrb[24].mxu0 }
 0x2c3   : > { %v3601_v57 = vadd.f32 %v1386_v54, %v3521_v7  ;;  %v3604_v58 = vadd.f32 %v1499_v55, %v3526_v4  ;;  %v1388_v59 = vpop.f32.mrb[9].mxu1  ;;  %v1501_v60 = vpop.f32.mrb[25].mxu0 }
 0x2c4   : > { %v3607_v63 = vadd.f32 %v1388_v59, %v3531_v3  ;;  %v3610_v1 = vadd.f32 %v1501_v60, %v3534_v10  ;;  %v1390_v5 = vpop.f32.mrb[10].mxu1  ;;  %v1503_v6 = vpop.f32.mrb[26].mxu0 }
 0x2c5   : > { %5102 = vst [vmem:[#allocation13_spill] sm:$0xff] %v3601_v57  ;;  %v3615_v26 = vadd.f32 %v1390_v5, %v3521_v7  ;;  %v3618_v34 = vadd.f32 %v1503_v6, %v3526_v4  ;;  %v1392_v32 = vpop.f32.mrb[11].mxu1  ;;  %v1505_v41 = vpop.f32.mrb[27].mxu0 }
 0x2c6   : > { %v3623_v18 = vadd.f32 %v1392_v32, %v3531_v3  ;;  %v3626_v62 = vadd.f32 %v1505_v41, %v3534_v10 }
 0x2c7   : > { %5103 = vst [vmem:[#allocation14_spill] sm:$0xff] %v3615_v26 }
 0x2ca   : > { %v1396_v37 = vpop.f32.mrb[12].mxu1  ;;  %v1509_v52 = vpop.f32.mrb[28].mxu0 }
 0x2cb   : > { %v3633_v54 = vadd.f32 %v1396_v37, %v3521_v7  ;;  %v3636_v55 = vadd.f32 %v1509_v52, %v3526_v4  ;;  %v1398_v59 = vpop.f32.mrb[13].mxu1  ;;  %v1511_v60 = vpop.f32.mrb[29].mxu0 }
 0x2cc   : > { %v3639_v5 = vadd.f32 %v1398_v59, %v3531_v3  ;;  %v3642_v6 = vadd.f32 %v1511_v60, %v3534_v10  ;;  %v1400_v32 = vpop.f32.mrb[14].mxu1  ;;  %v1513_v41 = vpop.f32.mrb[30].mxu0 }
 0x2cd   : > { %5104 = vst [vmem:[#allocation15_spill] sm:$0xff] %v3633_v54  ;;  %5105 = vst [vmem:[#allocation16_spill] sm:$0xff] %v3636_v55  ;;  %v3647_v24 = vadd.f32 %v1400_v32, %v3521_v7  ;;  %v3650_v52 = vadd.f32 %v1513_v41, %v3526_v4  ;;  %v1402_v27 = vpop.f32.mrb[15].mxu1  ;;  %v1515_v59 = vpop.f32.mrb[31].mxu0 }
 0x2ce   : > { %5106 = vst [vmem:[#allocation17_spill] sm:$0xff] %v3639_v5  ;;  %5107 = vst [vmem:[#allocation18_spill] sm:$0xff] %v3642_v6  ;;  %v3655_v39 = vadd.f32 %v1402_v27, %v3531_v3  ;;  %v3658_v19 = vadd.f32 %v1515_v59, %v3534_v10 }
 0x2cf   : > { %5108 = vst [vmem:[#allocation19_spill] sm:$0xff] %v3647_v24  ;;  %5109 = vst [vmem:[#allocation20_spill] sm:$0xff] %v3650_v52 }
 0x2d0   : > { %5110 = vst [vmem:[#allocation21_spill] sm:$0xff] %v3655_v39  ;;  %5111 = vst [vmem:[#allocation22_spill] sm:$0xff] %v3658_v19 }
 0x2e7   : > { %v1406_v22 = vpop.f32.mrb[16].mxu1  ;;  %v1519_v60 = vpop.f32.mrb[32].mxu0 }
 0x2e8   : > { %v3670_v27 = vadd.f32 %v1406_v22, %v3521_v7  ;;  %v3673_v59 = vadd.f32 %v1519_v60, %v3526_v4  ;;  %v1408_v2 = vpop.f32.mrb[17].mxu1  ;;  %v1521_v37 = vpop.f32.mrb[33].mxu0 }
 0x2e9   : > { %v3676_v32 = vadd.f32 %v1408_v2, %v3531_v3  ;;  %v3679_v28 = vadd.f32 %v1521_v37, %v3534_v10  ;;  %v1410_v41 = vpop.f32.mrb[18].mxu1  ;;  %v1523_v15 = vpop.f32.mrb[34].mxu0 }
 0x2ea   : > { %5112 = vst [vmem:[#allocation23_spill] sm:$0xff] %v3670_v27  ;;  %5113 = vst [vmem:[#allocation24_spill] sm:$0xff] %v3673_v59  ;;  %v3684_v22 = vadd.f32 %v1410_v41, %v3521_v7  ;;  %v3687_v60 = vadd.f32 %v1523_v15, %v3526_v4  ;;  %v1412_v49 = vpop.f32.mrb[19].mxu1  ;;  %v1525_v45 = vpop.f32.mrb[35].mxu0 }
 0x2eb   : > { %5114 = vst [vmem:[#allocation25_spill] sm:$0xff] %v3676_v32  ;;  %5115 = vst [vmem:[#allocation26_spill] sm:$0xff] %v3679_v28  ;;  %v3692_v37 = vadd.f32 %v1412_v49, %v3531_v3  ;;  %v3695_v31 = vadd.f32 %v1525_v45, %v3534_v10 }
 0x2ec   : > { %5116 = vst [vmem:[#allocation27_spill] sm:$0xff] %v3684_v22  ;;  %5117 = vst [vmem:[#allocation28_spill] sm:$0xff] %v3687_v60 }
 0x2ed   : > { %5118 = vst [vmem:[#allocation29_spill] sm:$0xff] %v3692_v37  ;;  %5119 = vst [vmem:[#allocation30_spill] sm:$0xff] %v3695_v31 }
 0x2ef   : > { %v1416_v38 = vpop.f32.mrb[20].mxu1  ;;  %v1529_v30 = vpop.f32.mrb[36].mxu0 }
 0x2f0   : > { %v3702_v2 = vadd.f32 %v1416_v38, %v3521_v7  ;;  %v3705_v40 = vadd.f32 %v1529_v30, %v3526_v4  ;;  %v1418_v49 = vpop.f32.mrb[21].mxu1  ;;  %v1531_v8 = vpop.f32.mrb[37].mxu0 }
 0x2f1   : > { %v3708_v45 = vadd.f32 %v1418_v49, %v3531_v3  ;;  %v3711_v48 = vadd.f32 %v1531_v8, %v3534_v10  ;;  %v1420_v41 = vpop.f32.mrb[22].mxu1  ;;  %v1533_v0 = vpop.f32.mrb[38].mxu0 }
 0x2f2   : > { %5120 = vst [vmem:[#allocation31_spill] sm:$0xff] %v3702_v2  ;;  %5121 = vst [vmem:[#allocation32_spill] sm:$0xff] %v3705_v40  ;;  %v3716_v38 = vadd.f32 %v1420_v41, %v3521_v7  ;;  %v3719_v30 = vadd.f32 %v1533_v0, %v3526_v4  ;;  %v1422_v51 = vpop.f32.mrb[23].mxu1  ;;  %v1535_v13 = vpop.f32.mrb[39].mxu0 }
 0x2f3   : > { %5122 = vst [vmem:[#allocation33_spill] sm:$0xff] %v3708_v45  ;;  %5123 = vst [vmem:[#allocation34_spill] sm:$0xff] %v3711_v48  ;;  %v3724_v8 = vadd.f32 %v1422_v51, %v3531_v3  ;;  %v3727_v14 = vadd.f32 %v1535_v13, %v3534_v10 }
 0x2f4   : > { %5124 = vst [vmem:[#allocation35_spill] sm:$0xff] %v3716_v38  ;;  %5125 = vst [vmem:[#allocation36_spill] sm:$0xff] %v3719_v30 }
 0x2f5   : > { %5126 = vst [vmem:[#allocation37_spill] sm:$0xff] %v3724_v8  ;;  %5127 = vst [vmem:[#allocation38_spill] sm:$0xff] %v3727_v14  ;;  %v998_v14 = vsub.s32 6, %v3252_v29 }
 0x308   : > { %v1426_v53 = vpop.f32.mrb[24].mxu1  ;;  %v1539_v12 = vpop.f32.mrb[40].mxu0 }
 0x309   : > { %v3734_v49 = vadd.f32 %v1426_v53, %v3521_v7  ;;  %v3737_v42 = vadd.f32 %v1539_v12, %v3526_v4  ;;  %v1428_v51 = vpop.f32.mrb[25].mxu1  ;;  %v1541_v48 = vpop.f32.mrb[41].mxu0 }
 0x30a   : > { %v3740_v13 = vadd.f32 %v1428_v51, %v3531_v3  ;;  %v3743_v17 = vadd.f32 %v1541_v48, %v3534_v10  ;;  %v1430_v41 = vpop.f32.mrb[26].mxu1  ;;  %v1543_v15 = vpop.f32.mrb[42].mxu0 }
 0x30b   : > { %5128 = vst [vmem:[#allocation39_spill] sm:$0xff] %v3734_v49  ;;  %5129 = vst [vmem:[#allocation40_spill] sm:$0xff] %v3737_v42  ;;  %v3748_v53 = vadd.f32 %v1430_v41, %v3521_v7  ;;  %v3751_v12 = vadd.f32 %v1543_v15, %v3526_v4  ;;  %v1432_v30 = vpop.f32.mrb[27].mxu1  ;;  %v1545_v8 = vpop.f32.mrb[43].mxu0 }
 0x30c   : > { %5130 = vst [vmem:[#allocation41_spill] sm:$0xff] %v3740_v13  ;;  %5131 = vst [vmem:[#allocation42_spill] sm:$0xff] %v3743_v17  ;;  %v3756_v48 = vadd.f32 %v1432_v30, %v3531_v3  ;;  %v3759_v40 = vadd.f32 %v1545_v8, %v3534_v10  ;;  %v990_v8 = vsub.s32 4, %v3252_v29 }
 0x30d   : > { %5132 = vst [vmem:[#allocation43_spill] sm:$0xff] %v3748_v53  ;;  %5133 = vst [vmem:[#allocation44_spill] sm:$0xff] %v3751_v12  ;;  %v1002_v12 = vsub.s32 7, %v3252_v29 }
 0x30e   : > { %5134 = vst [vmem:[#allocation45_spill] sm:$0xff] %v3756_v48  ;;  %5135 = vst [vmem:[#allocation46_spill] sm:$0xff] %v3759_v40 }
 0x310   : > { %v1436_v42 = vpop.f32.mrb[28].mxu1  ;;  %v1549_v49 = vpop.f32.mrb[44].mxu0 }
 0x311   : > { %v3766_v51 = vadd.f32 %v1436_v42, %v3521_v7  ;;  %v3769_v38 = vadd.f32 %v1549_v49, %v3526_v4  ;;  %v1438_v30 = vpop.f32.mrb[29].mxu1  ;;  %v1551_v17 = vpop.f32.mrb[45].mxu0  ;;  %v994_v42 = vsub.s32 5, %v3252_v29 }
 0x312   : > { %v3774_v41 = vadd.f32 %v1438_v30, %v3531_v3  ;;  %v3777_v0 = vadd.f32 %v1551_v17, %v3534_v10  ;;  %v1440_v15 = vpop.f32.mrb[30].mxu1  ;;  %v1553_v40 = vpop.f32.mrb[46].mxu0 }
 0x313   : > { %5136 = vst [vmem:[#allocation47_spill] sm:$0xff] %v3766_v51  ;;  %5137 = vst [vmem:[#allocation48_spill] sm:$0xff] %v3769_v38  ;;  %v3784_v53 = vadd.f32 %v1440_v15, %v3521_v7  ;;  %v3787_v13 = vadd.f32 %v1553_v40, %v3526_v4  ;;  %v1442_v30 = vpop.f32.mrb[31].mxu1  ;;  %v1555_v45 = vpop.f32.mrb[47].mxu0  ;;  %v3800_v15 = vrot.slane %v3515_v16, %v990_v8 }
 0x314   : > { %5138 = vst [vmem:[#allocation49_spill] sm:$0xff] %v3774_v41  ;;  %5139 = vst [vmem:[#allocation50_spill] sm:$0xff] %v3777_v0  ;;  %v3792_v31 = vadd.f32 %v1442_v30, %v3531_v3  ;;  %v3795_v29 = vadd.f32 %v1555_v45, %v3534_v10  ;;  %v3803_v4 = vrot.slane %v3515_v16, %v998_v14 }
 0x315   : > { %5140 = vst [vmem:[#allocation51_spill] sm:$0xff] %v3784_v53  ;;  %5141 = vst [vmem:[#allocation52_spill] sm:$0xff] %v3787_v13  ;;  %v3808_v3 = vrot.slane %v3515_v16, %v994_v42  ;;  %v3811_v10 = vrot.slane %v3515_v16, %v1002_v12 }
 0x316   : > { %5142 = vst [vmem:[#allocation53_spill] sm:$0xff] %v3792_v31  ;;  %5143 = vst [vmem:[#allocation54_spill] sm:$0xff] %v3795_v29 }
 0x318   : > { %v1592_v45 = vpop.f32.mrb[32].mxu1  ;;  %v1705_v30 = vpop.f32.mrb[48].mxu0 }
 0x319   : > { %v3814_v7 = vadd.f32 %v1592_v45, %v3800_v15  ;;  %v3817_v8 = vadd.f32 %v1705_v30, %v3803_v4  ;;  %v1594_v14 = vpop.f32.mrb[33].mxu1  ;;  %v1707_v48 = vpop.f32.mrb[49].mxu0 }
 0x31a   : > { %v3820_v40 = vadd.f32 %v1594_v14, %v3808_v3  ;;  %v3823_v2 = vadd.f32 %v1707_v48, %v3811_v10  ;;  %v1596_v42 = vpop.f32.mrb[34].mxu1  ;;  %v1709_v17 = vpop.f32.mrb[50].mxu0 }
 0x31b   : > { %5144 = vst [vmem:[#allocation55_spill] sm:$0xff] %v3814_v7  ;;  %5145 = vst [vmem:[#allocation56_spill] sm:$0xff] %v3817_v8  ;;  %v3828_v45 = vadd.f32 %v1596_v42, %v3800_v15  ;;  %v3831_v30 = vadd.f32 %v1709_v17, %v3803_v4  ;;  %v1598_v49 = vpop.f32.mrb[35].mxu1  ;;  %v1711_v29 = vpop.f32.mrb[51].mxu0 }
 0x31c   : > { %5146 = vst [vmem:[#allocation57_spill] sm:$0xff] %v3820_v40  ;;  %5147 = vst [vmem:[#allocation58_spill] sm:$0xff] %v3823_v2  ;;  %v3836_v48 = vadd.f32 %v1598_v49, %v3808_v3  ;;  %v3839_v31 = vadd.f32 %v1711_v29, %v3811_v10 }
 0x31d   : > { %5148 = vst [vmem:[#allocation59_spill] sm:$0xff] %v3828_v45  ;;  %5149 = vst [vmem:[#allocation60_spill] sm:$0xff] %v3831_v30 }
 0x31e   : > { %5150 = vst [vmem:[#allocation61_spill] sm:$0xff] %v3836_v48  ;;  %5151 = vst [vmem:[#allocation62_spill] sm:$0xff] %v3839_v31 }
 0x320   : > { %v1602_v53 = vpop.f32.mrb[36].mxu1  ;;  %v1715_v0 = vpop.f32.mrb[52].mxu0 }
 0x321   : > { %v3846_v14 = vadd.f32 %v1602_v53, %v3800_v15  ;;  %v3849_v13 = vadd.f32 %v1715_v0, %v3803_v4  ;;  %v1604_v49 = vpop.f32.mrb[37].mxu1  ;;  %v1717_v38 = vpop.f32.mrb[53].mxu0 }
 0x322   : > { %v3852_v29 = vadd.f32 %v1604_v49, %v3808_v3  ;;  %v3855_v12 = vadd.f32 %v1717_v38, %v3811_v10  ;;  %v1606_v42 = vpop.f32.mrb[38].mxu1  ;;  %v1719_v16 = vpop.f32.mrb[54].mxu0 }
 0x323   : > { %v3860_v53 = vadd.f32 %v1606_v42, %v3800_v15  ;;  %v3863_v0 = vadd.f32 %v1719_v16, %v3803_v4  ;;  %v1608_v51 = vpop.f32.mrb[39].mxu1  ;;  %v1721_v60 = vpop.f32.mrb[55].mxu0 }
 0x324   : > { %v3868_v38 = vadd.f32 %v1608_v51, %v3808_v3  ;;  %v3871_v22 = vadd.f32 %v1721_v60, %v3811_v10 }
 0x328   : > { %v1612_v28 = vpop.f32.mrb[40].mxu1  ;;  %v1725_v59 = vpop.f32.mrb[56].mxu0 }
 0x329   : > { %v3878_v49 = vadd.f32 %v1612_v28, %v3800_v15  ;;  %v3881_v37 = vadd.f32 %v1725_v59, %v3803_v4  ;;  %v1614_v51 = vpop.f32.mrb[41].mxu1  ;;  %v1727_v32 = vpop.f32.mrb[57].mxu0 }
 0x32a   : > { %v3884_v60 = vadd.f32 %v1614_v51, %v3808_v3  ;;  %v3887_v41 = vadd.f32 %v1727_v32, %v3811_v10  ;;  %v1616_v42 = vpop.f32.mrb[42].mxu1  ;;  %v1729_v17 = vpop.f32.mrb[58].mxu0 }
 0x32b   : > { %v3892_v28 = vadd.f32 %v1616_v42, %v3800_v15  ;;  %v3895_v59 = vadd.f32 %v1729_v17, %v3803_v4  ;;  %v1618_v19 = vpop.f32.mrb[43].mxu1  ;;  %v1731_v52 = vpop.f32.mrb[59].mxu0 }
 0x32c   : > { %v3900_v32 = vadd.f32 %v1618_v19, %v3808_v3  ;;  %v3903_v24 = vadd.f32 %v1731_v52, %v3811_v10 }
 0x32d   : > { %5152 = vst [vmem:[#allocation63_spill] sm:$0xff] %v3892_v28  ;;  %5153 = vst [vmem:[#allocation64_spill] sm:$0xff] %v3895_v59 }
 0x32e   : > { %5154 = vst [vmem:[#allocation65_spill] sm:$0xff] %v3900_v32  ;;  %5155 = vst [vmem:[#allocation66_spill] sm:$0xff] %v3903_v24 }
 0x330   : > { %v1622_v6 = vpop.f32.mrb[44].mxu1  ;;  %v1735_v55 = vpop.f32.mrb[60].mxu0 }
 0x331   : > { %v3910_v51 = vadd.f32 %v1622_v6, %v3800_v15  ;;  %v3913_v39 = vadd.f32 %v1735_v55, %v3803_v4  ;;  %v1624_v19 = vpop.f32.mrb[45].mxu1  ;;  %v1737_v5 = vpop.f32.mrb[61].mxu0 }
 0x332   : > { %v3916_v52 = vadd.f32 %v1624_v19, %v3808_v3  ;;  %v3919_v27 = vadd.f32 %v1737_v5, %v3811_v10  ;;  %v1626_v42 = vpop.f32.mrb[46].mxu1  ;;  %v1739_v16 = vpop.f32.mrb[62].mxu0 }
 0x333   : > { %5156 = vst [vmem:[#allocation67_spill] sm:$0xff] %v3910_v51  ;;  %5157 = vst [vmem:[#allocation68_spill] sm:$0xff] %v3913_v39  ;;  %v3924_v6 = vadd.f32 %v1626_v42, %v3800_v15  ;;  %v3927_v55 = vadd.f32 %v1739_v16, %v3803_v4  ;;  %v1628_v24 = vpop.f32.mrb[47].mxu1  ;;  %v1741_v59 = vpop.f32.mrb[63].mxu0 }
 0x334   : > { %5158 = vst [vmem:[#allocation69_spill] sm:$0xff] %v3916_v52  ;;  %5159 = vst [vmem:[#allocation70_spill] sm:$0xff] %v3919_v27  ;;  %v3932_v5 = vadd.f32 %v1628_v24, %v3808_v3  ;;  %v3935_v28 = vadd.f32 %v1741_v59, %v3811_v10 }
 0x335   : > { %5160 = vst [vmem:[#allocation71_spill] sm:$0xff] %v3924_v6  ;;  %5161 = vst [vmem:[#allocation72_spill] sm:$0xff] %v3927_v55 }
 0x336   : > { %5162 = vst [vmem:[#allocation73_spill] sm:$0xff] %v3932_v5  ;;  %5163 = vst [vmem:[#allocation74_spill] sm:$0xff] %v3935_v28 }
 0x338   : > { %v1632_v39 = vpop.f32.mrb[48].mxu1  ;;  %v1745_v51 = vpop.f32.mrb[64].mxu0 }
 0x339   : > { %v3942_v19 = vadd.f32 %v1632_v39, %v3800_v15  ;;  %v3945_v32 = vadd.f32 %v1745_v51, %v3803_v4  ;;  %v1634_v24 = vpop.f32.mrb[49].mxu1  ;;  %v1747_v27 = vpop.f32.mrb[65].mxu0 }
 0x33a   : > { %v3948_v59 = vadd.f32 %v1634_v24, %v3808_v3  ;;  %v3951_v54 = vadd.f32 %v1747_v27, %v3811_v10  ;;  %v1636_v42 = vpop.f32.mrb[50].mxu1  ;;  %v1749_v17 = vpop.f32.mrb[66].mxu0 }
 0x33b   : > { %5164 = vst [vmem:[#allocation75_spill] sm:$0xff] %v3942_v19  ;;  %5165 = vst [vmem:[#allocation76_spill] sm:$0xff] %v3945_v32  ;;  %v3956_v39 = vadd.f32 %v1636_v42, %v3800_v15  ;;  %v3959_v51 = vadd.f32 %v1749_v17, %v3803_v4  ;;  %v1638_v55 = vpop.f32.mrb[51].mxu1  ;;  %v1751_v5 = vpop.f32.mrb[67].mxu0 }
 0x33c   : > { %5166 = vst [vmem:[#allocation77_spill] sm:$0xff] %v3948_v59  ;;  %5167 = vst [vmem:[#allocation78_spill] sm:$0xff] %v3951_v54  ;;  %v3964_v27 = vadd.f32 %v1638_v55, %v3808_v3  ;;  %v3967_v52 = vadd.f32 %v1751_v5, %v3811_v10 }
 0x33d   : > { %5168 = vst [vmem:[#allocation79_spill] sm:$0xff] %v3956_v39  ;;  %5169 = vst [vmem:[#allocation80_spill] sm:$0xff] %v3959_v51 }
 0x33e   : > { %5170 = vst [vmem:[#allocation81_spill] sm:$0xff] %v3964_v27  ;;  %5171 = vst [vmem:[#allocation82_spill] sm:$0xff] %v3967_v52 }
 0x340   : > { %v1642_v32 = vpop.f32.mrb[52].mxu1  ;;  %v1755_v19 = vpop.f32.mrb[68].mxu0 }
 0x341   : > { %v3974_v24 = vadd.f32 %v1642_v32, %v3800_v15  ;;  %v3977_v6 = vadd.f32 %v1755_v19, %v3803_v4  ;;  %v1644_v55 = vpop.f32.mrb[53].mxu1  ;;  %v1757_v54 = vpop.f32.mrb[69].mxu0 }
 0x342   : > { %v3980_v5 = vadd.f32 %v1644_v55, %v3808_v3  ;;  %v3983_v28 = vadd.f32 %v1757_v54, %v3811_v10  ;;  %v1646_v42 = vpop.f32.mrb[54].mxu1  ;;  %v1759_v16 = vpop.f32.mrb[70].mxu0 }
 0x343   : > { %5172 = vst [vmem:[#allocation83_spill] sm:$0xff] %v3974_v24  ;;  %5173 = vst [vmem:[#allocation84_spill] sm:$0xff] %v3977_v6  ;;  %v3988_v32 = vadd.f32 %v1646_v42, %v3800_v15  ;;  %v3991_v19 = vadd.f32 %v1759_v16, %v3803_v4  ;;  %v1648_v51 = vpop.f32.mrb[55].mxu1  ;;  %v1761_v27 = vpop.f32.mrb[71].mxu0 }
 0x344   : > { %5174 = vst [vmem:[#allocation85_spill] sm:$0xff] %v3980_v5  ;;  %5175 = vst [vmem:[#allocation86_spill] sm:$0xff] %v3983_v28  ;;  %v3996_v54 = vadd.f32 %v1648_v51, %v3808_v3  ;;  %v3999_v59 = vadd.f32 %v1761_v27, %v3811_v10 }
 0x345   : > { %5176 = vst [vmem:[#allocation87_spill] sm:$0xff] %v3988_v32  ;;  %5177 = vst [vmem:[#allocation88_spill] sm:$0xff] %v3991_v19 }
 0x346   : > { %5178 = vst [vmem:[#allocation89_spill] sm:$0xff] %v3996_v54  ;;  %5179 = vst [vmem:[#allocation90_spill] sm:$0xff] %v3999_v59 }
 0x348   : > { %v1652_v6 = vpop.f32.mrb[56].mxu1  ;;  %v1765_v24 = vpop.f32.mrb[72].mxu0 }
 0x349   : > { %v4006_v55 = vadd.f32 %v1652_v6, %v3800_v15  ;;  %v4009_v39 = vadd.f32 %v1765_v24, %v3803_v4  ;;  %v1654_v51 = vpop.f32.mrb[57].mxu1  ;;  %v1767_v28 = vpop.f32.mrb[73].mxu0 }
 0x34a   : > { %v4012_v27 = vadd.f32 %v1654_v51, %v3808_v3  ;;  %v4015_v52 = vadd.f32 %v1767_v28, %v3811_v10  ;;  %v1656_v42 = vpop.f32.mrb[58].mxu1  ;;  %v1769_v17 = vpop.f32.mrb[74].mxu0 }
 0x34b   : > { %5180 = vst [vmem:[#allocation91_spill] sm:$0xff] %v4006_v55  ;;  %5181 = vst [vmem:[#allocation92_spill] sm:$0xff] %v4009_v39  ;;  %v4020_v6 = vadd.f32 %v1656_v42, %v3800_v15  ;;  %v4023_v24 = vadd.f32 %v1769_v17, %v3803_v4  ;;  %v1658_v19 = vpop.f32.mrb[59].mxu1  ;;  %v1771_v54 = vpop.f32.mrb[75].mxu0 }
 0x34c   : > { %5182 = vst [vmem:[#allocation93_spill] sm:$0xff] %v4015_v52  ;;  %v4028_v28 = vadd.f32 %v1658_v19, %v3808_v3  ;;  %v4031_v5 = vadd.f32 %v1771_v54, %v3811_v10 }
 0x34d   : > { %5183 = vst [vmem:[#allocation94_spill] sm:$0xff] %v4020_v6  ;;  %5184 = vst [vmem:[#allocation95_spill] sm:$0xff] %v4023_v24 }
 0x34e   : > { %5185 = vst [vmem:[#allocation96_spill] sm:$0xff] %v4028_v28  ;;  %5186 = vst [vmem:[#allocation97_spill] sm:$0xff] %v4031_v5 }
 0x350   : > { %v1662_v39 = vpop.f32.mrb[60].mxu1 }
 0x351   : > { %v4038_v55 = vadd.f32 %v1662_v39, %v3800_v15  ;;  %v1664_v51 = vpop.f32.mrb[61].mxu1 }
 0x352   : > { %v4041_v32 = vadd.f32 %v1664_v51, %v3808_v3  ;;  %v1666_v19 = vpop.f32.mrb[62].mxu1 }
 0x353   : > { %5187 = vst [vmem:[#allocation98_spill] sm:$0xff] %v4038_v55  ;;  %v4045_v52 = vadd.f32 %v1666_v19, %v3800_v15  ;;  %v1668_v59 = vpop.f32.mrb[63].mxu1  ;;  %v5196_v19 = vmax.f32 (!%p2793_p12), %v3537_v23, 0.0  ;;  %v5204_v23 = vmax.f32 (!%p2793_p12), %v3814_v7, 0.0  ;;  %v5251_v7 = vld [vmem:[#allocation16_spill] sm:$0xff] (!%p2793_p12) }
 0x354   : > { %5188 = vst [vmem:[#allocation99_spill] sm:$0xff] %v4041_v32  ;;  %v4049_v16 = vadd.f32 %v1668_v59, %v3808_v3 }
 0x355   : > { %5189 = vst [vmem:[#allocation100_spill] sm:$0xff] %v4045_v52 }
 0x356   : > { %5190 = vst [vmem:[#allocation101_spill] sm:$0xff] %v4049_v16 }
 0x358   : > { %v1775_v5 = vpop.f32.mrb[64].mxu1  ;;  %1919 = sbr.rel (%p2793_p12) target bundleno = 949 (0x3b5), region = 60 }
 0x359   : > { %v4054_v51 = vadd.f32 %v1775_v5, %v3803_v4  ;;  %v1777_v24 = vpop.f32.mrb[65].mxu1  ;;  %v5201_v5 = vmax.f32 (!%p2793_p12), %v3562_v11, 0.0  ;;  %v5210_v11 = vmax.f32 (!%p2793_p12), %v3823_v2, 0.0  ;;  %v5247_v2 = vld [vmem:[#allocation15_spill] sm:$0xff] (!%p2793_p12) }
 0x35a   : > { %v4057_v54 = vadd.f32 %v1777_v24, %v3811_v10  ;;  %v1779_v15 = vpop.f32.mrb[66].mxu1  ;;  %v5195_v24 = vmax.f32 (!%p2793_p12), %v3551_v56, 0.0  ;;  %v5203_v56 = vmax.f32 (!%p2793_p12), %v3828_v45, 0.0 }
 0x35b   : > { %5191 = vst [vmem:[#allocation102_spill] sm:$0xff] %v4054_v51  ;;  %v4061_v42 = vadd.f32 %v1779_v15, %v3803_v4  ;;  %v1781_v3 = vpop.f32.mrb[67].mxu1  ;;  %v5197_v4 = vmax.f32 (!%p2793_p12), %v3559_v9, 0.0  ;;  %v5198_v15 = vmax.f32 (!%p2793_p12), %v3543_v36, 0.0  ;;  %v5206_v9 = vmax.f32 (!%p2793_p12), %v3820_v40, 0.0 }
 0x35c   : > { %5192 = vst [vmem:[#allocation103_spill] sm:$0xff] %v4057_v54  ;;  %v4065_v17 = vadd.f32 %v1781_v3, %v3811_v10  ;;  %v1921_v16 = vmax.f32 (!%p2793_p12), %v5196_v19, %v5195_v24  ;;  %v5199_v10 = vmax.f32 (!%p2793_p12), %v3554_v61, 0.0  ;;  %v5200_v3 = vmax.f32 (!%p2793_p12), %v3540_v33, 0.0 }
 0x35d   : > { %5193 = vst [vmem:[#allocation104_spill] sm:$0xff] %v4061_v42  ;;  %v1942_v59 = vmax.f32 (!%p2793_p12), %v5198_v15, %v5197_v4  ;;  %v2005_v19 = vmax.f32 (!%p2793_p12), %v5204_v23, %v5203_v56  ;;  %v5205_v24 = vmax.f32 (!%p2793_p12), %v3836_v48, 0.0  ;;  %v5207_v15 = vmax.f32 (!%p2793_p12), %v3831_v30, 0.0 }
 0x35e   : > { %5194 = vst [vmem:[#allocation105_spill] sm:$0xff] %v4065_v17  ;;  %v1963_v39 = vmax.f32 (!%p2793_p12), %v5200_v3, %v5199_v10  ;;  %v5202_v17 = vmax.f32 (!%p2793_p12), %v3546_v35, 0.0  ;;  %v5208_v61 = vmax.f32 (!%p2793_p12), %v3817_v8, 0.0  ;;  %v5209_v3 = vmax.f32 (!%p2793_p12), %v3839_v31, 0.0  ;;  %v5249_v8 = vld [vmem:[#allocation17_spill] sm:$0xff] (!%p2793_p12) }
 0x35f   : > { %v2026_v4 = vmax.f32 %v5206_v9, %v5205_v24  ;;  %v5212_v23 = vmax.f32 %v3575_v25, 0.0  ;;  %v5213_v48 = vmax.f32 %v3572_v21, 0.0  ;;  %v5214_v9 = vmax.f32 %v3578_v50, 0.0 }
 0x360   : > { %v1984_v42 = vmax.f32 %v5202_v17, %v5201_v5  ;;  %v2047_v10 = vmax.f32 %v5208_v61, %v5207_v15  ;;  %v2068_v17 = vmax.f32 %v5210_v11, %v5209_v3  ;;  %v5211_v5 = vmax.f32 %v3569_v20, 0.0  ;;  %v5243_v20 = vld [vmem:[#allocation64_spill] sm:$0xff] }
 0x361   : > { %v1943_v56 = vmax.f32 %v1942_v59, %v5212_v23  ;;  %v1964_v40 = vmax.f32 %v1963_v39, %v5213_v48  ;;  %v5215_v30 = vmax.f32 %v3846_v14, 0.0  ;;  %v5216_v15 = vmax.f32 %v3852_v29, 0.0 }
 0x362   : > { %v1922_v45 = vmax.f32 %v1921_v16, %v5211_v5  ;;  %v1985_v24 = vmax.f32 %v1984_v42, %v5214_v9  ;;  %v5217_v11 = vmax.f32 %v3849_v13, 0.0  ;;  %v5218_v16 = vmax.f32 %v3855_v12, 0.0 }
 0x363   : > { %v2006_v61 = vmax.f32 %v2005_v19, %v5215_v30  ;;  %v2027_v31 = vmax.f32 %v2026_v4, %v5216_v15  ;;  %v5219_v59 = vmax.f32 %v3583_v46, 0.0  ;;  %v5220_v48 = vmax.f32 %v3591_v43, 0.0  ;;  %v5241_v46 = vld [vmem:[#allocation65_spill] sm:$0xff] }
 0x364   : > { %v2048_v3 = vmax.f32 %v2047_v10, %v5217_v11  ;;  %v2069_v5 = vmax.f32 %v2068_v17, %v5218_v16  ;;  %v5221_v42 = vmax.f32 %v3586_v47, 0.0  ;;  %v5222_v30 = vmax.f32 %v3594_v44, 0.0 }
 0x365   : > { %v1923_v23 = vmax.f32 %v1922_v45, %v5219_v59  ;;  %v1944_v39 = vmax.f32 %v1943_v56, %v5220_v48  ;;  %v5223_v4 = vmax.f32 %v3860_v53, 0.0  ;;  %v5224_v10 = vmax.f32 %v3868_v38, 0.0 }
 0x366   : > { %v1965_v9 = vmax.f32 %v1964_v40, %v5221_v42  ;;  %v1986_v19 = vmax.f32 %v1985_v24, %v5222_v30  ;;  %v5225_v17 = vmax.f32 %v3863_v0, 0.0  ;;  %v5226_v45 = vmax.f32 %v3871_v22, 0.0 }
 0x367   : > { %v2007_v15 = vmax.f32 %v2006_v61, %v5223_v4  ;;  %v2028_v11 = vmax.f32 %v2027_v31, %v5224_v10  ;;  %v5227_v56 = vmax.f32 %v3601_v57, 0.0  ;;  %v5228_v40 = vmax.f32 %v3607_v63, 0.0  ;;  %v5239_v57 = vld [vmem:[#allocation63_spill] sm:$0xff] }
 0x368   : > { %v2049_v16 = vmax.f32 %v2048_v3, %v5225_v17  ;;  %v2070_v59 = vmax.f32 %v2069_v5, %v5226_v45  ;;  %v5229_v24 = vmax.f32 %v3604_v58, 0.0  ;;  %v5230_v61 = vmax.f32 %v3610_v1, 0.0 }
 0x369   : > { %v1924_v48 = vmax.f32 %v1923_v23, %v5227_v56  ;;  %v1945_v42 = vmax.f32 %v1944_v39, %v5228_v40  ;;  %v5231_v31 = vmax.f32 %v3878_v49, 0.0  ;;  %v5232_v3 = vmax.f32 %v3884_v60, 0.0 }
 0x36a   : > { %v1966_v30 = vmax.f32 %v1965_v9, %v5229_v24  ;;  %v1987_v4 = vmax.f32 %v1986_v19, %v5230_v61  ;;  %v5233_v5 = vmax.f32 %v3881_v37, 0.0  ;;  %v5234_v23 = vmax.f32 %v3887_v41, 0.0 }
 0x36b   : > { %v2008_v10 = vmax.f32 %v2007_v15, %v5231_v31  ;;  %v2029_v17 = vmax.f32 %v2028_v11, %v5232_v3  ;;  %v5235_v39 = vmax.f32 %v3615_v26, 0.0  ;;  %v5236_v9 = vmax.f32 %v3623_v18, 0.0  ;;  %v5245_v26 = vld [vmem:[#allocation66_spill] sm:$0xff] }
 0x36c   : > { %v2050_v45 = vmax.f32 %v2049_v16, %v5233_v5  ;;  %v2071_v56 = vmax.f32 %v2070_v59, %v5234_v23  ;;  %v5237_v19 = vmax.f32 %v3618_v34, 0.0  ;;  %v5238_v15 = vmax.f32 %v3626_v62, 0.0 }
 0x36d   : > { %v1925_v40 = vmax.f32 %v1924_v48, %v5235_v39  ;;  %v1946_v24 = vmax.f32 %v1945_v42, %v5236_v9  ;;  %v5240_v11 = vmax.f32 %v5239_v57, 0.0  ;;  %v5242_v16 = vmax.f32 %v5241_v46, 0.0  ;;  %v5253_v57 = vld [vmem:[#allocation18_spill] sm:$0xff]  ;;  %v5255_v46 = vld [vmem:[#allocation67_spill] sm:$0xff] }
 0x36e   : > { %v1967_v61 = vmax.f32 %v1966_v30, %v5237_v19  ;;  %v1988_v31 = vmax.f32 %v1987_v4, %v5238_v15  ;;  %v5244_v59 = vmax.f32 %v5243_v20, 0.0  ;;  %v5246_v48 = vmax.f32 %v5245_v26, 0.0  ;;  %v5257_v20 = vld [vmem:[#allocation69_spill] sm:$0xff]  ;;  %v5259_v26 = vld [vmem:[#allocation68_spill] sm:$0xff] }
 0x36f   : > { %v2009_v3 = vmax.f32 %v2008_v10, %v5240_v11  ;;  %v2030_v5 = vmax.f32 %v2029_v17, %v5242_v16  ;;  %v5248_v42 = vmax.f32 %v5247_v2, 0.0  ;;  %v5250_v30 = vmax.f32 %v5249_v8, 0.0  ;;  %v5261_v2 = vld [vmem:[#allocation70_spill] sm:$0xff]  ;;  %v5263_v8 = vld [vmem:[#allocation19_spill] sm:$0xff] }
 0x370   : > { %v2051_v23 = vmax.f32 %v2050_v45, %v5244_v59  ;;  %v2072_v39 = vmax.f32 %v2071_v56, %v5246_v48  ;;  %v5252_v4 = vmax.f32 %v5251_v7, 0.0  ;;  %v5254_v10 = vmax.f32 %v5253_v57, 0.0  ;;  %v5265_v7 = vld [vmem:[#allocation21_spill] sm:$0xff]  ;;  %v5267_v57 = vld [vmem:[#allocation20_spill] sm:$0xff] }
 0x371   : > { %v1926_v9 = vmax.f32 %v1925_v40, %v5248_v42  ;;  %v1947_v19 = vmax.f32 %v1946_v24, %v5250_v30  ;;  %v5256_v17 = vmax.f32 %v5255_v46, 0.0  ;;  %v5258_v45 = vmax.f32 %v5257_v20, 0.0  ;;  %v5269_v46 = vld [vmem:[#allocation22_spill] sm:$0xff]  ;;  %v5271_v20 = vld [vmem:[#allocation71_spill] sm:$0xff] }
 0x372   : > { %v1968_v15 = vmax.f32 %v1967_v61, %v5252_v4  ;;  %v1989_v11 = vmax.f32 %v1988_v31, %v5254_v10  ;;  %v5260_v56 = vmax.f32 %v5259_v26, 0.0  ;;  %v5262_v40 = vmax.f32 %v5261_v2, 0.0  ;;  %v5273_v26 = vld [vmem:[#allocation73_spill] sm:$0xff]  ;;  %v5275_v2 = vld [vmem:[#allocation72_spill] sm:$0xff] }
 0x373   : > { %v2010_v16 = vmax.f32 %v2009_v3, %v5256_v17  ;;  %v2031_v59 = vmax.f32 %v2030_v5, %v5258_v45  ;;  %v5264_v24 = vmax.f32 %v5263_v8, 0.0  ;;  %v5266_v61 = vmax.f32 %v5265_v7, 0.0  ;;  %v5277_v8 = vld [vmem:[#allocation74_spill] sm:$0xff]  ;;  %v5279_v7 = vld [vmem:[#allocation23_spill] sm:$0xff] }
 0x374   : > { %v2052_v48 = vmax.f32 %v2051_v23, %v5260_v56  ;;  %v2073_v42 = vmax.f32 %v2072_v39, %v5262_v40  ;;  %v5268_v31 = vmax.f32 %v5267_v57, 0.0  ;;  %v5270_v3 = vmax.f32 %v5269_v46, 0.0  ;;  %v5281_v57 = vld [vmem:[#allocation25_spill] sm:$0xff]  ;;  %v5283_v46 = vld [vmem:[#allocation24_spill] sm:$0xff] }
 0x375   : > { %v1927_v30 = vmax.f32 %v1926_v9, %v5264_v24  ;;  %v1948_v4 = vmax.f32 %v1947_v19, %v5266_v61  ;;  %v5272_v5 = vmax.f32 %v5271_v20, 0.0  ;;  %v5274_v23 = vmax.f32 %v5273_v26, 0.0  ;;  %v5285_v20 = vld [vmem:[#allocation26_spill] sm:$0xff]  ;;  %v5287_v26 = vld [vmem:[#allocation75_spill] sm:$0xff] }
 0x376   : > { %v1969_v10 = vmax.f32 %v1968_v15, %v5268_v31  ;;  %v1990_v17 = vmax.f32 %v1989_v11, %v5270_v3  ;;  %v5276_v39 = vmax.f32 %v5275_v2, 0.0  ;;  %v5278_v9 = vmax.f32 %v5277_v8, 0.0  ;;  %v5289_v2 = vld [vmem:[#allocation77_spill] sm:$0xff]  ;;  %v5291_v8 = vld [vmem:[#allocation76_spill] sm:$0xff] }
 0x377   : > { %v2011_v45 = vmax.f32 %v2010_v16, %v5272_v5  ;;  %v2032_v56 = vmax.f32 %v2031_v59, %v5274_v23  ;;  %v5280_v19 = vmax.f32 %v5279_v7, 0.0  ;;  %v5282_v15 = vmax.f32 %v5281_v57, 0.0  ;;  %v5293_v7 = vld [vmem:[#allocation78_spill] sm:$0xff]  ;;  %v5295_v57 = vld [vmem:[#allocation27_spill] sm:$0xff] }
 0x378   : > { %v2053_v40 = vmax.f32 %v2052_v48, %v5276_v39  ;;  %v2074_v24 = vmax.f32 %v2073_v42, %v5278_v9  ;;  %v5284_v11 = vmax.f32 %v5283_v46, 0.0  ;;  %v5286_v16 = vmax.f32 %v5285_v20, 0.0  ;;  %v5297_v46 = vld [vmem:[#allocation29_spill] sm:$0xff]  ;;  %v5299_v20 = vld [vmem:[#allocation28_spill] sm:$0xff] }
 0x379   : > { %v1928_v61 = vmax.f32 %v1927_v30, %v5280_v19  ;;  %v1949_v31 = vmax.f32 %v1948_v4, %v5282_v15  ;;  %v5288_v59 = vmax.f32 %v5287_v26, 0.0  ;;  %v5290_v48 = vmax.f32 %v5289_v2, 0.0  ;;  %v5301_v26 = vld [vmem:[#allocation30_spill] sm:$0xff]  ;;  %v5303_v2 = vld [vmem:[#allocation79_spill] sm:$0xff] }
 0x37a   : > { %v1970_v3 = vmax.f32 %v1969_v10, %v5284_v11  ;;  %v1991_v5 = vmax.f32 %v1990_v17, %v5286_v16  ;;  %v5292_v42 = vmax.f32 %v5291_v8, 0.0  ;;  %v5294_v30 = vmax.f32 %v5293_v7, 0.0  ;;  %v5305_v8 = vld [vmem:[#allocation81_spill] sm:$0xff]  ;;  %v5307_v7 = vld [vmem:[#allocation80_spill] sm:$0xff] }
 0x37b   : > { %v2012_v23 = vmax.f32 %v2011_v45, %v5288_v59  ;;  %v2033_v39 = vmax.f32 %v2032_v56, %v5290_v48  ;;  %v5296_v4 = vmax.f32 %v5295_v57, 0.0  ;;  %v5298_v10 = vmax.f32 %v5297_v46, 0.0  ;;  %v5309_v57 = vld [vmem:[#allocation82_spill] sm:$0xff]  ;;  %v5311_v46 = vld [vmem:[#allocation31_spill] sm:$0xff] }
 0x37c   : > { %v2054_v9 = vmax.f32 %v2053_v40, %v5292_v42  ;;  %v2075_v19 = vmax.f32 %v2074_v24, %v5294_v30  ;;  %v5300_v17 = vmax.f32 %v5299_v20, 0.0  ;;  %v5302_v45 = vmax.f32 %v5301_v26, 0.0  ;;  %v5313_v20 = vld [vmem:[#allocation33_spill] sm:$0xff]  ;;  %v5315_v26 = vld [vmem:[#allocation32_spill] sm:$0xff] }
 0x37d   : > { %v1929_v15 = vmax.f32 %v1928_v61, %v5296_v4  ;;  %v1950_v11 = vmax.f32 %v1949_v31, %v5298_v10  ;;  %v5304_v56 = vmax.f32 %v5303_v2, 0.0  ;;  %v5306_v40 = vmax.f32 %v5305_v8, 0.0  ;;  %v5317_v2 = vld [vmem:[#allocation34_spill] sm:$0xff]  ;;  %v5319_v8 = vld [vmem:[#allocation83_spill] sm:$0xff] }
 0x37e   : > { %v1971_v16 = vmax.f32 %v1970_v3, %v5300_v17  ;;  %v1992_v59 = vmax.f32 %v1991_v5, %v5302_v45  ;;  %v5308_v24 = vmax.f32 %v5307_v7, 0.0  ;;  %v5310_v61 = vmax.f32 %v5309_v57, 0.0  ;;  %v5321_v7 = vld [vmem:[#allocation85_spill] sm:$0xff]  ;;  %v5323_v57 = vld [vmem:[#allocation84_spill] sm:$0xff] }
 0x37f   : > { %v2013_v48 = vmax.f32 %v2012_v23, %v5304_v56  ;;  %v2034_v42 = vmax.f32 %v2033_v39, %v5306_v40  ;;  %v5312_v31 = vmax.f32 %v5311_v46, 0.0  ;;  %v5314_v3 = vmax.f32 %v5313_v20, 0.0  ;;  %v5325_v46 = vld [vmem:[#allocation86_spill] sm:$0xff]  ;;  %v5327_v20 = vld [vmem:[#allocation35_spill] sm:$0xff] }
 0x380   : > { %v2055_v30 = vmax.f32 %v2054_v9, %v5308_v24  ;;  %v2076_v4 = vmax.f32 %v2075_v19, %v5310_v61  ;;  %v5316_v5 = vmax.f32 %v5315_v26, 0.0  ;;  %v5318_v23 = vmax.f32 %v5317_v2, 0.0  ;;  %v5329_v26 = vld [vmem:[#allocation37_spill] sm:$0xff]  ;;  %v5331_v2 = vld [vmem:[#allocation36_spill] sm:$0xff] }
 0x381   : > { %v1930_v10 = vmax.f32 %v1929_v15, %v5312_v31  ;;  %v1951_v17 = vmax.f32 %v1950_v11, %v5314_v3  ;;  %v5320_v39 = vmax.f32 %v5319_v8, 0.0  ;;  %v5322_v9 = vmax.f32 %v5321_v7, 0.0  ;;  %v5333_v8 = vld [vmem:[#allocation38_spill] sm:$0xff]  ;;  %v5335_v7 = vld [vmem:[#allocation87_spill] sm:$0xff] }
 0x382   : > { %v1972_v45 = vmax.f32 %v1971_v16, %v5316_v5  ;;  %v1993_v56 = vmax.f32 %v1992_v59, %v5318_v23  ;;  %v5324_v19 = vmax.f32 %v5323_v57, 0.0  ;;  %v5326_v15 = vmax.f32 %v5325_v46, 0.0  ;;  %v5337_v57 = vld [vmem:[#allocation89_spill] sm:$0xff]  ;;  %v5339_v46 = vld [vmem:[#allocation88_spill] sm:$0xff] }
 0x383   : > { %v2014_v40 = vmax.f32 %v2013_v48, %v5320_v39  ;;  %v2035_v24 = vmax.f32 %v2034_v42, %v5322_v9  ;;  %v5328_v11 = vmax.f32 %v5327_v20, 0.0  ;;  %v5330_v16 = vmax.f32 %v5329_v26, 0.0  ;;  %v5341_v20 = vld [vmem:[#allocation90_spill] sm:$0xff]  ;;  %v5343_v26 = vld [vmem:[#allocation39_spill] sm:$0xff] }
 0x384   : > { %v2056_v61 = vmax.f32 %v2055_v30, %v5324_v19  ;;  %v2077_v31 = vmax.f32 %v2076_v4, %v5326_v15  ;;  %v5332_v59 = vmax.f32 %v5331_v2, 0.0  ;;  %v5334_v48 = vmax.f32 %v5333_v8, 0.0  ;;  %v5345_v2 = vld [vmem:[#allocation41_spill] sm:$0xff]  ;;  %v5347_v8 = vld [vmem:[#allocation40_spill] sm:$0xff] }
 0x385   : > { %v1931_v3 = vmax.f32 %v1930_v10, %v5328_v11  ;;  %v1952_v5 = vmax.f32 %v1951_v17, %v5330_v16  ;;  %v5336_v42 = vmax.f32 %v5335_v7, 0.0  ;;  %v5338_v30 = vmax.f32 %v5337_v57, 0.0  ;;  %v5349_v7 = vld [vmem:[#allocation42_spill] sm:$0xff]  ;;  %v5351_v57 = vld [vmem:[#allocation91_spill] sm:$0xff] }
 0x386   : > { %v1973_v23 = vmax.f32 %v1972_v45, %v5332_v59  ;;  %v1994_v39 = vmax.f32 %v1993_v56, %v5334_v48  ;;  %v5340_v4 = vmax.f32 %v5339_v46, 0.0  ;;  %v5342_v10 = vmax.f32 %v5341_v20, 0.0 }
 0x387   : > { %v2015_v9 = vmax.f32 %v2014_v40, %v5336_v42  ;;  %v2036_v19 = vmax.f32 %v2035_v24, %v5338_v30  ;;  %v5344_v17 = vmax.f32 %v5343_v26, 0.0  ;;  %v5346_v45 = vmax.f32 %v5345_v2, 0.0 }
 0x388   : > { %v2057_v15 = vmax.f32 %v2056_v61, %v5340_v4  ;;  %v2078_v11 = vmax.f32 %v2077_v31, %v5342_v10  ;;  %v5348_v56 = vmax.f32 %v5347_v8, 0.0  ;;  %v5350_v40 = vmax.f32 %v5349_v7, 0.0  ;;  %v5354_v4 = vld [vmem:[#allocation92_spill] sm:$0xff]  ;;  %v5356_v10 = vld [vmem:[#allocation93_spill] sm:$0xff] }
 0x389   : > { %v1932_v16 = vmax.f32 %v1931_v3, %v5344_v17  ;;  %v1953_v59 = vmax.f32 %v1952_v5, %v5346_v45  ;;  %v5352_v24 = vmax.f32 %v5351_v57, 0.0  ;;  %v5353_v61 = vmax.f32 %v4012_v27, 0.0  ;;  %v5358_v17 = vld [vmem:[#allocation43_spill] sm:$0xff]  ;;  %v5360_v45 = vld [vmem:[#allocation45_spill] sm:$0xff] }
 0x38a   : > { %v1974_v48 = vmax.f32 %v1973_v23, %v5348_v56  ;;  %v1995_v42 = vmax.f32 %v1994_v39, %v5350_v40  ;;  %v5355_v31 = vmax.f32 %v5354_v4, 0.0  ;;  %v5357_v3 = vmax.f32 %v5356_v10, 0.0  ;;  %v5362_v56 = vld [vmem:[#allocation44_spill] sm:$0xff]  ;;  %v5364_v40 = vld [vmem:[#allocation46_spill] sm:$0xff]  ;;  %v5368_v4 = vld [vmem:[#allocation95_spill] sm:$0xff] }
 0x38b   : > { %v2016_v30 = vmax.f32 %v2015_v9, %v5352_v24  ;;  %v2037_v46 = vmax.f32 %v2036_v19, %v5353_v61  ;;  %v5359_v5 = vmax.f32 %v5358_v17, 0.0  ;;  %v5361_v23 = vmax.f32 %v5360_v45, 0.0  ;;  %v5370_v10 = vld [vmem:[#allocation97_spill] sm:$0xff]  ;;  %v5372_v17 = vld [vmem:[#allocation47_spill] sm:$0xff] }
 0x38c   : > { %v2058_v20 = vmax.f32 %v2057_v15, %v5355_v31  ;;  %v2079_v26 = vmax.f32 %v2078_v11, %v5357_v3  ;;  %v5363_v39 = vmax.f32 %v5362_v56, 0.0  ;;  %v5365_v9 = vmax.f32 %v5364_v40, 0.0  ;;  %v5374_v45 = vld [vmem:[#allocation49_spill] sm:$0xff]  ;;  %v5376_v56 = vld [vmem:[#allocation48_spill] sm:$0xff]  ;;  %v5378_v40 = vld [vmem:[#allocation50_spill] sm:$0xff] }
 0x38d   : > { %v1933_v2 = vmax.f32 %v1932_v16, %v5359_v5  ;;  %v1954_v8 = vmax.f32 %v1953_v59, %v5361_v23  ;;  %v5366_v19 = vmax.f32 %v4020_v6, 0.0  ;;  %v5367_v15 = vmax.f32 %v4028_v28, 0.0 }
 0x38e   : > { %v1975_v7 = vmax.f32 %v1974_v48, %v5363_v39  ;;  %v1996_v57 = vmax.f32 %v1995_v42, %v5365_v9  ;;  %v5369_v11 = vmax.f32 %v5368_v4, 0.0  ;;  %v5371_v16 = vmax.f32 %v5370_v10, 0.0  ;;  %v5384_v10 = vld [vmem:[#allocation51_spill] sm:$0xff] }
 0x38f   : > { %v2017_v24 = vmax.f32 %v2016_v30, %v5366_v19  ;;  %v2038_v61 = vmax.f32 %v2037_v46, %v5367_v15  ;;  %v5373_v59 = vmax.f32 %v5372_v17, 0.0  ;;  %v5375_v48 = vmax.f32 %v5374_v45, 0.0  ;;  %v5386_v17 = vld [vmem:[#allocation53_spill] sm:$0xff]  ;;  %v5388_v45 = vld [vmem:[#allocation52_spill] sm:$0xff] }
 0x390   : > { %v2059_v31 = vmax.f32 %v2058_v20, %v5369_v11  ;;  %v2080_v3 = vmax.f32 %v2079_v26, %v5371_v16  ;;  %v5377_v42 = vmax.f32 %v5376_v56, 0.0  ;;  %v5379_v30 = vmax.f32 %v5378_v40, 0.0  ;;  %v5390_v56 = vld [vmem:[#allocation54_spill] sm:$0xff] }
 0x391   : > { %v1934_v5 = vmax.f32 %v1933_v2, %v5373_v59  ;;  %v1955_v23 = vmax.f32 %v1954_v8, %v5375_v48  ;;  %v5380_v46 = vmax.f32 %v4038_v55, 0.0  ;;  %v5381_v20 = vmax.f32 %v4041_v32, 0.0 }
 0x392   : > { %v1976_v39 = vmax.f32 %v1975_v7, %v5377_v42  ;;  %v1997_v9 = vmax.f32 %v1996_v57, %v5379_v30  ;;  %v5382_v26 = vmax.f32 %v4054_v51, 0.0  ;;  %v5383_v2 = vmax.f32 %v4057_v54, 0.0  ;;  %v5393_v30 = vld [vmem:[#allocation101_spill] sm:$0xff] }
 0x393   : > { %v2018_v19 = vmax.f32 %v2017_v24, %v5380_v46  ;;  %v2039_v15 = vmax.f32 %v2038_v61, %v5381_v20  ;;  %v5385_v8 = vmax.f32 %v5384_v10, 0.0  ;;  %v5387_v7 = vmax.f32 %v5386_v17, 0.0  ;;  %v5395_v20 = vld [vmem:[#allocation104_spill] sm:$0xff] }
 0x394   : > { %v2060_v4 = vmax.f32 %v2059_v31, %v5382_v26  ;;  %v2081_v11 = vmax.f32 %v2080_v3, %v5383_v2  ;;  %v5389_v57 = vmax.f32 %v5388_v45, 0.0  ;;  %v5391_v24 = vmax.f32 %v5390_v56, 0.0  ;;  %v5397_v2 = vld [vmem:[#allocation105_spill] sm:$0xff] }
 0x395   : > { %v1935_v16 = vmax.f32 %v1934_v5, %v5385_v8  ;;  %v1956_v59 = vmax.f32 %v1955_v23, %v5387_v7  ;;  %v5392_v61 = vmax.f32 %v4045_v52, 0.0  ;;  %v5394_v31 = vmax.f32 %v5393_v30, 0.0 }
 0x396   : > { %v1977_v48 = vmax.f32 %v1976_v39, %v5389_v57  ;;  %v1998_v42 = vmax.f32 %v1997_v9, %v5391_v24  ;;  %v5396_v3 = vmax.f32 %v5395_v20, 0.0  ;;  %v5398_v5 = vmax.f32 %v5397_v2, 0.0 }
 0x397   : > { %v2019_v40 = vmax.f32 %v2018_v19, %v5392_v61  ;;  %v2040_v46 = vmax.f32 %v2039_v15, %v5394_v31  ;;  %v1936_v8 = vrot.slane %v1935_v16, 4  ;;  %v1957_v23 = vrot.slane %v1956_v59, 4 }
 0x398   : > { %v2061_v26 = vmax.f32 %v2060_v4, %v5396_v3  ;;  %v2082_v10 = vmax.f32 %v2081_v11, %v5398_v5  ;;  %v1978_v17 = vrot.slane %v1977_v48, 4  ;;  %v1999_v7 = vrot.slane %v1998_v42, 4 }
 0x399   : > { %v2020_v39 = vrot.slane %v2019_v40, 4  ;;  %v2041_v45 = vrot.slane %v2040_v46, 4  ;;  %v1937_v56 = vmax.f32 %v1935_v16, %v1936_v8  ;;  %v1958_v24 = vmax.f32 %v1956_v59, %v1957_v23 }
 0x39a   : > { %v2062_v57 = vrot.slane %v2061_v26, 4  ;;  %v2083_v9 = vrot.slane %v2082_v10, 4  ;;  %v1979_v19 = vmax.f32 %v1977_v48, %v1978_v17  ;;  %v2000_v61 = vmax.f32 %v1998_v42, %v1999_v7 }
 0x39b   : > { %v2021_v30 = vmax.f32 %v2019_v40, %v2020_v39  ;;  %v2042_v15 = vmax.f32 %v2040_v46, %v2041_v45  ;;  %v1938_v4 = vrot.slane %v1937_v56, 2  ;;  %v1959_v3 = vrot.slane %v1958_v24, 2 }
 0x39c   : > { %v2063_v31 = vmax.f32 %v2061_v26, %v2062_v57  ;;  %v2084_v20 = vmax.f32 %v2082_v10, %v2083_v9  ;;  %v1980_v2 = vrot.slane %v1979_v19, 2  ;;  %v2001_v11 = vrot.slane %v2000_v61, 2 }
 0x39d   : > { %v2022_v5 = vrot.slane %v2021_v30, 2  ;;  %v2043_v52 = vrot.slane %v2042_v15, 2  ;;  %v1939_v32 = vmax.f32 %v1937_v56, %v1938_v4  ;;  %v1960_v55 = vmax.f32 %v1958_v24, %v1959_v3  ;;  %v5399_v4 = vld [vmem:[#allocation5_spill] sm:$0xff] }
 0x39e   : > { %v2064_v54 = vrot.slane %v2063_v31, 2  ;;  %v2085_v51 = vrot.slane %v2084_v20, 2  ;;  %v1981_v28 = vmax.f32 %v1979_v19, %v1980_v2  ;;  %v2002_v6 = vmax.f32 %v2000_v61, %v2001_v11 }
 0x39f   : > { %v2023_v16 = vmax.f32 %v2021_v30, %v2022_v5  ;;  %v2044_v59 = vmax.f32 %v2042_v15, %v2043_v52  ;;  %v1940_v40 = vrot.slane %v1939_v32, 1  ;;  %v1961_v46 = vrot.slane %v1960_v55, 1 }
 0x3a0   : > { %v2065_v48 = vmax.f32 %v2063_v31, %v2064_v54  ;;  %v2086_v42 = vmax.f32 %v2084_v20, %v2085_v51  ;;  %v1982_v26 = vrot.slane %v1981_v28, 1  ;;  %v2003_v10 = vrot.slane %v2002_v6, 1 }
 0x3a1   : > { %v2024_v8 = vrot.slane %v2023_v16, 1  ;;  %v2045_v23 = vrot.slane %v2044_v59, 1  ;;  %v1941_v39 = vmax.f32 %v1939_v32, %v1940_v40  ;;  %v1962_v45 = vmax.f32 %v1960_v55, %v1961_v46 }
 0x3a2   : > { %v2066_v17 = vrot.slane %v2065_v48, 1  ;;  %v2087_v7 = vrot.slane %v2086_v42, 1  ;;  %v1983_v57 = vmax.f32 %v1981_v28, %v1982_v26  ;;  %v2004_v9 = vmax.f32 %v2002_v6, %v2003_v10 }
 0x3a3   : > { %v2025_v56 = vmax.f32 %v2023_v16, %v2024_v8  ;;  %v2046_v24 = vmax.f32 %v2044_v59, %v2045_v23  ;;  %v3048_v30 = vmov 1966171168   ;;  %v2097_v54 = vcombine.low %v1941_v39, %v1962_v45  ;;  %v1920_v59 = vld [vmem:[%s3194_s5] sm:$0xff] }
 0x3a4   : > { %v2067_v19 = vmax.f32 %v2065_v48, %v2066_v17  ;;  %v2088_v61 = vmax.f32 %v2086_v42, %v2087_v7  ;;  %v2102_v52 = vunpack.c.l.s4 %v3048_v30  ;;  %v2098_v51 = vcombine.low %v1983_v57, %v2004_v9 }
 0x3a5   : > { %v2099_v15 = vcombine.low %v2025_v56, %v2046_v24 }
 0x3a6   : > { %v2100_v31 = vcombine.low %v2067_v19, %v2088_v61  ;;  %v2103_v20 = vunpack.c.0.s8 %v2102_v52 }
 0x3a8   : > { %v2106_v3 = vsub.s32 %v2103_v20, %v5399_v4 }
 0x3aa   : > { %v2107_v2 = vrot.slane %v2097_v54, %v2106_v3  ;;  %v2114_v32 = vrot.slane %v2098_v51, %v2106_v3  ;;  %v2121_v55 = vrot.slane %v2099_v15, %v2106_v3  ;;  %v2128_v28 = vrot.slane %v2100_v31, %v2106_v3 }
 0x3ac   : > { %v2129_v6 = vcombine.low %v2107_v2, %v2114_v32  ;;  %v2130_v11 = vcombine.low %v2121_v55, %v2128_v28 }
 0x3ae   : > { %v2137_v5 = vrot.slane %v2129_v6, %v2106_v3  ;;  %v2144_v16 = vrot.slane %v2130_v11, %v2106_v3 }
 0x3b0   : > { %v2145_v48 = vcombine.low %v2137_v5, %v2144_v16 }
 0x3b2   : > { %v2147_v42 = vmax.f32 %v1920_v59, %v2145_v48 }
 0x3b4   : > { %2148 = vst [vmem:[%s3194_s5] sm:$0xff] %v2147_v42 }
 0x3b5 PF: > { %p2794_p13 = scmp.le.s32.totalorder %s3667_s26, 300 }
 0x3b6   : > { %v5400_v40 = vld [vmem:[#allocation5_spill] sm:$0xff] (!%p2794_p13)  ;;  %v2170_v23 = vstv (!%p2794_p13), %s2792_s25  ;;  %v5401_v59 = vmax.f32 (!%p2794_p13), %v3572_v21, 0.0  ;;  %v5402_v42 = vmax.f32 (!%p2794_p13), %v3578_v50, 0.0 }
 0x3b7   : > { %2152 = sbr.rel (%p2794_p13) target bundleno = 1095 (0x447), region = 64  ;;  %v2156_v46 = vadd.s32 (!%p2794_p13), 16, %v5400_v40  ;;  %v2157_v26 = vadd.s32 (!%p2794_p13), 24, %v5400_v40  ;;  %v2155_v10 = vadd.s32 (!%p2794_p13), 8, %v5400_v40  ;;  %v2158_v8 = vadd.s32 (!%p2794_p13), 32, %v5400_v40 }
 0x3b8   : > { %v2159_v17 = vadd.s32 (!%p2794_p13), 40, %v5400_v40  ;;  %v2160_v7 = vadd.s32 (!%p2794_p13), 48, %v5400_v40  ;;  %v2161_v39 = vadd.s32 (!%p2794_p13), 56, %v5400_v40  ;;  %v2162_v57 = vadd.s32 (!%p2794_p13), 64, %v5400_v40 }
 0x3b9   : > { %v4339_v45 = vadd.s32 (!%p2794_p13), %v2170_v23, %v2156_v46  ;;  %v2163_v9 = vadd.s32 (!%p2794_p13), 72, %v5400_v40  ;;  %v2164_v56 = vadd.s32 (!%p2794_p13), 80, %v5400_v40  ;;  %v2165_v24 = vadd.s32 (!%p2794_p13), 88, %v5400_v40 }
 0x3ba   : > { %v2166_v19 = vadd.s32 (!%p2794_p13), 96, %v5400_v40  ;;  %v2167_v61 = vadd.s32 (!%p2794_p13), 104, %v5400_v40  ;;  %v2168_v30 = vadd.s32 (!%p2794_p13), 112, %v5400_v40  ;;  %v4348_v52 = vadd.s32 (!%p2794_p13), %v2170_v23, %v2157_v26 }
 0x3bb   : > { %v2169_v54 = vadd.s32 (!%p2794_p13), 120, %v5400_v40  ;;  %v4352_v51 = vadd.s32 (!%p2794_p13), %v2170_v23, %v5400_v40  ;;  %v4354_v15 = vadd.s32 (!%p2794_p13), %v2170_v23, %v2155_v10  ;;  %v4356_v31 = vadd.s32 (!%p2794_p13), %v2170_v23, %v2158_v8 }
 0x3bc   : > { %v4358_v20 = vadd.s32 (!%p2794_p13), %v2170_v23, %v2159_v17  ;;  %v4360_v4 = vadd.s32 (!%p2794_p13), %v2170_v23, %v2160_v7  ;;  %v4362_v3 = vadd.s32 (!%p2794_p13), %v2170_v23, %v2161_v39  ;;  %vm2189_vm1 = vcmp.lt.s32.totalorder (!%p2794_p13), %v4339_v45, 300 }
 0x3bd   : > { %v4365_v2 = vadd.s32 (!%p2794_p13), %v2170_v23, %v2162_v57  ;;  %v4367_v32 = vadd.s32 (!%p2794_p13), %v2170_v23, %v2163_v9  ;;  %v4369_v55 = vadd.s32 (!%p2794_p13), %v2170_v23, %v2164_v56  ;;  %v4371_v28 = vadd.s32 (!%p2794_p13), %v2170_v23, %v2165_v24 }
 0x3be   : > { %v4373_v6 = vadd.s32 %v2170_v23, %v2166_v19  ;;  %v4375_v11 = vadd.s32 %v2170_v23, %v2167_v61  ;;  %v4377_v5 = vadd.s32 %v2170_v23, %v2168_v30  ;;  %vm2190_vm2 = vcmp.lt.s32.totalorder %v4348_v52, 300 }
 0x3bf   : > { %v4380_v16 = vadd.s32 %v2170_v23, %v2169_v54  ;;  %vm2187_vm3 = vcmp.lt.s32.totalorder %v4352_v51, 300  ;;  %vm2191_vm4 = vcmp.lt.s32.totalorder %v4356_v31, 300  ;;  %v2253_v48 = vsel %vm2189_vm1, %v5401_v59, 0.0 }
 0x3c0   : > { %vm2192_vm5 = vcmp.lt.s32.totalorder %v4358_v20, 300  ;;  %v2254_v46 = vsel %vm2189_vm1, %v5402_v42, 0.0  ;;  %v5403_v26 = vmax.f32 %v3846_v14, 0.0  ;;  %v5404_v8 = vmax.f32 %v3852_v29, 0.0 }
 0x3c1   : > { %vm2193_vm6 = vcmp.lt.s32.totalorder %v4360_v4, 300  ;;  %v5405_v23 = vmax.f32 %v3849_v13, 0.0  ;;  %v5406_v17 = vmax.f32 %v3855_v12, 0.0  ;;  %v5407_v7 = vmax.f32 %v3586_v47, 0.0 }
 0x3c2   : > { %v2255_v10 = vsel %vm2189_vm1, %v5403_v26, 0.0  ;;  %v2256_v21 = vsel %vm2189_vm1, %v5404_v8, 0.0  ;;  %v5408_v39 = vmax.f32 %v3594_v44, 0.0  ;;  %v5409_v13 = vmax.f32 %v3575_v25, 0.0 }
 0x3c3   : > { %v2257_v50 = vsel %vm2189_vm1, %v5405_v23, 0.0  ;;  %v2258_v14 = vsel %vm2189_vm1, %v5406_v17, 0.0  ;;  %v2261_v29 = vsel %vm2190_vm2, %v5407_v7, 0.0  ;;  %v5410_v12 = vmax.f32 %v3591_v43, 0.0 }
 0x3c4   : > { %v2262_v57 = vsel %vm2190_vm2, %v5408_v39, 0.0  ;;  %v2252_v9 = vsel %vm2189_vm1, %v5409_v13, 0.0  ;;  %v2407_v24 = vmax.f32 %v2261_v29, %v2253_v48  ;;  %v5411_v47 = vmax.f32 %v3860_v53, 0.0 }
 0x3c5   : > { %v2260_v56 = vsel %vm2190_vm2, %v5410_v12, 0.0  ;;  %v5412_v61 = vmax.f32 %v3868_v38, 0.0  ;;  %v5413_v30 = vmax.f32 %v3863_v0, 0.0  ;;  %v5414_v54 = vmax.f32 %v3871_v22, 0.0 }
 0x3c6   : > { %v2263_v19 = vsel %vm2190_vm2, %v5411_v47, 0.0  ;;  %v2428_v53 = vmax.f32 %v2262_v57, %v2254_v46  ;;  %v5415_v38 = vmax.f32 %v3604_v58, 0.0  ;;  %v5416_v0 = vmax.f32 %v3610_v1, 0.0  ;;  %v5418_v46 = vld [vmem:[#allocation6_spill] sm:$0xff] }
 0x3c7   : > { %v2449_v44 = vmax.f32 %v2263_v19, %v2255_v10  ;;  %v2264_v25 = vsel %vm2190_vm2, %v5412_v61, 0.0  ;;  %v2265_v43 = vsel %vm2190_vm2, %v5413_v30, 0.0  ;;  %v2266_v59 = vsel %vm2190_vm2, %v5414_v54, 0.0 }
 0x3c8   : > { %v2470_v48 = vmax.f32 %v2264_v25, %v2256_v21  ;;  %v2491_v42 = vmax.f32 %v2265_v43, %v2257_v50  ;;  %v2512_v26 = vmax.f32 %v2266_v59, %v2258_v14  ;;  %v2386_v10 = vmax.f32 %v2260_v56, %v2252_v9  ;;  %v5430_v59 = vld [vmem:[#allocation65_spill] sm:$0xff] }
 0x3c9   : > { %v2269_v8 = vsel %vm2191_vm4, %v5415_v38, 0.0  ;;  %v2270_v23 = vsel %vm2191_vm4, %v5416_v0, 0.0  ;;  %v5417_v22 = vmax.f32 %v3878_v49, 0.0  ;;  %vm2194_vm7 = vcmp.lt.s32.totalorder %v4362_v3, 300 }
 0x3ca   : > { %v5419_v21 = vmax.f32 %v5418_v46, 0.0  ;;  %v5420_v50 = vmax.f32 %v3607_v63, 0.0  ;;  %v2408_v7 = vmax.f32 %v2407_v24, %v2269_v8  ;;  %v5421_v49 = vmax.f32 %v3884_v60, 0.0  ;;  %v5434_v8 = vld [vmem:[#allocation66_spill] sm:$0xff]  ;;  %v5436_v46 = vld [vmem:[#allocation16_spill] sm:$0xff] }
 0x3cb   : > { %v2271_v17 = vsel %vm2191_vm4, %v5417_v22, 0.0  ;;  %v5422_v39 = vmax.f32 %v3881_v37, 0.0  ;;  %v5423_v13 = vmax.f32 %v3887_v41, 0.0  ;;  %v2429_v9 = vmax.f32 %v2428_v53, %v2270_v23 }
 0x3cc   : > { %v4459_v58 = vsel %vm2187_vm3, %v5419_v21, 0.0  ;;  %v2268_v1 = vsel %vm2191_vm4, %v5420_v50, 0.0  ;;  %v2450_v14 = vmax.f32 %v2449_v44, %v2271_v17  ;;  %v2272_v29 = vsel %vm2191_vm4, %v5421_v49, 0.0  ;;  %v5426_v44 = vld [vmem:[#allocation63_spill] sm:$0xff]  ;;  %v5439_v49 = vld [vmem:[#allocation18_spill] sm:$0xff] }
 0x3cd   : > { %v2273_v57 = vsel %vm2191_vm4, %v5422_v39, 0.0  ;;  %v2274_v63 = vsel %vm2191_vm4, %v5423_v13, 0.0  ;;  %v2471_v12 = vmax.f32 %v2470_v48, %v2272_v29  ;;  %vm2195_vm8 = vcmp.lt.s32.totalorder %v4365_v2, 300 }
 0x3ce   : > { %v2492_v56 = vmax.f32 %v2491_v42, %v2273_v57  ;;  %v2513_v47 = vmax.f32 %v2512_v26, %v2274_v63  ;;  %v2387_v60 = vmax.f32 %v2386_v10, %v2268_v1  ;;  %v5424_v24 = vmax.f32 %v3618_v34, 0.0  ;;  %v5432_v10 = vld [vmem:[#allocation64_spill] sm:$0xff]  ;;  %v5441_v57 = vld [vmem:[#allocation67_spill] sm:$0xff] }
 0x3cf   : > { %v5425_v19 = vmax.f32 %v3626_v62, 0.0  ;;  %v5427_v61 = vmax.f32 %v5426_v44, 0.0  ;;  %v5428_v30 = vmax.f32 %v3543_v36, 0.0  ;;  %v5429_v34 = vmax.f32 %v3623_v18, 0.0 }
 0x3d0   : > { %v2277_v37 = vsel %vm2192_vm5, %v5424_v24, 0.0  ;;  %v5431_v53 = vmax.f32 %v5430_v59, 0.0  ;;  %v5433_v38 = vmax.f32 %v5432_v10, 0.0  ;;  %v5435_v0 = vmax.f32 %v5434_v8, 0.0  ;;  %v5452_v10 = vld [vmem:[#allocation20_spill] sm:$0xff] }
 0x3d1   : > { %v2278_v41 = vsel %vm2192_vm5, %v5425_v19, 0.0  ;;  %v2279_v25 = vsel %vm2192_vm5, %v5427_v61, 0.0  ;;  %v4494_v43 = vsel %vm2187_vm3, %v5428_v30, 0.0  ;;  %v2276_v54 = vsel %vm2192_vm5, %v5429_v34, 0.0  ;;  %v5449_v30 = vld [vmem:[#allocation70_spill] sm:$0xff] }
 0x3d2   : > { %v2451_v62 = vmax.f32 %v2450_v14, %v2279_v25  ;;  %v2280_v48 = vsel %vm2192_vm5, %v5431_v53, 0.0  ;;  %v2409_v42 = vmax.f32 %v2408_v7, %v2277_v37  ;;  %v2281_v36 = vsel %vm2192_vm5, %v5433_v38, 0.0  ;;  %v5447_v37 = vld [vmem:[#allocation68_spill] sm:$0xff] }
 0x3d3   : > { %v2472_v26 = vmax.f32 %v2471_v12, %v2280_v48  ;;  %v2282_v18 = vsel %vm2192_vm5, %v5435_v0, 0.0  ;;  %v2430_v23 = vmax.f32 %v2429_v9, %v2278_v41  ;;  %v2493_v22 = vmax.f32 %v2492_v56, %v2281_v36  ;;  %v5443_v9 = vld [vmem:[#allocation17_spill] sm:$0xff] }
 0x3d4   : > { %v2514_v17 = vmax.f32 %v2513_v47, %v2282_v18  ;;  %v5437_v21 = vmax.f32 %v5436_v46, 0.0  ;;  %vm2196_vm9 = vcmp.lt.s32.totalorder %v4367_v32, 300  ;;  %v5438_v1 = vmax.f32 %v3540_v33, 0.0  ;;  %v5445_v47 = vld [vmem:[#allocation69_spill] sm:$0xff] }
 0x3d5   : > { %v2388_v7 = vmax.f32 %v2387_v60, %v2276_v54  ;;  %v5440_v29 = vmax.f32 %v5439_v49, 0.0  ;;  %v5442_v13 = vmax.f32 %v5441_v57, 0.0  ;;  %v5444_v12 = vmax.f32 %v5443_v9, 0.0  ;;  %v5454_v36 = vld [vmem:[#allocation21_spill] sm:$0xff]  ;;  %v5462_v49 = vld [vmem:[#allocation72_spill] sm:$0xff]  ;;  %v5464_v57 = vld [vmem:[#allocation74_spill] sm:$0xff] }
 0x3d6   : > { %v2285_v50 = vsel %vm2193_vm6, %v5437_v21, 0.0  ;;  %v4521_v14 = vsel %vm2187_vm3, %v5438_v1, 0.0  ;;  %v5446_v24 = vmax.f32 %v5445_v47, 0.0  ;;  %v5448_v19 = vmax.f32 %v5447_v37, 0.0 }
 0x3d7   : > { %v2286_v39 = vsel %vm2193_vm6, %v5440_v29, 0.0  ;;  %v2287_v63 = vsel %vm2193_vm6, %v5442_v13, 0.0  ;;  %v2284_v33 = vsel %vm2193_vm6, %v5444_v12, 0.0  ;;  %vm2188_vm10 = vcmp.lt.s32.totalorder %v4354_v15, 300 }
 0x3d8   : > { %v2452_v56 = vmax.f32 %v2451_v62, %v2287_v63  ;;  %v2288_v60 = vsel %vm2193_vm6, %v5446_v24, 0.0  ;;  %v2289_v41 = vsel %vm2193_vm6, %v5448_v19, 0.0  ;;  %v2410_v44 = vmax.f32 %v2409_v42, %v2285_v50  ;;  %v5460_v50 = vld [vmem:[#allocation73_spill] sm:$0xff]  ;;  %v5468_v19 = vld [vmem:[#allocation24_spill] sm:$0xff] }
 0x3d9   : > { %v2473_v61 = vmax.f32 %v2472_v26, %v2288_v60  ;;  %v2494_v25 = vmax.f32 %v2493_v22, %v2289_v41  ;;  %v5450_v34 = vmax.f32 %v5449_v30, 0.0  ;;  %v5451_v62 = vmax.f32 %v3546_v35, 0.0  ;;  %v5456_v35 = vld [vmem:[#allocation22_spill] sm:$0xff] }
 0x3da   : > { %v2431_v53 = vmax.f32 %v2430_v23, %v2286_v39  ;;  %v5453_v38 = vmax.f32 %v5452_v10, 0.0  ;;  %vm2197_vm11 = vcmp.lt.s32.totalorder %v4369_v55, 300  ;;  %v2389_v26 = vmax.f32 %v2388_v7, %v2284_v33  ;;  %v5458_v23 = vld [vmem:[#allocation71_spill] sm:$0xff] }
 0x3db   : > { %v2290_v54 = vsel %vm2193_vm6, %v5450_v34, 0.0  ;;  %v4552_v59 = vsel %vm2187_vm3, %v5451_v62, 0.0  ;;  %v5455_v8 = vmax.f32 %v5454_v36, 0.0  ;;  %v5457_v18 = vmax.f32 %v5456_v35, 0.0  ;;  %v5470_v34 = vld [vmem:[#allocation75_spill] sm:$0xff] }
 0x3dc   : > { %v2515_v48 = vmax.f32 %v2514_v17, %v2290_v54  ;;  %v2293_v42 = vsel %vm2194_vm7, %v5453_v38, 0.0  ;;  %v5459_v17 = vmax.f32 %v5458_v23, 0.0  ;;  %v5461_v1 = vmax.f32 %v5460_v50, 0.0  ;;  %v5476_v38 = vld [vmem:[#allocation26_spill] sm:$0xff] }
 0x3dd   : > { %v2292_v0 = vsel %vm2194_vm7, %v5455_v8, 0.0  ;;  %v2294_v22 = vsel %vm2194_vm7, %v5457_v18, 0.0  ;;  %v5463_v29 = vmax.f32 %v5462_v49, 0.0  ;;  %v5465_v13 = vmax.f32 %v5464_v57, 0.0  ;;  %v5478_v18 = vld [vmem:[#allocation77_spill] sm:$0xff] }
 0x3de   : > { %v2295_v46 = vsel %vm2194_vm7, %v5459_v17, 0.0  ;;  %v2296_v7 = vsel %vm2194_vm7, %v5461_v1, 0.0  ;;  %v2411_v9 = vmax.f32 %v2410_v44, %v2293_v42  ;;  %v2432_v37 = vmax.f32 %v2431_v53, %v2294_v22  ;;  %v5480_v17 = vld [vmem:[#allocation76_spill] sm:$0xff]  ;;  %v5482_v1 = vld [vmem:[#allocation78_spill] sm:$0xff] }
 0x3df   : > { %v2453_v21 = vmax.f32 %v2452_v56, %v2295_v46  ;;  %v2297_v39 = vsel %vm2194_vm7, %v5463_v29, 0.0  ;;  %v2298_v63 = vsel %vm2194_vm7, %v5465_v13, 0.0  ;;  %v2474_v12 = vmax.f32 %v2473_v61, %v2296_v7  ;;  %v5466_v56 = vld [vmem:[#allocation55_spill] sm:$0xff]  ;;  %v5472_v61 = vld [vmem:[#allocation57_spill] sm:$0xff] }
 0x3e0   : > { %v2495_v33 = vmax.f32 %v2494_v25, %v2297_v39  ;;  %v2516_v47 = vmax.f32 %v2515_v48, %v2298_v63  ;;  %v5467_v24 = vmax.f32 %v5466_v56, 0.0  ;;  %v5469_v41 = vmax.f32 %v5468_v19, 0.0  ;;  %v5474_v48 = vld [vmem:[#allocation56_spill] sm:$0xff] }
 0x3e1   : > { %v5471_v54 = vmax.f32 %v5470_v34, 0.0  ;;  %vm2198_vm12 = vcmp.lt.s32.totalorder %v4371_v28, 300  ;;  %v5473_v25 = vmax.f32 %v5472_v61, 0.0  ;;  %v5475_v53 = vmax.f32 %v5474_v48, 0.0  ;;  %v5486_v56 = vld [vmem:[#allocation28_spill] sm:$0xff]  ;;  %v5494_v61 = vld [vmem:[#allocation81_spill] sm:$0xff] }
 0x3e2   : > { %v4587_v60 = vsel %vm2187_vm3, %v5467_v24, 0.0  ;;  %v2301_v30 = vsel %vm2195_vm8, %v5469_v41, 0.0  ;;  %v5477_v42 = vmax.f32 %v5476_v38, 0.0  ;;  %v2390_v35 = vmax.f32 %v2389_v26, %v2292_v0  ;;  %v5484_v26 = vld [vmem:[#allocation25_spill] sm:$0xff]  ;;  %v5488_v41 = vld [vmem:[#allocation79_spill] sm:$0xff] }
 0x3e3   : > { %v2303_v44 = vsel %vm2195_vm8, %v5471_v54, 0.0  ;;  %v4602_v62 = vsel %vm2187_vm3, %v5473_v25, 0.0  ;;  %v4608_v10 = vsel %vm2187_vm3, %v5475_v53, 0.0  ;;  %v5479_v22 = vmax.f32 %v5478_v18, 0.0  ;;  %v5496_v53 = vld [vmem:[#allocation7_spill] sm:$0xff] }
 0x3e4   : > { %v2302_v36 = vsel %vm2195_vm8, %v5477_v42, 0.0  ;;  %v2454_v8 = vmax.f32 %v2453_v21, %v2303_v44  ;;  %v5481_v46 = vmax.f32 %v5480_v17, 0.0  ;;  %v5483_v7 = vmax.f32 %v5482_v1, 0.0 }
 0x3e5   : > { %v2304_v23 = vsel %vm2195_vm8, %v5479_v22, 0.0  ;;  %v2412_v29 = vmax.f32 %v2411_v9, %v2301_v30  ;;  %vm2199_vm13 = vcmp.lt.s32.totalorder %v4373_v6, 300  ;;  %v5485_v0 = vmax.f32 %v5484_v26, 0.0  ;;  %v5492_v30 = vld [vmem:[#allocation30_spill] sm:$0xff] }
 0x3e6   : > { %v2305_v50 = vsel %vm2195_vm8, %v5481_v46, 0.0  ;;  %v2306_v49 = vsel %vm2195_vm8, %v5483_v7, 0.0  ;;  %v2475_v39 = vmax.f32 %v2474_v12, %v2304_v23  ;;  %v2433_v63 = vmax.f32 %v2432_v37, %v2302_v36  ;;  %v5490_v12 = vld [vmem:[#allocation58_spill] sm:$0xff]  ;;  %v5498_v36 = vld [vmem:[#allocation80_spill] sm:$0xff] }
 0x3e7   : > { %v2496_v57 = vmax.f32 %v2495_v33, %v2305_v50  ;;  %v2517_v21 = vmax.f32 %v2516_v47, %v2306_v49  ;;  %v2300_v13 = vsel %vm2195_vm8, %v5485_v0, 0.0  ;;  %v5487_v24 = vmax.f32 %v5486_v56, 0.0  ;;  %v5500_v23 = vld [vmem:[#allocation82_spill] sm:$0xff]  ;;  %v5502_v49 = vld [vmem:[#allocation29_spill] sm:$0xff]  ;;  %v5504_v56 = vld [vmem:[#allocation32_spill] sm:$0xff] }
 0x3e8   : > { %v5489_v34 = vmax.f32 %v5488_v41, 0.0  ;;  %v5491_v33 = vmax.f32 %v5490_v12, 0.0  ;;  %v5493_v54 = vmax.f32 %v5492_v30, 0.0  ;;  %v5495_v25 = vmax.f32 %v5494_v61, 0.0 }
 0x3e9   : > { %v2309_v19 = vsel %vm2196_vm9, %v5487_v24, 0.0  ;;  %v5497_v38 = vmax.f32 %v5496_v53, 0.0  ;;  %v5499_v18 = vmax.f32 %v5498_v36, 0.0  ;;  %v5501_v17 = vmax.f32 %v5500_v23, 0.0 }
 0x3ea   : > { %v2311_v9 = vsel %vm2196_vm9, %v5489_v34, 0.0  ;;  %v4643_v47 = vsel %vm2187_vm3, %v5491_v33, 0.0  ;;  %v2310_v37 = vsel %vm2196_vm9, %v5493_v54, 0.0  ;;  %v2312_v48 = vsel %vm2196_vm9, %v5495_v25, 0.0  ;;  %v5506_v34 = vld [vmem:[#allocation83_spill] sm:$0xff]  ;;  %v5512_v33 = vld [vmem:[#allocation84_spill] sm:$0xff] }
 0x3eb   : > { %v2455_v44 = vmax.f32 %v2454_v8, %v2311_v9  ;;  %v4657_v42 = vsel %vm2188_vm10, %v5497_v38, 0.0  ;;  %v2476_v51 = vmax.f32 %v2475_v39, %v2312_v48  ;;  %v2313_v22 = vsel %vm2196_vm9, %v5499_v18, 0.0  ;;  %v5516_v38 = vld [vmem:[#allocation86_spill] sm:$0xff] }
 0x3ec   : > { %v2314_v8 = vsel %vm2196_vm9, %v5501_v17, 0.0  ;;  %v2391_v46 = vmax.f32 %v2390_v35, %v2300_v13  ;;  %v2413_v50 = vmax.f32 %v2412_v29, %v2309_v19  ;;  %v2497_v1 = vmax.f32 %v2496_v57, %v2313_v22  ;;  %v5508_v29 = vld [vmem:[#allocation34_spill] sm:$0xff]  ;;  %v5510_v19 = vld [vmem:[#allocation85_spill] sm:$0xff] }
 0x3ed   : > { %v2518_v7 = vmax.f32 %v2517_v21, %v2314_v8  ;;  %vm2200_vm14 = vcmp.lt.s32.totalorder %v4375_v11, 300  ;;  %v5503_v26 = vmax.f32 %v5502_v49, 0.0  ;;  %v2434_v0 = vmax.f32 %v2433_v63, %v2310_v37  ;;  %v5514_v37 = vld [vmem:[#allocation8_spill] sm:$0xff]  ;;  %v5518_v22 = vld [vmem:[#allocation33_spill] sm:$0xff] }
 0x3ee   : > { %v5505_v24 = vmax.f32 %v5504_v56, 0.0  ;;  %v5507_v9 = vmax.f32 %v5506_v34, 0.0  ;;  %v5509_v57 = vmax.f32 %v5508_v29, 0.0  ;;  %v5511_v12 = vmax.f32 %v5510_v19, 0.0  ;;  %v5520_v56 = vld [vmem:[#allocation36_spill] sm:$0xff]  ;;  %v5530_v19 = vld [vmem:[#allocation90_spill] sm:$0xff] }
 0x3ef   : > { %v2308_v39 = vsel %vm2196_vm9, %v5503_v26, 0.0  ;;  %v5513_v30 = vmax.f32 %v5512_v33, 0.0  ;;  %v5515_v61 = vmax.f32 %v5514_v37, 0.0  ;;  %v5519_v23 = vmax.f32 %v5518_v22, 0.0  ;;  %v5528_v29 = vld [vmem:[#allocation88_spill] sm:$0xff]  ;;  %v5532_v33 = vld [vmem:[#allocation10_spill] sm:$0xff] }
 0x3f0   : > { %v2317_v41 = vsel %vm2197_vm11, %v5505_v24, 0.0  ;;  %v2319_v35 = vsel %vm2197_vm11, %v5507_v9, 0.0  ;;  %v2318_v21 = vsel %vm2197_vm11, %v5509_v57, 0.0  ;;  %v2320_v63 = vsel %vm2197_vm11, %v5511_v12, 0.0 }
 0x3f1   : > { %v2456_v13 = vmax.f32 %v2455_v44, %v2319_v35  ;;  %v2321_v54 = vsel %vm2197_vm11, %v5513_v30, 0.0  ;;  %v4696_v25 = vsel %vm2188_vm10, %v5515_v61, 0.0  ;;  %v2477_v48 = vmax.f32 %v2476_v51, %v2320_v63 }
 0x3f2   : > { %v2498_v53 = vmax.f32 %v2497_v1, %v2321_v54  ;;  %v5517_v44 = vmax.f32 %v5516_v38, 0.0  ;;  %v2392_v18 = vmax.f32 %v2391_v46, %v2308_v39  ;;  %v2316_v17 = vsel %vm2197_vm11, %v5519_v23, 0.0  ;;  %v5522_v1 = vld [vmem:[#allocation38_spill] sm:$0xff]  ;;  %v5524_v39 = vld [vmem:[#allocation87_spill] sm:$0xff] }
 0x3f3   : > { %v2414_v8 = vmax.f32 %v2413_v50, %v2317_v41  ;;  %vm2201_vm15 = vcmp.lt.s32.totalorder %v4377_v5, 300  ;;  %v2435_v26 = vmax.f32 %v2434_v0, %v2318_v21  ;;  %v5521_v24 = vmax.f32 %v5520_v56, 0.0  ;;  %v5534_v38 = vld [vmem:[#allocation59_spill] sm:$0xff] }
 0x3f4   : > { %v2322_v36 = vsel %vm2197_vm11, %v5517_v44, 0.0  ;;  %v5523_v34 = vmax.f32 %v5522_v1, 0.0  ;;  %v5525_v9 = vmax.f32 %v5524_v39, 0.0  ;;  %v5529_v57 = vmax.f32 %v5528_v29, 0.0  ;;  %v5536_v56 = vld [vmem:[#allocation91_spill] sm:$0xff] }
 0x3f5   : > { %v2519_v49 = vmax.f32 %v2518_v7, %v2322_v36  ;;  %v2325_v51 = vsel %vm2198_vm12, %v5521_v24, 0.0  ;;  %v5526_v7 = vld [vmem:[#allocation89_spill] sm:$0xff]  ;;  %v5531_v12 = vmax.f32 %v5530_v19, 0.0  ;;  %v5533_v30 = vmax.f32 %v5532_v33, 0.0 }
 0x3f6   : > { %v2326_v46 = vsel %vm2198_vm12, %v5523_v34, 0.0  ;;  %v2327_v35 = vsel %vm2198_vm12, %v5525_v9, 0.0  ;;  %v5527_v41 = vmax.f32 %v5526_v7, 0.0  ;;  %v2329_v21 = vsel %vm2198_vm12, %v5529_v57, 0.0  ;;  %v5538_v34 = vld [vmem:[#allocation37_spill] sm:$0xff] }
 0x3f7   : > { %v2457_v50 = vmax.f32 %v2456_v13, %v2327_v35  ;;  %v2330_v63 = vsel %vm2198_vm12, %v5531_v12, 0.0  ;;  %v4735_v13 = vsel %vm2188_vm10, %v5533_v30, 0.0  ;;  %v2499_v37 = vmax.f32 %v2498_v53, %v2329_v21  ;;  %v5549_v19 = vld [vmem:[#allocation61_spill] sm:$0xff]  ;;  %v5551_v30 = vld [vmem:[#allocation60_spill] sm:$0xff] }
 0x3f8   : > { %v2328_v0 = vsel %vm2198_vm12, %v5527_v41, 0.0  ;;  %v2520_v61 = vmax.f32 %v2519_v49, %v2330_v63  ;;  %v5535_v44 = vmax.f32 %v5534_v38, 0.0  ;;  %v2393_v22 = vmax.f32 %v2392_v18, %v2316_v17  ;;  %v5540_v49 = vld [vmem:[#allocation40_spill] sm:$0xff]  ;;  %v5542_v18 = vld [vmem:[#allocation42_spill] sm:$0xff] }
 0x3f9   : > { %v2478_v54 = vmax.f32 %v2477_v48, %v2328_v0  ;;  %v2415_v23 = vmax.f32 %v2414_v8, %v2325_v51  ;;  %v5537_v24 = vmax.f32 %v5536_v56, 0.0  ;;  %vm2202_vm0 = vcmp.lt.s32.totalorder %v4380_v16, 300  ;;  %v5545_v0 = vld [vmem:[#allocation92_spill] sm:$0xff] }
 0x3fa   : > { %v4741_v36 = vsel %vm2188_vm10, %v5535_v44, 0.0  ;;  %v5539_v39 = vmax.f32 %v5538_v34, 0.0  ;;  %v2436_v53 = vmax.f32 %v2435_v26, %v2326_v46  ;;  %v5541_v9 = vmax.f32 %v5540_v49, 0.0  ;;  %v5547_v46 = vld [vmem:[#allocation93_spill] sm:$0xff] }
 0x3fb   : > { %v2335_v1 = vsel %vm2199_vm13, %v5537_v24, 0.0  ;;  %v5543_v17 = vmax.f32 %v5542_v18, 0.0  ;;  %v5544_v7 = vmax.f32 %v4012_v27, 0.0  ;;  %v5546_v29 = vmax.f32 %v5545_v0, 0.0  ;;  %v5555_v49 = vld [vmem:[#allocation41_spill] sm:$0xff] }
 0x3fc   : > { %v2324_v48 = vsel %vm2198_vm12, %v5539_v39, 0.0  ;;  %v2333_v35 = vsel %vm2199_vm13, %v5541_v9, 0.0  ;;  %v2458_v51 = vmax.f32 %v2457_v50, %v2335_v1  ;;  %v5548_v57 = vmax.f32 %v5547_v46, 0.0  ;;  %v5553_v1 = vld [vmem:[#allocation94_spill] sm:$0xff] }
 0x3fd   : > { %v2334_v8 = vsel %vm2199_vm13, %v5543_v17, 0.0  ;;  %v2336_v41 = vsel %vm2199_vm13, %v5544_v7, 0.0  ;;  %v2337_v26 = vsel %vm2199_vm13, %v5546_v29, 0.0  ;;  %v5550_v12 = vmax.f32 %v5549_v19, 0.0  ;;  %v5559_v7 = vld [vmem:[#allocation96_spill] sm:$0xff]  ;;  %v5563_v29 = vld [vmem:[#allocation95_spill] sm:$0xff] }
 0x3fe   : > { %v2338_v21 = vsel %vm2199_vm13, %v5548_v57, 0.0  ;;  %v2479_v27 = vmax.f32 %v2478_v54, %v2336_v41  ;;  %v2500_v63 = vmax.f32 %v2499_v37, %v2337_v26  ;;  %v5552_v38 = vmax.f32 %v5551_v30, 0.0 }
 0x3ff   : > { %v4776_v50 = vsel %vm2188_vm10, %v5550_v12, 0.0  ;;  %v2521_v33 = vmax.f32 %v2520_v61, %v2338_v21  ;;  %v2394_v56 = vmax.f32 %v2393_v22, %v2324_v48  ;;  %v2416_v24 = vmax.f32 %v2415_v23, %v2333_v35  ;;  %v5557_v61 = vld [vmem:[#allocation44_spill] sm:$0xff]  ;;  %v5561_v23 = vld [vmem:[#allocation46_spill] sm:$0xff] }
 0x400   : > { %v4782_v44 = vsel %vm2188_vm10, %v5552_v38, 0.0  ;;  %v5554_v34 = vmax.f32 %v5553_v1, 0.0  ;;  %v5556_v9 = vmax.f32 %v5555_v49, 0.0  ;;  %v2437_v37 = vmax.f32 %v2436_v53, %v2334_v8  ;;  %v5565_v8 = vld [vmem:[#allocation97_spill] sm:$0xff]  ;;  %v5567_v21 = vld [vmem:[#allocation62_spill] sm:$0xff] }
 0x401   : > { %v5558_v18 = vmax.f32 %v5557_v61, 0.0  ;;  %v5560_v41 = vmax.f32 %v5559_v7, 0.0  ;;  %v5562_v48 = vmax.f32 %v5561_v23, 0.0  ;;  %v5564_v26 = vmax.f32 %v5563_v29, 0.0  ;;  %v5571_v61 = vld [vmem:[#allocation98_spill] sm:$0xff]  ;;  %v5573_v23 = vld [vmem:[#allocation48_spill] sm:$0xff] }
 0x402   : > { %v2343_v39 = vsel %vm2200_vm14, %v5554_v34, 0.0  ;;  %v2332_v54 = vsel %vm2199_vm13, %v5556_v9, 0.0  ;;  %v5566_v46 = vmax.f32 %v5565_v8, 0.0  ;;  %v5568_v19 = vmax.f32 %v5567_v21, 0.0 }
 0x403   : > { %v2341_v17 = vsel %vm2200_vm14, %v5558_v18, 0.0  ;;  %v2344_v22 = vsel %vm2200_vm14, %v5560_v41, 0.0  ;;  %v2342_v35 = vsel %vm2200_vm14, %v5562_v48, 0.0  ;;  %v2459_v0 = vmax.f32 %v2458_v51, %v2343_v39  ;;  %v5569_v51 = vld [vmem:[#allocation45_spill] sm:$0xff] }
 0x404   : > { %v2345_v53 = vsel %vm2200_vm14, %v5564_v26, 0.0  ;;  %v2346_v57 = vsel %vm2200_vm14, %v5566_v46, 0.0  ;;  %v2250_v12 = vsel %vm2188_vm10, %v5568_v19, 0.0  ;;  %v2480_v30 = vmax.f32 %v2479_v27, %v2344_v22  ;;  %v5583_v46 = vld [vmem:[#allocation103_spill] sm:$0xff]  ;;  %v5585_v19 = vld [vmem:[#allocation12_spill] sm:$0xff] }
 0x405   : > { %v2501_v38 = vmax.f32 %v2500_v63, %v2345_v53  ;;  %v2522_v1 = vmax.f32 %v2521_v33, %v2346_v57  ;;  %v2395_v34 = vmax.f32 %v2394_v56, %v2332_v54  ;;  %v5570_v39 = vmax.f32 %v5569_v51, 0.0  ;;  %v5575_v63 = vld [vmem:[#allocation99_spill] sm:$0xff]  ;;  %v5577_v54 = vld [vmem:[#allocation102_spill] sm:$0xff] }
 0x406   : > { %v2417_v9 = vmax.f32 %v2416_v24, %v2341_v17  ;;  %v5572_v18 = vmax.f32 %v5571_v61, 0.0  ;;  %v2438_v41 = vmax.f32 %v2437_v37, %v2342_v35  ;;  %v5574_v48 = vmax.f32 %v5573_v23, 0.0  ;;  %v5579_v17 = vld [vmem:[#allocation11_spill] sm:$0xff]  ;;  %v5581_v35 = vld [vmem:[#allocation50_spill] sm:$0xff] }
 0x407   : > { %v2340_v49 = vsel %vm2200_vm14, %v5570_v39, 0.0  ;;  %v5576_v33 = vmax.f32 %v5575_v63, 0.0  ;;  %v5578_v22 = vmax.f32 %v5577_v54, 0.0  ;;  %v5580_v29 = vmax.f32 %v5579_v17, 0.0 }
 0x408   : > { %v2351_v7 = vsel %vm2201_vm15, %v5572_v18, 0.0  ;;  %v2349_v27 = vsel %vm2201_vm15, %v5574_v48, 0.0  ;;  %v5582_v26 = vmax.f32 %v5581_v35, 0.0  ;;  %v5584_v57 = vmax.f32 %v5583_v46, 0.0  ;;  %v5587_v48 = vld [vmem:[#allocation49_spill] sm:$0xff] }
 0x409   : > { %v2352_v56 = vsel %vm2201_vm15, %v5576_v33, 0.0  ;;  %v2353_v24 = vsel %vm2201_vm15, %v5578_v22, 0.0  ;;  %v2251_v37 = vsel %vm2189_vm1, %v5580_v29, 0.0  ;;  %v2460_v8 = vmax.f32 %v2459_v0, %v2351_v7  ;;  %v5589_v7 = vld [vmem:[#allocation100_spill] sm:$0xff]  ;;  %v5591_v29 = vld [vmem:[#allocation101_spill] sm:$0xff] }
 0x40a   : > { %v2350_v53 = vsel %vm2201_vm15, %v5582_v26, 0.0  ;;  %v2354_v21 = vsel %vm2201_vm15, %v5584_v57, 0.0  ;;  %v5586_v51 = vmax.f32 %v5585_v19, 0.0  ;;  %v2481_v61 = vmax.f32 %v2480_v30, %v2352_v56  ;;  %v5593_v30 = vld [vmem:[#allocation104_spill] sm:$0xff] }
 0x40b   : > { %v2502_v18 = vmax.f32 %v2501_v38, %v2353_v24  ;;  %v2523_v45 = vmax.f32 %v2522_v1, %v2354_v21  ;;  %v2396_v23 = vmax.f32 %v2395_v34, %v2340_v49  ;;  %v5588_v63 = vmax.f32 %v5587_v48, 0.0  ;;  %v5595_v34 = vld [vmem:[#allocation105_spill] sm:$0xff]  ;;  %v5599_v24 = vld [vmem:[#allocation54_spill] sm:$0xff] }
 0x40c   : > { %v2259_v39 = vsel %vm2190_vm2, %v5586_v51, 0.0  ;;  %v2418_v0 = vmax.f32 %v2417_v9, %v2349_v27  ;;  %v5590_v54 = vmax.f32 %v5589_v7, 0.0  ;;  %v2439_v17 = vmax.f32 %v2438_v41, %v2350_v53  ;;  %v5597_v27 = vld [vmem:[#allocation52_spill] sm:$0xff] }
 0x40d   : > { %v2348_v33 = vsel %vm2201_vm15, %v5588_v63, 0.0  ;;  %v5592_v35 = vmax.f32 %v5591_v29, 0.0  ;;  %v5594_v38 = vmax.f32 %v5593_v30, 0.0  ;;  %v5596_v49 = vmax.f32 %v5595_v34, 0.0  ;;  %v5611_v34 = vld [vmem:[#allocation19_spill] sm:$0xff] }
 0x40e   : > { %v2359_v22 = vsel %vm2202_vm0, %v5590_v54, 0.0  ;;  %v5598_v56 = vmax.f32 %v5597_v27, 0.0  ;;  %v5600_v26 = vmax.f32 %v5599_v24, 0.0  ;;  %v2364_v57 = vmax.f32 %v4459_v58, %v4657_v42  ;;  %v5603_v42 = vld [vmem:[#allocation13_spill] sm:$0xff]  ;;  %v5613_v24 = vld [vmem:[#allocation23_spill] sm:$0xff] }
 0x40f   : > { %v2360_v52 = vsel %vm2202_vm0, %v5592_v35, 0.0  ;;  %v2361_v1 = vsel %vm2202_vm0, %v5594_v38, 0.0  ;;  %v2362_v9 = vsel %vm2202_vm0, %v5596_v49, 0.0  ;;  %v2461_v46 = vmax.f32 %v2460_v8, %v2359_v22  ;;  %v5601_v35 = vld [vmem:[#allocation9_spill] sm:$0xff] }
 0x410   : > { %v2357_v41 = vsel %vm2202_vm0, %v5598_v56, 0.0  ;;  %v2358_v53 = vsel %vm2202_vm0, %v5600_v26, 0.0  ;;  %v2482_v21 = vmax.f32 %v2481_v61, %v2360_v52  ;;  %v2503_v19 = vmax.f32 %v2502_v18, %v2361_v1 }
 0x411   : > { %v2524_v51 = vmax.f32 %v2523_v45, %v2362_v9  ;;  %v2448_v48 = vmax.f32 %v4587_v60, %v4741_v36  ;;  %v2365_v63 = vmax.f32 %v2364_v57, %v2251_v37  ;;  %v2469_v7 = vmax.f32 %v4602_v62, %v4776_v50  ;;  %v5605_v60 = vld [vmem:[#allocation14_spill] sm:$0xff]  ;;  %v5607_v37 = vld [vmem:[#allocation53_spill] sm:$0xff] }
 0x412   : > { %v2490_v54 = vmax.f32 %v4608_v10, %v4782_v44  ;;  %v2511_v29 = vmax.f32 %v4643_v47, %v2250_v12  ;;  %v5602_v8 = vmax.f32 %v5601_v35, 0.0  ;;  %v5604_v61 = vmax.f32 %v5603_v42, 0.0 }
 0x413   : > { %v5606_v36 = vmax.f32 %v5605_v60, 0.0  ;;  %v2397_v50 = vmax.f32 %v2396_v23, %v2348_v33  ;;  %v5608_v10 = vmax.f32 %v5607_v37, 0.0  ;;  %v2419_v44 = vmax.f32 %v2418_v0, %v2357_v41  ;;  %v5609_v23 = vld [vmem:[#allocation15_spill] sm:$0xff] }
 0x414   : > { %v2244_v58 = vsel %vm2188_vm10, %v5602_v8, 0.0  ;;  %v2267_v18 = vsel %vm2191_vm4, %v5604_v61, 0.0  ;;  %v2440_v12 = vmax.f32 %v2439_v17, %v2358_v53  ;;  %v2366_v15 = vmax.f32 %v2365_v63, %v2259_v39  ;;  %v5615_v53 = vld [vmem:[#allocation27_spill] sm:$0xff] }
 0x415   : > { %v2275_v62 = vsel %vm2192_vm5, %v5606_v36, 0.0  ;;  %v2356_v47 = vsel %vm2202_vm0, %v5608_v10, 0.0  ;;  %v2406_v45 = vmax.f32 %v4521_v14, %v4696_v25  ;;  %v2427_v31 = vmax.f32 %v4552_v59, %v4735_v13  ;;  %v5619_v8 = vld [vmem:[#allocation35_spill] sm:$0xff] }
 0x416   : > { %v2462_v22 = vmax.f32 %v2461_v46, %v2448_v48  ;;  %v2483_v52 = vmax.f32 %v2482_v21, %v2469_v7  ;;  %v2367_v30 = vmax.f32 %v2366_v15, %v2267_v18  ;;  %v2504_v20 = vmax.f32 %v2503_v19, %v2490_v54 }
 0x417   : > { %v2525_v38 = vmax.f32 %v2524_v51, %v2511_v29  ;;  %v5610_v33 = vmax.f32 %v5609_v23, 0.0  ;;  %v5612_v0 = vmax.f32 %v5611_v34, 0.0  ;;  %v2398_v17 = vmax.f32 %v2397_v50, %v2356_v47  ;;  %v5617_v29 = vld [vmem:[#allocation31_spill] sm:$0xff] }
 0x418   : > { %v2368_v14 = vmax.f32 %v2367_v30, %v2275_v62  ;;  %v2385_v25 = vmax.f32 %v4494_v43, %v2244_v58  ;;  %v2420_v59 = vmax.f32 %v2419_v44, %v2406_v45  ;;  %v2441_v13 = vmax.f32 %v2440_v12, %v2427_v31  ;;  %v5621_v47 = vld [vmem:[#allocation39_spill] sm:$0xff] }
 0x419   : > { %v2283_v1 = vsel %vm2193_vm6, %v5610_v33, 0.0  ;;  %v2291_v39 = vsel %vm2194_vm7, %v5612_v0, 0.0  ;;  %v2463_v49 = vrot.slane %v2462_v22, 4  ;;  %v2484_v9 = vrot.slane %v2483_v52, 4  ;;  %v5623_v12 = vld [vmem:[#allocation43_spill] sm:$0xff] }
 0x41a   : > { %v2369_v27 = vmax.f32 %v2368_v14, %v2283_v1  ;;  %v2505_v56 = vrot.slane %v2504_v20, 4  ;;  %v2526_v41 = vrot.slane %v2525_v38, 4  ;;  %v5614_v26 = vmax.f32 %v5613_v24, 0.0  ;;  %v5625_v1 = vld [vmem:[#allocation47_spill] sm:$0xff] }
 0x41b   : > { %v5616_v46 = vmax.f32 %v5615_v53, 0.0  ;;  %v2399_v21 = vmax.f32 %v2398_v17, %v2385_v25  ;;  %v2421_v43 = vrot.slane %v2420_v59, 4  ;;  %v2442_v19 = vrot.slane %v2441_v13, 4  ;;  %v5627_v0 = vld [vmem:[#allocation51_spill] sm:$0xff] }
 0x41c   : > { %v2299_v4 = vsel %vm2195_vm8, %v5614_v26, 0.0  ;;  %v2370_v57 = vmax.f32 %v2369_v27, %v2291_v39  ;;  %v2464_v51 = vmax.f32 %v2462_v22, %v2463_v49  ;;  %v2485_v48 = vmax.f32 %v2483_v52, %v2484_v9 }
 0x41d   : > { %v2307_v3 = vsel %vm2196_vm9, %v5616_v46, 0.0  ;;  %v2506_v7 = vmax.f32 %v2504_v20, %v2505_v56  ;;  %v2527_v54 = vmax.f32 %v2525_v38, %v2526_v41  ;;  %v5618_v35 = vmax.f32 %v5617_v29, 0.0 }
 0x41e   : > { %v2371_v63 = vmax.f32 %v2370_v57, %v2299_v4  ;;  %v5620_v58 = vmax.f32 %v5619_v8, 0.0  ;;  %v2400_v61 = vrot.slane %v2399_v21, 4  ;;  %v2422_v18 = vmax.f32 %v2420_v59, %v2421_v43 }
 0x41f   : > { %v2315_v2 = vsel %vm2197_vm11, %v5618_v35, 0.0  ;;  %v2443_v60 = vmax.f32 %v2441_v13, %v2442_v19  ;;  %v2465_v36 = vrot.slane %v2464_v51, 2  ;;  %v2486_v62 = vrot.slane %v2485_v48, 2 }
 0x420   : > { %v2323_v32 = vsel %vm2198_vm12, %v5620_v58, 0.0  ;;  %v2372_v42 = vmax.f32 %v2371_v63, %v2307_v3  ;;  %v2507_v37 = vrot.slane %v2506_v7, 2  ;;  %v2528_v10 = vrot.slane %v2527_v54, 2 }
 0x421   : > { %v5622_v44 = vmax.f32 %v5621_v47, 0.0  ;;  %v5624_v15 = vmax.f32 %v5623_v12, 0.0  ;;  %v2401_v31 = vmax.f32 %v2399_v21, %v2400_v61  ;;  %v2423_v22 = vrot.slane %v2422_v18, 2 }
 0x422   : > { %v2373_v50 = vmax.f32 %v2372_v42, %v2315_v2  ;;  %v2444_v52 = vrot.slane %v2443_v60, 2  ;;  %v2466_v30 = vmax.f32 %v2464_v51, %v2465_v36  ;;  %v2487_v20 = vmax.f32 %v2485_v48, %v2486_v62 }
 0x423   : > { %v2331_v55 = vsel %vm2199_vm13, %v5622_v44, 0.0  ;;  %v2339_v28 = vsel %vm2200_vm14, %v5624_v15, 0.0  ;;  %v2508_v23 = vmax.f32 %v2506_v7, %v2507_v37  ;;  %v2529_v33 = vmax.f32 %v2527_v54, %v2528_v10  ;;  %v2363_v44 = vld [vmem:[%s3194_s5] sm:$0xff] }
 0x424   : > { %v2374_v45 = vmax.f32 %v2373_v50, %v2323_v32  ;;  %v5626_v34 = vmax.f32 %v5625_v1, 0.0  ;;  %v5628_v39 = vmax.f32 %v5627_v0, 0.0  ;;  %v2402_v14 = vrot.slane %v2401_v31, 2 }
 0x425   : > { %v2424_v25 = vmax.f32 %v2422_v18, %v2423_v22  ;;  %v2445_v59 = vmax.f32 %v2443_v60, %v2444_v52  ;;  %v2467_v13 = vrot.slane %v2466_v30, 1  ;;  %v2488_v49 = vrot.slane %v2487_v20, 1 }
 0x426   : > { %v2375_v38 = vmax.f32 %v2374_v45, %v2331_v55  ;;  %v2347_v6 = vsel %vm2201_vm15, %v5626_v34, 0.0  ;;  %v2355_v11 = vsel %vm2202_vm0, %v5628_v39, 0.0  ;;  %v2509_v27 = vrot.slane %v2508_v23, 1 }
 0x427   : > { %v2530_v56 = vrot.slane %v2529_v33, 1  ;;  %v3049_v41 = vmov 1966171168   ;;  %v2403_v4 = vmax.f32 %v2401_v31, %v2402_v14  ;;  %v2425_v5 = vrot.slane %v2424_v25, 1 }
 0x428   : > { %v2376_v17 = vmax.f32 %v2375_v38, %v2339_v28  ;;  %v2545_v24 = vunpack.c.l.s4 %v3049_v41  ;;  %v2446_v53 = vrot.slane %v2445_v59, 1  ;;  %v2468_v46 = vmax.f32 %v2466_v30, %v2467_v13 }
 0x429   : > { %v2489_v3 = vmax.f32 %v2487_v20, %v2488_v49  ;;  %v2510_v16 = vmax.f32 %v2508_v23, %v2509_v27  ;;  %v2531_v21 = vmax.f32 %v2529_v33, %v2530_v56  ;;  %v2404_v51 = vrot.slane %v2403_v4, 1 }
 0x42a   : > { %v2377_v9 = vmax.f32 %v2376_v17, %v2347_v6  ;;  %v2546_v43 = vunpack.c.0.s8 %v2545_v24  ;;  %v2426_v48 = vmax.f32 %v2424_v25, %v2425_v5  ;;  %v2447_v63 = vmax.f32 %v2445_v59, %v2446_v53 }
 0x42b   : > { %v2542_v54 = vcombine.low %v2468_v46, %v2489_v3  ;;  %v2543_v29 = vcombine.low %v2510_v16, %v2531_v21  ;;  %v2405_v8 = vmax.f32 %v2403_v4, %v2404_v51 }
 0x42c   : > { %v2378_v26 = vmax.f32 %v2377_v9, %v2355_v11  ;;  %v2549_v35 = vsub.s32 %v2546_v43, %v5400_v40  ;;  %v2541_v32 = vcombine.low %v2426_v48, %v2447_v63 }
 0x42e   : > { %v2379_v57 = vrot.slane %v2378_v26, 4  ;;  %v2564_v42 = vrot.slane %v2542_v54, %v2549_v35  ;;  %v2571_v61 = vrot.slane %v2543_v29, %v2549_v35  ;;  %v2557_v36 = vrot.slane %v2541_v32, %v2549_v35 }
 0x430   : > { %v2380_v19 = vmax.f32 %v2378_v26, %v2379_v57  ;;  %v2573_v62 = vcombine.low %v2564_v42, %v2571_v61 }
 0x432   : > { %v2381_v7 = vrot.slane %v2380_v19, 2  ;;  %v2587_v10 = vrot.slane %v2573_v62, %v2549_v35 }
 0x434   : > { %v2382_v2 = vmax.f32 %v2380_v19, %v2381_v7 }
 0x436   : > { %v2383_v58 = vrot.slane %v2382_v2, 1 }
 0x438   : > { %v2384_v18 = vmax.f32 %v2382_v2, %v2383_v58 }
 0x43a   : > { %v2540_v60 = vcombine.low %v2384_v18, %v2405_v8 }
 0x43c   : > { %v2550_v50 = vrot.slane %v2540_v60, %v2549_v35 }
 0x43e   : > { %v2572_v37 = vcombine.low %v2550_v50, %v2557_v36 }
 0x440   : > { %v2580_v47 = vrot.slane %v2572_v37, %v2549_v35 }
 0x442   : > { %v2588_v55 = vcombine.low %v2580_v47, %v2587_v10 }
 0x444   : > { %v2590_v12 = vmax.f32 %v2363_v44, %v2588_v55 }
 0x446   : > { %2591 = vst [vmem:[%s3194_s5] sm:$0xff] %v2590_v12 }
 0x447 PF: > { %s18_s30 = sadd.s32 1, %s3039_s30   ;;  %s5629_s24 = smov %s3027_s27 }
 0x448   : > { %p15_p0 = scmp.ge.s32.totalorder %s18_s30, 10   ;;  %s5630_s25 = smov %s3031_s28 }
 0x449   : > { %s5631_s26 = smov %s3035_s29  ;;  %s5632_s27 = smov %s5636_s9 }
 0x44a   : > { %s5633_s28 = smov %s5640_s10  ;;  %s5634_s29 = smov %s5644_s11 }
 0x44b   :  { %17 = sbr.rel (!%p15_p0) target bundleno = 6 (0x6), region = 95 }
 0x452   :  { %2619 = vsyncpa [#allocation3], 1 }
 0x453   :  { %2621 = vsyncpa [#allocation3 + $0x1], 1 }

// kernel: pointnet_seg_forward.3
= control target key start
LH: loop header
LB: loop body
LE: loop exit
PB: predicated region body
PF: predicated region fallthrough
CT: control target
= control target key end

     0   :  { %s5663_s25 = smov 0   ;;  %s5665_s26 = smov 0   ;;  %s7328_s0 = inlined_call_operand.vmem [shape: f32[2,512,3], index: 0, kind: input, shape index: {}]   ;;  %s7329_s1 = inlined_call_operand.vmem [shape: f32[2,2,1,1024], index: 1, kind: input, shape index: {}]   ;;  %s7330_s2 = inlined_call_operand.vmem [shape: f32[3,64], index: 2, kind: input, shape index: {}]   ;;  %s7331_s3 = inlined_call_operand.vmem [shape: f32[1,64], index: 3, kind: input, shape index: {}]   ;;  %s7332_s4 = inlined_call_operand.vmem [shape: bf16[1024,512], index: 4, kind: input, shape index: {}]   ;;  %s7333_s5 = inlined_call_operand.vmem [shape: f32[1,512], index: 5, kind: input, shape index: {}]   ;;  %s7334_s6 = inlined_call_operand.vmem [shape: bf16[64,512], index: 6, kind: input, shape index: {}]   ;;  %s7335_s7 = inlined_call_operand.vmem [shape: bf16[512,256], index: 7, kind: input, shape index: {}]   ;;  %s7336_s8 = inlined_call_operand.vmem [shape: f32[1,256], index: 8, kind: input, shape index: {}]   ;;  %s7337_s9 = inlined_call_operand.vmem [shape: bf16[256,128], index: 9, kind: input, shape index: {}]   ;;  %s7338_s10 = inlined_call_operand.vmem [shape: f32[1,128], index: 10, kind: input, shape index: {}]   ;;  %s7339_s11 = inlined_call_operand.vmem [shape: bf16[2,128], index: 11, kind: input, shape index: {}]   ;;  %s7340_s12 = inlined_call_operand.vmem [shape: f32[2,1], index: 12, kind: input, shape index: {}]   ;;  %s7341_s13 = inlined_call_operand.vmem [shape: f32[2,2,512], index: 13, kind: output, shape index: {}]  }
   0x1   :  { %s5667_s27 = smov 0   ;;  %s5669_s28 = smov 0  }
   0x2   :  { %s5671_s29 = smov 0  }
   0x3 LB: > { %7343 = sst [smem:[#allocation2_spill]] %s5582_s28  ;;  %s32_s30 = sadd.s32 1, %s5578_s27  ;;  %s5586_s29 = sphi %s5671_s29, %s23_s29   ;;  %s5582_s28 = sphi %s5669_s28, %s7349_s28   ;;  %s5578_s27 = sphi %s5667_s27, %s7351_s27   ;;  %s5574_s26 = sphi %s5665_s26, %s7347_s26   ;;  %s5570_s25 = sphi %s5663_s25, %s7350_s25  }
   0x4   : > { %s35_s14 = sadd.s32 1, %s5582_s28  ;;  %p33_p0 = scmp.ge.s32.totalorder %s32_s30, 4 }
   0x5   : > { %p4386_p1 = scmp.ge.s32.totalorder %s5586_s29, 1  ;;  %p417_p2 = scmp.lt.s32.totalorder %s5586_s29, 9 }
   0x6   : > { %s7353_s30 = smov (%p33_p0, %s32_s30), 0  ;;  %s7355_s14 = smov (!%p33_p0, %s35_s14), %s5582_s28 }
   0x7   : > { %7344 = sst [smem:[#allocation3_spill]] %s7353_s30  ;;  %p418_p3 = pnand %p4386_p1, %p417_p2 }
   0x8   : > { %p37_p4 = scmp.ge.s32.totalorder %s7355_s14, 2  ;;  %v5024_v0 = vld [vmem:[%s7332_s4 + $0x4] ss:$16 sps:$4 sm:$0xff] (!%p418_p3)   ;;  %s4387_s17 = sshll.u32 (!%p418_p3), %s5570_s25, 4  ;;  %v5026_v1 = vld [vmem:[%s7332_s4 + $0xc] ss:$16 sps:$4 sm:$0xff] (!%p418_p3)   ;;  %v593_v48 = vlaneseq (!%p418_p3) }
   0x9   : > { %421 = sbr.rel (%p418_p3) target bundleno = 1476 (0x5c4), region = 72  ;;  %v5588_v2 = vmov (!%p418_p3), 1   ;;  %p473_p5 = scmp.lt.s32.totalorder (!%p418_p3), %s5574_s26, 1  ;;  %2461 = vmatprep.subr.bf16.mxu0 (!%p418_p3), %v5024_v0  ;;  %v5028_v3 = vld [vmem:[%s7332_s4] ss:$16 sps:$4 sm:$0xff] (!%p418_p3)   ;;  %2625 = vmatprep.subr.bf16.mxu1 (!%p418_p3), %v5026_v1  ;;  %v5589_v6 = vmov (!%p418_p3), 2  }
   0xa   : > { %s7357_s14 = smov (%p37_p4, %s7355_s14), 0  ;;  %4995 = vset.pattern.permute.xlu1 (!%p418_p3), %v5588_v2  ;;  %p5703_p6 = scmp.lt.s32.totalorder (!%p418_p3), %s4387_s17, 63  ;;  %v5029_v4 = vld [vmem:[%s7332_s4 + $0x8] ss:$16 sps:$4 sm:$0xff] (!%p418_p3)   ;;  %v5030_v5 = vld [vmem:[%s7332_s4 + $0x24] ss:$16 sps:$4 sm:$0xff] (!%p418_p3)   ;;  %4996 = vset.pattern.permute.xlu0 (!%p418_p3), %v5589_v6 }
   0xb   : > { %7345 = sst [smem:[#allocation4_spill]] %s7357_s14  ;;  %2462 = vmatpush1.bf16.msra.mxu0 (!%p418_p3), %v5028_v3  ;;  %2626 = vmatpush1.bf16.msra.mxu1 (!%p418_p3), %v5029_v4  ;;  %v5032_v7 = vld [vmem:[%s7332_s4 + $0x2c] ss:$16 sps:$4 sm:$0xff] (!%p418_p3)   ;;  %v5034_v8 = vld [vmem:[%s7332_s4 + $0x20] ss:$16 sps:$4 sm:$0xff] (!%p418_p3)   ;;  %v5590_v44 = vmov (!%p418_p3), 0  }
   0xc   : > { %2463 = vmatprep.subr.bf16.mxu0 (!%p418_p3), %v5030_v5  ;;  %v5035_v9 = vld [vmem:[%s7332_s4 + $0x28] ss:$16 sps:$4 sm:$0xff] (!%p418_p3)   ;;  %2627 = vmatprep.subr.bf16.mxu1 (!%p418_p3), %v5032_v7  ;;  %v5036_v10 = vld [vmem:[%s7332_s4 + $0x44] ss:$16 sps:$4 sm:$0xff] (!%p418_p3)   ;;  %v5038_v11 = vld [vmem:[%s7332_s4 + $0x4c] ss:$16 sps:$4 sm:$0xff] (!%p418_p3)  }
   0xd   : > { %v5040_v12 = vld [vmem:[%s7332_s4 + $0x40] ss:$16 sps:$4 sm:$0xff] (!%p418_p3)   ;;  %v5041_v13 = vld [vmem:[%s7332_s4 + $0x48] ss:$16 sps:$4 sm:$0xff] (!%p418_p3)   ;;  %v5042_v14 = vld [vmem:[%s7332_s4 + $0x64] ss:$16 sps:$4 sm:$0xff] (!%p418_p3)  }
   0xe   : > { %v5044_v15 = vld [vmem:[%s7332_s4 + $0x6c] ss:$16 sps:$4 sm:$0xff] (!%p418_p3)   ;;  %v5046_v16 = vld [vmem:[%s7332_s4 + $0x60] ss:$16 sps:$4 sm:$0xff] (!%p418_p3)   ;;  %v5047_v17 = vld [vmem:[%s7332_s4 + $0x68] ss:$16 sps:$4 sm:$0xff] (!%p418_p3)  }
   0xf   : > { %2464 = vmatpush1.bf16.msra.mxu0 (!%p418_p3), %v5034_v8  ;;  %2628 = vmatpush1.bf16.msra.mxu1 (!%p418_p3), %v5035_v9  ;;  %v5048_v18 = vld [vmem:[%s7332_s4 + $0x84] ss:$16 sps:$4 sm:$0xff] (!%p418_p3)   ;;  %v5050_v19 = vld [vmem:[%s7332_s4 + $0x8c] ss:$16 sps:$4 sm:$0xff] (!%p418_p3)   ;;  %v5052_v20 = vld [vmem:[%s7332_s4 + $0x80] ss:$16 sps:$4 sm:$0xff] (!%p418_p3)  }
  0x10   : > { %s7359_s26 = smov (!%p473_p5, %s5574_s26), 1  ;;  %s7361_s17 = smov (!%p5703_p6, %s4387_s17), 63  ;;  %2465 = vmatprep.subr.bf16.mxu0 %v5036_v10  ;;  %2629 = vmatprep.subr.bf16.mxu1 %v5038_v11  ;;  %v5053_v21 = vld [vmem:[%s7332_s4 + $0x88] ss:$16 sps:$4 sm:$0xff]   ;;  %v5054_v22 = vld [vmem:[%s7332_s4 + $0xa4] ss:$16 sps:$4 sm:$0xff]  }
  0x11   : > { %s4388_s14 = sshll.u32 %s7359_s26, 6  ;;  %v5056_v23 = vld [vmem:[%s7332_s4 + $0xac] ss:$16 sps:$4 sm:$0xff]   ;;  %v5058_v25 = vld [vmem:[%s7332_s4 + $0xa0] ss:$16 sps:$4 sm:$0xff]   ;;  %s4390_s15 = sshll.u32 %s7359_s26, 4 }
  0x12   : > { %s478_s30 = sadd.s32 %s4388_s14, %s7361_s17  ;;  %v5059_v26 = vld [vmem:[%s7332_s4 + $0xa8] ss:$16 sps:$4 sm:$0xff]   ;;  %v5060_v27 = vld [vmem:[%s7332_s4 + $0xc4] ss:$16 sps:$4 sm:$0xff]   ;;  %v5062_v28 = vld [vmem:[%s7332_s4 + $0xcc] ss:$16 sps:$4 sm:$0xff]   ;;  %s485_s17 = scalar_lea.vmem %s7329_s1, %s4390_s15 }
  0x13   : > { %2466 = vmatpush1.bf16.msra.mxu0 %v5040_v12  ;;  %2630 = vmatpush1.bf16.msra.mxu1 %v5041_v13  ;;  %s4389_s20 = sshll.u32 %s478_s30, 3  ;;  %v5064_v30 = vld [vmem:[%s7332_s4 + $0xc0] ss:$16 sps:$4 sm:$0xff]   ;;  %v5065_v31 = vld [vmem:[%s7332_s4 + $0xc8] ss:$16 sps:$4 sm:$0xff]   ;;  %v5856_v52 = vshrl.u32 %v593_v48, 7 }
  0x14   : > { %2467 = vmatprep.subr.bf16.mxu0 %v5042_v14  ;;  %2631 = vmatprep.subr.bf16.mxu1 %v5044_v15  ;;  %s5770_s19 = scalar_lea.vmem %s7328_s0, %s4389_s20  ;;  %v5066_v32 = vld [vmem:[%s7332_s4 + $0xe4] ss:$16 sps:$4 sm:$0xff]   ;;  %v5068_v34 = vld [vmem:[%s7332_s4 + $0xec] ss:$16 sps:$4 sm:$0xff]   ;;  %v5070_v35 = vld [vmem:[%s7332_s4 + $0xe0] ss:$16 sps:$4 sm:$0xff]  }
  0x15   : > { %v495_v24 = vld [vmem:[%s5770_s19] sm:$0xff]  ;;  %v496_v29 = vld [vmem:[%s5770_s19 + $0x8] sm:$0xff]  ;;  %v497_v33 = vld [vmem:[%s5770_s19 + $0x10] sm:$0xff]  ;;  %v5878_v59 = vsub.s32 1, %v5856_v52  ;;  %v5917_v13 = vsub.s32 0, %v5856_v52  ;;  %vm2909_vm0 = vcmask 523264  }
  0x16   : > { %614 = vperm.xlu1 %4995, %v495_v24   ;;  %714 = vperm.xlu0 %4996, %v495_v24   ;;  %v5071_v36 = vld [vmem:[%s7332_s4 + $0xe8] ss:$16 sps:$4 sm:$0xff]   ;;  %v5813_v37 = vld [vmem:[%s5770_s19 + $0x20] sm:$0xff]  ;;  %v5074_v39 = vld [vmem:[%s7332_s4 + $0x10c] ss:$16 sps:$4 sm:$0xff]   ;;  %vm5592_vm1 = vmmov 0  }
  0x17   : > { %2468 = vmatpush1.bf16.msra.mxu0 %v5046_v16  ;;  %2632 = vmatpush1.bf16.msra.mxu1 %v5047_v17  ;;  %v5072_v38 = vld [vmem:[%s7332_s4 + $0x104] ss:$16 sps:$4 sm:$0xff]   ;;  %v5076_v40 = vld [vmem:[%s7332_s4 + $0x100] ss:$16 sps:$4 sm:$0xff]   ;;  %v5077_v41 = vld [vmem:[%s7332_s4 + $0x108] ss:$16 sps:$4 sm:$0xff]  }
  0x18   : > { %2469 = vmatprep.subr.bf16.mxu0 %v5048_v18  ;;  %2633 = vmatprep.subr.bf16.mxu1 %v5050_v19  ;;  %v5078_v42 = vld [vmem:[%s7332_s4 + $0x124] ss:$16 sps:$4 sm:$0xff]   ;;  %v5080_v43 = vld [vmem:[%s7332_s4 + $0x12c] ss:$16 sps:$4 sm:$0xff]   ;;  %v5082_v45 = vld [vmem:[%s7332_s4 + $0x120] ss:$16 sps:$4 sm:$0xff]  }
  0x19   : > { %v5083_v46 = vld [vmem:[%s7332_s4 + $0x128] ss:$16 sps:$4 sm:$0xff]   ;;  %v5084_v47 = vld [vmem:[%s7332_s4 + $0x144] ss:$16 sps:$4 sm:$0xff]   ;;  %v5086_v49 = vld [vmem:[%s7332_s4 + $0x14c] ss:$16 sps:$4 sm:$0xff]  }
  0x1a   : > { %618 = vperm.xlu1 %4995, %v496_v29   ;;  %722 = vperm.xlu0 %4996, %v497_v33   ;;  %v5088_v50 = vld [vmem:[%s7332_s4 + $0x140] ss:$16 sps:$4 sm:$0xff]   ;;  %v5089_v51 = vld [vmem:[%s7332_s4 + $0x148] ss:$16 sps:$4 sm:$0xff]   ;;  %v5090_v53 = vld [vmem:[%s7332_s4 + $0x164] ss:$16 sps:$4 sm:$0xff]  }
  0x1b   : > { %2470 = vmatpush1.bf16.msra.mxu0 %v5052_v20  ;;  %2634 = vmatpush1.bf16.msra.mxu1 %v5053_v21  ;;  %v5092_v54 = vld [vmem:[%s7332_s4 + $0x16c] ss:$16 sps:$4 sm:$0xff]   ;;  %v5094_v56 = vld [vmem:[%s7332_s4 + $0x160] ss:$16 sps:$4 sm:$0xff]   ;;  %v5095_v57 = vld [vmem:[%s7332_s4 + $0x168] ss:$16 sps:$4 sm:$0xff]  }
  0x1c   : > { %2471 = vmatprep.subr.bf16.mxu0 %v5054_v22  ;;  %2635 = vmatprep.subr.bf16.mxu1 %v5056_v23  ;;  %v498_v55 = vld [vmem:[%s5770_s19 + $0x18] sm:$0xff]  ;;  %v5096_v58 = vld [vmem:[%s7332_s4 + $0x184] ss:$16 sps:$4 sm:$0xff]   ;;  %v852_v62 = vld [vmem:[%s485_s17 + $0x8] sm:$0xff]  ;;  %v869_v20 = vsub.s32 3, %v5856_v52  ;;  %vm4261_vm2 = vcmask 1041408  }
  0x1d   : > { %v851_v60 = vld [vmem:[%s485_s17] sm:$0xff]  ;;  %v5098_v61 = vld [vmem:[%s7332_s4 + $0x18c] ss:$16 sps:$4 sm:$0xff]   ;;  %v5101_v1 = vld [vmem:[%s7332_s4 + $0x188] ss:$16 sps:$4 sm:$0xff]   ;;  %p488_p7 = scmp.lt.s32.totalorder %s5570_s25, 3 }
  0x1e   : > { %4997 = vset.pattern.permute.xlu1 %v5589_v6  ;;  %730 = vperm.xlu0 %4996, %v5813_v37   ;;  %v5883_v63 = vmax.f32 %v851_v60, %v852_v62  ;;  %v5100_v0 = vld [vmem:[%s7332_s4 + $0x180] ss:$16 sps:$4 sm:$0xff]   ;;  %v5102_v4 = vld [vmem:[%s7332_s4 + $0x1a4] ss:$16 sps:$4 sm:$0xff]   ;;  %v5104_v5 = vld [vmem:[%s7332_s4 + $0x1ac] ss:$16 sps:$4 sm:$0xff]  }
  0x1f   : > { %2472 = vmatpush1.bf16.msra.mxu0 %v5058_v25  ;;  %2636 = vmatpush1.bf16.msra.mxu1 %v5059_v26  ;;  %v5106_v8 = vld [vmem:[%s7332_s4 + $0x1a0] ss:$16 sps:$4 sm:$0xff]   ;;  %v5107_v9 = vld [vmem:[%s7332_s4 + $0x1a8] ss:$16 sps:$4 sm:$0xff]   ;;  %v5108_v10 = vld [vmem:[%s7332_s4 + $0x1c4] ss:$16 sps:$4 sm:$0xff]  }
  0x20   : > { %2473 = vmatprep.subr.bf16.mxu0 %v5060_v27  ;;  %2637 = vmatprep.subr.bf16.mxu1 %v5062_v28  ;;  %v862_v3 = vrot.slane %v5883_v63, %v5878_v59  ;;  %v5110_v11 = vld [vmem:[%s7332_s4 + $0x1cc] ss:$16 sps:$4 sm:$0xff]   ;;  %v5112_v14 = vld [vmem:[%s7332_s4 + $0x1c0] ss:$16 sps:$4 sm:$0xff]   ;;  %v5113_v15 = vld [vmem:[%s7332_s4 + $0x1c8] ss:$16 sps:$4 sm:$0xff]   ;;  %v858_v19 = vrot.slane %v5883_v63, %v5917_v13  ;;  %v870_v28 = vrot.slane %v5883_v63, %v869_v20 }
  0x21   : > { %718 = vperm.xlu1 %4997, %v496_v29   ;;  %v5913_v12 = vld [vmem:[%s5770_s19 + $0x28] sm:$0xff]  ;;  %v5114_v16 = vld [vmem:[%s7332_s4 + $0x1e4] ss:$16 sps:$4 sm:$0xff]   ;;  %v5118_v18 = vld [vmem:[%s7332_s4 + $0x1e0] ss:$16 sps:$4 sm:$0xff]   ;;  %s7363_s25 = smov (!%p488_p7, %s5570_s25), 3 }
  0x22   : > { %5003 = vset.pattern.permute.xlu0 %v5590_v44  ;;  %v896_v7 = vpack.c.bf16 %v862_v3, %v862_v3  ;;  %v5116_v17 = vld [vmem:[%s7332_s4 + $0x1ec] ss:$16 sps:$4 sm:$0xff]   ;;  %v5119_v21 = vld [vmem:[%s7332_s4 + $0x1e8] ss:$16 sps:$4 sm:$0xff]   ;;  %v5122_v22 = vld [vmem:[%s7332_s4 + $0x204] ss:$16 sps:$4 sm:$0xff]   ;;  %v895_v27 = vpack.c.bf16 %v858_v19, %v858_v19 }
  0x23   : > { %2474 = vmatpush1.bf16.msra.mxu0 %v5064_v30  ;;  %2638 = vmatpush1.bf16.msra.mxu1 %v5065_v31  ;;  %v5125_v23 = vld [vmem:[%s7332_s4 + $0x20c] ss:$16 sps:$4 sm:$0xff]   ;;  %v5120_v25 = vld [vmem:[%s7332_s4 + $0x200] ss:$16 sps:$4 sm:$0xff]   ;;  %v5123_v26 = vld [vmem:[%s7332_s4 + $0x208] ss:$16 sps:$4 sm:$0xff]  }
  0x24   : > { %2475 = vmatprep.subr.bf16.mxu0 %v5066_v32  ;;  %2639 = vmatprep.subr.bf16.mxu1 %v5068_v34  ;;  %v5131_v30 = vld [vmem:[%s7332_s4 + $0x22c] ss:$16 sps:$4 sm:$0xff]   ;;  %v5126_v31 = vld [vmem:[%s7332_s4 + $0x220] ss:$16 sps:$4 sm:$0xff]   ;;  %v5129_v32 = vld [vmem:[%s7332_s4 + $0x228] ss:$16 sps:$4 sm:$0xff]  }
  0x25   : > { %4998 = vset.pattern.permute.xlu1 %v5590_v44  ;;  %515 = vperm.xlu0 %5003, %v495_v24   ;;  %v5950_v24 = vld [vmem:[%s5770_s19 + $0x38] sm:$0xff]  ;;  %v5976_v34 = vld [vmem:[%s5770_s19 + $0x48] sm:$0xff]  ;;  %v5144_v48 = vld [vmem:[%s7332_s4 + $0x280] ss:$16 sps:$4 sm:$0xff]   ;;  %s4391_s21 = sshll.u32 %s7359_s26, 2 }
  0x26   : > { %525 = vperm.xlu1 %4998, %v497_v33   ;;  %2493 = vmatprep.mubr.bf16.mxu0 %v896_v7  ;;  %v5156_v60 = vld [vmem:[%s7332_s4 + $0x2c0] ss:$16 sps:$4 sm:$0xff]   ;;  %v5164_v62 = vld [vmem:[%s7332_s4 + $0x2e4] ss:$16 sps:$4 sm:$0xff]   ;;  %v5165_v3 = vld [vmem:[%s7332_s4 + $0x2e8] ss:$16 sps:$4 sm:$0xff]   ;;  %s491_s22 = sadd.s32 %s4391_s21, %s7363_s25 }
  0x27   : > { %2476 = vmatpush1.bf16.msra.mxu0 %v5070_v35  ;;  %2640 = vmatpush1.bf16.msra.mxu1 %v5071_v36  ;;  %v5134_v35 = vld [vmem:[%s7332_s4 + $0x244] ss:$16 sps:$4 sm:$0xff]   ;;  %v5137_v36 = vld [vmem:[%s7332_s4 + $0x24c] ss:$16 sps:$4 sm:$0xff]   ;;  %s4392_s15 = sshll.u32 %s491_s22, 1 }
  0x28   : > { %2477 = vmatprep.subr.bf16.mxu0 %v5072_v38  ;;  %2641 = vmatprep.subr.bf16.mxu1 %v5074_v39  ;;  %v5990_v38 = vld [vmem:[%s5770_s19 + $0x58] sm:$0xff]  ;;  %s493_s14 = scalar_lea.vmem %s7341_s13, %s4392_s15 }
  0x29   : > { %520 = vperm.xlu0 %5003, %v496_v29   ;;  %2657 = vmatprep.mubr.bf16.mxu1 %v896_v7  ;;  %v5128_v29 = vld [vmem:[%s7332_s4 + $0x224] ss:$16 sps:$4 sm:$0xff]   ;;  %v5135_v39 = vld [vmem:[%s7332_s4 + $0x248] ss:$16 sps:$4 sm:$0xff]   ;;  %v5168_v7 = vld [vmem:[%s7332_s4 + $0x300] ss:$16 sps:$4 sm:$0xff]  }
  0x2a   : > { %4999 = vset.pattern.permute.xlu1 %v5588_v2  ;;  %v5191_v19 = vld [vmem:[%s7332_s4 + $0x36c] ss:$16 sps:$4 sm:$0xff]  }
  0x2b   : > { %2478 = vmatpush1.bf16.msra.mxu0 %v5076_v40  ;;  %2642 = vmatpush1.bf16.msra.mxu1 %v5077_v41  ;;  %v5140_v40 = vld [vmem:[%s7332_s4 + $0x264] ss:$16 sps:$4 sm:$0xff]   ;;  %v5143_v41 = vld [vmem:[%s7332_s4 + $0x26c] ss:$16 sps:$4 sm:$0xff]  }
  0x2c   : > { %2479 = vmatprep.subr.bf16.mxu0 %v5078_v42  ;;  %2643 = vmatprep.subr.bf16.mxu1 %v5080_v43  ;;  %v5138_v42 = vld [vmem:[%s7332_s4 + $0x260] ss:$16 sps:$4 sm:$0xff]   ;;  %v5141_v43 = vld [vmem:[%s7332_s4 + $0x268] ss:$16 sps:$4 sm:$0xff]  }
  0x2d   : > { %622 = vperm.xlu1 %4999, %v497_v33   ;;  %530 = vperm.xlu0 %5003, %v498_v55   ;;  %v898_v33 = vpack.c.bf16 %v870_v28, %v870_v28  ;;  %v5200_v28 = vld [vmem:[%s7332_s4 + $0x3a4] ss:$16 sps:$4 sm:$0xff]  }
  0x2f   : > { %2480 = vmatpush1.bf16.msra.mxu0 %v5082_v45  ;;  %2644 = vmatpush1.bf16.msra.mxu1 %v5083_v46  ;;  %v501_v45 = vld [vmem:[%s5770_s19 + $0x30] sm:$0xff] }
  0x30   : > { %2481 = vmatprep.subr.bf16.mxu0 %v5084_v47  ;;  %2645 = vmatprep.subr.bf16.mxu1 %v5086_v49  ;;  %v5146_v46 = vld [vmem:[%s7332_s4 + $0x284] ss:$16 sps:$4 sm:$0xff]   ;;  %v5149_v47 = vld [vmem:[%s7332_s4 + $0x28c] ss:$16 sps:$4 sm:$0xff]   ;;  %v5147_v49 = vld [vmem:[%s7332_s4 + $0x288] ss:$16 sps:$4 sm:$0xff]  }
  0x31   : > { %626 = vperm.xlu1 %4999, %v498_v55   ;;  %540 = vperm.xlu0 %5003, %v5913_v12  }
  0x33   : > { %2482 = vmatpush1.bf16.msra.mxu0 %v5088_v50  ;;  %2646 = vmatpush1.bf16.msra.mxu1 %v5089_v51  ;;  %v5152_v50 = vld [vmem:[%s7332_s4 + $0x2a4] ss:$16 sps:$4 sm:$0xff]   ;;  %v5155_v51 = vld [vmem:[%s7332_s4 + $0x2ac] ss:$16 sps:$4 sm:$0xff]  }
  0x34   : > { %2483 = vmatprep.subr.bf16.mxu0 %v5090_v53  ;;  %2647 = vmatprep.subr.bf16.mxu1 %v5092_v54  ;;  %v503_v53 = vld [vmem:[%s5770_s19 + $0x40] sm:$0xff] }
  0x35   : > { %5000 = vset.pattern.permute.xlu1 %v5589_v6  ;;  %550 = vperm.xlu0 %5003, %v5950_v24   ;;  %v5150_v54 = vld [vmem:[%s7332_s4 + $0x2a0] ss:$16 sps:$4 sm:$0xff]  }
  0x36   : > { %726 = vperm.xlu1 %5000, %v498_v55   ;;  %v5153_v55 = vld [vmem:[%s7332_s4 + $0x2a8] ss:$16 sps:$4 sm:$0xff]  }
  0x37   : > { %2484 = vmatpush1.bf16.msra.mxu0 %v5094_v56  ;;  %2648 = vmatpush1.bf16.msra.mxu1 %v5095_v57  ;;  %v5158_v56 = vld [vmem:[%s7332_s4 + $0x2c4] ss:$16 sps:$4 sm:$0xff]   ;;  %v5161_v57 = vld [vmem:[%s7332_s4 + $0x2cc] ss:$16 sps:$4 sm:$0xff]  }
  0x38   : > { %2485 = vmatprep.subr.bf16.mxu0 %v5096_v58  ;;  %2649 = vmatprep.subr.bf16.mxu1 %v5098_v61  ;;  %v6046_v58 = vld [vmem:[%s5770_s19 + $0x50] sm:$0xff]  ;;  %v5159_v61 = vld [vmem:[%s7332_s4 + $0x2c8] ss:$16 sps:$4 sm:$0xff]  }
  0x39   : > { %560 = vperm.xlu0 %5003, %v5976_v34  }
  0x3a   : > { %5001 = vset.pattern.permute.xlu1 %v5590_v44 }
  0x3b   : > { %2486 = vmatpush1.bf16.msra.mxu0 %v5100_v0  ;;  %2650 = vmatpush1.bf16.msra.mxu1 %v5101_v1  ;;  %v5167_v0 = vld [vmem:[%s7332_s4 + $0x2ec] ss:$16 sps:$4 sm:$0xff]   ;;  %v5162_v1 = vld [vmem:[%s7332_s4 + $0x2e0] ss:$16 sps:$4 sm:$0xff]  }
  0x3c   : > { %2487 = vmatprep.subr.bf16.mxu0 %v5102_v4  ;;  %2651 = vmatprep.subr.bf16.mxu1 %v5104_v5  ;;  %v5170_v4 = vld [vmem:[%s7332_s4 + $0x304] ss:$16 sps:$4 sm:$0xff]   ;;  %v5173_v5 = vld [vmem:[%s7332_s4 + $0x30c] ss:$16 sps:$4 sm:$0xff]  }
  0x3d   : > { %535 = vperm.xlu1 %5001, %v5813_v37   ;;  %570 = vperm.xlu0 %5003, %v5990_v38  }
  0x3f   : > { %2488 = vmatpush1.bf16.msra.mxu0 %v5106_v8  ;;  %2652 = vmatpush1.bf16.msra.mxu1 %v5107_v9  ;;  %v5171_v8 = vld [vmem:[%s7332_s4 + $0x308] ss:$16 sps:$4 sm:$0xff]   ;;  %v5176_v9 = vld [vmem:[%s7332_s4 + $0x324] ss:$16 sps:$4 sm:$0xff]  }
  0x40   : > { %2489 = vmatprep.subr.bf16.mxu0 %v5108_v10  ;;  %2653 = vmatprep.subr.bf16.mxu1 %v5110_v11  ;;  %v5179_v10 = vld [vmem:[%s7332_s4 + $0x32c] ss:$16 sps:$4 sm:$0xff]   ;;  %v5174_v11 = vld [vmem:[%s7332_s4 + $0x320] ss:$16 sps:$4 sm:$0xff]  }
  0x41   : > { %5002 = vset.pattern.permute.xlu1 %v5588_v2  ;;  %5012 = vset.pattern.permute.xlu0 %v5589_v6 }
  0x42   : > { %630 = vperm.xlu1 %5002, %v5813_v37   ;;  %v5132_v37 = vld [vmem:[%s7332_s4 + $0x240] ss:$16 sps:$4 sm:$0xff]   ;;  %738 = vperm.xlu0 %5012, %v501_v45  }
  0x43   : > { %2490 = vmatpush1.bf16.msra.mxu0 %v5112_v14  ;;  %2654 = vmatpush1.bf16.msra.mxu1 %v5113_v15  ;;  %v5182_v14 = vld [vmem:[%s7332_s4 + $0x344] ss:$16 sps:$4 sm:$0xff]   ;;  %v5185_v15 = vld [vmem:[%s7332_s4 + $0x34c] ss:$16 sps:$4 sm:$0xff]  }
  0x44   : > { %2491 = vmatprep.subr.bf16.mxu0 %v5114_v16  ;;  %2655 = vmatprep.subr.bf16.mxu1 %v5116_v17  ;;  %v5180_v16 = vld [vmem:[%s7332_s4 + $0x340] ss:$16 sps:$4 sm:$0xff]   ;;  %v5183_v17 = vld [vmem:[%s7332_s4 + $0x348] ss:$16 sps:$4 sm:$0xff]  }
  0x46   : > { %634 = vperm.xlu1 %5002, %v5913_v12   ;;  %746 = vperm.xlu0 %5012, %v503_v53  }
  0x47   : > { %2492 = vmatpush1.bf16.msra.mxu0 %v5118_v18  ;;  %2656 = vmatpush1.bf16.msra.mxu1 %v5119_v21  ;;  %v5188_v18 = vld [vmem:[%s7332_s4 + $0x364] ss:$16 sps:$4 sm:$0xff]  }
  0x48   : > { %2502 = vmatprep.subr.bf16.mxu0 %v5122_v22  ;;  %2666 = vmatprep.subr.bf16.mxu1 %v5125_v23  ;;  %v6115_v21 = vld [vmem:[%s5770_s19 + $0x60] sm:$0xff]  ;;  %v5189_v23 = vld [vmem:[%s7332_s4 + $0x368] ss:$16 sps:$4 sm:$0xff]  }
  0x49   : > { %v5186_v22 = vld [vmem:[%s7332_s4 + $0x360] ss:$16 sps:$4 sm:$0xff]  }
  0x4a   : > { %2494 = vmatmul.mubr.bf16.vlgmr.msra.gmra.mrb[0].mxu0 %v895_v27  ;;  %2658 = vmatmul.mubr.bf16.vlgmr.msra.gmra.mrb[0].mxu1 %v895_v27  ;;  %v5195_v27 = vld [vmem:[%s7332_s4 + $0x388] ss:$16 sps:$4 sm:$0xff]  }
  0x4b   : > { %2503 = vmatpush1.bf16.msra.mxu0 %v5120_v25  ;;  %2667 = vmatpush1.bf16.msra.mxu1 %v5123_v26  ;;  %v5197_v25 = vld [vmem:[%s7332_s4 + $0x38c] ss:$16 sps:$4 sm:$0xff]   ;;  %v5192_v26 = vld [vmem:[%s7332_s4 + $0x380] ss:$16 sps:$4 sm:$0xff]  }
  0x4c   : > { %2504 = vmatprep.subr.bf16.mxu0 %v5128_v29  ;;  %2668 = vmatprep.subr.bf16.mxu1 %v5131_v30  ;;  %v5203_v29 = vld [vmem:[%s7332_s4 + $0x3ac] ss:$16 sps:$4 sm:$0xff]  }
  0x4d   : > { %2534 = vmatprep.mubr.bf16.mxu0 %v898_v33  ;;  %2698 = vmatprep.mubr.bf16.mxu1 %v898_v33  ;;  %v6145_v30 = vld [vmem:[%s5770_s19 + $0x68] sm:$0xff]  ;;  %v5206_v33 = vld [vmem:[%s7332_s4 + $0x3c4] ss:$16 sps:$4 sm:$0xff]  }
  0x4e   : > { %5004 = vset.pattern.permute.xlu1 %v5589_v6  ;;  %754 = vperm.xlu0 %5012, %v6046_v58  }
  0x4f   : > { %2505 = vmatpush1.bf16.msra.mxu0 %v5126_v31  ;;  %2669 = vmatpush1.bf16.msra.mxu1 %v5129_v32  ;;  %v5198_v31 = vld [vmem:[%s7332_s4 + $0x3a0] ss:$16 sps:$4 sm:$0xff]   ;;  %v5201_v32 = vld [vmem:[%s7332_s4 + $0x3a8] ss:$16 sps:$4 sm:$0xff]  }
  0x50   : > { %2506 = vmatprep.subr.bf16.mxu0 %v5134_v35  ;;  %2670 = vmatprep.subr.bf16.mxu1 %v5137_v36  ;;  %v6164_v35 = vsub.s32 2, %v5856_v52  ;;  %v5204_v36 = vld [vmem:[%s7332_s4 + $0x3c0] ss:$16 sps:$4 sm:$0xff]  }
  0x51   : > { %734 = vperm.xlu1 %5004, %v5913_v12   ;;  %v5177_v12 = vld [vmem:[%s7332_s4 + $0x328] ss:$16 sps:$4 sm:$0xff]  }
  0x52   : > { %762 = vperm.xlu0 %5012, %v6115_v21  }
  0x53   : > { %2507 = vmatpush1.bf16.msra.mxu0 %v5132_v37  ;;  %2671 = vmatpush1.bf16.msra.mxu1 %v5135_v39  ;;  %v5207_v37 = vld [vmem:[%s7332_s4 + $0x3c8] ss:$16 sps:$4 sm:$0xff]   ;;  %v5212_v39 = vld [vmem:[%s7332_s4 + $0x3e4] ss:$16 sps:$4 sm:$0xff]  }
  0x54   : > { %2508 = vmatprep.subr.bf16.mxu0 %v5140_v40  ;;  %2672 = vmatprep.subr.bf16.mxu1 %v5143_v41  ;;  %v5215_v40 = vld [vmem:[%s7332_s4 + $0x3ec] ss:$16 sps:$4 sm:$0xff]   ;;  %v5210_v41 = vld [vmem:[%s7332_s4 + $0x3e0] ss:$16 sps:$4 sm:$0xff]  }
  0x55   : > { %5005 = vset.pattern.permute.xlu1 %v5590_v44 }
  0x56   : > { %545 = vperm.xlu1 %5005, %v501_v45   ;;  %5017 = vset.pattern.permute.xlu0 %v5590_v44 }
  0x57   : > { %2509 = vmatpush1.bf16.msra.mxu0 %v5138_v42  ;;  %2673 = vmatpush1.bf16.msra.mxu1 %v5141_v43  ;;  %v866_v42 = vrot.slane %v5883_v63, %v6164_v35  ;;  %v6186_v43 = vld [vmem:[%s5770_s19 + $0x78] sm:$0xff] }
  0x58   : > { %2510 = vmatprep.subr.bf16.mxu0 %v5146_v46  ;;  %2674 = vmatprep.subr.bf16.mxu1 %v5149_v47  ;;  %v5213_v46 = vld [vmem:[%s7332_s4 + $0x3e8] ss:$16 sps:$4 sm:$0xff]   ;;  %v5218_v47 = vld [vmem:[%s7332_s4 + $0x404] ss:$16 sps:$4 sm:$0xff]  }
  0x59   : > { %580 = vperm.xlu0 %5017, %v6145_v30  }
  0x5a   : > { %5006 = vset.pattern.permute.xlu1 %v5588_v2 }
  0x5b   : > { %2511 = vmatpush1.bf16.msra.mxu0 %v5144_v48  ;;  %2675 = vmatpush1.bf16.msra.mxu1 %v5147_v49  ;;  %v5221_v48 = vld [vmem:[%s7332_s4 + $0x40c] ss:$16 sps:$4 sm:$0xff]   ;;  %v897_v49 = vpack.c.bf16 %v866_v42, %v866_v42  ;;  %v5284_v42 = vld [vmem:[%s7332_s4 + $0x564] ss:$16 sps:$4 sm:$0xff]  }
  0x5c   : > { %2512 = vmatprep.subr.bf16.mxu0 %v5152_v50  ;;  %638 = vperm.xlu1 %5006, %v501_v45   ;;  %v877_v45 = vsub.s32 5, %v5856_v52  ;;  %v5216_v50 = vld [vmem:[%s7332_s4 + $0x400] ss:$16 sps:$4 sm:$0xff]  }
  0x5d   : > { %2676 = vmatprep.subr.bf16.mxu1 %v5155_v51  ;;  %590 = vperm.xlu0 %5017, %v6186_v43  }
  0x5e   : > { %v878_v51 = vrot.slane %v5883_v63, %v877_v45 }
  0x5f   : > { %2513 = vmatpush1.bf16.msra.mxu0 %v5150_v54  ;;  %2677 = vmatpush1.bf16.msra.mxu1 %v5153_v55  ;;  %v5224_v54 = vld [vmem:[%s7332_s4 + $0x424] ss:$16 sps:$4 sm:$0xff]   ;;  %v5227_v55 = vld [vmem:[%s7332_s4 + $0x42c] ss:$16 sps:$4 sm:$0xff]  }
  0x60   : > { %2514 = vmatprep.subr.bf16.mxu0 %v5158_v56  ;;  %2678 = vmatprep.subr.bf16.mxu1 %v5161_v57  ;;  %v5222_v56 = vld [vmem:[%s7332_s4 + $0x420] ss:$16 sps:$4 sm:$0xff]   ;;  %v900_v57 = vpack.c.bf16 %v878_v51, %v878_v51 }
  0x61   : > { %642 = vperm.xlu1 %5006, %v5950_v24   ;;  %5021 = vset.pattern.permute.xlu0 %v5589_v6 }
  0x63   : > { %2515 = vmatpush1.bf16.msra.mxu0 %v5156_v60  ;;  %2679 = vmatpush1.bf16.msra.mxu1 %v5159_v61  ;;  %v5230_v60 = vld [vmem:[%s7332_s4 + $0x444] ss:$16 sps:$4 sm:$0xff]   ;;  %v5233_v61 = vld [vmem:[%s7332_s4 + $0x44c] ss:$16 sps:$4 sm:$0xff]  }
  0x64   : > { %2516 = vmatprep.subr.bf16.mxu0 %v5164_v62  ;;  %2680 = vmatprep.subr.bf16.mxu1 %v5167_v0  ;;  %v6230_v62 = vld [vmem:[%s5770_s19 + $0x70] sm:$0xff] }
  0x65   : > { %5007 = vset.pattern.permute.xlu1 %v5589_v6  ;;  %770 = vperm.xlu0 %5021, %v6230_v62   ;;  %v5228_v0 = vld [vmem:[%s7332_s4 + $0x440] ss:$16 sps:$4 sm:$0xff]  }
  0x66   : > { %742 = vperm.xlu1 %5007, %v5950_v24   ;;  %v5194_v24 = vld [vmem:[%s7332_s4 + $0x384] ss:$16 sps:$4 sm:$0xff]  }
  0x67   : > { %2517 = vmatpush1.bf16.msra.mxu0 %v5162_v1  ;;  %2681 = vmatpush1.bf16.msra.mxu1 %v5165_v3  ;;  %v5236_v1 = vld [vmem:[%s7332_s4 + $0x464] ss:$16 sps:$4 sm:$0xff]   ;;  %v5239_v3 = vld [vmem:[%s7332_s4 + $0x46c] ss:$16 sps:$4 sm:$0xff]  }
  0x68   : > { %2518 = vmatprep.subr.bf16.mxu0 %v5170_v4  ;;  %2682 = vmatprep.subr.bf16.mxu1 %v5173_v5  ;;  %v5234_v4 = vld [vmem:[%s7332_s4 + $0x460] ss:$16 sps:$4 sm:$0xff]   ;;  %v5237_v5 = vld [vmem:[%s7332_s4 + $0x468] ss:$16 sps:$4 sm:$0xff]  }
  0x69   : > { %5023 = vset.pattern.permute.xlu0 %v5590_v44 }
  0x6a   : > { %5008 = vset.pattern.permute.xlu1 %v5590_v44 }
  0x6b   : > { %2519 = vmatpush1.bf16.msra.mxu0 %v5168_v7  ;;  %2683 = vmatpush1.bf16.msra.mxu1 %v5171_v8  ;;  %v5242_v7 = vld [vmem:[%s7332_s4 + $0x484] ss:$16 sps:$4 sm:$0xff]   ;;  %v5245_v8 = vld [vmem:[%s7332_s4 + $0x48c] ss:$16 sps:$4 sm:$0xff]  }
  0x6c   : > { %555 = vperm.xlu1 %5008, %v503_v53   ;;  %2520 = vmatprep.subr.bf16.mxu0 %v5176_v9  ;;  %v5240_v9 = vld [vmem:[%s7332_s4 + $0x480] ss:$16 sps:$4 sm:$0xff]  }
  0x6d   : > { %2684 = vmatprep.subr.bf16.mxu1 %v5179_v10  ;;  %v5243_v10 = vld [vmem:[%s7332_s4 + $0x488] ss:$16 sps:$4 sm:$0xff]  }
  0x6f   : > { %2521 = vmatpush1.bf16.msra.mxu0 %v5174_v11  ;;  %2685 = vmatpush1.bf16.msra.mxu1 %v5177_v12  ;;  %v5248_v11 = vld [vmem:[%s7332_s4 + $0x4a4] ss:$16 sps:$4 sm:$0xff]   ;;  %v5251_v12 = vld [vmem:[%s7332_s4 + $0x4ac] ss:$16 sps:$4 sm:$0xff]  }
  0x70   : > { %5009 = vset.pattern.permute.xlu1 %v5588_v2  ;;  %2522 = vmatprep.subr.bf16.mxu0 %v5182_v14 }
  0x71   : > { %646 = vperm.xlu1 %5009, %v503_v53   ;;  %2686 = vmatprep.subr.bf16.mxu1 %v5185_v15  ;;  %v5219_v53 = vld [vmem:[%s7332_s4 + $0x408] ss:$16 sps:$4 sm:$0xff]   ;;  %v5246_v15 = vld [vmem:[%s7332_s4 + $0x4a0] ss:$16 sps:$4 sm:$0xff]  }
  0x73   : > { %2523 = vmatpush1.bf16.msra.mxu0 %v5180_v16  ;;  %2687 = vmatpush1.bf16.msra.mxu1 %v5183_v17  ;;  %v5249_v16 = vld [vmem:[%s7332_s4 + $0x4a8] ss:$16 sps:$4 sm:$0xff]   ;;  %v5254_v17 = vld [vmem:[%s7332_s4 + $0x4c4] ss:$16 sps:$4 sm:$0xff]  }
  0x74   : > { %2524 = vmatprep.subr.bf16.mxu0 %v5188_v18  ;;  %2688 = vmatprep.subr.bf16.mxu1 %v5191_v19  ;;  %v5257_v18 = vld [vmem:[%s7332_s4 + $0x4cc] ss:$16 sps:$4 sm:$0xff]  }
  0x75   : > { %650 = vperm.xlu1 %5009, %v5976_v34  }
  0x77   : > { %2525 = vmatpush1.bf16.msra.mxu0 %v5186_v22  ;;  %2689 = vmatpush1.bf16.msra.mxu1 %v5189_v23  ;;  %v5255_v22 = vld [vmem:[%s7332_s4 + $0x4c8] ss:$16 sps:$4 sm:$0xff]   ;;  %v5260_v23 = vld [vmem:[%s7332_s4 + $0x4e4] ss:$16 sps:$4 sm:$0xff]  }
  0x78   : > { %2526 = vmatprep.subr.bf16.mxu0 %v5194_v24  ;;  %2690 = vmatprep.subr.bf16.mxu1 %v5197_v25  ;;  %v5263_v24 = vld [vmem:[%s7332_s4 + $0x4ec] ss:$16 sps:$4 sm:$0xff]   ;;  %v5258_v25 = vld [vmem:[%s7332_s4 + $0x4e0] ss:$16 sps:$4 sm:$0xff]  }
  0x79   : > { %5010 = vset.pattern.permute.xlu1 %v5589_v6 }
  0x7a   : > { %750 = vperm.xlu1 %5010, %v5976_v34   ;;  %v5209_v34 = vld [vmem:[%s7332_s4 + $0x3cc] ss:$16 sps:$4 sm:$0xff]  }
  0x7b   : > { %2527 = vmatpush1.bf16.msra.mxu0 %v5192_v26  ;;  %2691 = vmatpush1.bf16.msra.mxu1 %v5195_v27  ;;  %v5261_v26 = vld [vmem:[%s7332_s4 + $0x4e8] ss:$16 sps:$4 sm:$0xff]   ;;  %v5266_v27 = vld [vmem:[%s7332_s4 + $0x504] ss:$16 sps:$4 sm:$0xff]  }
  0x7c   : > { %2528 = vmatprep.subr.bf16.mxu0 %v5200_v28  ;;  %2692 = vmatprep.subr.bf16.mxu1 %v5203_v29  ;;  %v5269_v29 = vld [vmem:[%s7332_s4 + $0x50c] ss:$16 sps:$4 sm:$0xff]  }
  0x7e   : > { %5011 = vset.pattern.permute.xlu1 %v5590_v44 }
  0x7f   : > { %565 = vperm.xlu1 %5011, %v6046_v58   ;;  %2529 = vmatpush1.bf16.msra.mxu0 %v5198_v31  ;;  %v5267_v31 = vld [vmem:[%s7332_s4 + $0x508] ss:$16 sps:$4 sm:$0xff]  }
  0x80   : > { %2693 = vmatpush1.bf16.msra.mxu1 %v5201_v32  ;;  %2530 = vmatprep.subr.bf16.mxu0 %v5206_v33  ;;  %v5272_v32 = vld [vmem:[%s7332_s4 + $0x524] ss:$16 sps:$4 sm:$0xff]   ;;  %v5275_v33 = vld [vmem:[%s7332_s4 + $0x52c] ss:$16 sps:$4 sm:$0xff]  }
  0x81   : > { %2694 = vmatprep.subr.bf16.mxu1 %v5209_v34 }
  0x83   : > { %5013 = vset.pattern.permute.xlu1 %v5588_v2  ;;  %2531 = vmatpush1.bf16.msra.mxu0 %v5204_v36  ;;  %v5270_v36 = vld [vmem:[%s7332_s4 + $0x520] ss:$16 sps:$4 sm:$0xff]  }
  0x84   : > { %2695 = vmatpush1.bf16.msra.mxu1 %v5207_v37  ;;  %654 = vperm.xlu1 %5013, %v6046_v58   ;;  %v5225_v58 = vld [vmem:[%s7332_s4 + $0x428] ss:$16 sps:$4 sm:$0xff]  }
  0x85   : > { %2532 = vmatprep.subr.bf16.mxu0 %v5212_v39  ;;  %2696 = vmatprep.subr.bf16.mxu1 %v5215_v40  ;;  %v5273_v37 = vld [vmem:[%s7332_s4 + $0x528] ss:$16 sps:$4 sm:$0xff]   ;;  %v5278_v39 = vld [vmem:[%s7332_s4 + $0x544] ss:$16 sps:$4 sm:$0xff]   ;;  %v5276_v40 = vld [vmem:[%s7332_s4 + $0x540] ss:$16 sps:$4 sm:$0xff]  }
  0x87   : > { %2533 = vmatpush1.bf16.msra.mxu0 %v5210_v41  ;;  %v5279_v41 = vld [vmem:[%s7332_s4 + $0x548] ss:$16 sps:$4 sm:$0xff]  }
  0x88   : > { %2697 = vmatpush1.bf16.msra.mxu1 %v5213_v46  ;;  %658 = vperm.xlu1 %5013, %v5990_v38   ;;  %v5287_v46 = vld [vmem:[%s7332_s4 + $0x56c] ss:$16 sps:$4 sm:$0xff]  }
  0x89   : > { %2543 = vmatprep.subr.bf16.mxu0 %v5218_v47  ;;  %2707 = vmatprep.subr.bf16.mxu1 %v5221_v48  ;;  %v5282_v47 = vld [vmem:[%s7332_s4 + $0x560] ss:$16 sps:$4 sm:$0xff]   ;;  %v5285_v48 = vld [vmem:[%s7332_s4 + $0x568] ss:$16 sps:$4 sm:$0xff]  }
  0x8a   : > { %2535 = vmatmul.mubr.bf16.vlgmr.msra.gmra.mrb[0].mxu0 %v897_v49 }
  0x8b   : > { %2544 = vmatpush1.bf16.msra.mxu0 %v5216_v50  ;;  %2699 = vmatmul.mubr.bf16.vlgmr.msra.gmra.mrb[0].mxu1 %v897_v49  ;;  %v5290_v49 = vld [vmem:[%s7332_s4 + $0x584] ss:$16 sps:$4 sm:$0xff]   ;;  %v5293_v50 = vld [vmem:[%s7332_s4 + $0x58c] ss:$16 sps:$4 sm:$0xff]  }
  0x8c   : > { %2708 = vmatpush1.bf16.msra.mxu1 %v5219_v53  ;;  %5014 = vset.pattern.permute.xlu1 %v5589_v6  ;;  %v5291_v53 = vld [vmem:[%s7332_s4 + $0x588] ss:$16 sps:$4 sm:$0xff]  }
  0x8d   : > { %758 = vperm.xlu1 %5014, %v5990_v38   ;;  %2545 = vmatprep.subr.bf16.mxu0 %v5224_v54  ;;  %v5231_v38 = vld [vmem:[%s7332_s4 + $0x448] ss:$16 sps:$4 sm:$0xff]   ;;  %v5296_v54 = vld [vmem:[%s7332_s4 + $0x5a4] ss:$16 sps:$4 sm:$0xff]  }
  0x8e   : > { %2709 = vmatprep.subr.bf16.mxu1 %v5227_v55  ;;  %2575 = vmatprep.mubr.bf16.mxu0 %v900_v57  ;;  %v5294_v55 = vld [vmem:[%s7332_s4 + $0x5a0] ss:$16 sps:$4 sm:$0xff]  }
  0x8f   : > { %2546 = vmatpush1.bf16.msra.mxu0 %v5222_v56  ;;  %2739 = vmatprep.mubr.bf16.mxu1 %v900_v57  ;;  %v5297_v56 = vld [vmem:[%s7332_s4 + $0x5a8] ss:$16 sps:$4 sm:$0xff]   ;;  %v5302_v57 = vld [vmem:[%s7332_s4 + $0x5c4] ss:$16 sps:$4 sm:$0xff]  }
  0x90   : > { %2710 = vmatpush1.bf16.msra.mxu1 %v5225_v58  ;;  %2547 = vmatprep.subr.bf16.mxu0 %v5230_v60  ;;  %v5305_v60 = vld [vmem:[%s7332_s4 + $0x5cc] ss:$16 sps:$4 sm:$0xff]  }
  0x91   : > { %2711 = vmatprep.subr.bf16.mxu1 %v5233_v61  ;;  %5015 = vset.pattern.permute.xlu1 %v5590_v44  ;;  %v873_v61 = vsub.s32 4, %v5856_v52 }
  0x92   : > { %575 = vperm.xlu1 %5015, %v6115_v21  }
  0x93   : > { %2548 = vmatpush1.bf16.msra.mxu0 %v5228_v0  ;;  %v5303_v0 = vld [vmem:[%s7332_s4 + $0x5c8] ss:$16 sps:$4 sm:$0xff]  }
  0x94   : > { %2712 = vmatpush1.bf16.msra.mxu1 %v5231_v38  ;;  %2549 = vmatprep.subr.bf16.mxu0 %v5236_v1  ;;  %v5308_v38 = vld [vmem:[%s7332_s4 + $0x5e4] ss:$16 sps:$4 sm:$0xff]  }
  0x95   : > { %2713 = vmatprep.subr.bf16.mxu1 %v5239_v3  ;;  %v6274_v14 = vpop.permute.xlu1 %614  ;;  %v5306_v3 = vld [vmem:[%s7332_s4 + $0x5e0] ss:$16 sps:$4 sm:$0xff]  }
  0x96   : > { %5016 = vset.pattern.permute.xlu1 %v5588_v2 }
  0x97   : > { %2550 = vmatpush1.bf16.msra.mxu0 %v5234_v4  ;;  %662 = vperm.xlu1 %5016, %v6115_v21   ;;  %v5252_v21 = vld [vmem:[%s7332_s4 + $0x4c0] ss:$16 sps:$4 sm:$0xff]   ;;  %v5311_v4 = vld [vmem:[%s7332_s4 + $0x5ec] ss:$16 sps:$4 sm:$0xff]  }
  0x98   : > { %2714 = vmatpush1.bf16.msra.mxu1 %v5237_v5  ;;  %2551 = vmatprep.subr.bf16.mxu0 %v5242_v7  ;;  %v885_v5 = vsub.s32 7, %v5856_v52  ;;  %v5309_v7 = vld [vmem:[%s7332_s4 + $0x5e8] ss:$16 sps:$4 sm:$0xff]  }
  0x99   : > { %2715 = vmatprep.subr.bf16.mxu1 %v5245_v8  ;;  %v6289_v19 = vpop.permute.xlu1 %618  ;;  %v5314_v8 = vld [vmem:[%s7332_s4 + $0x604] ss:$16 sps:$4 sm:$0xff]  }
  0x9b   : > { %2552 = vmatpush1.bf16.msra.mxu0 %v5240_v9  ;;  %666 = vperm.xlu1 %5016, %v6145_v30   ;;  %v874_v9 = vrot.slane %v5883_v63, %v873_v61  ;;  %v5357_v61 = vld [vmem:[%s7332_s4 + $0x6e8] ss:$16 sps:$4 sm:$0xff]  }
  0x9c   : > { %2716 = vmatpush1.bf16.msra.mxu1 %v5243_v10  ;;  %2553 = vmatprep.subr.bf16.mxu0 %v5248_v11  ;;  %v5317_v10 = vld [vmem:[%s7332_s4 + $0x60c] ss:$16 sps:$4 sm:$0xff]   ;;  %v5312_v11 = vld [vmem:[%s7332_s4 + $0x600] ss:$16 sps:$4 sm:$0xff]  }
  0x9d   : > { %2717 = vmatprep.subr.bf16.mxu1 %v5251_v12  ;;  %v886_v12 = vrot.slane %v5883_v63, %v885_v5  ;;  %v5363_v5 = vld [vmem:[%s7332_s4 + $0x708] ss:$16 sps:$4 sm:$0xff]  }
  0x9f   : > { %2554 = vmatpush1.bf16.msra.mxu0 %v5246_v15  ;;  %5018 = vset.pattern.permute.xlu1 %v5589_v6  ;;  %v5315_v15 = vld [vmem:[%s7332_s4 + $0x608] ss:$16 sps:$4 sm:$0xff]  }
  0xa0   : > { %2718 = vmatpush1.bf16.msra.mxu1 %v5249_v16  ;;  %2555 = vmatprep.subr.bf16.mxu0 %v5254_v17  ;;  %v6314_v28 = vpop.permute.xlu1 %718  ;;  %v899_v16 = vpack.c.bf16 %v874_v9, %v874_v9  ;;  %v5320_v17 = vld [vmem:[%s7332_s4 + $0x624] ss:$16 sps:$4 sm:$0xff]   ;;  %v5366_v9 = vld [vmem:[%s7332_s4 + $0x720] ss:$16 sps:$4 sm:$0xff]  }
  0xa1   : > { %2719 = vmatprep.subr.bf16.mxu1 %v5257_v18  ;;  %766 = vperm.xlu1 %5018, %v6145_v30   ;;  %v5264_v30 = vld [vmem:[%s7332_s4 + $0x500] ss:$16 sps:$4 sm:$0xff]  }
  0xa3   : > { %2556 = vmatpush1.bf16.msra.mxu0 %v5252_v21  ;;  %v5323_v21 = vld [vmem:[%s7332_s4 + $0x62c] ss:$16 sps:$4 sm:$0xff]  }
  0xa4   : > { %2720 = vmatpush1.bf16.msra.mxu1 %v5255_v22  ;;  %2557 = vmatprep.subr.bf16.mxu0 %v5260_v23  ;;  %v5318_v22 = vld [vmem:[%s7332_s4 + $0x620] ss:$16 sps:$4 sm:$0xff]   ;;  %v902_v23 = vpack.c.bf16 %v886_v12, %v886_v12  ;;  %v5369_v12 = vld [vmem:[%s7332_s4 + $0x728] ss:$16 sps:$4 sm:$0xff]  }
  0xa5   : > { %2721 = vmatprep.subr.bf16.mxu1 %v5263_v24  ;;  %5019 = vset.pattern.permute.xlu1 %v5590_v44  ;;  %v6334_v34 = vpop.permute.xlu1 %525  ;;  %v5321_v24 = vld [vmem:[%s7332_s4 + $0x628] ss:$16 sps:$4 sm:$0xff]  }
  0xa6   : > { %585 = vperm.xlu1 %5019, %v6230_v62  }
  0xa7   : > { %2558 = vmatpush1.bf16.msra.mxu0 %v5258_v25  ;;  %v5326_v25 = vld [vmem:[%s7332_s4 + $0x644] ss:$16 sps:$4 sm:$0xff]  }
  0xa8   : > { %2722 = vmatpush1.bf16.msra.mxu1 %v5261_v26  ;;  %2559 = vmatprep.subr.bf16.mxu0 %v5266_v27  ;;  %v5329_v26 = vld [vmem:[%s7332_s4 + $0x64c] ss:$16 sps:$4 sm:$0xff]  }
  0xa9   : > { %2723 = vmatprep.subr.bf16.mxu1 %v5269_v29  ;;  %v5324_v29 = vld [vmem:[%s7332_s4 + $0x640] ss:$16 sps:$4 sm:$0xff]  }
  0xaa   : > { %5020 = vset.pattern.permute.xlu1 %v5588_v2  ;;  %v5281_v2 = vld [vmem:[%s7332_s4 + $0x54c] ss:$16 sps:$4 sm:$0xff]  }
  0xab   : > { %2560 = vmatpush1.bf16.msra.mxu0 %v5264_v30  ;;  %670 = vperm.xlu1 %5020, %v6230_v62   ;;  %v5300_v62 = vld [vmem:[%s7332_s4 + $0x5c0] ss:$16 sps:$4 sm:$0xff]   ;;  %v5327_v30 = vld [vmem:[%s7332_s4 + $0x648] ss:$16 sps:$4 sm:$0xff]  }
  0xac   : > { %2724 = vmatpush1.bf16.msra.mxu1 %v5267_v31  ;;  %2561 = vmatprep.subr.bf16.mxu0 %v5272_v32  ;;  %v6359_v45 = vpop.permute.xlu1 %622  ;;  %v5332_v31 = vld [vmem:[%s7332_s4 + $0x664] ss:$16 sps:$4 sm:$0xff]   ;;  %v5335_v32 = vld [vmem:[%s7332_s4 + $0x66c] ss:$16 sps:$4 sm:$0xff]  }
  0xad   : > { %2725 = vmatprep.subr.bf16.mxu1 %v5275_v33 }
  0xaf   : > { %2562 = vmatpush1.bf16.msra.mxu0 %v5270_v36  ;;  %674 = vperm.xlu1 %5020, %v6186_v43   ;;  %v5330_v36 = vld [vmem:[%s7332_s4 + $0x660] ss:$16 sps:$4 sm:$0xff]  }
  0xb0   : > { %2726 = vmatpush1.bf16.msra.mxu1 %v5273_v37  ;;  %2563 = vmatprep.subr.bf16.mxu0 %v5278_v39  ;;  %v6378_v51 = vpop.permute.xlu1 %626  ;;  %v5333_v37 = vld [vmem:[%s7332_s4 + $0x668] ss:$16 sps:$4 sm:$0xff]   ;;  %v5338_v39 = vld [vmem:[%s7332_s4 + $0x684] ss:$16 sps:$4 sm:$0xff]  }
  0xb1   : > { %2727 = vmatprep.subr.bf16.mxu1 %v5281_v2  ;;  %v5341_v2 = vld [vmem:[%s7332_s4 + $0x68c] ss:$16 sps:$4 sm:$0xff]  }
  0xb3   : > { %2564 = vmatpush1.bf16.msra.mxu0 %v5276_v40  ;;  %5022 = vset.pattern.permute.xlu1 %v5589_v6  ;;  %v5288_v6 = vld [vmem:[%s7332_s4 + $0x580] ss:$16 sps:$4 sm:$0xff]  }
  0xb4   : > { %2728 = vmatpush1.bf16.msra.mxu1 %v5279_v41  ;;  %2565 = vmatprep.subr.bf16.mxu0 %v5284_v42  ;;  %v5336_v40 = vld [vmem:[%s7332_s4 + $0x680] ss:$16 sps:$4 sm:$0xff]   ;;  %v5339_v42 = vld [vmem:[%s7332_s4 + $0x688] ss:$16 sps:$4 sm:$0xff]  }
  0xb5   : > { %2729 = vmatprep.subr.bf16.mxu1 %v5287_v46  ;;  %774 = vperm.xlu1 %5022, %v6186_v43   ;;  %v5299_v43 = vld [vmem:[%s7332_s4 + $0x5ac] ss:$16 sps:$4 sm:$0xff]   ;;  %v6401_v58 = vpop.permute.xlu1 %726  ;;  %v5344_v46 = vld [vmem:[%s7332_s4 + $0x6a4] ss:$16 sps:$4 sm:$0xff]  }
  0xb7   : > { %2566 = vmatpush1.bf16.msra.mxu0 %v5282_v47  ;;  %v5342_v47 = vld [vmem:[%s7332_s4 + $0x6a0] ss:$16 sps:$4 sm:$0xff]  }
  0xb8   : > { %2730 = vmatpush1.bf16.msra.mxu1 %v5285_v48  ;;  %2567 = vmatprep.subr.bf16.mxu0 %v5290_v49  ;;  %v5347_v48 = vld [vmem:[%s7332_s4 + $0x6ac] ss:$16 sps:$4 sm:$0xff]   ;;  %v5345_v49 = vld [vmem:[%s7332_s4 + $0x6a8] ss:$16 sps:$4 sm:$0xff]  }
  0xb9   : > { %2731 = vmatprep.subr.bf16.mxu1 %v5293_v50  ;;  %v5350_v50 = vld [vmem:[%s7332_s4 + $0x6c4] ss:$16 sps:$4 sm:$0xff]  }
  0xbb   : > { %2568 = vmatpush1.bf16.msra.mxu0 %v5288_v6  ;;  %v5353_v6 = vld [vmem:[%s7332_s4 + $0x6cc] ss:$16 sps:$4 sm:$0xff]  }
  0xbc   : > { %2732 = vmatpush1.bf16.msra.mxu1 %v5291_v53  ;;  %2569 = vmatprep.subr.bf16.mxu0 %v5296_v54  ;;  %v6416_v1 = vpop.permute.xlu1 %535  ;;  %v5348_v54 = vld [vmem:[%s7332_s4 + $0x6c0] ss:$16 sps:$4 sm:$0xff]  }
  0xbd   : > { %2733 = vmatprep.subr.bf16.mxu1 %v5299_v43  ;;  %v5351_v43 = vld [vmem:[%s7332_s4 + $0x6c8] ss:$16 sps:$4 sm:$0xff]  }
  0xbf   : > { %2570 = vmatpush1.bf16.msra.mxu0 %v5294_v55  ;;  %v5356_v55 = vld [vmem:[%s7332_s4 + $0x6e4] ss:$16 sps:$4 sm:$0xff]  }
  0xc0   : > { %2734 = vmatpush1.bf16.msra.mxu1 %v5297_v56  ;;  %2571 = vmatprep.subr.bf16.mxu0 %v5302_v57  ;;  %v5359_v56 = vld [vmem:[%s7332_s4 + $0x6ec] ss:$16 sps:$4 sm:$0xff]  }
  0xc1   : > { %2735 = vmatprep.subr.bf16.mxu1 %v5305_v60  ;;  %v6445_v18 = vpop.permute.xlu1 %630  ;;  %v5354_v60 = vld [vmem:[%s7332_s4 + $0x6e0] ss:$16 sps:$4 sm:$0xff]  }
  0xc3   : > { %2572 = vmatpush1.bf16.msra.mxu0 %v5300_v62  ;;  %v5362_v62 = vld [vmem:[%s7332_s4 + $0x704] ss:$16 sps:$4 sm:$0xff]  }
  0xc4   : > { %2736 = vmatpush1.bf16.msra.mxu1 %v5303_v0  ;;  %2573 = vmatprep.subr.bf16.mxu0 %v5308_v38  ;;  %v5360_v0 = vld [vmem:[%s7332_s4 + $0x700] ss:$16 sps:$4 sm:$0xff]   ;;  %v5365_v38 = vld [vmem:[%s7332_s4 + $0x70c] ss:$16 sps:$4 sm:$0xff]  }
  0xc5   : > { %2737 = vmatprep.subr.bf16.mxu1 %v5311_v4  ;;  %v6462_v27 = vpop.permute.xlu1 %634  ;;  %v6549_v4 = vpop.permute.xlu0 %714 }
  0xc7   : > { %2574 = vmatpush1.bf16.msra.mxu0 %v5306_v3 }
  0xc8   : > { %2738 = vmatpush1.bf16.msra.mxu1 %v5309_v7  ;;  %2584 = vmatprep.subr.bf16.mxu0 %v5314_v8  ;;  %v5368_v7 = vld [vmem:[%s7332_s4 + $0x724] ss:$16 sps:$4 sm:$0xff]   ;;  %v5371_v8 = vld [vmem:[%s7332_s4 + $0x72c] ss:$16 sps:$4 sm:$0xff]  }
  0xc9   : > { %2748 = vmatprep.subr.bf16.mxu1 %v5317_v10 }
  0xca   : > { %2576 = vmatmul.mubr.bf16.vlgmr.msra.gmra.mrb[0].mxu0 %v899_v16 }
  0xcb   : > { %2585 = vmatpush1.bf16.msra.mxu0 %v5312_v11  ;;  %2740 = vmatmul.mubr.bf16.vlgmr.msra.gmra.mrb[0].mxu1 %v899_v16  ;;  %v6565_v11 = vpop.permute.xlu0 %722  ;;  %v5377_v16 = vld [vmem:[%s7332_s4 + $0x74c] ss:$16 sps:$4 sm:$0xff]  }
  0xcc   : > { %2749 = vmatpush1.bf16.msra.mxu1 %v5315_v15  ;;  %2586 = vmatprep.subr.bf16.mxu0 %v5320_v17  ;;  %v5374_v15 = vld [vmem:[%s7332_s4 + $0x744] ss:$16 sps:$4 sm:$0xff]   ;;  %v5372_v17 = vld [vmem:[%s7332_s4 + $0x740] ss:$16 sps:$4 sm:$0xff]  }
  0xcd   : > { %2750 = vmatprep.subr.bf16.mxu1 %v5323_v21  ;;  %2616 = vmatprep.mubr.bf16.mxu0 %v902_v23  ;;  %v5375_v21 = vld [vmem:[%s7332_s4 + $0x748] ss:$16 sps:$4 sm:$0xff]  }
  0xce   : > { %2780 = vmatprep.mubr.bf16.mxu1 %v902_v23  ;;  %v5380_v23 = vld [vmem:[%s7332_s4 + $0x764] ss:$16 sps:$4 sm:$0xff]  }
  0xcf   : > { %2587 = vmatpush1.bf16.msra.mxu0 %v5318_v22 }
  0xd0   : > { %2751 = vmatpush1.bf16.msra.mxu1 %v5321_v24  ;;  %2588 = vmatprep.subr.bf16.mxu0 %v5326_v25  ;;  %v6476_v33 = vpop.permute.xlu1 %734  ;;  %v5383_v24 = vld [vmem:[%s7332_s4 + $0x76c] ss:$16 sps:$4 sm:$0xff]   ;;  %v6590_v25 = vpop.permute.xlu0 %730 }
  0xd1   : > { %2752 = vmatprep.subr.bf16.mxu1 %v5329_v26  ;;  %v5378_v26 = vld [vmem:[%s7332_s4 + $0x760] ss:$16 sps:$4 sm:$0xff]  }
  0xd3   : > { %2589 = vmatpush1.bf16.msra.mxu0 %v5324_v29  ;;  %v5381_v29 = vld [vmem:[%s7332_s4 + $0x768] ss:$16 sps:$4 sm:$0xff]  }
  0xd4   : > { %2753 = vmatpush1.bf16.msra.mxu1 %v5327_v30  ;;  %2590 = vmatprep.subr.bf16.mxu0 %v5332_v31  ;;  %v5386_v31 = vld [vmem:[%s7332_s4 + $0x784] ss:$16 sps:$4 sm:$0xff]  }
  0xd5   : > { %2754 = vmatprep.subr.bf16.mxu1 %v5335_v32  ;;  %v6493_v41 = vpop.permute.xlu1 %545  ;;  %v5389_v32 = vld [vmem:[%s7332_s4 + $0x78c] ss:$16 sps:$4 sm:$0xff]  }
  0xd7   : > { %2591 = vmatpush1.bf16.msra.mxu0 %v5330_v36  ;;  %v5384_v36 = vld [vmem:[%s7332_s4 + $0x780] ss:$16 sps:$4 sm:$0xff]  }
  0xd8   : > { %2755 = vmatpush1.bf16.msra.mxu1 %v5333_v37  ;;  %2592 = vmatprep.subr.bf16.mxu0 %v5338_v39  ;;  %v516_v37 = vpop.permute.xlu0 %515  ;;  %v5387_v39 = vld [vmem:[%s7332_s4 + $0x788] ss:$16 sps:$4 sm:$0xff]  }
  0xd9   : > { %2756 = vmatprep.subr.bf16.mxu1 %v5341_v2  ;;  %v5392_v2 = vld [vmem:[%s7332_s4 + $0x7a4] ss:$16 sps:$4 sm:$0xff]  }
  0xdb   : > { %2593 = vmatpush1.bf16.msra.mxu0 %v5336_v40  ;;  %v6516_v53 = vpop.permute.xlu1 %638 }
  0xdc   : > { %2757 = vmatpush1.bf16.msra.mxu1 %v5339_v42  ;;  %2594 = vmatprep.subr.bf16.mxu0 %v5344_v46  ;;  %v5395_v42 = vld [vmem:[%s7332_s4 + $0x7ac] ss:$16 sps:$4 sm:$0xff]   ;;  %v5390_v46 = vld [vmem:[%s7332_s4 + $0x7a0] ss:$16 sps:$4 sm:$0xff]  }
  0xdd   : > { %2758 = vmatprep.subr.bf16.mxu1 %v5347_v48  ;;  %v5393_v48 = vld [vmem:[%s7332_s4 + $0x7a8] ss:$16 sps:$4 sm:$0xff]  }
  0xdf   : > { %2595 = vmatpush1.bf16.msra.mxu0 %v5342_v47  ;;  %v511_v47 = vld [vmem:[%s7330_s2] sm:$0x7] }
  0xe0   : > { %2759 = vmatpush1.bf16.msra.mxu1 %v5345_v49  ;;  %2596 = vmatprep.subr.bf16.mxu0 %v5350_v50  ;;  %v6530_v57 = vpop.permute.xlu1 %642  ;;  %v5398_v49 = vld [vmem:[%s7332_s4 + $0x7c4] ss:$16 sps:$4 sm:$0xff]   ;;  %v5401_v50 = vld [vmem:[%s7332_s4 + $0x7cc] ss:$16 sps:$4 sm:$0xff]  }
  0xe1   : > { %2760 = vmatprep.subr.bf16.mxu1 %v5353_v6  ;;  %v521_v6 = vpop.permute.xlu0 %520 }
  0xe3   : > { %2597 = vmatpush1.bf16.msra.mxu0 %v5348_v54  ;;  %v881_v54 = vsub.s32 6, %v5856_v52 }
  0xe4   : > { %2761 = vmatpush1.bf16.msra.mxu1 %v5351_v43  ;;  %2598 = vmatprep.subr.bf16.mxu0 %v5356_v55  ;;  %v6637_v43 = vrot.slane %v511_v47, %v5878_v59  ;;  %v6640_v55 = vrot.slane %v511_v47, %v5917_v13 }
  0xe5   : > { %2762 = vmatprep.subr.bf16.mxu1 %v5359_v56  ;;  %v6547_v3 = vpop.permute.xlu1 %742 }
  0xe7   : > { %2599 = vmatpush1.bf16.msra.mxu0 %v5354_v60  ;;  %v5396_v60 = vld [vmem:[%s7332_s4 + $0x7c0] ss:$16 sps:$4 sm:$0xff]  }
  0xe8   : > { %2763 = vmatpush1.bf16.msra.mxu1 %v5357_v61  ;;  %2600 = vmatprep.subr.bf16.mxu0 %v5362_v62  ;;  %v5399_v61 = vld [vmem:[%s7332_s4 + $0x7c8] ss:$16 sps:$4 sm:$0xff]   ;;  %v5404_v62 = vld [vmem:[%s7332_s4 + $0x7e4] ss:$16 sps:$4 sm:$0xff]  }
  0xe9   : > { %2764 = vmatprep.subr.bf16.mxu1 %v5365_v38  ;;  %v531_v38 = vpop.permute.xlu0 %530 }
  0xeb   : > { %2601 = vmatpush1.bf16.msra.mxu0 %v5360_v0  ;;  %v6563_v10 = vpop.permute.xlu1 %555  ;;  %v5407_v0 = vld [vmem:[%s7332_s4 + $0x7ec] ss:$16 sps:$4 sm:$0xff]  }
  0xec   : > { %2765 = vmatpush1.bf16.msra.mxu1 %v5363_v5  ;;  %2602 = vmatprep.subr.bf16.mxu0 %v5368_v7  ;;  %v882_v5 = vrot.slane %v5883_v63, %v881_v54  ;;  %v6658_v7 = vrot.slane %v511_v47, %v6164_v35  ;;  %v5405_v63 = vld [vmem:[%s7332_s4 + $0x7e8] ss:$16 sps:$4 sm:$0xff]   ;;  %v5414_v47 = vld [vmem:[%s7334_s6 + $0x20] ss:$16 sps:$4 sm:$0xff]   ;;  %v5425_v54 = vld [vmem:[%s7334_s6 + $0x4c] ss:$16 sps:$4 sm:$0xff]  }
  0xed   : > { %2766 = vmatprep.subr.bf16.mxu1 %v5371_v8  ;;  %v681_v8 = vmul.f32 %v6637_v43, %v6274_v14  ;;  %v5410_v14 = vld [vmem:[%s7334_s6 + $0x4] ss:$16 sps:$4 sm:$0xff]  }
  0xef   : > { %2603 = vmatpush1.bf16.msra.mxu0 %v5366_v9  ;;  %v597_v9 = vmul.f32 %v6640_v55, %v516_v37  ;;  %v5419_v37 = vld [vmem:[%s7334_s6 + $0x2c] ss:$16 sps:$4 sm:$0xff]  }
  0xf0   : > { %2767 = vmatpush1.bf16.msra.mxu1 %v5369_v12  ;;  %2604 = vmatprep.subr.bf16.mxu0 %v5374_v15  ;;  %v6582_v22 = vpop.permute.xlu1 %646  ;;  %v5402_v12 = vld [vmem:[%s7332_s4 + $0x7e0] ss:$16 sps:$4 sm:$0xff]   ;;  %v682_v15 = vmul.f32 %v6637_v43, %v6289_v19  ;;  %v541_v19 = vpop.permute.xlu0 %540 }
  0xf1   : > { %2768 = vmatprep.subr.bf16.mxu1 %v5377_v16  ;;  %v598_v16 = vmul.f32 %v6640_v55, %v521_v6  ;;  %v5422_v6 = vld [vmem:[%s7334_s6 + $0x44] ss:$16 sps:$4 sm:$0xff]  }
  0xf3   : > { %2605 = vmatpush1.bf16.msra.mxu0 %v5372_v17 }
  0xf4   : > { %2769 = vmatpush1.bf16.msra.mxu1 %v5375_v21  ;;  %2606 = vmatprep.subr.bf16.mxu0 %v5380_v23  ;;  %v6598_v30 = vpop.permute.xlu1 %650  ;;  %v5413_v21 = vld [vmem:[%s7334_s6 + $0xc] ss:$16 sps:$4 sm:$0xff]   ;;  %v901_v23 = vpack.c.bf16 %v882_v5, %v882_v5  ;;  %v784_v5 = vmul.f32 %v6658_v7, %v6401_v58  ;;  %v601_v58 = vmul.f32 %v6640_v55, %v6416_v1  ;;  %v5429_v1 = vld [vmem:[%s7334_s6 + $0x68] ss:$16 sps:$4 sm:$0xff]  }
  0xf5   : > { %2770 = vmatprep.subr.bf16.mxu1 %v5383_v24  ;;  %v781_v24 = vmul.f32 %v6658_v7, %v6549_v4  ;;  %v5416_v4 = vld [vmem:[%s7334_s6 + $0x24] ss:$16 sps:$4 sm:$0xff]  }
  0xf7   : > { %2607 = vmatpush1.bf16.msra.mxu0 %v5378_v26  ;;  %v697_v26 = vadd.f32 %v681_v8, %v597_v9  ;;  %v5428_v9 = vld [vmem:[%s7334_s6 + $0x64] ss:$16 sps:$4 sm:$0xff]  }
  0xf8   : > { %2771 = vmatpush1.bf16.msra.mxu1 %v5381_v29  ;;  %2608 = vmatprep.subr.bf16.mxu0 %v5386_v31  ;;  %v5408_v29 = vld [vmem:[%s7334_s6] ss:$16 sps:$4 sm:$0xff]   ;;  %v698_v31 = vadd.f32 %v682_v15, %v598_v16  ;;  %v5431_v15 = vld [vmem:[%s7334_s6 + $0x6c] ss:$16 sps:$4 sm:$0xff]   ;;  %v685_v16 = vmul.f32 %v6637_v43, %v6445_v18 }
  0xf9   : > { %2772 = vmatprep.subr.bf16.mxu1 %v5389_v32  ;;  %v6615_v40 = vpop.permute.xlu1 %750  ;;  %v782_v32 = vmul.f32 %v6658_v7, %v6314_v28  ;;  %v599_v28 = vmul.f32 %v6640_v55, %v6334_v34  ;;  %v684_v34 = vmul.f32 %v6637_v43, %v6378_v51  ;;  %v783_v51 = vmul.f32 %v6658_v7, %v6565_v11  ;;  %v5423_v11 = vld [vmem:[%s7334_s6 + $0x48] ss:$16 sps:$4 sm:$0xff]   ;;  %v5434_v18 = vld [vmem:[%s7335_s7 + $0x4] ss:$8 sps:$4 sm:$0xff]  }
  0xfb   : > { %2609 = vmatpush1.bf16.msra.mxu0 %v5384_v36  ;;  %v5411_v36 = vld [vmem:[%s7334_s6 + $0x8] ss:$16 sps:$4 sm:$0xff]  }
  0xfc   : > { %2773 = vmatpush1.bf16.msra.mxu1 %v5387_v39  ;;  %2610 = vmatprep.subr.bf16.mxu0 %v5392_v2  ;;  %v6696_v39 = vpop.permute.xlu0 %550  ;;  %v797_v2 = vadd.f32 %v781_v24, %v697_v26 }
  0xfd   : > { %2774 = vmatprep.subr.bf16.mxu1 %v5395_v42  ;;  %v683_v42 = vmul.f32 %v6637_v43, %v6359_v45  ;;  %v5417_v45 = vld [vmem:[%s7334_s6 + $0x28] ss:$16 sps:$4 sm:$0xff]  }
  0xfe   : > { %v6642_v56 = vpop.permute.xlu1 %565 }
  0xff   : > { %2611 = vmatpush1.bf16.msra.mxu0 %v5390_v46 }
 0x100   : > { %2775 = vmatpush1.bf16.msra.mxu1 %v5393_v48  ;;  %2612 = vmatprep.subr.bf16.mxu0 %v5398_v49  ;;  %v6710_v48 = vld [vmem:[%s7331_s3] ss:$0 sm:$0xff]  ;;  %v798_v49 = vadd.f32 %v782_v32, %v698_v31  ;;  %v6735_v8 = vpop.permute.xlu0 %560  ;;  %v701_v31 = vadd.f32 %v685_v16, %v601_v58  ;;  %v5443_v58 = vld [vmem:[%s7335_s7 + $0x34] ss:$8 sps:$4 sm:$0xff]  }
 0x101   : > { %2776 = vmatprep.subr.bf16.mxu1 %v5401_v50  ;;  %v600_v50 = vmul.f32 %v6640_v55, %v531_v38  ;;  %v606_v16 = vmul.f32 %v6640_v55, %v6735_v8  ;;  %v5441_v8 = vld [vmem:[%s7335_s7 + $0x30] ss:$8 sps:$4 sm:$0xff]  }
 0x103   : > { %2613 = vmatpush1.bf16.msra.mxu0 %v5396_v60  ;;  %v6675_v17 = vpop.permute.xlu1 %654  ;;  %v819_v60 = vadd.f32 %v6710_v48, %v797_v2  ;;  %v700_v38 = vadd.f32 %v684_v34, %v600_v50  ;;  %v603_v34 = vmul.f32 %v6640_v55, %v6493_v41  ;;  %v687_v50 = vmul.f32 %v6637_v43, %v6516_v53  ;;  %v5435_v41 = vld [vmem:[%s7335_s7 + $0x10] ss:$8 sps:$4 sm:$0xff]   ;;  %v5440_v53 = vld [vmem:[%s7335_s7 + $0x24] ss:$8 sps:$4 sm:$0xff]  }
 0x104   : > { %2777 = vmatpush1.bf16.msra.mxu1 %v5399_v61  ;;  %2614 = vmatprep.subr.bf16.mxu0 %v5404_v62  ;;  %v699_v61 = vadd.f32 %v683_v42, %v599_v28  ;;  %v5420_v62 = vld [vmem:[%s7334_s6 + $0x40] ss:$16 sps:$4 sm:$0xff]  }
 0x105   : > { %2778 = vmatprep.subr.bf16.mxu1 %v5407_v0  ;;  %v820_v0 = vadd.f32 %v6710_v48, %v798_v49  ;;  %v5432_v42 = vld [vmem:[%s7335_s7] ss:$8 sps:$4 sm:$0xff]   ;;  %v604_v49 = vmul.f32 %v6640_v55, %v6696_v39 }
 0x106   : > { %v799_v26 = vadd.f32 %v783_v51, %v699_v61  ;;  %v703_v61 = vadd.f32 %v687_v50, %v603_v34 }
 0x107   : > { %2615 = vmatpush1.bf16.msra.mxu0 %v5402_v12  ;;  %v6702_v46 = vpop.permute.xlu1 %658  ;;  %v836_v24 = vmax.f32 %v820_v0, 0.0  ;;  %v788_v0 = vmul.f32 %v6658_v7, %v6547_v3 }
 0x108   : > { %2779 = vmatpush1.bf16.msra.mxu1 %v5405_v63  ;;  %2934 = vmatprep.subr.bf16.mxu0 %v5410_v14  ;;  %v686_v63 = vmul.f32 %v6637_v43, %v6462_v27  ;;  %v602_v14 = vmul.f32 %v6640_v55, %v541_v19  ;;  %v785_v19 = vmul.f32 %v6658_v7, %v6590_v25  ;;  %v5437_v25 = vld [vmem:[%s7335_s7 + $0x14] ss:$8 sps:$4 sm:$0xff]  }
 0x109   : > { %3047 = vmatprep.subr.bf16.mxu1 %v5413_v21  ;;  %v5426_v21 = vld [vmem:[%s7334_s6 + $0x60] ss:$16 sps:$4 sm:$0xff]   ;;  %v821_v2 = vadd.f32 %v6710_v48, %v799_v26  ;;  %v690_v26 = vmul.f32 %v6637_v43, %v6598_v30 }
 0x10a   : > { %2617 = vmatmul.mubr.bf16.vlgmr.msra.gmra.mrb[0].mxu0 %v901_v23  ;;  %v702_v32 = vadd.f32 %v686_v63, %v602_v14 }
 0x10b   : > { %2781 = vmatmul.mubr.bf16.vlgmr.msra.gmra.mrb[0].mxu1 %v901_v23  ;;  %2935 = vmatpush1.bf16.msra.mxu0 %v5408_v29  ;;  %v835_v23 = vmax.f32 %v819_v60, 0.0  ;;  %v800_v29 = vadd.f32 %v784_v5, %v700_v38 }
 0x10c   : > { %3048 = vmatpush1.bf16.msra.mxu1 %v5411_v36  ;;  %2936 = vmatprep.subr.bf16.mxu0 %v5416_v4  ;;  %v6743_v12 = vpop.permute.xlu1 %758  ;;  %v786_v36 = vmul.f32 %v6658_v7, %v6476_v33  ;;  %v6770_v4 = vpop.permute.xlu0 %570  ;;  %v801_v33 = vadd.f32 %v785_v19, %v701_v31 }
 0x10d   : > { %3049 = vmatprep.subr.bf16.mxu1 %v5419_v37  ;;  %2966 = vmatprep.mubr.bf16.mxu0 %v5590_v44  ;;  %v2789_v37 = vpack.c.bf16 %v836_v24, %v835_v23  ;;  %v822_v28 = vadd.f32 %v6710_v48, %v800_v29  ;;  %v605_v23 = vmul.f32 %v6640_v55, %v6563_v10 }
 0x10e   : > { %3079 = vmatprep.mubr.bf16.mxu1 %v5590_v44  ;;  %v689_v24 = vmul.f32 %v6637_v43, %v6582_v22 }
 0x10f   : > { %2937 = vmatpush1.bf16.msra.mxu0 %v5414_v47  ;;  %v802_v47 = vadd.f32 %v786_v36, %v702_v32  ;;  %v838_v51 = vmax.f32 %v822_v28, 0.0  ;;  %v706_v32 = vadd.f32 %v690_v26, %v606_v16  ;;  %v790_v36 = vmul.f32 %v6658_v7, %v6615_v40  ;;  %v5449_v28 = vld [vmem:[%s7335_s7 + $0x54] ss:$8 sps:$4 sm:$0xff]  }
 0x110   : > { %3050 = vmatpush1.bf16.msra.mxu1 %v5417_v45  ;;  %2938 = vmatprep.subr.bf16.mxu0 %v5422_v6  ;;  %v688_v45 = vmul.f32 %v6637_v43, %v6530_v57  ;;  %v739_v39 = vpop.permute.xlu0 %738  ;;  %v823_v57 = vadd.f32 %v6710_v48, %v801_v33  ;;  %v705_v31 = vadd.f32 %v689_v24, %v605_v23 }
 0x111   : > { %3051 = vmatprep.subr.bf16.mxu1 %v5425_v54  ;;  %v6764_v27 = vpop.permute.xlu1 %575  ;;  %v837_v54 = vmax.f32 %v821_v2, 0.0  ;;  %v824_v60 = vadd.f32 %v6710_v48, %v802_v47  ;;  %v787_v38 = vmul.f32 %v6658_v7, %v739_v39  ;;  %v691_v40 = vmul.f32 %v6637_v43, %v6675_v17  ;;  %v5452_v17 = vld [vmem:[%s7335_s7 + $0x64] ss:$8 sps:$4 sm:$0xff]  }
 0x112   : > { %v839_v3 = vmax.f32 %v823_v57, 0.0  ;;  %v692_v33 = vmul.f32 %v6637_v43, %v6702_v46  ;;  %v806_v50 = vadd.f32 %v790_v36, %v706_v32 }
 0x113   : > { %2939 = vmatpush1.bf16.msra.mxu0 %v5420_v62  ;;  %v704_v62 = vadd.f32 %v688_v45, %v604_v49  ;;  %v2790_v5 = vpack.c.bf16 %v838_v51, %v837_v54  ;;  %v840_v63 = vmax.f32 %v824_v60, 0.0  ;;  %v792_v51 = vmul.f32 %v6658_v7, %v6743_v12  ;;  %v5450_v60 = vld [vmem:[%s7335_s7 + $0x60] ss:$8 sps:$4 sm:$0xff]  }
 0x114   : > { %3052 = vmatpush1.bf16.msra.mxu1 %v5423_v11  ;;  %2940 = vmatprep.subr.bf16.mxu0 %v5428_v9  ;;  %v5438_v11 = vld [vmem:[%s7335_s7 + $0x20] ss:$8 sps:$4 sm:$0xff]   ;;  %v747_v9 = vpop.permute.xlu0 %746 }
 0x115   : > { %3053 = vmatprep.subr.bf16.mxu1 %v5431_v15  ;;  %v804_v14 = vadd.f32 %v788_v0, %v704_v62  ;;  %v2791_v10 = vpack.c.bf16 %v840_v63, %v839_v3  ;;  %v789_v22 = vmul.f32 %v6658_v7, %v747_v9  ;;  %v5455_v62 = vld [vmem:[%s7335_s7 + $0x74] ss:$8 sps:$4 sm:$0xff]   ;;  %v5453_v3 = vld [vmem:[%s7335_s7 + $0x70] ss:$8 sps:$4 sm:$0xff]  }
 0x116   : > { %v6790_v6 = vpop.permute.xlu1 %662 }
 0x117   : > { %2941 = vmatpush1.bf16.msra.mxu0 %v5426_v21  ;;  %v803_v21 = vadd.f32 %v787_v38, %v703_v61  ;;  %v826_v30 = vadd.f32 %v6710_v48, %v804_v14 }
 0x118   : > { %3054 = vmatpush1.bf16.msra.mxu1 %v5429_v1  ;;  %3652 = vmatprep.subr.bf16.mxu0 %v5434_v18  ;;  %v755_v29 = vpop.permute.xlu0 %754  ;;  %v5446_v1 = vld [vmem:[%s7335_s7 + $0x44] ss:$8 sps:$4 sm:$0xff]  }
 0x119   : > { %v825_v18 = vadd.f32 %v6710_v48, %v803_v21  ;;  %v842_v49 = vmax.f32 %v826_v30, 0.0  ;;  %v791_v54 = vmul.f32 %v6658_v7, %v755_v29  ;;  %v5456_v29 = vld [vmem:[%s7335_s7 + $0x80] ss:$8 sps:$4 sm:$0xff]  }
 0x11a   : > { %4666 = vmatmul.mubr.msk.bf16.vlgmr.msra.gmra.mrb[4].mxu0 %vm2909_vm0, %v2789_v37  ;;  %v6808_v15 = vpop.permute.xlu1 %666 }
 0x11b   : > { %4674 = vmatmul.mubr.msk.bf16.vlgmr.msra.gmra.mrb[4].mxu1 %vm2909_vm0, %v2789_v37  ;;  %2976 = vmatprep.mubr.bf16.mxu0 %v5590_v44  ;;  %v5444_v37 = vld [vmem:[%s7335_s7 + $0x40] ss:$8 sps:$4 sm:$0xff]   ;;  %v841_v34 = vmax.f32 %v825_v18, 0.0  ;;  %v694_v9 = vmul.f32 %v6637_v43, %v6808_v15 }
 0x11c   : > { %3089 = vmatprep.mubr.bf16.mxu1 %v5590_v44  ;;  %3653 = vmatpush1.bf16.msra.mxu0 %v5432_v42  ;;  %v763_v2 = vpop.permute.xlu0 %762  ;;  %v608_v42 = vmul.f32 %v6640_v55, %v6770_v4  ;;  %v805_v4 = vadd.f32 %v789_v22, %v705_v31 }
 0x11d   : > { %3654 = vmatprep.subr.bf16.mxu0 %v5437_v25  ;;  %v607_v25 = vmul.f32 %v6640_v55, %v6642_v56  ;;  %v5447_v56 = vld [vmem:[%s7335_s7 + $0x50] ss:$8 sps:$4 sm:$0xff]   ;;  %v793_v15 = vmul.f32 %v6658_v7, %v763_v2 }
 0x11e   : > { %v708_v45 = vadd.f32 %v692_v33, %v608_v42  ;;  %v827_v57 = vadd.f32 %v6710_v48, %v805_v4  ;;  %v5459_v2 = vld [vmem:[%s7335_s7 + $0x90] ss:$8 sps:$4 sm:$0xff]  }
 0x11f   : > { %v707_v46 = vadd.f32 %v691_v40, %v607_v25 }
 0x120   : > { %3655 = vmatpush1.bf16.msra.mxu0 %v5435_v41  ;;  %v767_v19 = vpop.permute.xlu1 %766  ;;  %v581_v39 = vpop.permute.xlu0 %580  ;;  %v2792_v41 = vpack.c.bf16 %v842_v49, %v841_v34  ;;  %v808_v38 = vadd.f32 %v792_v51, %v708_v45  ;;  %v843_v16 = vmax.f32 %v827_v57, 0.0  ;;  %v5464_v51 = vld [vmem:[%s7335_s7 + $0xa4] ss:$8 sps:$4 sm:$0xff]   ;;  %v5473_v57 = vld [vmem:[%s7335_s7 + $0xd4] ss:$8 sps:$4 sm:$0xff]  }
 0x121   : > { %3656 = vmatprep.subr.bf16.mxu0 %v5440_v53  ;;  %v828_v53 = vadd.f32 %v6710_v48, %v806_v50  ;;  %v807_v0 = vadd.f32 %v791_v54, %v707_v46  ;;  %v610_v12 = vmul.f32 %v6640_v55, %v581_v39  ;;  %v794_v24 = vmul.f32 %v6658_v7, %v767_v19  ;;  %v5465_v39 = vld [vmem:[%s7335_s7 + $0xb0] ss:$8 sps:$4 sm:$0xff]  }
 0x122   : > { %4667 = vmatmul.mubr.msk.bf16.gmra.mrb[8].mxu0 %vm2909_vm0, %v2790_v5  ;;  %v830_v14 = vadd.f32 %v6710_v48, %v808_v38  ;;  %v5477_v38 = vld [vmem:[%s7335_s7 + $0xf0] ss:$8 sps:$4 sm:$0xff]  }
 0x123   : > { %4675 = vmatmul.mubr.msk.bf16.gmra.mrb[8].mxu1 %vm2909_vm0, %v2790_v5  ;;  %2986 = vmatprep.mubr.bf16.mxu0 %v5590_v44  ;;  %v609_v5 = vmul.f32 %v6640_v55, %v6764_v27  ;;  %v5458_v27 = vld [vmem:[%s7335_s7 + $0x84] ss:$8 sps:$4 sm:$0xff]   ;;  %v710_v23 = vadd.f32 %v694_v9, %v610_v12 }
 0x124   : > { %3099 = vmatprep.mubr.bf16.mxu1 %v5590_v44  ;;  %3657 = vmatpush1.bf16.msra.mxu0 %v5438_v11  ;;  %v693_v11 = vmul.f32 %v6637_v43, %v6790_v6  ;;  %v829_v6 = vadd.f32 %v6710_v48, %v807_v0  ;;  %v591_v63 = vpop.permute.xlu0 %590  ;;  %v846_v22 = vmax.f32 %v830_v14, 0.0  ;;  %v5479_v0 = vld [vmem:[%s7335_s7 + $0xf4] ss:$8 sps:$4 sm:$0xff]   ;;  %v5482_v12 = vld [vmem:[%s7335_s7 + $0x104] ss:$8 sps:$4 sm:$0xff]  }
 0x125   : > { %3658 = vmatprep.subr.bf16.mxu0 %v5443_v58  ;;  %v586_v47 = vpop.permute.xlu1 %585  ;;  %v844_v58 = vmax.f32 %v828_v53, 0.0  ;;  %v810_v19 = vadd.f32 %v794_v24, %v710_v23  ;;  %v5468_v53 = vld [vmem:[%s7335_s7 + $0xc0] ss:$8 sps:$4 sm:$0xff]  }
 0x126   : > { %v709_v21 = vadd.f32 %v693_v11, %v609_v5  ;;  %v845_v18 = vmax.f32 %v829_v6, 0.0  ;;  %v611_v31 = vmul.f32 %v6640_v55, %v586_v47  ;;  %v1159_v6 = vld [vmem:[%s7333_s5] sm:$0xf] }
 0x127   : > { %v2452_v14 = vrot.slane %v1159_v6, %v6164_v35  ;;  %v2456_v23 = vrot.slane %v1159_v6, %v869_v20 }
 0x128   : > { %3659 = vmatpush1.bf16.msra.mxu0 %v5441_v8  ;;  %v2793_v8 = vpack.c.bf16 %v844_v58, %v843_v16  ;;  %v809_v30 = vadd.f32 %v793_v15, %v709_v21  ;;  %v2794_v42 = vpack.c.bf16 %v846_v22, %v845_v18  ;;  %v2448_v21 = vrot.slane %v1159_v6, %v5878_v59 }
 0x129   : > { %3660 = vmatprep.subr.bf16.mxu0 %v5446_v1  ;;  %v5461_v1 = vld [vmem:[%s7335_s7 + $0x94] ss:$8 sps:$4 sm:$0xff]  }
 0x12a   : > { %4668 = vmatmul.mubr.msk.bf16.gmra.mrb[12].mxu0 %vm2909_vm0, %v2791_v10  ;;  %v671_v61 = vpop.permute.xlu1 %670  ;;  %v831_v25 = vadd.f32 %v6710_v48, %v809_v30 }
 0x12b   : > { %4676 = vmatmul.mubr.msk.bf16.gmra.mrb[12].mxu1 %vm2909_vm0, %v2791_v10  ;;  %2996 = vmatprep.mubr.bf16.mxu0 %v5590_v44  ;;  %v612_v10 = vmul.f32 %v6640_v55, %v591_v63  ;;  %v695_v32 = vmul.f32 %v6637_v43, %v671_v61  ;;  %v832_v55 = vadd.f32 %v6710_v48, %v810_v19  ;;  %v5476_v61 = vld [vmem:[%s7335_s7 + $0xe4] ss:$8 sps:$4 sm:$0xff]  }
 0x12c   : > { %3109 = vmatprep.mubr.bf16.mxu1 %v5590_v44  ;;  %3661 = vmatpush1.bf16.msra.mxu0 %v5444_v37  ;;  %v771_v37 = vpop.permute.xlu0 %770  ;;  %v847_v49 = vmax.f32 %v831_v25, 0.0  ;;  %v2444_v63 = vrot.slane %v1159_v6, %v5917_v13  ;;  %v5528_v25 = vld [vmem:[%s7337_s9 + $0x40] sm:$0xff]   ;;  %v5534_v6 = vld [vmem:[%s7337_s9 + $0x58] sm:$0xff]  }
 0x12d   : > { %3662 = vmatprep.subr.bf16.mxu0 %v5449_v28  ;;  %v795_v40 = vmul.f32 %v6658_v7, %v771_v37  ;;  %v711_v33 = vadd.f32 %v695_v32, %v611_v31  ;;  %v848_v34 = vmax.f32 %v832_v55, 0.0  ;;  %v5530_v55 = vld [vmem:[%s7337_s9 + $0x48] sm:$0xff]   ;;  %4765 = vmatprep.subr.bf16.mxu1 %v5528_v25 }
 0x12e   : > { %v675_v26 = vpop.permute.xlu1 %674 }
 0x12f   : > { %v696_v36 = vmul.f32 %v6637_v43, %v675_v26  ;;  %v811_v50 = vadd.f32 %v795_v40, %v711_v33  ;;  %v5529_v40 = vld [vmem:[%s7337_s9] sm:$0xff]  }
 0x130   : > { %3663 = vmatpush1.bf16.msra.mxu0 %v5447_v56  ;;  %v2795_v56 = vpack.c.bf16 %v848_v34, %v847_v49  ;;  %4766 = vmatpush3.bf16.msra.mxu1 %v5529_v40 }
 0x131   : > { %3664 = vmatprep.subr.bf16.mxu0 %v5452_v17  ;;  %v712_v47 = vadd.f32 %v696_v36, %v612_v10  ;;  %v833_v17 = vadd.f32 %v6710_v48, %v811_v50  ;;  %4767 = vmatprep.subr.bf16.mxu1 %v5530_v55 }
 0x132   : > { %4669 = vmatmul.mubr.msk.bf16.gmra.mrb[16].mxu0 %vm2909_vm0, %v2792_v41 }
 0x133   : > { %4677 = vmatmul.mubr.msk.bf16.gmra.mrb[16].mxu1 %vm2909_vm0, %v2792_v41  ;;  %3006 = vmatprep.mubr.bf16.mxu0 %v5590_v44  ;;  %v5470_v41 = vld [vmem:[%s7335_s7 + $0xc4] ss:$8 sps:$4 sm:$0xff]  }
 0x134   : > { %3119 = vmatprep.mubr.bf16.mxu1 %v5590_v44  ;;  %3665 = vmatpush1.bf16.msra.mxu0 %v5450_v60  ;;  %v775_v28 = vpop.permute.xlu1 %774  ;;  %v5471_v60 = vld [vmem:[%s7335_s7 + $0xd0] ss:$8 sps:$4 sm:$0xff]  }
 0x135   : > { %3666 = vmatprep.subr.bf16.mxu0 %v5455_v62  ;;  %v796_v43 = vmul.f32 %v6658_v7, %v775_v28  ;;  %v849_v7 = vmax.f32 %v833_v17, 0.0  ;;  %v5474_v62 = vld [vmem:[%s7335_s7 + $0xe0] ss:$8 sps:$4 sm:$0xff]  }
 0x137   : > { %v812_v4 = vadd.f32 %v796_v43, %v712_v47 }
 0x138   : > { %3667 = vmatpush1.bf16.msra.mxu0 %v5453_v3 }
 0x139   : > { %3668 = vmatprep.subr.bf16.mxu0 %v5458_v27  ;;  %v834_v46 = vadd.f32 %v6710_v48, %v812_v4  ;;  %v5462_v48 = vld [vmem:[%s7335_s7 + $0xa0] ss:$8 sps:$4 sm:$0xff]  }
 0x13a   : > { %4670 = vmatmul.mubr.msk.bf16.gmra.mrb[20].mxu0 %vm2909_vm0, %v2793_v8 }
 0x13b   : > { %4678 = vmatmul.mubr.msk.bf16.gmra.mrb[20].mxu1 %vm2909_vm0, %v2793_v8  ;;  %3016 = vmatprep.mubr.bf16.mxu0 %v5590_v44  ;;  %v850_v45 = vmax.f32 %v834_v46, 0.0 }
 0x13c   : > { %3129 = vmatprep.mubr.bf16.mxu1 %v5590_v44  ;;  %3669 = vmatpush1.bf16.msra.mxu0 %v5456_v29 }
 0x13d   : > { %3670 = vmatprep.subr.bf16.mxu0 %v5461_v1  ;;  %v2796_v54 = vpack.c.bf16 %v850_v45, %v849_v7  ;;  %v5531_v7 = vld [vmem:[%s7337_s9 + $0x8] sm:$0xff]  }
 0x13e   : > { %4768 = vmatpush3.bf16.msra.mxu1 %v5531_v7 }
 0x140   : > { %3671 = vmatpush1.bf16.msra.mxu0 %v5459_v2 }
 0x141   : > { %3672 = vmatprep.subr.bf16.mxu0 %v5464_v51 }
 0x142   : > { %4671 = vmatmul.mubr.msk.bf16.gmra.mrb[24].mxu0 %vm2909_vm0, %v2794_v42 }
 0x143   : > { %4679 = vmatmul.mubr.msk.bf16.gmra.mrb[24].mxu1 %vm2909_vm0, %v2794_v42  ;;  %3026 = vmatprep.mubr.bf16.mxu0 %v5590_v44 }
 0x144   : > { %3139 = vmatprep.mubr.bf16.mxu1 %v5590_v44  ;;  %3673 = vmatpush1.bf16.msra.mxu0 %v5462_v48  ;;  %v5532_v48 = vld [vmem:[%s7337_s9 + $0x50] sm:$0xff]  }
 0x145   : > { %4769 = vmatprep.subr.bf16.mxu1 %v5532_v48 }
 0x14a   : > { %4672 = vmatmul.mubr.msk.bf16.gmra.mrb[28].mxu0 %vm2909_vm0, %v2795_v56 }
 0x14b   : > { %4680 = vmatmul.mubr.msk.bf16.gmra.mrb[28].mxu1 %vm2909_vm0, %v2795_v56  ;;  %3036 = vmatprep.mubr.bf16.mxu0 %v5590_v44 }
 0x14c   : > { %3149 = vmatprep.mubr.bf16.mxu1 %v5590_v44  ;;  %v5467_v44 = vld [vmem:[%s7335_s7 + $0xb4] ss:$8 sps:$4 sm:$0xff]  }
 0x14d   : > { %3674 = vmatprep.subr.bf16.mxu0 %v5467_v44 }
 0x14e   : > { %3675 = vmatpush1.bf16.msra.mxu0 %v5465_v39 }
 0x14f   : > { %3676 = vmatprep.subr.bf16.mxu0 %v5470_v41 }
 0x152   : > { %4673 = vmatmul.mubr.msk.bf16.gmra.mrb[32].mxu0 %vm2909_vm0, %v2796_v54 }
 0x153   : > { %4681 = vmatmul.mubr.msk.bf16.gmra.mrb[32].mxu1 %vm2909_vm0, %v2796_v54  ;;  %3677 = vmatpush1.bf16.msra.mxu0 %v5468_v53  ;;  %v5480_v53 = vld [vmem:[%s7335_s7 + $0x100] ss:$8 sps:$4 sm:$0xff]  }
 0x154   : > { %3678 = vmatprep.subr.bf16.mxu0 %v5473_v57 }
 0x157   : > { %3679 = vmatpush1.bf16.msra.mxu0 %v5471_v60 }
 0x158   : > { %3680 = vmatprep.subr.bf16.mxu0 %v5476_v61 }
 0x15b   : > { %3681 = vmatpush1.bf16.msra.mxu0 %v5474_v62 }
 0x15c   : > { %3682 = vmatprep.subr.bf16.mxu0 %v5479_v0  ;;  %v5485_v0 = vld [vmem:[%s7335_s7 + $0x114] ss:$8 sps:$4 sm:$0xff]  }
 0x15f   : > { %3683 = vmatpush1.bf16.msra.mxu0 %v5477_v38 }
 0x160   : > { %3765 = vmatprep.subr.bf16.mxu0 %v5482_v12 }
 0x1dd   : > { %v2618_v5 = vpop.f32.mrb[0].mxu0 }
 0x1de   : > { %v2782_v11 = vpop.f32.mrb[0].mxu1  ;;  %v2620_v9 = vpop.f32.mrb[1].mxu0  ;;  %v4858_v24 = vadd.f32 %v2618_v5, %v2444_v63 }
 0x1df   : > { %v2784_v58 = vpop.f32.mrb[1].mxu1  ;;  %v2622_v16 = vpop.f32.mrb[2].mxu0  ;;  %v4860_v26 = vadd.f32 %v2782_v11, %v2452_v14  ;;  %v4859_v8 = vadd.f32 %v2620_v9, %v2448_v21  ;;  %v5533_v9 = vld [vmem:[%s7337_s9 + $0x10] sm:$0xff]  }
 0x1e0   : > { %v2786_v3 = vpop.f32.mrb[2].mxu1  ;;  %v2623_v27 = vpop.f32.mrb[3].mxu0  ;;  %v4861_v29 = vadd.f32 %v2784_v58, %v2456_v23  ;;  %v6973_v1 = vrot.slane %v4858_v24, %v5917_v13  ;;  %v5483_v21 = vld [vmem:[%s7335_s7 + $0x110] ss:$8 sps:$4 sm:$0xff]   ;;  %4770 = vmatpush3.bf16.msra.mxu1 %v5533_v9 }
 0x1e1   : > { %v2787_v15 = vpop.f32.mrb[3].mxu1  ;;  %v6976_v10 = vrot.slane %v4860_v26, %v5917_v13  ;;  %v6979_v18 = vrot.slane %v4859_v8, %v5917_v13  ;;  %v5488_v8 = vld [vmem:[%s7335_s7 + $0x124] ss:$8 sps:$4 sm:$0xff]   ;;  %4771 = vmatprep.subr.bf16.mxu1 %v5534_v6 }
 0x1e2   : > { %v6982_v35 = vrot.slane %v4861_v29, %v5917_v13 }
 0x1ed   : > { %v2968_v22 = vpop.f32.mrb[4].mxu0 }
 0x1ee   : > { %v2969_v52 = vadd.f32 %v2968_v22, %v6973_v1  ;;  %v3081_v20 = vpop.f32.mrb[4].mxu1  ;;  %v2970_v30 = vpop.f32.mrb[5].mxu0 }
 0x1ef   : > { %v3082_v19 = vadd.f32 %v3081_v20, %v6976_v10  ;;  %v2971_v31 = vadd.f32 %v2970_v30, %v6979_v18  ;;  %v3083_v32 = vpop.f32.mrb[5].mxu1  ;;  %v2972_v36 = vpop.f32.mrb[6].mxu0  ;;  %v5535_v30 = vld [vmem:[%s7337_s9 + $0x18] sm:$0xff]  }
 0x1f0   : > { %v3084_v37 = vadd.f32 %v3083_v32, %v6982_v35  ;;  %v2973_v2 = vadd.f32 %v2972_v36, %v6973_v1  ;;  %v3085_v28 = vpop.f32.mrb[6].mxu1  ;;  %v2974_v42 = vpop.f32.mrb[7].mxu0  ;;  %v3160_v49 = vmax.f32 %v2969_v52, 0.0  ;;  %v5536_v36 = vld [vmem:[%s7337_s9 + $0x60] sm:$0xff]   ;;  %4772 = vmatpush3.bf16.msra.mxu1 %v5535_v30 }
 0x1f1   : > { %v3086_v33 = vadd.f32 %v3085_v28, %v6976_v10  ;;  %v2975_v47 = vadd.f32 %v2974_v42, %v6979_v18  ;;  %v3087_v43 = vpop.f32.mrb[7].mxu1  ;;  %v3162_v4 = vmax.f32 %v3082_v19, 0.0  ;;  %v3161_v56 = vmax.f32 %v2971_v31, 0.0  ;;  %v5486_v42 = vld [vmem:[%s7335_s7 + $0x120] ss:$8 sps:$4 sm:$0xff]   ;;  %4773 = vmatprep.subr.bf16.mxu1 %v5536_v36 }
 0x1f2   : > { %v3164_v34 = vmax.f32 %v2973_v2, 0.0  ;;  %v3088_v50 = vadd.f32 %v3087_v43, %v6982_v35  ;;  %v3163_v45 = vmax.f32 %v3084_v37, 0.0 }
 0x1f3   : > { %v3166_v17 = vmax.f32 %v3086_v33, 0.0  ;;  %v3165_v46 = vmax.f32 %v2975_v47, 0.0  ;;  %v5491_v47 = vld [vmem:[%s7335_s7 + $0x134] ss:$8 sps:$4 sm:$0xff]  }
 0x1f4   : > { %v3224_v54 = vpack.c.bf16 %v3164_v34, %v3160_v49  ;;  %v3167_v51 = vmax.f32 %v3088_v50, 0.0 }
 0x1f5   : > { %v7007_v39 = vpack.c.bf16 %v3166_v17, %v3162_v4  ;;  %v3225_v44 = vpack.c.bf16 %v3165_v46, %v3161_v56  ;;  %v2978_v41 = vpop.f32.mrb[8].mxu0  ;;  %v5537_v4 = vld [vmem:[%s7337_s9 + $0x20] sm:$0xff]  }
 0x1f6   : > { %v7012_v57 = vpack.c.bf16 %v3167_v51, %v3163_v45  ;;  %v2979_v60 = vadd.f32 %v2978_v41, %v6973_v1  ;;  %v3091_v61 = vpop.f32.mrb[8].mxu1  ;;  %v2980_v62 = vpop.f32.mrb[9].mxu0  ;;  %v5538_v45 = vld [vmem:[%s7337_s9 + $0x68] sm:$0xff]   ;;  %4774 = vmatpush3.bf16.msra.mxu1 %v5537_v4 }
 0x1f7   : > { %v3092_v38 = vadd.f32 %v3091_v61, %v6976_v10  ;;  %v2981_v12 = vadd.f32 %v2980_v62, %v6979_v18  ;;  %v3093_v5 = vpop.f32.mrb[9].mxu1  ;;  %v2982_v11 = vpop.f32.mrb[10].mxu0  ;;  %3684 = vmatprep.mubr.bf16.mxu0 %v3225_v44  ;;  %v5489_v44 = vld [vmem:[%s7335_s7 + $0x130] ss:$8 sps:$4 sm:$0xff]   ;;  %v5494_v61 = vld [vmem:[%s7335_s7 + $0x144] ss:$8 sps:$4 sm:$0xff]   ;;  %4775 = vmatprep.subr.bf16.mxu1 %v5538_v45 }
 0x1f8   : > { %v3094_v58 = vadd.f32 %v3093_v5, %v6982_v35  ;;  %v2983_v16 = vadd.f32 %v2982_v11, %v6973_v1  ;;  %v3095_v3 = vpop.f32.mrb[10].mxu1  ;;  %v2984_v27 = vpop.f32.mrb[11].mxu0  ;;  %3685 = vmatmul.mubr.bf16.vlgmr.msra.gmra.mrb[36].mxu0 %v3224_v54  ;;  %v3168_v23 = vmax.f32 %v2979_v60, 0.0  ;;  %v5539_v5 = vld [vmem:[%s7337_s9 + $0x28] sm:$0xff]  }
 0x1f9   : > { %v3096_v15 = vadd.f32 %v3095_v3, %v6976_v10  ;;  %v2985_v63 = vadd.f32 %v2984_v27, %v6979_v18  ;;  %v3097_v14 = vpop.f32.mrb[11].mxu1  ;;  %3766 = vmatpush1.bf16.msra.mxu0 %v5480_v53  ;;  %v3170_v29 = vmax.f32 %v3092_v38, 0.0  ;;  %v3169_v22 = vmax.f32 %v2981_v12, 0.0 }
 0x1fa   : > { %v3172_v24 = vmax.f32 %v2983_v16, 0.0  ;;  %v3098_v26 = vadd.f32 %v3097_v14, %v6982_v35  ;;  %3767 = vmatprep.subr.bf16.mxu0 %v5485_v0  ;;  %v3171_v19 = vmax.f32 %v3094_v58, 0.0  ;;  %v5540_v16 = vld [vmem:[%s7337_s9 + $0x70] sm:$0xff]   ;;  %4776 = vmatpush3.bf16.msra.mxu1 %v5539_v5 }
 0x1fb   : > { %v3174_v52 = vmax.f32 %v3096_v15, 0.0  ;;  %v3173_v20 = vmax.f32 %v2985_v63, 0.0  ;;  %v5492_v15 = vld [vmem:[%s7335_s7 + $0x140] ss:$8 sps:$4 sm:$0xff]   ;;  %4777 = vmatprep.subr.bf16.mxu1 %v5540_v16 }
 0x1fc   : > { %v3228_v31 = vpack.c.bf16 %v3172_v24, %v3168_v23  ;;  %v3175_v32 = vmax.f32 %v3098_v26, 0.0  ;;  %v5497_v24 = vld [vmem:[%s7335_s7 + $0x154] ss:$8 sps:$4 sm:$0xff]  }
 0x1fd   : > { %v7043_v37 = vpack.c.bf16 %v3174_v52, %v3170_v29  ;;  %v3229_v2 = vpack.c.bf16 %v3173_v20, %v3169_v22  ;;  %v2988_v28 = vpop.f32.mrb[12].mxu0  ;;  %3768 = vmatpush1.bf16.msra.mxu0 %v5483_v21 }
 0x1fe   : > { %v7048_v25 = vpack.c.bf16 %v3175_v32, %v3171_v19  ;;  %v2989_v40 = vadd.f32 %v2988_v28, %v6973_v1  ;;  %v3101_v55 = vpop.f32.mrb[12].mxu1  ;;  %v2990_v33 = vpop.f32.mrb[13].mxu0  ;;  %3769 = vmatprep.subr.bf16.mxu0 %v5488_v8 }
 0x1ff   : > { %v3102_v43 = vadd.f32 %v3101_v55, %v6976_v10  ;;  %v2991_v49 = vadd.f32 %v2990_v33, %v6979_v18  ;;  %v3103_v34 = vpop.f32.mrb[13].mxu1  ;;  %v2992_v50 = vpop.f32.mrb[14].mxu0  ;;  %3694 = vmatprep.mubr.bf16.mxu0 %v3229_v2  ;;  %v5495_v2 = vld [vmem:[%s7335_s7 + $0x150] ss:$8 sps:$4 sm:$0xff]   ;;  %v5500_v55 = vld [vmem:[%s7335_s7 + $0x164] ss:$8 sps:$4 sm:$0xff]  }
 0x200   : > { %v3104_v56 = vadd.f32 %v3103_v34, %v6982_v35  ;;  %v2993_v17 = vadd.f32 %v2992_v50, %v6973_v1  ;;  %v3105_v46 = vpop.f32.mrb[14].mxu1  ;;  %v2994_v7 = vpop.f32.mrb[15].mxu0  ;;  %3695 = vmatmul.mubr.bf16.gmra.mrb[40].mxu0 %v3228_v31  ;;  %v3176_v41 = vmax.f32 %v2989_v40, 0.0 }
 0x201   : > { %v3106_v54 = vadd.f32 %v3105_v46, %v6976_v10  ;;  %v2995_v51 = vadd.f32 %v2994_v7, %v6979_v18  ;;  %v3107_v48 = vpop.f32.mrb[15].mxu1  ;;  %3770 = vmatpush1.bf16.msra.mxu0 %v5486_v42  ;;  %v3178_v62 = vmax.f32 %v3102_v43, 0.0  ;;  %v3177_v0 = vmax.f32 %v2991_v49, 0.0  ;;  %v5498_v7 = vld [vmem:[%s7335_s7 + $0x160] ss:$8 sps:$4 sm:$0xff]  }
 0x202   : > { %v3180_v53 = vmax.f32 %v2993_v17, 0.0  ;;  %v3108_v60 = vadd.f32 %v3107_v48, %v6982_v35  ;;  %3771 = vmatprep.subr.bf16.mxu0 %v5491_v47  ;;  %v3179_v11 = vmax.f32 %v3104_v56, 0.0 }
 0x203   : > { %v3182_v38 = vmax.f32 %v3106_v54, 0.0  ;;  %v3181_v12 = vmax.f32 %v2995_v51, 0.0 }
 0x204   : > { %v3232_v9 = vpack.c.bf16 %v3180_v53, %v3176_v41  ;;  %v3183_v58 = vmax.f32 %v3108_v60, 0.0 }
 0x205   : > { %v7079_v3 = vpack.c.bf16 %v3182_v38, %v3178_v62  ;;  %v3233_v27 = vpack.c.bf16 %v3181_v12, %v3177_v0  ;;  %v2998_v6 = vpop.f32.mrb[16].mxu0  ;;  %3772 = vmatpush1.bf16.msra.mxu0 %v5489_v44  ;;  %v5503_v44 = vld [vmem:[%s7335_s7 + $0x174] ss:$8 sps:$4 sm:$0xff]  }
 0x206   : > { %v7084_v63 = vpack.c.bf16 %v3183_v58, %v3179_v11  ;;  %v2999_v14 = vadd.f32 %v2998_v6, %v6973_v1  ;;  %v3111_v21 = vpop.f32.mrb[16].mxu1  ;;  %v3000_v23 = vpop.f32.mrb[17].mxu0  ;;  %3773 = vmatprep.subr.bf16.mxu0 %v5494_v61  ;;  %v5501_v58 = vld [vmem:[%s7335_s7 + $0x170] ss:$8 sps:$4 sm:$0xff]  }
 0x207   : > { %v3112_v26 = vadd.f32 %v3111_v21, %v6976_v10  ;;  %v3001_v8 = vadd.f32 %v3000_v23, %v6979_v18  ;;  %v3113_v29 = vpop.f32.mrb[17].mxu1  ;;  %v3002_v22 = vpop.f32.mrb[18].mxu0  ;;  %3704 = vmatprep.mubr.bf16.mxu0 %v3233_v27 }
 0x208   : > { %v3114_v52 = vadd.f32 %v3113_v29, %v6982_v35  ;;  %v3003_v20 = vadd.f32 %v3002_v22, %v6973_v1  ;;  %v3115_v30 = vpop.f32.mrb[18].mxu1  ;;  %v3004_v19 = vpop.f32.mrb[19].mxu0  ;;  %3705 = vmatmul.mubr.bf16.gmra.mrb[44].mxu0 %v3232_v9  ;;  %v3184_v28 = vmax.f32 %v2999_v14, 0.0 }
 0x209   : > { %v3116_v31 = vadd.f32 %v3115_v30, %v6976_v10  ;;  %v3005_v32 = vadd.f32 %v3004_v19, %v6979_v18  ;;  %v3117_v36 = vpop.f32.mrb[19].mxu1  ;;  %3774 = vmatpush1.bf16.msra.mxu0 %v5492_v15  ;;  %v3186_v33 = vmax.f32 %v3112_v26, 0.0  ;;  %v3185_v47 = vmax.f32 %v3001_v8, 0.0  ;;  %v5506_v15 = vld [vmem:[%s7335_s7 + $0x184] ss:$8 sps:$4 sm:$0xff]  }
 0x20a   : > { %v3188_v42 = vmax.f32 %v3003_v20, 0.0  ;;  %v3118_v40 = vadd.f32 %v3117_v36, %v6982_v35  ;;  %3775 = vmatprep.subr.bf16.mxu0 %v5497_v24  ;;  %v3187_v34 = vmax.f32 %v3114_v52, 0.0  ;;  %v5504_v30 = vld [vmem:[%s7335_s7 + $0x180] ss:$8 sps:$4 sm:$0xff]  }
 0x20b   : > { %v3190_v43 = vmax.f32 %v3116_v31, 0.0  ;;  %v3189_v49 = vmax.f32 %v3005_v32, 0.0 }
 0x20c   : > { %v3236_v50 = vpack.c.bf16 %v3188_v42, %v3184_v28  ;;  %v3191_v4 = vmax.f32 %v3118_v40, 0.0 }
 0x20d   : > { %v7103_v56 = vpack.c.bf16 %v3190_v43, %v3186_v33  ;;  %v3237_v17 = vpack.c.bf16 %v3189_v49, %v3185_v47  ;;  %v3008_v46 = vpop.f32.mrb[20].mxu0  ;;  %3776 = vmatpush1.bf16.msra.mxu0 %v5495_v2  ;;  %v5509_v2 = vld [vmem:[%s7335_s7 + $0x194] ss:$8 sps:$4 sm:$0xff]  }
 0x20e   : > { %v7108_v45 = vpack.c.bf16 %v3191_v4, %v3187_v34  ;;  %v3009_v54 = vadd.f32 %v3008_v46, %v6973_v1  ;;  %v3121_v51 = vpop.f32.mrb[20].mxu1  ;;  %v3010_v48 = vpop.f32.mrb[21].mxu0  ;;  %3777 = vmatprep.subr.bf16.mxu0 %v5500_v55 }
 0x20f   : > { %v3122_v41 = vadd.f32 %v3121_v51, %v6976_v10  ;;  %v3011_v53 = vadd.f32 %v3010_v48, %v6979_v18  ;;  %v3123_v60 = vpop.f32.mrb[21].mxu1  ;;  %v3012_v61 = vpop.f32.mrb[22].mxu0  ;;  %3714 = vmatprep.mubr.bf16.mxu0 %v3237_v17  ;;  %v5507_v17 = vld [vmem:[%s7335_s7 + $0x190] ss:$8 sps:$4 sm:$0xff]   ;;  %v5512_v51 = vld [vmem:[%s7335_s7 + $0x1a4] ss:$8 sps:$4 sm:$0xff]  }
 0x210   : > { %v3124_v62 = vadd.f32 %v3123_v60, %v6982_v35  ;;  %v3013_v0 = vadd.f32 %v3012_v61, %v6973_v1  ;;  %v3125_v38 = vpop.f32.mrb[22].mxu1  ;;  %v3014_v12 = vpop.f32.mrb[23].mxu0  ;;  %3715 = vmatmul.mubr.bf16.gmra.mrb[48].mxu0 %v3236_v50  ;;  %v3192_v16 = vmax.f32 %v3009_v54, 0.0 }
 0x211   : > { %v3126_v5 = vadd.f32 %v3125_v38, %v6976_v10  ;;  %v3015_v11 = vadd.f32 %v3014_v12, %v6979_v18  ;;  %v3127_v9 = vpop.f32.mrb[23].mxu1  ;;  %3778 = vmatpush1.bf16.msra.mxu0 %v5498_v7  ;;  %v3194_v14 = vmax.f32 %v3122_v41, 0.0  ;;  %v3193_v21 = vmax.f32 %v3011_v53, 0.0 }
 0x212   : > { %v3196_v27 = vmax.f32 %v3013_v0, 0.0  ;;  %v3128_v6 = vadd.f32 %v3127_v9, %v6982_v35  ;;  %3779 = vmatprep.subr.bf16.mxu0 %v5503_v44  ;;  %v3195_v26 = vmax.f32 %v3124_v62, 0.0 }
 0x213   : > { %v3198_v23 = vmax.f32 %v3126_v5, 0.0  ;;  %v3197_v24 = vmax.f32 %v3015_v11, 0.0  ;;  %v5510_v5 = vld [vmem:[%s7335_s7 + $0x1a0] ss:$8 sps:$4 sm:$0xff]  }
 0x214   : > { %v3240_v8 = vpack.c.bf16 %v3196_v27, %v3192_v16  ;;  %v3199_v29 = vmax.f32 %v3128_v6, 0.0  ;;  %v5515_v27 = vld [vmem:[%s7335_s7 + $0x1b4] ss:$8 sps:$4 sm:$0xff]  }
 0x215   : > { %v7127_v22 = vpack.c.bf16 %v3198_v23, %v3194_v14  ;;  %v3241_v52 = vpack.c.bf16 %v3197_v24, %v3193_v21  ;;  %v3018_v20 = vpop.f32.mrb[24].mxu0  ;;  %3780 = vmatpush1.bf16.msra.mxu0 %v5501_v58 }
 0x216   : > { %v7132_v19 = vpack.c.bf16 %v3199_v29, %v3195_v26  ;;  %v3019_v31 = vadd.f32 %v3018_v20, %v6973_v1  ;;  %v3131_v32 = vpop.f32.mrb[24].mxu1  ;;  %v3020_v36 = vpop.f32.mrb[25].mxu0  ;;  %3781 = vmatprep.subr.bf16.mxu0 %v5506_v15 }
 0x217   : > { %v3132_v28 = vadd.f32 %v3131_v32, %v6976_v10  ;;  %v3021_v42 = vadd.f32 %v3020_v36, %v6979_v18  ;;  %v3133_v40 = vpop.f32.mrb[25].mxu1  ;;  %v3022_v55 = vpop.f32.mrb[26].mxu0  ;;  %3724 = vmatprep.mubr.bf16.mxu0 %v3241_v52 }
 0x218   : > { %v3134_v33 = vadd.f32 %v3133_v40, %v6982_v35  ;;  %v3023_v47 = vadd.f32 %v3022_v55, %v6973_v1  ;;  %v3135_v43 = vpop.f32.mrb[26].mxu1  ;;  %v3024_v49 = vpop.f32.mrb[27].mxu0  ;;  %3725 = vmatmul.mubr.bf16.gmra.mrb[52].mxu0 %v3240_v8  ;;  %v3200_v46 = vmax.f32 %v3019_v31, 0.0 }
 0x219   : > { %v3136_v34 = vadd.f32 %v3135_v43, %v6976_v10  ;;  %v3025_v50 = vadd.f32 %v3024_v49, %v6979_v18  ;;  %v3137_v4 = vpop.f32.mrb[27].mxu1  ;;  %3782 = vmatpush1.bf16.msra.mxu0 %v5504_v30  ;;  %v3202_v48 = vmax.f32 %v3132_v28, 0.0  ;;  %v3201_v44 = vmax.f32 %v3021_v42, 0.0  ;;  %v5513_v30 = vld [vmem:[%s7335_s7 + $0x1b0] ss:$8 sps:$4 sm:$0xff]  }
 0x21a   : > { %v3204_v7 = vmax.f32 %v3023_v47, 0.0  ;;  %v3138_v54 = vadd.f32 %v3137_v4, %v6982_v35  ;;  %3783 = vmatprep.subr.bf16.mxu0 %v5509_v2  ;;  %v3203_v60 = vmax.f32 %v3134_v33, 0.0  ;;  %v5518_v2 = vld [vmem:[%s7335_s7 + $0x1c4] ss:$8 sps:$4 sm:$0xff]   ;;  %v5516_v4 = vld [vmem:[%s7335_s7 + $0x1c0] ss:$8 sps:$4 sm:$0xff]  }
 0x21b   : > { %v3206_v41 = vmax.f32 %v3136_v34, 0.0  ;;  %v3205_v53 = vmax.f32 %v3025_v50, 0.0 }
 0x21c   : > { %v3244_v61 = vpack.c.bf16 %v3204_v7, %v3200_v46  ;;  %v3207_v62 = vmax.f32 %v3138_v54, 0.0 }
 0x21d   : > { %v7151_v0 = vpack.c.bf16 %v3206_v41, %v3202_v48  ;;  %v3245_v38 = vpack.c.bf16 %v3205_v53, %v3201_v44  ;;  %v3028_v12 = vpop.f32.mrb[28].mxu0  ;;  %3784 = vmatpush1.bf16.msra.mxu0 %v5507_v17 }
 0x21e   : > { %v7156_v11 = vpack.c.bf16 %v3207_v62, %v3203_v60  ;;  %v3029_v9 = vadd.f32 %v3028_v12, %v6973_v1  ;;  %v3141_v58 = vpop.f32.mrb[28].mxu1  ;;  %v3030_v16 = vpop.f32.mrb[29].mxu0  ;;  %3785 = vmatprep.subr.bf16.mxu0 %v5512_v51  ;;  %v5521_v51 = vld [vmem:[%s7335_s7 + $0x1d4] ss:$8 sps:$4 sm:$0xff]  }
 0x21f   : > { %v3142_v6 = vadd.f32 %v3141_v58, %v6976_v10  ;;  %v3031_v15 = vadd.f32 %v3030_v16, %v6979_v18  ;;  %v3143_v14 = vpop.f32.mrb[29].mxu1  ;;  %v3032_v21 = vpop.f32.mrb[30].mxu0  ;;  %3734 = vmatprep.mubr.bf16.mxu0 %v3245_v38  ;;  %v5519_v58 = vld [vmem:[%s7335_s7 + $0x1d0] ss:$8 sps:$4 sm:$0xff]  }
 0x220   : > { %v3144_v23 = vadd.f32 %v3143_v14, %v6982_v35  ;;  %v3033_v24 = vadd.f32 %v3032_v21, %v6973_v1  ;;  %v3145_v26 = vpop.f32.mrb[30].mxu1  ;;  %v3034_v8 = vpop.f32.mrb[31].mxu0  ;;  %3735 = vmatmul.mubr.bf16.gmra.mrb[56].mxu0 %v3244_v61  ;;  %v3208_v31 = vmax.f32 %v3029_v9, 0.0 }
 0x221   : > { %v3146_v29 = vadd.f32 %v3145_v26, %v6976_v10  ;;  %v3035_v52 = vadd.f32 %v3034_v8, %v6979_v18  ;;  %v3147_v20 = vpop.f32.mrb[31].mxu1  ;;  %3786 = vmatpush1.bf16.msra.mxu0 %v5510_v5  ;;  %v3210_v28 = vmax.f32 %v3142_v6, 0.0  ;;  %v3209_v42 = vmax.f32 %v3031_v15, 0.0 }
 0x222   : > { %v3212_v32 = vmax.f32 %v3033_v24, 0.0  ;;  %v3148_v36 = vadd.f32 %v3147_v20, %v6982_v35  ;;  %3787 = vmatprep.subr.bf16.mxu0 %v5515_v27  ;;  %v3211_v33 = vmax.f32 %v3144_v23, 0.0  ;;  %v5525_v20 = vld [vmem:[%s7335_s7 + $0x1f0] ss:$8 sps:$4 sm:$0xff]  }
 0x223   : > { %v3214_v40 = vmax.f32 %v3146_v29, 0.0  ;;  %v3213_v55 = vmax.f32 %v3035_v52, 0.0  ;;  %v5522_v29 = vld [vmem:[%s7335_s7 + $0x1e0] ss:$8 sps:$4 sm:$0xff]   ;;  %v5527_v52 = vld [vmem:[%s7335_s7 + $0x1f4] ss:$8 sps:$4 sm:$0xff]  }
 0x224   : > { %v3248_v47 = vpack.c.bf16 %v3212_v32, %v3208_v31  ;;  %v3215_v43 = vmax.f32 %v3148_v36, 0.0 }
 0x225   : > { %v7175_v49 = vpack.c.bf16 %v3214_v40, %v3210_v28  ;;  %v3249_v34 = vpack.c.bf16 %v3213_v55, %v3209_v42  ;;  %v3038_v50 = vpop.f32.mrb[32].mxu0  ;;  %3788 = vmatpush1.bf16.msra.mxu0 %v5513_v30 }
 0x226   : > { %v3251_v17 = vpack.c.bf16 %v3215_v43, %v3211_v33  ;;  %v3039_v46 = vadd.f32 %v3038_v50, %v6973_v1  ;;  %v3151_v7 = vpop.f32.mrb[32].mxu1  ;;  %v3040_v54 = vpop.f32.mrb[33].mxu0  ;;  %3789 = vmatprep.subr.bf16.mxu0 %v5518_v2 }
 0x227   : > { %v3152_v48 = vadd.f32 %v3151_v7, %v6976_v10  ;;  %v3041_v44 = vadd.f32 %v3040_v54, %v6979_v18  ;;  %v3153_v41 = vpop.f32.mrb[33].mxu1  ;;  %v3042_v53 = vpop.f32.mrb[34].mxu0  ;;  %3744 = vmatprep.mubr.bf16.mxu0 %v3249_v34 }
 0x228   : > { %v3154_v60 = vadd.f32 %v3153_v41, %v6982_v35  ;;  %v3043_v61 = vadd.f32 %v3042_v53, %v6973_v1  ;;  %v3155_v62 = vpop.f32.mrb[34].mxu1  ;;  %v3044_v38 = vpop.f32.mrb[35].mxu0  ;;  %3745 = vmatmul.mubr.bf16.gmra.mrb[60].mxu0 %v3248_v47  ;;  %v3216_v16 = vmax.f32 %v3039_v46, 0.0  ;;  %v5524_v1 = vld [vmem:[%s7335_s7 + $0x1e4] ss:$8 sps:$4 sm:$0xff]  }
 0x229   : > { %v3156_v12 = vadd.f32 %v3155_v62, %v6976_v10  ;;  %v3045_v5 = vadd.f32 %v3044_v38, %v6979_v18  ;;  %v3157_v9 = vpop.f32.mrb[35].mxu1  ;;  %3790 = vmatpush1.bf16.msra.mxu0 %v5516_v4  ;;  %v3218_v15 = vmax.f32 %v3152_v48, 0.0  ;;  %v3217_v14 = vmax.f32 %v3041_v44, 0.0 }
 0x22a   : > { %v3220_v27 = vmax.f32 %v3043_v61, 0.0  ;;  %v3158_v6 = vadd.f32 %v3157_v9, %v6982_v35  ;;  %3791 = vmatprep.subr.bf16.mxu0 %v5521_v51  ;;  %v3219_v18 = vmax.f32 %v3154_v60, 0.0 }
 0x22b   : > { %v3222_v10 = vmax.f32 %v3156_v12, 0.0  ;;  %v3221_v21 = vmax.f32 %v3045_v5, 0.0 }
 0x22c   : > { %v3252_v23 = vpack.c.bf16 %v3220_v27, %v3216_v16  ;;  %v3223_v24 = vmax.f32 %v3158_v6, 0.0 }
 0x22d   : > { %v3254_v26 = vpack.c.bf16 %v3222_v10, %v3218_v15  ;;  %v3253_v8 = vpack.c.bf16 %v3221_v21, %v3217_v14  ;;  %3792 = vmatpush1.bf16.msra.mxu0 %v5519_v58 }
 0x22e   : > { %v3255_v35 = vpack.c.bf16 %v3223_v24, %v3219_v18  ;;  %3793 = vmatprep.subr.bf16.mxu0 %v5524_v1 }
 0x22f   : > { %3754 = vmatprep.mubr.bf16.mxu0 %v3253_v8 }
 0x230   : > { %3755 = vmatmul.mubr.bf16.gmra.mrb[64].mxu0 %v3252_v23 }
 0x231   : > { %3794 = vmatpush1.bf16.msra.mxu0 %v5522_v29  ;;  %3797 = vmatprep.mubr.bf16.mxu0 %v7012_v57  ;;  %v5542_v57 = vld [vmem:[%s7337_s9 + $0x78] sm:$0xff]  }
 0x232   : > { %3795 = vmatprep.subr.bf16.mxu0 %v5527_v52 }
 0x235   : > { %3796 = vmatpush1.bf16.msra.mxu0 %v5525_v20 }
 0x238   : > { %3798 = vmatmul.mubr.bf16.vlgmr.msra.gmra.mrb[36].mxu0 %v7007_v39  ;;  %v5541_v39 = vld [vmem:[%s7337_s9 + $0x30] sm:$0xff]  }
 0x239   : > { %3807 = vmatprep.mubr.bf16.mxu0 %v7048_v25  ;;  %4778 = vmatpush3.bf16.msra.mxu1 %v5541_v39  ;;  %v3320_v25 = vld [vmem:[%s7336_s8] sm:$0x3] }
 0x23a   : > { %4779 = vmatprep.subr.bf16.mxu1 %v5542_v57 }
 0x240   : > { %3808 = vmatmul.mubr.bf16.gmra.mrb[40].mxu0 %v7043_v37  ;;  %v5543_v37 = vld [vmem:[%s7337_s9 + $0x38] sm:$0xff]  }
 0x241   : > { %3817 = vmatprep.mubr.bf16.mxu0 %v7084_v63  ;;  %4780 = vmatpush3.bf16.msra.mxu1 %v5543_v37  ;;  %v7235_v63 = vrot.slane %v3320_v25, %v5878_v59 }
 0x248   : > { %3818 = vmatmul.mubr.bf16.gmra.mrb[44].mxu0 %v7079_v3  ;;  %v7232_v3 = vrot.slane %v3320_v25, %v5917_v13 }
 0x249   : > { %3827 = vmatprep.mubr.bf16.mxu0 %v7108_v45 }
 0x250   : > { %3828 = vmatmul.mubr.bf16.gmra.mrb[48].mxu0 %v7103_v56 }
 0x251   : > { %3837 = vmatprep.mubr.bf16.mxu0 %v7132_v19 }
 0x258   : > { %3838 = vmatmul.mubr.bf16.gmra.mrb[52].mxu0 %v7127_v22 }
 0x259   : > { %3847 = vmatprep.mubr.bf16.mxu0 %v7156_v11 }
 0x260   : > { %3848 = vmatmul.mubr.bf16.gmra.mrb[56].mxu0 %v7151_v0 }
 0x261   : > { %3857 = vmatprep.mubr.bf16.mxu0 %v3251_v17 }
 0x268   : > { %3858 = vmatmul.mubr.bf16.gmra.mrb[60].mxu0 %v7175_v49 }
 0x269   : > { %3867 = vmatprep.mubr.bf16.mxu0 %v3255_v35 }
 0x270   : > { %3868 = vmatmul.mubr.bf16.gmra.mrb[64].mxu0 %v3254_v26 }
 0x30b   : > { %v3799_v56 = vpop.f32.mrb[36].mxu0 }
 0x30c   : > { %v4862_v45 = vadd.f32 %v3799_v56, %v7232_v3  ;;  %v3801_v22 = vpop.f32.mrb[37].mxu0 }
 0x30d   : > { %v4863_v19 = vadd.f32 %v3801_v22, %v7235_v63  ;;  %v3803_v0 = vpop.f32.mrb[38].mxu0 }
 0x30e   : > { %v4864_v11 = vadd.f32 %v3803_v0, %v7232_v3  ;;  %v3805_v30 = vpop.f32.mrb[39].mxu0  ;;  %v3878_v32 = vmax.f32 %v4862_v45, 0.0 }
 0x30f   : > { %v4865_v31 = vadd.f32 %v3805_v30, %v7235_v63  ;;  %v3879_v2 = vmax.f32 %v4863_v19, 0.0 }
 0x310   : > { %v3880_v36 = vmax.f32 %v4864_v11, 0.0 }
 0x311   : > { %v3881_v13 = vmax.f32 %v4865_v31, 0.0 }
 0x312   : > { %v3910_v28 = vpack.c.bf16 %v3880_v36, %v3878_v32 }
 0x313   : > { %v3911_v42 = vpack.c.bf16 %v3881_v13, %v3879_v2  ;;  %v3809_v59 = vpop.f32.mrb[40].mxu0 }
 0x314   : > { %v4866_v40 = vadd.f32 %v3809_v59, %v7232_v3  ;;  %v3811_v55 = vpop.f32.mrb[41].mxu0 }
 0x315   : > { %v4867_v33 = vadd.f32 %v3811_v55, %v7235_v63  ;;  %v3813_v47 = vpop.f32.mrb[42].mxu0  ;;  %4093 = vmatprep.mubr.bf16.mxu1 %v3911_v42 }
 0x316   : > { %v4868_v43 = vadd.f32 %v3813_v47, %v7232_v3  ;;  %v3815_v49 = vpop.f32.mrb[43].mxu0  ;;  %4094 = vmatmul.mubr.bf16.vlgmr.msra.gmra.mrb[36].mxu1 %v3910_v28  ;;  %v3882_v50 = vmax.f32 %v4866_v40, 0.0 }
 0x317   : > { %v4869_v34 = vadd.f32 %v3815_v49, %v7235_v63  ;;  %v3883_v17 = vmax.f32 %v4867_v33, 0.0 }
 0x318   : > { %v3884_v4 = vmax.f32 %v4868_v43, 0.0 }
 0x319   : > { %v3885_v46 = vmax.f32 %v4869_v34, 0.0 }
 0x31a   : > { %v3912_v7 = vpack.c.bf16 %v3884_v4, %v3882_v50 }
 0x31b   : > { %v3913_v54 = vpack.c.bf16 %v3885_v46, %v3883_v17  ;;  %v3819_v51 = vpop.f32.mrb[44].mxu0 }
 0x31c   : > { %v4870_v48 = vadd.f32 %v3819_v51, %v7232_v3  ;;  %v3821_v44 = vpop.f32.mrb[45].mxu0 }
 0x31d   : > { %v4871_v41 = vadd.f32 %v3821_v44, %v7235_v63  ;;  %v3823_v53 = vpop.f32.mrb[46].mxu0  ;;  %4101 = vmatprep.mubr.bf16.mxu1 %v3913_v54 }
 0x31e   : > { %v4872_v60 = vadd.f32 %v3823_v53, %v7232_v3  ;;  %v3825_v61 = vpop.f32.mrb[47].mxu0  ;;  %4102 = vmatmul.mubr.bf16.gmra.mrb[40].mxu1 %v3912_v7  ;;  %v3886_v38 = vmax.f32 %v4870_v48, 0.0 }
 0x31f   : > { %v4873_v62 = vadd.f32 %v3825_v61, %v7235_v63  ;;  %v3887_v5 = vmax.f32 %v4871_v41, 0.0 }
 0x320   : > { %v3888_v12 = vmax.f32 %v4872_v60, 0.0 }
 0x321   : > { %v3889_v9 = vmax.f32 %v4873_v62, 0.0 }
 0x322   : > { %v3914_v58 = vpack.c.bf16 %v3888_v12, %v3886_v38 }
 0x323   : > { %v3915_v16 = vpack.c.bf16 %v3889_v9, %v3887_v5  ;;  %v3829_v27 = vpop.f32.mrb[48].mxu0 }
 0x324   : > { %v4874_v6 = vadd.f32 %v3829_v27, %v7232_v3  ;;  %v3831_v1 = vpop.f32.mrb[49].mxu0 }
 0x325   : > { %v4875_v15 = vadd.f32 %v3831_v1, %v7235_v63  ;;  %v3833_v14 = vpop.f32.mrb[50].mxu0  ;;  %4109 = vmatprep.mubr.bf16.mxu1 %v3915_v16 }
 0x326   : > { %v4876_v10 = vadd.f32 %v3833_v14, %v7232_v3  ;;  %v3835_v21 = vpop.f32.mrb[51].mxu0  ;;  %4110 = vmatmul.mubr.bf16.gmra.mrb[44].mxu1 %v3914_v58  ;;  %v3890_v23 = vmax.f32 %v4874_v6, 0.0 }
 0x327   : > { %v4877_v18 = vadd.f32 %v3835_v21, %v7235_v63  ;;  %v3891_v26 = vmax.f32 %v4875_v15, 0.0 }
 0x328   : > { %v3892_v24 = vmax.f32 %v4876_v10, 0.0 }
 0x329   : > { %v3893_v8 = vmax.f32 %v4877_v18, 0.0 }
 0x32a   : > { %v3916_v29 = vpack.c.bf16 %v3892_v24, %v3890_v23  ;;  %v7272_v24 = vld [vmem:[%s7338_s10] ss:$0 sm:$0xff] }
 0x32b   : > { %v3917_v35 = vpack.c.bf16 %v3893_v8, %v3891_v26  ;;  %v3839_v52 = vpop.f32.mrb[52].mxu0 }
 0x32c   : > { %v4878_v20 = vadd.f32 %v3839_v52, %v7232_v3  ;;  %v3841_v39 = vpop.f32.mrb[53].mxu0 }
 0x32d   : > { %v4879_v57 = vadd.f32 %v3841_v39, %v7235_v63  ;;  %v3843_v37 = vpop.f32.mrb[54].mxu0  ;;  %4117 = vmatprep.mubr.bf16.mxu1 %v3917_v35 }
 0x32e   : > { %v4880_v25 = vadd.f32 %v3843_v37, %v7232_v3  ;;  %v3845_v56 = vpop.f32.mrb[55].mxu0  ;;  %4118 = vmatmul.mubr.bf16.gmra.mrb[48].mxu1 %v3916_v29  ;;  %v3894_v22 = vmax.f32 %v4878_v20, 0.0 }
 0x32f   : > { %v4881_v45 = vadd.f32 %v3845_v56, %v7235_v63  ;;  %v3895_v0 = vmax.f32 %v4879_v57, 0.0 }
 0x330   : > { %v3896_v19 = vmax.f32 %v4880_v25, 0.0 }
 0x331   : > { %v3897_v11 = vmax.f32 %v4881_v45, 0.0 }
 0x332   : > { %v3918_v30 = vpack.c.bf16 %v3896_v19, %v3894_v22 }
 0x333   : > { %v3919_v31 = vpack.c.bf16 %v3897_v11, %v3895_v0  ;;  %v3849_v32 = vpop.f32.mrb[56].mxu0 }
 0x334   : > { %v4882_v36 = vadd.f32 %v3849_v32, %v7232_v3  ;;  %v3851_v2 = vpop.f32.mrb[57].mxu0 }
 0x335   : > { %v4883_v13 = vadd.f32 %v3851_v2, %v7235_v63  ;;  %v3853_v28 = vpop.f32.mrb[58].mxu0  ;;  %4125 = vmatprep.mubr.bf16.mxu1 %v3919_v31 }
 0x336   : > { %v4884_v42 = vadd.f32 %v3853_v28, %v7232_v3  ;;  %v3855_v59 = vpop.f32.mrb[59].mxu0  ;;  %4126 = vmatmul.mubr.bf16.gmra.mrb[52].mxu1 %v3918_v30  ;;  %v3898_v55 = vmax.f32 %v4882_v36, 0.0  ;;  %v5591_v30 = vmov 0.0  }
 0x337   : > { %v4885_v40 = vadd.f32 %v3855_v59, %v7235_v63  ;;  %v3899_v47 = vmax.f32 %v4883_v13, 0.0  ;;  %4838 = vmatprep.subr.bf16.mxu1 %v5591_v30 }
 0x338   : > { %v3900_v33 = vmax.f32 %v4884_v42, 0.0 }
 0x339   : > { %v3901_v43 = vmax.f32 %v4885_v40, 0.0 }
 0x33a   : > { %v3920_v49 = vpack.c.bf16 %v3900_v33, %v3898_v55 }
 0x33b   : > { %v3921_v34 = vpack.c.bf16 %v3901_v43, %v3899_v47  ;;  %v3859_v50 = vpop.f32.mrb[60].mxu0 }
 0x33c   : > { %v4886_v4 = vadd.f32 %v3859_v50, %v7232_v3  ;;  %v3861_v17 = vpop.f32.mrb[61].mxu0 }
 0x33d   : > { %v4887_v46 = vadd.f32 %v3861_v17, %v7235_v63  ;;  %v3863_v7 = vpop.f32.mrb[62].mxu0  ;;  %4133 = vmatprep.mubr.bf16.mxu1 %v3921_v34 }
 0x33e   : > { %v4888_v54 = vadd.f32 %v3863_v7, %v7232_v3  ;;  %v3865_v51 = vpop.f32.mrb[63].mxu0  ;;  %4134 = vmatmul.mubr.bf16.gmra.mrb[56].mxu1 %v3920_v49  ;;  %v3902_v44 = vmax.f32 %v4886_v4, 0.0 }
 0x33f   : > { %v4889_v48 = vadd.f32 %v3865_v51, %v7235_v63  ;;  %v3903_v53 = vmax.f32 %v4887_v46, 0.0 }
 0x340   : > { %v3904_v41 = vmax.f32 %v4888_v54, 0.0 }
 0x341   : > { %v3905_v60 = vmax.f32 %v4889_v48, 0.0 }
 0x342   : > { %v3922_v61 = vpack.c.bf16 %v3904_v41, %v3902_v44 }
 0x343   : > { %v3923_v62 = vpack.c.bf16 %v3905_v60, %v3903_v53  ;;  %v3869_v38 = vpop.f32.mrb[64].mxu0 }
 0x344   : > { %v4890_v12 = vadd.f32 %v3869_v38, %v7232_v3  ;;  %v3871_v5 = vpop.f32.mrb[65].mxu0 }
 0x345   : > { %v4891_v9 = vadd.f32 %v3871_v5, %v7235_v63  ;;  %v3873_v58 = vpop.f32.mrb[66].mxu0  ;;  %4141 = vmatprep.mubr.bf16.mxu1 %v3923_v62 }
 0x346   : > { %v4892_v16 = vadd.f32 %v3873_v58, %v7232_v3  ;;  %v3875_v27 = vpop.f32.mrb[67].mxu0  ;;  %4142 = vmatmul.mubr.bf16.gmra.mrb[60].mxu1 %v3922_v61  ;;  %v3906_v1 = vmax.f32 %v4890_v12, 0.0 }
 0x347   : > { %v4893_v6 = vadd.f32 %v3875_v27, %v7235_v63  ;;  %v3907_v14 = vmax.f32 %v4891_v9, 0.0 }
 0x348   : > { %v3908_v15 = vmax.f32 %v4892_v16, 0.0 }
 0x349   : > { %v3909_v10 = vmax.f32 %v4893_v6, 0.0 }
 0x34a   : > { %v3924_v21 = vpack.c.bf16 %v3908_v15, %v3906_v1 }
 0x34b   : > { %v3925_v18 = vpack.c.bf16 %v3909_v10, %v3907_v14 }
 0x34d   : > { %4149 = vmatprep.mubr.bf16.mxu1 %v3925_v18 }
 0x34e   : > { %4150 = vmatmul.mubr.bf16.gmra.mrb[64].mxu1 %v3924_v21 }
 0x34f   : > { %4854 = vmatprep.mubr.msk.bf16.mxu1 %vm5592_vm1, %v5591_v30 }
 0x3e9   : > { %v4781_v23 = vpop.f32.mrb[36].mxu1 }
 0x3ea   : > { %v4782_v26 = vpop.f32.mrb[37].mxu1 }
 0x3eb   : > { %v4783_v3 = vadd.f32 %v4782_v26, %v4781_v23  ;;  %v4784_v8 = vpop.f32.mrb[38].mxu1 }
 0x3ec   : > { %v4785_v29 = vpop.f32.mrb[39].mxu1 }
 0x3ed   : > { %v4096_v63 = vadd.f32 %v4783_v3, %v7272_v24  ;;  %v4786_v35 = vadd.f32 %v4785_v29, %v4784_v8 }
 0x3ef   : > { %v4158_v52 = vmax.f32 %v4096_v63, 0.0  ;;  %v4099_v20 = vadd.f32 %v4786_v35, %v7272_v24 }
 0x3f1   : > { %v4787_v39 = vpop.f32.mrb[40].mxu1  ;;  %4174 = vxpose.xlu1.b32.start [1/16] %v4158_v52, 128  ;;  %v4159_v37 = vmax.f32 %v4099_v20, 0.0 }
 0x3f2   : > { %v4788_v57 = vpop.f32.mrb[41].mxu1 }
 0x3f3   : > { %v4789_v25 = vadd.f32 %v4788_v57, %v4787_v39  ;;  %v4790_v56 = vpop.f32.mrb[42].mxu1 }
 0x3f4   : > { %v4791_v45 = vpop.f32.mrb[43].mxu1 }
 0x3f5   : > { %v4104_v22 = vadd.f32 %v4789_v25, %v7272_v24  ;;  %v4792_v19 = vadd.f32 %v4791_v45, %v4790_v56  ;;  %4175 = vxpose.xlu1.b32.cont [2/16] %v4159_v37, 128 }
 0x3f7   : > { %v4160_v0 = vmax.f32 %v4104_v22, 0.0  ;;  %v4107_v11 = vadd.f32 %v4792_v19, %v7272_v24 }
 0x3f9   : > { %v4793_v31 = vpop.f32.mrb[44].mxu1  ;;  %4176 = vxpose.xlu1.b32.cont [3/16] %v4160_v0, 128  ;;  %v4161_v36 = vmax.f32 %v4107_v11, 0.0  ;;  %v4215_v11 = vld [vmem:[%s7340_s12] sm:$0x3] }
 0x3fa   : > { %v4794_v32 = vpop.f32.mrb[45].mxu1  ;;  %4218 = vperm.xlu0 %5023, %v4215_v11  }
 0x3fb   : > { %v4795_v2 = vadd.f32 %v4794_v32, %v4793_v31  ;;  %v4796_v13 = vpop.f32.mrb[46].mxu1 }
 0x3fc   : > { %v4797_v28 = vpop.f32.mrb[47].mxu1 }
 0x3fd   : > { %v4112_v42 = vadd.f32 %v4795_v2, %v7272_v24  ;;  %v4798_v59 = vadd.f32 %v4797_v28, %v4796_v13  ;;  %4177 = vxpose.xlu1.b32.cont [4/16] %v4161_v36, 128 }
 0x3ff   : > { %v4162_v40 = vmax.f32 %v4112_v42, 0.0  ;;  %v4115_v55 = vadd.f32 %v4798_v59, %v7272_v24 }
 0x401   : > { %v4799_v33 = vpop.f32.mrb[48].mxu1  ;;  %4178 = vxpose.xlu1.b32.cont [5/16] %v4162_v40, 128  ;;  %v4163_v43 = vmax.f32 %v4115_v55, 0.0 }
 0x402   : > { %v4800_v47 = vpop.f32.mrb[49].mxu1 }
 0x403   : > { %v4801_v49 = vadd.f32 %v4800_v47, %v4799_v33  ;;  %v4802_v34 = vpop.f32.mrb[50].mxu1 }
 0x404   : > { %v4803_v50 = vpop.f32.mrb[51].mxu1 }
 0x405   : > { %v4120_v4 = vadd.f32 %v4801_v49, %v7272_v24  ;;  %v4804_v17 = vadd.f32 %v4803_v50, %v4802_v34  ;;  %4179 = vxpose.xlu1.b32.cont [6/16] %v4163_v43, 128 }
 0x407   : > { %v4164_v46 = vmax.f32 %v4120_v4, 0.0  ;;  %v4123_v7 = vadd.f32 %v4804_v17, %v7272_v24 }
 0x409   : > { %v4805_v54 = vpop.f32.mrb[52].mxu1  ;;  %4180 = vxpose.xlu1.b32.cont [7/16] %v4164_v46, 128  ;;  %v4165_v48 = vmax.f32 %v4123_v7, 0.0 }
 0x40a   : > { %v4806_v51 = vpop.f32.mrb[53].mxu1 }
 0x40b   : > { %v4807_v44 = vadd.f32 %v4806_v51, %v4805_v54  ;;  %v4808_v41 = vpop.f32.mrb[54].mxu1 }
 0x40c   : > { %v4809_v53 = vpop.f32.mrb[55].mxu1 }
 0x40d   : > { %v4128_v60 = vadd.f32 %v4807_v44, %v7272_v24  ;;  %v4810_v61 = vadd.f32 %v4809_v53, %v4808_v41  ;;  %4181 = vxpose.xlu1.b32.cont [8/16] %v4165_v48, 128  ;;  %v4214_v44 = vld [vmem:[%s7339_s11] sm:$0x1] }
 0x40f   : > { %v4166_v62 = vmax.f32 %v4128_v60, 0.0  ;;  %v4131_v38 = vadd.f32 %v4810_v61, %v7272_v24 }
 0x411   : > { %v4811_v12 = vpop.f32.mrb[56].mxu1  ;;  %4182 = vxpose.xlu1.b32.cont [9/16] %v4166_v62, 128  ;;  %v4167_v9 = vmax.f32 %v4131_v38, 0.0 }
 0x412   : > { %v4812_v5 = vpop.f32.mrb[57].mxu1 }
 0x413   : > { %v4813_v58 = vadd.f32 %v4812_v5, %v4811_v12  ;;  %v4814_v16 = vpop.f32.mrb[58].mxu1 }
 0x414   : > { %v4815_v27 = vpop.f32.mrb[59].mxu1 }
 0x415   : > { %v4136_v6 = vadd.f32 %v4813_v58, %v7272_v24  ;;  %v4816_v1 = vadd.f32 %v4815_v27, %v4814_v16  ;;  %4183 = vxpose.xlu1.b32.cont [10/16] %v4167_v9, 128 }
 0x417   : > { %v4168_v15 = vmax.f32 %v4136_v6, 0.0  ;;  %v4139_v14 = vadd.f32 %v4816_v1, %v7272_v24 }
 0x419   : > { %v4817_v10 = vpop.f32.mrb[60].mxu1  ;;  %4184 = vxpose.xlu1.b32.cont [11/16] %v4168_v15, 128  ;;  %v4169_v18 = vmax.f32 %v4139_v14, 0.0 }
 0x41a   : > { %v4818_v21 = vpop.f32.mrb[61].mxu1 }
 0x41b   : > { %v4819_v23 = vadd.f32 %v4818_v21, %v4817_v10  ;;  %v4820_v26 = vpop.f32.mrb[62].mxu1 }
 0x41c   : > { %v4821_v3 = vpop.f32.mrb[63].mxu1 }
 0x41d   : > { %v4144_v8 = vadd.f32 %v4819_v23, %v7272_v24  ;;  %v4822_v29 = vadd.f32 %v4821_v3, %v4820_v26  ;;  %4185 = vxpose.xlu1.b32.cont [12/16] %v4169_v18, 128 }
 0x41f   : > { %v4170_v63 = vmax.f32 %v4144_v8, 0.0  ;;  %v4147_v35 = vadd.f32 %v4822_v29, %v7272_v24 }
 0x421   : > { %v4823_v52 = vpop.f32.mrb[64].mxu1  ;;  %4186 = vxpose.xlu1.b32.cont [13/16] %v4170_v63, 128  ;;  %v4171_v39 = vmax.f32 %v4147_v35, 0.0 }
 0x422   : > { %v4824_v20 = vpop.f32.mrb[65].mxu1 }
 0x423   : > { %v4825_v57 = vadd.f32 %v4824_v20, %v4823_v52  ;;  %v4826_v37 = vpop.f32.mrb[66].mxu1 }
 0x424   : > { %v4827_v25 = vpop.f32.mrb[67].mxu1 }
 0x425   : > { %v4152_v56 = vadd.f32 %v4825_v57, %v7272_v24  ;;  %v4828_v45 = vadd.f32 %v4827_v25, %v4826_v37  ;;  %4187 = vxpose.xlu1.b32.cont [14/16] %v4171_v39, 128 }
 0x427   : > { %v4172_v22 = vmax.f32 %v4152_v56, 0.0  ;;  %v4155_v19 = vadd.f32 %v4828_v45, %v7272_v24 }
 0x429   : > { %4188 = vxpose.xlu1.b32.cont [15/16] %v4172_v22, 128  ;;  %v4173_v0 = vmax.f32 %v4155_v19, 0.0 }
 0x42d   : > { %4189 = vxpose.xlu1.b32.end [16/16] %v4173_v0, 128 }
 0x471   : > { %v4190_v31 = vpop.trf.xlu1 }
 0x475   : > { %v4191_v32 = vpop.trf.xlu1 }
 0x476   : > { %v4206_v36 = vpack.c.bf16 %v4191_v32, %v4190_v31 }
 0x478   : > { %4839 = vmatpush3.bf16.msra.mxu1 %v4206_v36 }
 0x479   : > { %v4192_v2 = vpop.trf.xlu1  ;;  %4840 = vmatprep.subr.bf16.mxu1 %v5591_v30  ;;  %v4219_v41 = vpop.permute.xlu0 %4218 }
 0x47d   : > { %v4193_v13 = vpop.trf.xlu1 }
 0x47e   : > { %v4207_v24 = vpack.c.bf16 %v4193_v13, %v4192_v2 }
 0x480   : > { %4841 = vmatpush3.bf16.msra.mxu1 %v4207_v24 }
 0x481   : > { %v4194_v28 = vpop.trf.xlu1  ;;  %4842 = vmatprep.subr.bf16.mxu1 %v5591_v30 }
 0x485   : > { %v4195_v42 = vpop.trf.xlu1 }
 0x486   : > { %v4208_v59 = vpack.c.bf16 %v4195_v42, %v4194_v28 }
 0x488   : > { %4843 = vmatpush3.bf16.msra.mxu1 %v4208_v59 }
 0x489   : > { %v4196_v40 = vpop.trf.xlu1  ;;  %4844 = vmatprep.subr.bf16.mxu1 %v5591_v30 }
 0x48d   : > { %v4197_v55 = vpop.trf.xlu1 }
 0x48e   : > { %v4209_v33 = vpack.c.bf16 %v4197_v55, %v4196_v40 }
 0x490   : > { %4845 = vmatpush3.bf16.msra.mxu1 %v4209_v33 }
 0x491   : > { %v4198_v47 = vpop.trf.xlu1  ;;  %4846 = vmatprep.subr.bf16.mxu1 %v5591_v30 }
 0x495   : > { %v4199_v43 = vpop.trf.xlu1 }
 0x496   : > { %v4210_v49 = vpack.c.bf16 %v4199_v43, %v4198_v47 }
 0x498   : > { %4847 = vmatpush3.bf16.msra.mxu1 %v4210_v49 }
 0x499   : > { %v4200_v34 = vpop.trf.xlu1  ;;  %4848 = vmatprep.subr.bf16.mxu1 %v5591_v30 }
 0x49d   : > { %v4201_v50 = vpop.trf.xlu1 }
 0x49e   : > { %v4211_v4 = vpack.c.bf16 %v4201_v50, %v4200_v34 }
 0x4a0   : > { %4849 = vmatpush3.bf16.msra.mxu1 %v4211_v4 }
 0x4a1   : > { %v4202_v17 = vpop.trf.xlu1  ;;  %4850 = vmatprep.subr.bf16.mxu1 %v5591_v30 }
 0x4a5   : > { %v4203_v46 = vpop.trf.xlu1 }
 0x4a6   : > { %v4212_v7 = vpack.c.bf16 %v4203_v46, %v4202_v17 }
 0x4a8   : > { %4851 = vmatpush3.bf16.msra.mxu1 %v4212_v7 }
 0x4a9   : > { %v4204_v54 = vpop.trf.xlu1  ;;  %4852 = vmatprep.subr.bf16.mxu1 %v5591_v30 }
 0x4ad   : > { %v4205_v51 = vpop.trf.xlu1 }
 0x4ae   : > { %v4213_v48 = vpack.c.bf16 %v4205_v51, %v4204_v54 }
 0x4b0   : > { %4853 = vmatpush3.bf16.msra.mxu1 %v4213_v48 }
 0x4b3   : > { %4855 = vmatmul.mubr.bf16.vlgmr.msra.gmra.mrb[68].mxu1 %v4214_v44 }
 0x586   : > { %v4255_v53 = vpop.f32.mrb[68].mxu1 }
 0x587   : > { %v4256_v60 = vadd.f32 %v4255_v53, %v4219_v41  ;;  %v4856_v61 = vpop.f32.mrb[69].mxu1 }
 0x588   : > { %v4258_v62 = vpop.f32.mrb[70].mxu1 }
 0x589   : > { %v4262_v38 = vsel %vm4261_vm2, %v4256_v60, -inf  ;;  %v4857_v12 = vpop.f32.mrb[71].mxu1 }
 0x58a   : > { %v4263_v5 = vrot.slane %v4262_v38, 4 }
 0x58c   : > { %v4264_v9 = vmax.f32 %v4262_v38, %v4263_v5 }
 0x58e   : > { %v4265_v30 = vrot.slane %v4264_v9, 2 }
 0x590   : > { %v4266_v58 = vmax.f32 %v4264_v9, %v4265_v30 }
 0x592   : > { %v4267_v16 = vrot.slane %v4266_v58, 1 }
 0x594   : > { %v4268_v27 = vmax.f32 %v4266_v58, %v4267_v16 }
 0x596   : > { %v4269_v6 = vsub.f32 %v4256_v60, %v4268_v27 }
 0x598   : > { %v4270_v1 = vmul.f32 1.442695, %v4269_v6 }
 0x59a   : > { %5544 = vpow2.f32 %v4270_v1 }
 0x5a4   : > { %v5545_v15 = vpop.eup %5544 }
 0x5a5   : > { %v4272_v14 = vsel %vm4261_vm2, %v5545_v15, 0.0 }
 0x5a6   : > { %v4273_v10 = vrot.slane %v4272_v14, 4 }
 0x5a8   : > { %v4274_v21 = vadd.f32 %v4273_v10, %v4272_v14 }
 0x5aa   : > { %v4275_v18 = vrot.slane %v4274_v21, 2 }
 0x5ac   : > { %v4276_v23 = vadd.f32 %v4275_v18, %v4274_v21 }
 0x5ae   : > { %v4277_v26 = vrot.slane %v4276_v23, 1 }
 0x5b0   : > { %v4278_v3 = vadd.f32 %v4277_v26, %v4276_v23 }
 0x5b2   : > { %5546 = vlog2.f32 %v4278_v3 }
 0x5bc   : > { %v5547_v8 = vpop.eup %5546 }
 0x5bd   : > { %v4280_v29 = vmul.f32 0.6931472, %v5547_v8 }
 0x5bf   : > { %v4281_v63 = vadd.f32 %v4280_v29, %v4268_v27 }
 0x5c1   : > { %v4282_v35 = vsub.f32 %v4256_v60, %v4281_v63 }
 0x5c3   : > { %4283 = vst [vmem:[%s493_s14] sm:$0x3] %v4282_v35 }
 0x5c4 PF: > { %s23_s29 = sadd.s32 1, %s5586_s29   ;;  %s7347_s26 = sld [smem:[#allocation2_spill]] }
 0x5c5   : > { %p20_p8 = scmp.ge.s32.totalorder %s23_s29, 10   ;;  %s7348_s19 = sld [smem:[#allocation3_spill]] }
 0x5c6   : > { %s7349_s28 = sld [smem:[#allocation4_spill]]  ;;  %s7350_s25 = smov %s5578_s27 }
 0x5c7   :  { %22 = sbr.rel (!%p20_p8) target bundleno = 3 (0x3), region = 105 }
 0x5cb   : > { %s7351_s27 = smov %s7348_s19 }

</bundles_post_ra>
